<compile_context>
chip_gen: v5e
topology: v5e:2x2
jax: 0.10.0
libtpu: 0.0.40
codegen_flags: <defaults>
</compile_context>

<pallas_src>
import jax
import jax.numpy as jnp
from jax.experimental import pallas as pl
from jax.experimental.pallas import tpu as pltpu

# ----- problem constants (shapes consistent with the module) -----
K = 4                         # users / streams
M = 8                         # BS antennas
N_HIDDEN = 200                # true hidden-layer width (from the module)
N_HIDDEN_PAD = 256            # zero-padded to a lane multiple (identical math)
N_LAYOUTS = 2                 # batch of channel layouts
LK = N_LAYOUTS * K            # fused (layout, user) row axis -> dense 8-sublane tiles
N_REALIZATIONS = 1000         # module value
R_PAD = 1024                  # realizations padded to a lane multiple
R_TILE = 512                  # realizations per grid step (parallel axis)
NUM_STEPS = R_PAD // R_TILE   # = 2
RCI_BF_ALPHA = 0.1
TRANSMIT_POWER_TOTAL = 1.0
NOISE_POWER = 1.0
ESTIMATION_ERROR_VARIANCE = 0.05


# =====================================================================
# Fused Pallas kernel (one grid step = one 512-realization chunk):
#   1) power-loading MLP (fc1..fc4 + ReLU, fc5 + softmax) on (L*K)-replicated input
#   2) SINR computation over the chunk's realizations (lane axis = R):
#        HB[lk,j,r] = sum_m conj(H)^T[lk,m,r] * B[l,m,j]          (complex)
#        numer[lk,r] = |HB[lk,k,r]|^2 p_k ; den = sum_j |HB[lk,j,r]|^2 p_j - numer + N0
#        sinr_out[lk,r] = numer / den           (min over users + log1p in wrapper)
# =====================================================================
def _robust_net_kernel(x_ref, w1, b1, w2, b2, w3, b3, w4, b4, w5, b5,
                       hhr_ref, hhi_ref, brt_ref, bit_ref, diag_ref,
                       pc_ref, sinr_ref):
    # ---------------- power-loading MLP (bf16 MXU, f32 accumulate) ----------------
    def lin(h, w_ref, b_ref):
        return jnp.dot(h.astype(jnp.bfloat16), w_ref[...],
                       preferred_element_type=jnp.float32) + b_ref[...]

    h = jnp.maximum(lin(x_ref[...], w1, b1), 0.0)
    h = jnp.maximum(lin(h, w2, b2), 0.0)
    h = jnp.maximum(lin(h, w3, b3), 0.0)
    h = jnp.maximum(lin(h, w4, b4), 0.0)
    logits = lin(h, w5, b5)                                    # (LK, K)
    mx = jnp.max(logits, axis=-1, keepdims=True)
    e = jnp.exp(logits - mx)
    pc = e / jnp.sum(e, axis=-1, keepdims=True)                # softmax over users
    pc_ref[...] = pc                                           # per-step pc output

    p_tab = pc * TRANSMIT_POWER_TOTAL                          # p_tab[l*K+k, j] = p[l, j]
    p_diag = p_tab * diag_ref[...]                             # only column j == row's user k

    brt = brt_ref[...]                                         # (M, LK, K)  B.real (repeated over k)
    bit = bit_ref[...]                                         # (M, LK, K)  B.imag

    # ---------------- SINR over this realization chunk ----------------
    total = None                                               # sum_j |HB[:,j]|^2 p_j
    numer = None                                               # |HB[:,k]|^2 p_k  (diagonal)
    for j in range(K):                                         # unrolled, K = 4
        cr = None
        ci = None
        for m in range(M):                                     # unrolled, M = 8: VPU FMA, no XLU reduce
            hrm = hhr_ref[m]                                   # (LK, R_TILE)  conj(H)^T real
            him = hhi_ref[m]                                   # (LK, R_TILE)  conj(H)^T imag
            br_c = brt[m, :, j:j + 1]                          # (LK, 1)
            bi_c = bit[m, :, j:j + 1]
            t_re = hrm * br_c - him * bi_c
            t_im = hrm * bi_c + him * br_c
            cr = t_re if cr is None else cr + t_re
            ci = t_im if ci is None else ci + t_im
        a2 = cr * cr + ci * ci                                 # |HB[:, j]|^2   (LK, R_TILE)
        tj = a2 * p_tab[:, j:j + 1]
        nj = a2 * p_diag[:, j:j + 1]
        total = tj if total is None else total + tj
        numer = nj if numer is None else numer + nj

    den = total - numer + NOISE_POWER
    sinr_ref[...] = numer / den                                # (LK, R_TILE), lane-dense


def robust_net_pallas(x_rep, params, hh_re, hh_im, brt, bit, diag):
    const2 = lambda r: (0, 0)
    const3 = lambda r: (0, 0, 0)

    operands = [x_rep]
    in_specs = [pl.BlockSpec(x_rep.shape, const2)]
    for (w, b) in params:
        operands += [w, b]
        in_specs += [pl.BlockSpec(w.shape, const2), pl.BlockSpec(b.shape, const2)]
    operands += [hh_re, hh_im, brt, bit, diag]
    in_specs += [pl.BlockSpec((M, LK, R_TILE), lambda r: (0, 0, r)),
                 pl.BlockSpec((M, LK, R_TILE), lambda r: (0, 0, r)),
                 pl.BlockSpec(brt.shape, const3),
                 pl.BlockSpec(bit.shape, const3),
                 pl.BlockSpec(diag.shape, const2)]

    out_shape = (jax.ShapeDtypeStruct((NUM_STEPS, LK, K), jnp.float32),   # pc per step
                 jax.ShapeDtypeStruct((LK, R_PAD), jnp.float32))          # per-user SINR
    out_specs = (pl.BlockSpec((None, LK, K), lambda r: (r, 0, 0)),
                 pl.BlockSpec((LK, R_TILE), lambda r: (0, r)))

    return pl.pallas_call(
        _robust_net_kernel,
        out_shape=out_shape,
        grid=(NUM_STEPS,),                                # realization chunks
        in_specs=in_specs,
        out_specs=out_specs,
        compiler_params=pltpu.CompilerParams(
            dimension_semantics=("parallel",)),           # both TensorCores on v7x
    )(*operands)


# =====================================================================
# Glue (plain JAX): beamformer, effective channel, noise injection,
#                   min-over-users + log1p + quantile objective.
# =====================================================================
def _complex_inv(G):
    # inv(A + iB) via the equivalent real 2Kx2K block system (TPU-safe).
    A, Bm = G.real, G.imag
    top = jnp.concatenate([A, -Bm], axis=-1)
    bot = jnp.concatenate([Bm, A], axis=-1)
    M2 = jnp.concatenate([top, bot], axis=-2)
    M2i = jnp.linalg.inv(M2)
    return M2i[..., :K, :K] + 1j * M2i[..., K:, :K]


def robust_net_forward(H_est, params, key):
    L = H_est.shape[0]

    # --- get_beamformer ---
    Hh = jnp.conj(jnp.swapaxes(H_est, 1, 2))                              # (L, K, M)
    G = jnp.einsum('lkm,lmj->lkj', Hh, H_est) + RCI_BF_ALPHA * jnp.eye(K, dtype=H_est.dtype)
    Bf = jnp.einsum('lmk,lkj->lmj', H_est, _complex_inv(G))               # (L, M, K)
    Bf = Bf / jnp.linalg.norm(Bf, axis=1, keepdims=True)

    # --- MLP input (torch.view_as_real interleaving), replicated per user row ---
    H_eff = jnp.einsum('lkm,lmj->lkj', Hh, Bf)                            # (L, K, K)
    x = jnp.stack([H_eff.real, H_eff.imag], axis=-1).reshape(L, 2 * K * K).astype(jnp.float32)
    x_rep = jnp.repeat(x, K, axis=0)                                      # (L*K, 2KK)

    # --- inject_uncertainties: antenna axis leading (pages), realizations last (lanes) ---
    k1, k2 = jax.random.split(key)
    scale = (ESTIMATION_ERROR_VARIANCE / 2.0) ** 0.5
    e_re = jax.random.normal(k1, (M, L, K, R_PAD), jnp.float32) * scale
    e_im = jax.random.normal(k2, (M, L, K, R_PAD), jnp.float32) * scale
    He_re = jnp.transpose(H_est.real, (1, 0, 2)).astype(jnp.float32)      # (M, L, K)
    He_im = jnp.transpose(H_est.imag, (1, 0, 2)).astype(jnp.float32)
    hh_re = (He_re[..., None] + e_re).reshape(M, L * K, R_PAD)            # conj(H)^T .real
    hh_im = (-(He_im[..., None] + e_im)).reshape(M, L * K, R_PAD)         # conj(H)^T .imag

    # --- beamformer tables repeated over users to match the fused (l,k) row axis ---
    Bt_re = jnp.transpose(Bf.real, (1, 0, 2)).astype(jnp.float32)         # (M, L, K)
    Bt_im = jnp.transpose(Bf.imag, (1, 0, 2)).astype(jnp.float32)
    brt = jnp.broadcast_to(Bt_re[:, :, None, :], (M, L, K, K)).reshape(M, L * K, K)
    bit = jnp.broadcast_to(Bt_im[:, :, None, :], (M, L, K, K)).reshape(M, L * K, K)

    diag = jnp.tile(jnp.eye(K, dtype=jnp.float32), (L, 1))                # (L*K, K)

    # --- fused power loading + SINR kernel ---
    pc_steps, sinr = robust_net_pallas(x_rep, params, hh_re, hh_im, brt, bit, diag)
    pc = pc_steps[0, ::K, :]                                              # (L, K)

    # --- min over users, log1p (hoisted: log monotone), 5%-quantile over 1000 real. ---
    sinr_min = jnp.min(sinr.reshape(L, K, R_PAD), axis=1)[:, :N_REALIZATIONS]
    min_rates = jnp.log1p(sinr_min)
    objectives = jnp.quantile(min_rates, 0.05, axis=1)
    return objectives.mean(), pc


def init_params(key):
    # torch.nn.Linear-style init at true width, zero-pad hidden 200 -> 256,
    # weights cast to bf16 (biases stay f32).
    true_dims = [(2 * K * K, N_HIDDEN), (N_HIDDEN, N_HIDDEN), (N_HIDDEN, N_HIDDEN),
                 (N_HIDDEN, N_HIDDEN), (N_HIDDEN, K)]
    pad_dims = [(2 * K * K, N_HIDDEN_PAD), (N_HIDDEN_PAD, N_HIDDEN_PAD),
                (N_HIDDEN_PAD, N_HIDDEN_PAD), (N_HIDDEN_PAD, N_HIDDEN_PAD),
                (N_HIDDEN_PAD, K)]
    params = []
    for (fi, fo), (pi, po) in zip(true_dims, pad_dims):
        key, kw, kb = jax.random.split(key, 3)
        bound = 1.0 / (fi ** 0.5)
        w = jax.random.uniform(kw, (fi, fo), jnp.float32, -bound, bound)
        b = jax.random.uniform(kb, (1, fo), jnp.float32, -bound, bound)
        w_pad = jnp.zeros((pi, po), jnp.float32).at[:fi, :fo].set(w).astype(jnp.bfloat16)
        b_pad = jnp.zeros((1, po), jnp.float32).at[:, :fo].set(b)
        params.append((w_pad, b_pad))
    return params


if __name__ == "__main__":
    key = jax.random.PRNGKey(0)
    kH, kp, knoise = jax.random.split(key, 3)
    kr, ki = jax.random.split(kH)
    H_est = ((jax.random.normal(kr, (N_LAYOUTS, M, K), jnp.float32)
              + 1j * jax.random.normal(ki, (N_LAYOUTS, M, K), jnp.float32))
             / jnp.sqrt(2.0)).astype(jnp.complex64)
    params = init_params(kp)

    obj, pc = jax.jit(robust_net_forward)(H_est, params, knoise)
    jax.block_until_ready((obj, pc))
    assert pc.shape == (N_LAYOUTS, K)
    assert obj.shape == ()
    print("KERNEL_OK")
</pallas_src>

<mosaic_0001>
module attributes {stable_mosaic.version = 11 : i64} {
  func.func @_robust_net_kernel(%arg0: i32, %arg1: memref<8x32xf32, #tpu.memory_space<vmem>>, %arg2: memref<32x256xbf16, #tpu.memory_space<vmem>>, %arg3: memref<1x256xf32, #tpu.memory_space<vmem>>, %arg4: memref<256x256xbf16, #tpu.memory_space<vmem>>, %arg5: memref<1x256xf32, #tpu.memory_space<vmem>>, %arg6: memref<256x256xbf16, #tpu.memory_space<vmem>>, %arg7: memref<1x256xf32, #tpu.memory_space<vmem>>, %arg8: memref<256x256xbf16, #tpu.memory_space<vmem>>, %arg9: memref<1x256xf32, #tpu.memory_space<vmem>>, %arg10: memref<256x4xbf16, #tpu.memory_space<vmem>>, %arg11: memref<1x4xf32, #tpu.memory_space<vmem>>, %arg12: memref<8x8x512xf32, #tpu.memory_space<vmem>>, %arg13: memref<8x8x512xf32, #tpu.memory_space<vmem>>, %arg14: memref<8x8x4xf32, #tpu.memory_space<vmem>>, %arg15: memref<8x8x4xf32, #tpu.memory_space<vmem>>, %arg16: memref<8x4xf32, #tpu.memory_space<vmem>>, %arg17: memref<1x8x4xf32, #tpu.memory_space<vmem>>, %arg18: memref<8x512xf32, #tpu.memory_space<vmem>>) attributes {dimension_semantics = [#tpu.dimension_semantics<parallel>], iteration_bounds = array<i64: 2>, scalar_prefetch = 0 : i64, scratch_operands = 0 : i64, tpu.core_type = #tpu.core_type<tc>, window_params = [{pipeline_mode = #tpu.pipeline_mode<synchronous>, transform_indices = @transform_0, window_bounds = array<i64: 8, 32>}, {pipeline_mode = #tpu.pipeline_mode<synchronous>, transform_indices = @transform_1, window_bounds = array<i64: 32, 256>}, {pipeline_mode = #tpu.pipeline_mode<synchronous>, transform_indices = @transform_2, window_bounds = array<i64: 1, 256>}, {pipeline_mode = #tpu.pipeline_mode<synchronous>, transform_indices = @transform_3, window_bounds = array<i64: 256, 256>}, {pipeline_mode = #tpu.pipeline_mode<synchronous>, transform_indices = @transform_4, window_bounds = array<i64: 1, 256>}, {pipeline_mode = #tpu.pipeline_mode<synchronous>, transform_indices = @transform_5, window_bounds = array<i64: 256, 256>}, {pipeline_mode = #tpu.pipeline_mode<synchronous>, transform_indices = @transform_6, window_bounds = array<i64: 1, 256>}, {pipeline_mode = #tpu.pipeline_mode<synchronous>, transform_indices = @transform_7, window_bounds = array<i64: 256, 256>}, {pipeline_mode = #tpu.pipeline_mode<synchronous>, transform_indices = @transform_8, window_bounds = array<i64: 1, 256>}, {pipeline_mode = #tpu.pipeline_mode<synchronous>, transform_indices = @transform_9, window_bounds = array<i64: 256, 4>}, {pipeline_mode = #tpu.pipeline_mode<synchronous>, transform_indices = @transform_10, window_bounds = array<i64: 1, 4>}, {transform_indices = @transform_11, window_bounds = array<i64: 8, 8, 512>}, {transform_indices = @transform_12, window_bounds = array<i64: 8, 8, 512>}, {pipeline_mode = #tpu.pipeline_mode<synchronous>, transform_indices = @transform_13, window_bounds = array<i64: 8, 8, 4>}, {pipeline_mode = #tpu.pipeline_mode<synchronous>, transform_indices = @transform_14, window_bounds = array<i64: 8, 8, 4>}, {pipeline_mode = #tpu.pipeline_mode<synchronous>, transform_indices = @transform_15, window_bounds = array<i64: 8, 4>}, {transform_indices = @transform_16, window_bounds = array<i64: 1, 8, 4>}, {transform_indices = @transform_17, window_bounds = array<i64: 8, 512>}]} {
    %c0 = arith.constant 0 : index
    %c0_0 = arith.constant 0 : index
    %0 = vector.load %arg1[%c0, %c0_0] : memref<8x32xf32, #tpu.memory_space<vmem>>, vector<8x32xf32>
    %1 = arith.truncf %0 : vector<8x32xf32> to vector<8x32xbf16>
    %c0_1 = arith.constant 0 : index
    %c0_2 = arith.constant 0 : index
    %2 = vector.load %arg2[%c0_1, %c0_2] : memref<32x256xbf16, #tpu.memory_space<vmem>>, vector<32x256xbf16>
    %cst = arith.constant dense<0.000000e+00> : vector<8x256xf32>
    %3 = tpu.matmul %1, %2, %cst {dimension_numbers = #tpu.dot_dimension_numbers<[1], [0], [0], [1], [0, 0, 1, 1], [], []>} : vector<8x32xbf16>, vector<32x256xbf16>, vector<8x256xf32> -> vector<8x256xf32>
    %c0_3 = arith.constant 0 : index
    %c0_4 = arith.constant 0 : index
    %4 = vector.load %arg3[%c0_3, %c0_4] : memref<1x256xf32, #tpu.memory_space<vmem>>, vector<1x256xf32>
    %5 = vector.broadcast %4 : vector<1x256xf32> to vector<8x256xf32>
    %6 = arith.addf %3, %5 : vector<8x256xf32>
    %cst_5 = arith.constant 0.000000e+00 : f32
    %7 = vector.broadcast %cst_5 : f32 to vector<8x256xf32>
    %8 = arith.maximumf %6, %7 : vector<8x256xf32>
    %9 = arith.truncf %8 : vector<8x256xf32> to vector<8x256xbf16>
    %c0_6 = arith.constant 0 : index
    %c0_7 = arith.constant 0 : index
    %10 = vector.load %arg4[%c0_6, %c0_7] : memref<256x256xbf16, #tpu.memory_space<vmem>>, vector<256x256xbf16>
    %cst_8 = arith.constant dense<0.000000e+00> : vector<8x256xf32>
    %11 = tpu.matmul %9, %10, %cst_8 {dimension_numbers = #tpu.dot_dimension_numbers<[1], [0], [0], [1], [0, 0, 1, 1], [], []>} : vector<8x256xbf16>, vector<256x256xbf16>, vector<8x256xf32> -> vector<8x256xf32>
    %c0_9 = arith.constant 0 : index
    %c0_10 = arith.constant 0 : index
    %12 = vector.load %arg5[%c0_9, %c0_10] : memref<1x256xf32, #tpu.memory_space<vmem>>, vector<1x256xf32>
    %13 = vector.broadcast %12 : vector<1x256xf32> to vector<8x256xf32>
    %14 = arith.addf %11, %13 : vector<8x256xf32>
    %cst_11 = arith.constant 0.000000e+00 : f32
    %15 = vector.broadcast %cst_11 : f32 to vector<8x256xf32>
    %16 = arith.maximumf %14, %15 : vector<8x256xf32>
    %17 = arith.truncf %16 : vector<8x256xf32> to vector<8x256xbf16>
    %c0_12 = arith.constant 0 : index
    %c0_13 = arith.constant 0 : index
    %18 = vector.load %arg6[%c0_12, %c0_13] : memref<256x256xbf16, #tpu.memory_space<vmem>>, vector<256x256xbf16>
    %cst_14 = arith.constant dense<0.000000e+00> : vector<8x256xf32>
    %19 = tpu.matmul %17, %18, %cst_14 {dimension_numbers = #tpu.dot_dimension_numbers<[1], [0], [0], [1], [0, 0, 1, 1], [], []>} : vector<8x256xbf16>, vector<256x256xbf16>, vector<8x256xf32> -> vector<8x256xf32>
    %c0_15 = arith.constant 0 : index
    %c0_16 = arith.constant 0 : index
    %20 = vector.load %arg7[%c0_15, %c0_16] : memref<1x256xf32, #tpu.memory_space<vmem>>, vector<1x256xf32>
    %21 = vector.broadcast %20 : vector<1x256xf32> to vector<8x256xf32>
    %22 = arith.addf %19, %21 : vector<8x256xf32>
    %cst_17 = arith.constant 0.000000e+00 : f32
    %23 = vector.broadcast %cst_17 : f32 to vector<8x256xf32>
    %24 = arith.maximumf %22, %23 : vector<8x256xf32>
    %25 = arith.truncf %24 : vector<8x256xf32> to vector<8x256xbf16>
    %c0_18 = arith.constant 0 : index
    %c0_19 = arith.constant 0 : index
    %26 = vector.load %arg8[%c0_18, %c0_19] : memref<256x256xbf16, #tpu.memory_space<vmem>>, vector<256x256xbf16>
    %cst_20 = arith.constant dense<0.000000e+00> : vector<8x256xf32>
    %27 = tpu.matmul %25, %26, %cst_20 {dimension_numbers = #tpu.dot_dimension_numbers<[1], [0], [0], [1], [0, 0, 1, 1], [], []>} : vector<8x256xbf16>, vector<256x256xbf16>, vector<8x256xf32> -> vector<8x256xf32>
    %c0_21 = arith.constant 0 : index
    %c0_22 = arith.constant 0 : index
    %28 = vector.load %arg9[%c0_21, %c0_22] : memref<1x256xf32, #tpu.memory_space<vmem>>, vector<1x256xf32>
    %29 = vector.broadcast %28 : vector<1x256xf32> to vector<8x256xf32>
    %30 = arith.addf %27, %29 : vector<8x256xf32>
    %cst_23 = arith.constant 0.000000e+00 : f32
    %31 = vector.broadcast %cst_23 : f32 to vector<8x256xf32>
    %32 = arith.maximumf %30, %31 : vector<8x256xf32>
    %33 = arith.truncf %32 : vector<8x256xf32> to vector<8x256xbf16>
    %c0_24 = arith.constant 0 : index
    %c0_25 = arith.constant 0 : index
    %34 = vector.load %arg10[%c0_24, %c0_25] : memref<256x4xbf16, #tpu.memory_space<vmem>>, vector<256x4xbf16>
    %cst_26 = arith.constant dense<0.000000e+00> : vector<8x4xf32>
    %35 = tpu.matmul %33, %34, %cst_26 {dimension_numbers = #tpu.dot_dimension_numbers<[1], [0], [0], [1], [0, 0, 1, 1], [], []>} : vector<8x256xbf16>, vector<256x4xbf16>, vector<8x4xf32> -> vector<8x4xf32>
    %c0_27 = arith.constant 0 : index
    %c0_28 = arith.constant 0 : index
    %36 = vector.load %arg11[%c0_27, %c0_28] : memref<1x4xf32, #tpu.memory_space<vmem>>, vector<1x4xf32>
    %37 = vector.broadcast %36 : vector<1x4xf32> to vector<8x4xf32>
    %38 = arith.addf %35, %37 : vector<8x4xf32>
    %cst_29 = arith.constant dense<0xFF800000> : vector<8xf32>
    %39 = vector.multi_reduction <maximumf>, %38, %cst_29 [1] : vector<8x4xf32> to vector<8xf32>
    %40 = vector.shape_cast %39 : vector<8xf32> to vector<8x1xf32>
    %41 = vector.broadcast %40 : vector<8x1xf32> to vector<8x4xf32>
    %42 = arith.subf %38, %41 : vector<8x4xf32>
    %43 = math.exp %42 : vector<8x4xf32>
    %cst_30 = arith.constant dense<0.000000e+00> : vector<8xf32>
    %44 = vector.multi_reduction <add>, %43, %cst_30 [1] : vector<8x4xf32> to vector<8xf32>
    %45 = vector.shape_cast %44 : vector<8xf32> to vector<8x1xf32>
    %46 = vector.broadcast %45 : vector<8x1xf32> to vector<8x4xf32>
    %47 = arith.divf %43, %46 : vector<8x4xf32>
    %c0_31 = arith.constant 0 : index
    %c0_32 = arith.constant 0 : index
    %c0_33 = arith.constant 0 : index
    %48 = vector.load %arg17[%c0_31, %c0_32, %c0_33] : memref<1x8x4xf32, #tpu.memory_space<vmem>>, vector<1x8x4xf32>
    %49 = vector.shape_cast %48 : vector<1x8x4xf32> to vector<8x4xf32>
    %50 = vector.shape_cast %47 : vector<8x4xf32> to vector<1x8x4xf32>
    tpu.vector_store %arg17[%c0_31, %c0_32, %c0_33], %50 {strides = array<i32>} : memref<1x8x4xf32, #tpu.memory_space<vmem>>, vector<1x8x4xf32>,
    %cst_34 = arith.constant 1.000000e+00 : f32
    %51 = vector.broadcast %cst_34 : f32 to vector<8x4xf32>
    %52 = arith.mulf %47, %51 : vector<8x4xf32>
    %c0_35 = arith.constant 0 : index
    %c0_36 = arith.constant 0 : index
    %53 = vector.load %arg16[%c0_35, %c0_36] : memref<8x4xf32, #tpu.memory_space<vmem>>, vector<8x4xf32>
    %54 = arith.mulf %52, %53 : vector<8x4xf32>
    %c0_37 = arith.constant 0 : index
    %c0_38 = arith.constant 0 : index
    %c0_39 = arith.constant 0 : index
    %55 = vector.load %arg14[%c0_37, %c0_38, %c0_39] : memref<8x8x4xf32, #tpu.memory_space<vmem>>, vector<8x8x4xf32>
    %c0_40 = arith.constant 0 : index
    %c0_41 = arith.constant 0 : index
    %c0_42 = arith.constant 0 : index
    %56 = vector.load %arg15[%c0_40, %c0_41, %c0_42] : memref<8x8x4xf32, #tpu.memory_space<vmem>>, vector<8x8x4xf32>
    %c0_43 = arith.constant 0 : index
    %c0_44 = arith.constant 0 : index
    %c0_45 = arith.constant 0 : index
    %57 = vector.load %arg12[%c0_43, %c0_44, %c0_45] : memref<8x8x512xf32, #tpu.memory_space<vmem>>, vector<1x8x512xf32>
    %58 = vector.shape_cast %57 : vector<1x8x512xf32> to vector<8x512xf32>
    %c0_46 = arith.constant 0 : index
    %c0_47 = arith.constant 0 : index
    %c0_48 = arith.constant 0 : index
    %59 = vector.load %arg13[%c0_46, %c0_47, %c0_48] : memref<8x8x512xf32, #tpu.memory_space<vmem>>, vector<1x8x512xf32>
    %60 = vector.shape_cast %59 : vector<1x8x512xf32> to vector<8x512xf32>
    %61 = vector.extract_strided_slice %55 {offsets = [0, 0, 0], sizes = [1, 8, 1], strides = [1, 1, 1]} : vector<8x8x4xf32> to vector<1x8x1xf32>
    %62 = vector.shape_cast %61 : vector<1x8x1xf32> to vector<8x1xf32>
    %63 = vector.extract_strided_slice %56 {offsets = [0, 0, 0], sizes = [1, 8, 1], strides = [1, 1, 1]} : vector<8x8x4xf32> to vector<1x8x1xf32>
    %64 = vector.shape_cast %63 : vector<1x8x1xf32> to vector<8x1xf32>
    %65 = vector.broadcast %62 : vector<8x1xf32> to vector<8x512xf32>
    %66 = arith.mulf %58, %65 : vector<8x512xf32>
    %67 = vector.broadcast %64 : vector<8x1xf32> to vector<8x512xf32>
    %68 = arith.mulf %60, %67 : vector<8x512xf32>
    %69 = arith.subf %66, %68 : vector<8x512xf32>
    %70 = vector.broadcast %64 : vector<8x1xf32> to vector<8x512xf32>
    %71 = arith.mulf %58, %70 : vector<8x512xf32>
    %72 = vector.broadcast %62 : vector<8x1xf32> to vector<8x512xf32>
    %73 = arith.mulf %60, %72 : vector<8x512xf32>
    %74 = arith.addf %71, %73 : vector<8x512xf32>
    %c1 = arith.constant 1 : index
    %c0_49 = arith.constant 0 : index
    %c0_50 = arith.constant 0 : index
    %75 = vector.load %arg12[%c1, %c0_49, %c0_50] : memref<8x8x512xf32, #tpu.memory_space<vmem>>, vector<1x8x512xf32>
    %76 = vector.shape_cast %75 : vector<1x8x512xf32> to vector<8x512xf32>
    %c1_51 = arith.constant 1 : index
    %c0_52 = arith.constant 0 : index
    %c0_53 = arith.constant 0 : index
    %77 = vector.load %arg13[%c1_51, %c0_52, %c0_53] : memref<8x8x512xf32, #tpu.memory_space<vmem>>, vector<1x8x512xf32>
    %78 = vector.shape_cast %77 : vector<1x8x512xf32> to vector<8x512xf32>
    %79 = vector.extract_strided_slice %55 {offsets = [1, 0, 0], sizes = [1, 8, 1], strides = [1, 1, 1]} : vector<8x8x4xf32> to vector<1x8x1xf32>
    %80 = vector.shape_cast %79 : vector<1x8x1xf32> to vector<8x1xf32>
    %81 = vector.extract_strided_slice %56 {offsets = [1, 0, 0], sizes = [1, 8, 1], strides = [1, 1, 1]} : vector<8x8x4xf32> to vector<1x8x1xf32>
    %82 = vector.shape_cast %81 : vector<1x8x1xf32> to vector<8x1xf32>
    %83 = vector.broadcast %80 : vector<8x1xf32> to vector<8x512xf32>
    %84 = arith.mulf %76, %83 : vector<8x512xf32>
    %85 = vector.broadcast %82 : vector<8x1xf32> to vector<8x512xf32>
    %86 = arith.mulf %78, %85 : vector<8x512xf32>
    %87 = arith.subf %84, %86 : vector<8x512xf32>
    %88 = vector.broadcast %82 : vector<8x1xf32> to vector<8x512xf32>
    %89 = arith.mulf %76, %88 : vector<8x512xf32>
    %90 = vector.broadcast %80 : vector<8x1xf32> to vector<8x512xf32>
    %91 = arith.mulf %78, %90 : vector<8x512xf32>
    %92 = arith.addf %89, %91 : vector<8x512xf32>
    %93 = arith.addf %69, %87 : vector<8x512xf32>
    %94 = arith.addf %74, %92 : vector<8x512xf32>
    %c2 = arith.constant 2 : index
    %c0_54 = arith.constant 0 : index
    %c0_55 = arith.constant 0 : index
    %95 = vector.load %arg12[%c2, %c0_54, %c0_55] : memref<8x8x512xf32, #tpu.memory_space<vmem>>, vector<1x8x512xf32>
    %96 = vector.shape_cast %95 : vector<1x8x512xf32> to vector<8x512xf32>
    %c2_56 = arith.constant 2 : index
    %c0_57 = arith.constant 0 : index
    %c0_58 = arith.constant 0 : index
    %97 = vector.load %arg13[%c2_56, %c0_57, %c0_58] : memref<8x8x512xf32, #tpu.memory_space<vmem>>, vector<1x8x512xf32>
    %98 = vector.shape_cast %97 : vector<1x8x512xf32> to vector<8x512xf32>
    %99 = vector.extract_strided_slice %55 {offsets = [2, 0, 0], sizes = [1, 8, 1], strides = [1, 1, 1]} : vector<8x8x4xf32> to vector<1x8x1xf32>
    %100 = vector.shape_cast %99 : vector<1x8x1xf32> to vector<8x1xf32>
    %101 = vector.extract_strided_slice %56 {offsets = [2, 0, 0], sizes = [1, 8, 1], strides = [1, 1, 1]} : vector<8x8x4xf32> to vector<1x8x1xf32>
    %102 = vector.shape_cast %101 : vector<1x8x1xf32> to vector<8x1xf32>
    %103 = vector.broadcast %100 : vector<8x1xf32> to vector<8x512xf32>
    %104 = arith.mulf %96, %103 : vector<8x512xf32>
    %105 = vector.broadcast %102 : vector<8x1xf32> to vector<8x512xf32>
    %106 = arith.mulf %98, %105 : vector<8x512xf32>
    %107 = arith.subf %104, %106 : vector<8x512xf32>
    %108 = vector.broadcast %102 : vector<8x1xf32> to vector<8x512xf32>
    %109 = arith.mulf %96, %108 : vector<8x512xf32>
    %110 = vector.broadcast %100 : vector<8x1xf32> to vector<8x512xf32>
    %111 = arith.mulf %98, %110 : vector<8x512xf32>
    %112 = arith.addf %109, %111 : vector<8x512xf32>
    %113 = arith.addf %93, %107 : vector<8x512xf32>
    %114 = arith.addf %94, %112 : vector<8x512xf32>
    %c3 = arith.constant 3 : index
    %c0_59 = arith.constant 0 : index
    %c0_60 = arith.constant 0 : index
    %115 = vector.load %arg12[%c3, %c0_59, %c0_60] : memref<8x8x512xf32, #tpu.memory_space<vmem>>, vector<1x8x512xf32>
    %116 = vector.shape_cast %115 : vector<1x8x512xf32> to vector<8x512xf32>
    %c3_61 = arith.constant 3 : index
    %c0_62 = arith.constant 0 : index
    %c0_63 = arith.constant 0 : index
    %117 = vector.load %arg13[%c3_61, %c0_62, %c0_63] : memref<8x8x512xf32, #tpu.memory_space<vmem>>, vector<1x8x512xf32>
    %118 = vector.shape_cast %117 : vector<1x8x512xf32> to vector<8x512xf32>
    %119 = vector.extract_strided_slice %55 {offsets = [3, 0, 0], sizes = [1, 8, 1], strides = [1, 1, 1]} : vector<8x8x4xf32> to vector<1x8x1xf32>
    %120 = vector.shape_cast %119 : vector<1x8x1xf32> to vector<8x1xf32>
    %121 = vector.extract_strided_slice %56 {offsets = [3, 0, 0], sizes = [1, 8, 1], strides = [1, 1, 1]} : vector<8x8x4xf32> to vector<1x8x1xf32>
    %122 = vector.shape_cast %121 : vector<1x8x1xf32> to vector<8x1xf32>
    %123 = vector.broadcast %120 : vector<8x1xf32> to vector<8x512xf32>
    %124 = arith.mulf %116, %123 : vector<8x512xf32>
    %125 = vector.broadcast %122 : vector<8x1xf32> to vector<8x512xf32>
    %126 = arith.mulf %118, %125 : vector<8x512xf32>
    %127 = arith.subf %124, %126 : vector<8x512xf32>
    %128 = vector.broadcast %122 : vector<8x1xf32> to vector<8x512xf32>
    %129 = arith.mulf %116, %128 : vector<8x512xf32>
    %130 = vector.broadcast %120 : vector<8x1xf32> to vector<8x512xf32>
    %131 = arith.mulf %118, %130 : vector<8x512xf32>
    %132 = arith.addf %129, %131 : vector<8x512xf32>
    %133 = arith.addf %113, %127 : vector<8x512xf32>
    %134 = arith.addf %114, %132 : vector<8x512xf32>
    %c4 = arith.constant 4 : index
    %c0_64 = arith.constant 0 : index
    %c0_65 = arith.constant 0 : index
    %135 = vector.load %arg12[%c4, %c0_64, %c0_65] : memref<8x8x512xf32, #tpu.memory_space<vmem>>, vector<1x8x512xf32>
    %136 = vector.shape_cast %135 : vector<1x8x512xf32> to vector<8x512xf32>
    %c4_66 = arith.constant 4 : index
    %c0_67 = arith.constant 0 : index
    %c0_68 = arith.constant 0 : index
    %137 = vector.load %arg13[%c4_66, %c0_67, %c0_68] : memref<8x8x512xf32, #tpu.memory_space<vmem>>, vector<1x8x512xf32>
    %138 = vector.shape_cast %137 : vector<1x8x512xf32> to vector<8x512xf32>
    %139 = vector.extract_strided_slice %55 {offsets = [4, 0, 0], sizes = [1, 8, 1], strides = [1, 1, 1]} : vector<8x8x4xf32> to vector<1x8x1xf32>
    %140 = vector.shape_cast %139 : vector<1x8x1xf32> to vector<8x1xf32>
    %141 = vector.extract_strided_slice %56 {offsets = [4, 0, 0], sizes = [1, 8, 1], strides = [1, 1, 1]} : vector<8x8x4xf32> to vector<1x8x1xf32>
    %142 = vector.shape_cast %141 : vector<1x8x1xf32> to vector<8x1xf32>
    %143 = vector.broadcast %140 : vector<8x1xf32> to vector<8x512xf32>
    %144 = arith.mulf %136, %143 : vector<8x512xf32>
    %145 = vector.broadcast %142 : vector<8x1xf32> to vector<8x512xf32>
    %146 = arith.mulf %138, %145 : vector<8x512xf32>
    %147 = arith.subf %144, %146 : vector<8x512xf32>
    %148 = vector.broadcast %142 : vector<8x1xf32> to vector<8x512xf32>
    %149 = arith.mulf %136, %148 : vector<8x512xf32>
    %150 = vector.broadcast %140 : vector<8x1xf32> to vector<8x512xf32>
    %151 = arith.mulf %138, %150 : vector<8x512xf32>
    %152 = arith.addf %149, %151 : vector<8x512xf32>
    %153 = arith.addf %133, %147 : vector<8x512xf32>
    %154 = arith.addf %134, %152 : vector<8x512xf32>
    %c5 = arith.constant 5 : index
    %c0_69 = arith.constant 0 : index
    %c0_70 = arith.constant 0 : index
    %155 = vector.load %arg12[%c5, %c0_69, %c0_70] : memref<8x8x512xf32, #tpu.memory_space<vmem>>, vector<1x8x512xf32>
    %156 = vector.shape_cast %155 : vector<1x8x512xf32> to vector<8x512xf32>
    %c5_71 = arith.constant 5 : index
    %c0_72 = arith.constant 0 : index
    %c0_73 = arith.constant 0 : index
    %157 = vector.load %arg13[%c5_71, %c0_72, %c0_73] : memref<8x8x512xf32, #tpu.memory_space<vmem>>, vector<1x8x512xf32>
    %158 = vector.shape_cast %157 : vector<1x8x512xf32> to vector<8x512xf32>
    %159 = vector.extract_strided_slice %55 {offsets = [5, 0, 0], sizes = [1, 8, 1], strides = [1, 1, 1]} : vector<8x8x4xf32> to vector<1x8x1xf32>
    %160 = vector.shape_cast %159 : vector<1x8x1xf32> to vector<8x1xf32>
    %161 = vector.extract_strided_slice %56 {offsets = [5, 0, 0], sizes = [1, 8, 1], strides = [1, 1, 1]} : vector<8x8x4xf32> to vector<1x8x1xf32>
    %162 = vector.shape_cast %161 : vector<1x8x1xf32> to vector<8x1xf32>
    %163 = vector.broadcast %160 : vector<8x1xf32> to vector<8x512xf32>
    %164 = arith.mulf %156, %163 : vector<8x512xf32>
    %165 = vector.broadcast %162 : vector<8x1xf32> to vector<8x512xf32>
    %166 = arith.mulf %158, %165 : vector<8x512xf32>
    %167 = arith.subf %164, %166 : vector<8x512xf32>
    %168 = vector.broadcast %162 : vector<8x1xf32> to vector<8x512xf32>
    %169 = arith.mulf %156, %168 : vector<8x512xf32>
    %170 = vector.broadcast %160 : vector<8x1xf32> to vector<8x512xf32>
    %171 = arith.mulf %158, %170 : vector<8x512xf32>
    %172 = arith.addf %169, %171 : vector<8x512xf32>
    %173 = arith.addf %153, %167 : vector<8x512xf32>
    %174 = arith.addf %154, %172 : vector<8x512xf32>
    %c6 = arith.constant 6 : index
    %c0_74 = arith.constant 0 : index
    %c0_75 = arith.constant 0 : index
    %175 = vector.load %arg12[%c6, %c0_74, %c0_75] : memref<8x8x512xf32, #tpu.memory_space<vmem>>, vector<1x8x512xf32>
    %176 = vector.shape_cast %175 : vector<1x8x512xf32> to vector<8x512xf32>
    %c6_76 = arith.constant 6 : index
    %c0_77 = arith.constant 0 : index
    %c0_78 = arith.constant 0 : index
    %177 = vector.load %arg13[%c6_76, %c0_77, %c0_78] : memref<8x8x512xf32, #tpu.memory_space<vmem>>, vector<1x8x512xf32>
    %178 = vector.shape_cast %177 : vector<1x8x512xf32> to vector<8x512xf32>
    %179 = vector.extract_strided_slice %55 {offsets = [6, 0, 0], sizes = [1, 8, 1], strides = [1, 1, 1]} : vector<8x8x4xf32> to vector<1x8x1xf32>
    %180 = vector.shape_cast %179 : vector<1x8x1xf32> to vector<8x1xf32>
    %181 = vector.extract_strided_slice %56 {offsets = [6, 0, 0], sizes = [1, 8, 1], strides = [1, 1, 1]} : vector<8x8x4xf32> to vector<1x8x1xf32>
    %182 = vector.shape_cast %181 : vector<1x8x1xf32> to vector<8x1xf32>
    %183 = vector.broadcast %180 : vector<8x1xf32> to vector<8x512xf32>
    %184 = arith.mulf %176, %183 : vector<8x512xf32>
    %185 = vector.broadcast %182 : vector<8x1xf32> to vector<8x512xf32>
    %186 = arith.mulf %178, %185 : vector<8x512xf32>
    %187 = arith.subf %184, %186 : vector<8x512xf32>
    %188 = vector.broadcast %182 : vector<8x1xf32> to vector<8x512xf32>
    %189 = arith.mulf %176, %188 : vector<8x512xf32>
    %190 = vector.broadcast %180 : vector<8x1xf32> to vector<8x512xf32>
    %191 = arith.mulf %178, %190 : vector<8x512xf32>
    %192 = arith.addf %189, %191 : vector<8x512xf32>
    %193 = arith.addf %173, %187 : vector<8x512xf32>
    %194 = arith.addf %174, %192 : vector<8x512xf32>
    %c7 = arith.constant 7 : index
    %c0_79 = arith.constant 0 : index
    %c0_80 = arith.constant 0 : index
    %195 = vector.load %arg12[%c7, %c0_79, %c0_80] : memref<8x8x512xf32, #tpu.memory_space<vmem>>, vector<1x8x512xf32>
    %196 = vector.shape_cast %195 : vector<1x8x512xf32> to vector<8x512xf32>
    %c7_81 = arith.constant 7 : index
    %c0_82 = arith.constant 0 : index
    %c0_83 = arith.constant 0 : index
    %197 = vector.load %arg13[%c7_81, %c0_82, %c0_83] : memref<8x8x512xf32, #tpu.memory_space<vmem>>, vector<1x8x512xf32>
    %198 = vector.shape_cast %197 : vector<1x8x512xf32> to vector<8x512xf32>
    %199 = vector.extract_strided_slice %55 {offsets = [7, 0, 0], sizes = [1, 8, 1], strides = [1, 1, 1]} : vector<8x8x4xf32> to vector<1x8x1xf32>
    %200 = vector.shape_cast %199 : vector<1x8x1xf32> to vector<8x1xf32>
    %201 = vector.extract_strided_slice %56 {offsets = [7, 0, 0], sizes = [1, 8, 1], strides = [1, 1, 1]} : vector<8x8x4xf32> to vector<1x8x1xf32>
    %202 = vector.shape_cast %201 : vector<1x8x1xf32> to vector<8x1xf32>
    %203 = vector.broadcast %200 : vector<8x1xf32> to vector<8x512xf32>
    %204 = arith.mulf %196, %203 : vector<8x512xf32>
    %205 = vector.broadcast %202 : vector<8x1xf32> to vector<8x512xf32>
    %206 = arith.mulf %198, %205 : vector<8x512xf32>
    %207 = arith.subf %204, %206 : vector<8x512xf32>
    %208 = vector.broadcast %202 : vector<8x1xf32> to vector<8x512xf32>
    %209 = arith.mulf %196, %208 : vector<8x512xf32>
    %210 = vector.broadcast %200 : vector<8x1xf32> to vector<8x512xf32>
    %211 = arith.mulf %198, %210 : vector<8x512xf32>
    %212 = arith.addf %209, %211 : vector<8x512xf32>
    %213 = arith.addf %193, %207 : vector<8x512xf32>
    %214 = arith.addf %194, %212 : vector<8x512xf32>
    %215 = arith.mulf %213, %213 : vector<8x512xf32>
    %216 = arith.mulf %214, %214 : vector<8x512xf32>
    %217 = arith.addf %215, %216 : vector<8x512xf32>
    %218 = vector.extract_strided_slice %52 {offsets = [0, 0], sizes = [8, 1], strides = [1, 1]} : vector<8x4xf32> to vector<8x1xf32>
    %219 = vector.broadcast %218 : vector<8x1xf32> to vector<8x512xf32>
    %220 = arith.mulf %217, %219 : vector<8x512xf32>
    %221 = vector.extract_strided_slice %54 {offsets = [0, 0], sizes = [8, 1], strides = [1, 1]} : vector<8x4xf32> to vector<8x1xf32>
    %222 = vector.broadcast %221 : vector<8x1xf32> to vector<8x512xf32>
    %223 = arith.mulf %217, %222 : vector<8x512xf32>
    %c0_84 = arith.constant 0 : index
    %c0_85 = arith.constant 0 : index
    %c0_86 = arith.constant 0 : index
    %224 = vector.load %arg12[%c0_84, %c0_85, %c0_86] : memref<8x8x512xf32, #tpu.memory_space<vmem>>, vector<1x8x512xf32>
    %225 = vector.shape_cast %224 : vector<1x8x512xf32> to vector<8x512xf32>
    %c0_87 = arith.constant 0 : index
    %c0_88 = arith.constant 0 : index
    %c0_89 = arith.constant 0 : index
    %226 = vector.load %arg13[%c0_87, %c0_88, %c0_89] : memref<8x8x512xf32, #tpu.memory_space<vmem>>, vector<1x8x512xf32>
    %227 = vector.shape_cast %226 : vector<1x8x512xf32> to vector<8x512xf32>
    %228 = vector.extract_strided_slice %55 {offsets = [0, 0, 1], sizes = [1, 8, 1], strides = [1, 1, 1]} : vector<8x8x4xf32> to vector<1x8x1xf32>
    %229 = vector.shape_cast %228 : vector<1x8x1xf32> to vector<8x1xf32>
    %230 = vector.extract_strided_slice %56 {offsets = [0, 0, 1], sizes = [1, 8, 1], strides = [1, 1, 1]} : vector<8x8x4xf32> to vector<1x8x1xf32>
    %231 = vector.shape_cast %230 : vector<1x8x1xf32> to vector<8x1xf32>
    %232 = vector.broadcast %229 : vector<8x1xf32> to vector<8x512xf32>
    %233 = arith.mulf %225, %232 : vector<8x512xf32>
    %234 = vector.broadcast %231 : vector<8x1xf32> to vector<8x512xf32>
    %235 = arith.mulf %227, %234 : vector<8x512xf32>
    %236 = arith.subf %233, %235 : vector<8x512xf32>
    %237 = vector.broadcast %231 : vector<8x1xf32> to vector<8x512xf32>
    %238 = arith.mulf %225, %237 : vector<8x512xf32>
    %239 = vector.broadcast %229 : vector<8x1xf32> to vector<8x512xf32>
    %240 = arith.mulf %227, %239 : vector<8x512xf32>
    %241 = arith.addf %238, %240 : vector<8x512xf32>
    %c1_90 = arith.constant 1 : index
    %c0_91 = arith.constant 0 : index
    %c0_92 = arith.constant 0 : index
    %242 = vector.load %arg12[%c1_90, %c0_91, %c0_92] : memref<8x8x512xf32, #tpu.memory_space<vmem>>, vector<1x8x512xf32>
    %243 = vector.shape_cast %242 : vector<1x8x512xf32> to vector<8x512xf32>
    %c1_93 = arith.constant 1 : index
    %c0_94 = arith.constant 0 : index
    %c0_95 = arith.constant 0 : index
    %244 = vector.load %arg13[%c1_93, %c0_94, %c0_95] : memref<8x8x512xf32, #tpu.memory_space<vmem>>, vector<1x8x512xf32>
    %245 = vector.shape_cast %244 : vector<1x8x512xf32> to vector<8x512xf32>
    %246 = vector.extract_strided_slice %55 {offsets = [1, 0, 1], sizes = [1, 8, 1], strides = [1, 1, 1]} : vector<8x8x4xf32> to vector<1x8x1xf32>
    %247 = vector.shape_cast %246 : vector<1x8x1xf32> to vector<8x1xf32>
    %248 = vector.extract_strided_slice %56 {offsets = [1, 0, 1], sizes = [1, 8, 1], strides = [1, 1, 1]} : vector<8x8x4xf32> to vector<1x8x1xf32>
    %249 = vector.shape_cast %248 : vector<1x8x1xf32> to vector<8x1xf32>
    %250 = vector.broadcast %247 : vector<8x1xf32> to vector<8x512xf32>
    %251 = arith.mulf %243, %250 : vector<8x512xf32>
    %252 = vector.broadcast %249 : vector<8x1xf32> to vector<8x512xf32>
    %253 = arith.mulf %245, %252 : vector<8x512xf32>
    %254 = arith.subf %251, %253 : vector<8x512xf32>
    %255 = vector.broadcast %249 : vector<8x1xf32> to vector<8x512xf32>
    %256 = arith.mulf %243, %255 : vector<8x512xf32>
    %257 = vector.broadcast %247 : vector<8x1xf32> to vector<8x512xf32>
    %258 = arith.mulf %245, %257 : vector<8x512xf32>
    %259 = arith.addf %256, %258 : vector<8x512xf32>
    %260 = arith.addf %236, %254 : vector<8x512xf32>
    %261 = arith.addf %241, %259 : vector<8x512xf32>
    %c2_96 = arith.constant 2 : index
    %c0_97 = arith.constant 0 : index
    %c0_98 = arith.constant 0 : index
    %262 = vector.load %arg12[%c2_96, %c0_97, %c0_98] : memref<8x8x512xf32, #tpu.memory_space<vmem>>, vector<1x8x512xf32>
    %263 = vector.shape_cast %262 : vector<1x8x512xf32> to vector<8x512xf32>
    %c2_99 = arith.constant 2 : index
    %c0_100 = arith.constant 0 : index
    %c0_101 = arith.constant 0 : index
    %264 = vector.load %arg13[%c2_99, %c0_100, %c0_101] : memref<8x8x512xf32, #tpu.memory_space<vmem>>, vector<1x8x512xf32>
    %265 = vector.shape_cast %264 : vector<1x8x512xf32> to vector<8x512xf32>
    %266 = vector.extract_strided_slice %55 {offsets = [2, 0, 1], sizes = [1, 8, 1], strides = [1, 1, 1]} : vector<8x8x4xf32> to vector<1x8x1xf32>
    %267 = vector.shape_cast %266 : vector<1x8x1xf32> to vector<8x1xf32>
    %268 = vector.extract_strided_slice %56 {offsets = [2, 0, 1], sizes = [1, 8, 1], strides = [1, 1, 1]} : vector<8x8x4xf32> to vector<1x8x1xf32>
    %269 = vector.shape_cast %268 : vector<1x8x1xf32> to vector<8x1xf32>
    %270 = vector.broadcast %267 : vector<8x1xf32> to vector<8x512xf32>
    %271 = arith.mulf %263, %270 : vector<8x512xf32>
    %272 = vector.broadcast %269 : vector<8x1xf32> to vector<8x512xf32>
    %273 = arith.mulf %265, %272 : vector<8x512xf32>
    %274 = arith.subf %271, %273 : vector<8x512xf32>
    %275 = vector.broadcast %269 : vector<8x1xf32> to vector<8x512xf32>
    %276 = arith.mulf %263, %275 : vector<8x512xf32>
    %277 = vector.broadcast %267 : vector<8x1xf32> to vector<8x512xf32>
    %278 = arith.mulf %265, %277 : vector<8x512xf32>
    %279 = arith.addf %276, %278 : vector<8x512xf32>
    %280 = arith.addf %260, %274 : vector<8x512xf32>
    %281 = arith.addf %261, %279 : vector<8x512xf32>
    %c3_102 = arith.constant 3 : index
    %c0_103 = arith.constant 0 : index
    %c0_104 = arith.constant 0 : index
    %282 = vector.load %arg12[%c3_102, %c0_103, %c0_104] : memref<8x8x512xf32, #tpu.memory_space<vmem>>, vector<1x8x512xf32>
    %283 = vector.shape_cast %282 : vector<1x8x512xf32> to vector<8x512xf32>
    %c3_105 = arith.constant 3 : index
    %c0_106 = arith.constant 0 : index
    %c0_107 = arith.constant 0 : index
    %284 = vector.load %arg13[%c3_105, %c0_106, %c0_107] : memref<8x8x512xf32, #tpu.memory_space<vmem>>, vector<1x8x512xf32>
    %285 = vector.shape_cast %284 : vector<1x8x512xf32> to vector<8x512xf32>
    %286 = vector.extract_strided_slice %55 {offsets = [3, 0, 1], sizes = [1, 8, 1], strides = [1, 1, 1]} : vector<8x8x4xf32> to vector<1x8x1xf32>
    %287 = vector.shape_cast %286 : vector<1x8x1xf32> to vector<8x1xf32>
    %288 = vector.extract_strided_slice %56 {offsets = [3, 0, 1], sizes = [1, 8, 1], strides = [1, 1, 1]} : vector<8x8x4xf32> to vector<1x8x1xf32>
    %289 = vector.shape_cast %288 : vector<1x8x1xf32> to vector<8x1xf32>
    %290 = vector.broadcast %287 : vector<8x1xf32> to vector<8x512xf32>
    %291 = arith.mulf %283, %290 : vector<8x512xf32>
    %292 = vector.broadcast %289 : vector<8x1xf32> to vector<8x512xf32>
    %293 = arith.mulf %285, %292 : vector<8x512xf32>
    %294 = arith.subf %291, %293 : vector<8x512xf32>
    %295 = vector.broadcast %289 : vector<8x1xf32> to vector<8x512xf32>
    %296 = arith.mulf %283, %295 : vector<8x512xf32>
    %297 = vector.broadcast %287 : vector<8x1xf32> to vector<8x512xf32>
    %298 = arith.mulf %285, %297 : vector<8x512xf32>
    %299 = arith.addf %296, %298 : vector<8x512xf32>
    %300 = arith.addf %280, %294 : vector<8x512xf32>
    %301 = arith.addf %281, %299 : vector<8x512xf32>
    %c4_108 = arith.constant 4 : index
    %c0_109 = arith.constant 0 : index
    %c0_110 = arith.constant 0 : index
    %302 = vector.load %arg12[%c4_108, %c0_109, %c0_110] : memref<8x8x512xf32, #tpu.memory_space<vmem>>, vector<1x8x512xf32>
    %303 = vector.shape_cast %302 : vector<1x8x512xf32> to vector<8x512xf32>
    %c4_111 = arith.constant 4 : index
    %c0_112 = arith.constant 0 : index
    %c0_113 = arith.constant 0 : index
    %304 = vector.load %arg13[%c4_111, %c0_112, %c0_113] : memref<8x8x512xf32, #tpu.memory_space<vmem>>, vector<1x8x512xf32>
    %305 = vector.shape_cast %304 : vector<1x8x512xf32> to vector<8x512xf32>
    %306 = vector.extract_strided_slice %55 {offsets = [4, 0, 1], sizes = [1, 8, 1], strides = [1, 1, 1]} : vector<8x8x4xf32> to vector<1x8x1xf32>
    %307 = vector.shape_cast %306 : vector<1x8x1xf32> to vector<8x1xf32>
    %308 = vector.extract_strided_slice %56 {offsets = [4, 0, 1], sizes = [1, 8, 1], strides = [1, 1, 1]} : vector<8x8x4xf32> to vector<1x8x1xf32>
    %309 = vector.shape_cast %308 : vector<1x8x1xf32> to vector<8x1xf32>
    %310 = vector.broadcast %307 : vector<8x1xf32> to vector<8x512xf32>
    %311 = arith.mulf %303, %310 : vector<8x512xf32>
    %312 = vector.broadcast %309 : vector<8x1xf32> to vector<8x512xf32>
    %313 = arith.mulf %305, %312 : vector<8x512xf32>
    %314 = arith.subf %311, %313 : vector<8x512xf32>
    %315 = vector.broadcast %309 : vector<8x1xf32> to vector<8x512xf32>
    %316 = arith.mulf %303, %315 : vector<8x512xf32>
    %317 = vector.broadcast %307 : vector<8x1xf32> to vector<8x512xf32>
    %318 = arith.mulf %305, %317 : vector<8x512xf32>
    %319 = arith.addf %316, %318 : vector<8x512xf32>
    %320 = arith.addf %300, %314 : vector<8x512xf32>
    %321 = arith.addf %301, %319 : vector<8x512xf32>
    %c5_114 = arith.constant 5 : index
    %c0_115 = arith.constant 0 : index
    %c0_116 = arith.constant 0 : index
    %322 = vector.load %arg12[%c5_114, %c0_115, %c0_116] : memref<8x8x512xf32, #tpu.memory_space<vmem>>, vector<1x8x512xf32>
    %323 = vector.shape_cast %322 : vector<1x8x512xf32> to vector<8x512xf32>
    %c5_117 = arith.constant 5 : index
    %c0_118 = arith.constant 0 : index
    %c0_119 = arith.constant 0 : index
    %324 = vector.load %arg13[%c5_117, %c0_118, %c0_119] : memref<8x8x512xf32, #tpu.memory_space<vmem>>, vector<1x8x512xf32>
    %325 = vector.shape_cast %324 : vector<1x8x512xf32> to vector<8x512xf32>
    %326 = vector.extract_strided_slice %55 {offsets = [5, 0, 1], sizes = [1, 8, 1], strides = [1, 1, 1]} : vector<8x8x4xf32> to vector<1x8x1xf32>
    %327 = vector.shape_cast %326 : vector<1x8x1xf32> to vector<8x1xf32>
    %328 = vector.extract_strided_slice %56 {offsets = [5, 0, 1], sizes = [1, 8, 1], strides = [1, 1, 1]} : vector<8x8x4xf32> to vector<1x8x1xf32>
    %329 = vector.shape_cast %328 : vector<1x8x1xf32> to vector<8x1xf32>
    %330 = vector.broadcast %327 : vector<8x1xf32> to vector<8x512xf32>
    %331 = arith.mulf %323, %330 : vector<8x512xf32>
    %332 = vector.broadcast %329 : vector<8x1xf32> to vector<8x512xf32>
    %333 = arith.mulf %325, %332 : vector<8x512xf32>
    %334 = arith.subf %331, %333 : vector<8x512xf32>
    %335 = vector.broadcast %329 : vector<8x1xf32> to vector<8x512xf32>
    %336 = arith.mulf %323, %335 : vector<8x512xf32>
    %337 = vector.broadcast %327 : vector<8x1xf32> to vector<8x512xf32>
    %338 = arith.mulf %325, %337 : vector<8x512xf32>
    %339 = arith.addf %336, %338 : vector<8x512xf32>
    %340 = arith.addf %320, %334 : vector<8x512xf32>
    %341 = arith.addf %321, %339 : vector<8x512xf32>
    %c6_120 = arith.constant 6 : index
    %c0_121 = arith.constant 0 : index
    %c0_122 = arith.constant 0 : index
    %342 = vector.load %arg12[%c6_120, %c0_121, %c0_122] : memref<8x8x512xf32, #tpu.memory_space<vmem>>, vector<1x8x512xf32>
    %343 = vector.shape_cast %342 : vector<1x8x512xf32> to vector<8x512xf32>
    %c6_123 = arith.constant 6 : index
    %c0_124 = arith.constant 0 : index
    %c0_125 = arith.constant 0 : index
    %344 = vector.load %arg13[%c6_123, %c0_124, %c0_125] : memref<8x8x512xf32, #tpu.memory_space<vmem>>, vector<1x8x512xf32>
    %345 = vector.shape_cast %344 : vector<1x8x512xf32> to vector<8x512xf32>
    %346 = vector.extract_strided_slice %55 {offsets = [6, 0, 1], sizes = [1, 8, 1], strides = [1, 1, 1]} : vector<8x8x4xf32> to vector<1x8x1xf32>
    %347 = vector.shape_cast %346 : vector<1x8x1xf32> to vector<8x1xf32>
    %348 = vector.extract_strided_slice %56 {offsets = [6, 0, 1], sizes = [1, 8, 1], strides = [1, 1, 1]} : vector<8x8x4xf32> to vector<1x8x1xf32>
    %349 = vector.shape_cast %348 : vector<1x8x1xf32> to vector<8x1xf32>
    %350 = vector.broadcast %347 : vector<8x1xf32> to vector<8x512xf32>
    %351 = arith.mulf %343, %350 : vector<8x512xf32>
    %352 = vector.broadcast %349 : vector<8x1xf32> to vector<8x512xf32>
    %353 = arith.mulf %345, %352 : vector<8x512xf32>
    %354 = arith.subf %351, %353 : vector<8x512xf32>
    %355 = vector.broadcast %349 : vector<8x1xf32> to vector<8x512xf32>
    %356 = arith.mulf %343, %355 : vector<8x512xf32>
    %357 = vector.broadcast %347 : vector<8x1xf32> to vector<8x512xf32>
    %358 = arith.mulf %345, %357 : vector<8x512xf32>
    %359 = arith.addf %356, %358 : vector<8x512xf32>
    %360 = arith.addf %340, %354 : vector<8x512xf32>
    %361 = arith.addf %341, %359 : vector<8x512xf32>
    %c7_126 = arith.constant 7 : index
    %c0_127 = arith.constant 0 : index
    %c0_128 = arith.constant 0 : index
    %362 = vector.load %arg12[%c7_126, %c0_127, %c0_128] : memref<8x8x512xf32, #tpu.memory_space<vmem>>, vector<1x8x512xf32>
    %363 = vector.shape_cast %362 : vector<1x8x512xf32> to vector<8x512xf32>
    %c7_129 = arith.constant 7 : index
    %c0_130 = arith.constant 0 : index
    %c0_131 = arith.constant 0 : index
    %364 = vector.load %arg13[%c7_129, %c0_130, %c0_131] : memref<8x8x512xf32, #tpu.memory_space<vmem>>, vector<1x8x512xf32>
    %365 = vector.shape_cast %364 : vector<1x8x512xf32> to vector<8x512xf32>
    %366 = vector.extract_strided_slice %55 {offsets = [7, 0, 1], sizes = [1, 8, 1], strides = [1, 1, 1]} : vector<8x8x4xf32> to vector<1x8x1xf32>
    %367 = vector.shape_cast %366 : vector<1x8x1xf32> to vector<8x1xf32>
    %368 = vector.extract_strided_slice %56 {offsets = [7, 0, 1], sizes = [1, 8, 1], strides = [1, 1, 1]} : vector<8x8x4xf32> to vector<1x8x1xf32>
    %369 = vector.shape_cast %368 : vector<1x8x1xf32> to vector<8x1xf32>
    %370 = vector.broadcast %367 : vector<8x1xf32> to vector<8x512xf32>
    %371 = arith.mulf %363, %370 : vector<8x512xf32>
    %372 = vector.broadcast %369 : vector<8x1xf32> to vector<8x512xf32>
    %373 = arith.mulf %365, %372 : vector<8x512xf32>
    %374 = arith.subf %371, %373 : vector<8x512xf32>
    %375 = vector.broadcast %369 : vector<8x1xf32> to vector<8x512xf32>
    %376 = arith.mulf %363, %375 : vector<8x512xf32>
    %377 = vector.broadcast %367 : vector<8x1xf32> to vector<8x512xf32>
    %378 = arith.mulf %365, %377 : vector<8x512xf32>
    %379 = arith.addf %376, %378 : vector<8x512xf32>
    %380 = arith.addf %360, %374 : vector<8x512xf32>
    %381 = arith.addf %361, %379 : vector<8x512xf32>
    %382 = arith.mulf %380, %380 : vector<8x512xf32>
    %383 = arith.mulf %381, %381 : vector<8x512xf32>
    %384 = arith.addf %382, %383 : vector<8x512xf32>
    %385 = vector.extract_strided_slice %52 {offsets = [0, 1], sizes = [8, 1], strides = [1, 1]} : vector<8x4xf32> to vector<8x1xf32>
    %386 = vector.broadcast %385 : vector<8x1xf32> to vector<8x512xf32>
    %387 = arith.mulf %384, %386 : vector<8x512xf32>
    %388 = vector.extract_strided_slice %54 {offsets = [0, 1], sizes = [8, 1], strides = [1, 1]} : vector<8x4xf32> to vector<8x1xf32>
    %389 = vector.broadcast %388 : vector<8x1xf32> to vector<8x512xf32>
    %390 = arith.mulf %384, %389 : vector<8x512xf32>
    %391 = arith.addf %220, %387 : vector<8x512xf32>
    %392 = arith.addf %223, %390 : vector<8x512xf32>
    %c0_132 = arith.constant 0 : index
    %c0_133 = arith.constant 0 : index
    %c0_134 = arith.constant 0 : index
    %393 = vector.load %arg12[%c0_132, %c0_133, %c0_134] : memref<8x8x512xf32, #tpu.memory_space<vmem>>, vector<1x8x512xf32>
    %394 = vector.shape_cast %393 : vector<1x8x512xf32> to vector<8x512xf32>
    %c0_135 = arith.constant 0 : index
    %c0_136 = arith.constant 0 : index
    %c0_137 = arith.constant 0 : index
    %395 = vector.load %arg13[%c0_135, %c0_136, %c0_137] : memref<8x8x512xf32, #tpu.memory_space<vmem>>, vector<1x8x512xf32>
    %396 = vector.shape_cast %395 : vector<1x8x512xf32> to vector<8x512xf32>
    %397 = vector.extract_strided_slice %55 {offsets = [0, 0, 2], sizes = [1, 8, 1], strides = [1, 1, 1]} : vector<8x8x4xf32> to vector<1x8x1xf32>
    %398 = vector.shape_cast %397 : vector<1x8x1xf32> to vector<8x1xf32>
    %399 = vector.extract_strided_slice %56 {offsets = [0, 0, 2], sizes = [1, 8, 1], strides = [1, 1, 1]} : vector<8x8x4xf32> to vector<1x8x1xf32>
    %400 = vector.shape_cast %399 : vector<1x8x1xf32> to vector<8x1xf32>
    %401 = vector.broadcast %398 : vector<8x1xf32> to vector<8x512xf32>
    %402 = arith.mulf %394, %401 : vector<8x512xf32>
    %403 = vector.broadcast %400 : vector<8x1xf32> to vector<8x512xf32>
    %404 = arith.mulf %396, %403 : vector<8x512xf32>
    %405 = arith.subf %402, %404 : vector<8x512xf32>
    %406 = vector.broadcast %400 : vector<8x1xf32> to vector<8x512xf32>
    %407 = arith.mulf %394, %406 : vector<8x512xf32>
    %408 = vector.broadcast %398 : vector<8x1xf32> to vector<8x512xf32>
    %409 = arith.mulf %396, %408 : vector<8x512xf32>
    %410 = arith.addf %407, %409 : vector<8x512xf32>
    %c1_138 = arith.constant 1 : index
    %c0_139 = arith.constant 0 : index
    %c0_140 = arith.constant 0 : index
    %411 = vector.load %arg12[%c1_138, %c0_139, %c0_140] : memref<8x8x512xf32, #tpu.memory_space<vmem>>, vector<1x8x512xf32>
    %412 = vector.shape_cast %411 : vector<1x8x512xf32> to vector<8x512xf32>
    %c1_141 = arith.constant 1 : index
    %c0_142 = arith.constant 0 : index
    %c0_143 = arith.constant 0 : index
    %413 = vector.load %arg13[%c1_141, %c0_142, %c0_143] : memref<8x8x512xf32, #tpu.memory_space<vmem>>, vector<1x8x512xf32>
    %414 = vector.shape_cast %413 : vector<1x8x512xf32> to vector<8x512xf32>
    %415 = vector.extract_strided_slice %55 {offsets = [1, 0, 2], sizes = [1, 8, 1], strides = [1, 1, 1]} : vector<8x8x4xf32> to vector<1x8x1xf32>
    %416 = vector.shape_cast %415 : vector<1x8x1xf32> to vector<8x1xf32>
    %417 = vector.extract_strided_slice %56 {offsets = [1, 0, 2], sizes = [1, 8, 1], strides = [1, 1, 1]} : vector<8x8x4xf32> to vector<1x8x1xf32>
    %418 = vector.shape_cast %417 : vector<1x8x1xf32> to vector<8x1xf32>
    %419 = vector.broadcast %416 : vector<8x1xf32> to vector<8x512xf32>
    %420 = arith.mulf %412, %419 : vector<8x512xf32>
    %421 = vector.broadcast %418 : vector<8x1xf32> to vector<8x512xf32>
    %422 = arith.mulf %414, %421 : vector<8x512xf32>
    %423 = arith.subf %420, %422 : vector<8x512xf32>
    %424 = vector.broadcast %418 : vector<8x1xf32> to vector<8x512xf32>
    %425 = arith.mulf %412, %424 : vector<8x512xf32>
    %426 = vector.broadcast %416 : vector<8x1xf32> to vector<8x512xf32>
    %427 = arith.mulf %414, %426 : vector<8x512xf32>
    %428 = arith.addf %425, %427 : vector<8x512xf32>
    %429 = arith.addf %405, %423 : vector<8x512xf32>
    %430 = arith.addf %410, %428 : vector<8x512xf32>
    %c2_144 = arith.constant 2 : index
    %c0_145 = arith.constant 0 : index
    %c0_146 = arith.constant 0 : index
    %431 = vector.load %arg12[%c2_144, %c0_145, %c0_146] : memref<8x8x512xf32, #tpu.memory_space<vmem>>, vector<1x8x512xf32>
    %432 = vector.shape_cast %431 : vector<1x8x512xf32> to vector<8x512xf32>
    %c2_147 = arith.constant 2 : index
    %c0_148 = arith.constant 0 : index
    %c0_149 = arith.constant 0 : index
    %433 = vector.load %arg13[%c2_147, %c0_148, %c0_149] : memref<8x8x512xf32, #tpu.memory_space<vmem>>, vector<1x8x512xf32>
    %434 = vector.shape_cast %433 : vector<1x8x512xf32> to vector<8x512xf32>
    %435 = vector.extract_strided_slice %55 {offsets = [2, 0, 2], sizes = [1, 8, 1], strides = [1, 1, 1]} : vector<8x8x4xf32> to vector<1x8x1xf32>
    %436 = vector.shape_cast %435 : vector<1x8x1xf32> to vector<8x1xf32>
    %437 = vector.extract_strided_slice %56 {offsets = [2, 0, 2], sizes = [1, 8, 1], strides = [1, 1, 1]} : vector<8x8x4xf32> to vector<1x8x1xf32>
    %438 = vector.shape_cast %437 : vector<1x8x1xf32> to vector<8x1xf32>
    %439 = vector.broadcast %436 : vector<8x1xf32> to vector<8x512xf32>
    %440 = arith.mulf %432, %439 : vector<8x512xf32>
    %441 = vector.broadcast %438 : vector<8x1xf32> to vector<8x512xf32>
    %442 = arith.mulf %434, %441 : vector<8x512xf32>
    %443 = arith.subf %440, %442 : vector<8x512xf32>
    %444 = vector.broadcast %438 : vector<8x1xf32> to vector<8x512xf32>
    %445 = arith.mulf %432, %444 : vector<8x512xf32>
    %446 = vector.broadcast %436 : vector<8x1xf32> to vector<8x512xf32>
    %447 = arith.mulf %434, %446 : vector<8x512xf32>
    %448 = arith.addf %445, %447 : vector<8x512xf32>
    %449 = arith.addf %429, %443 : vector<8x512xf32>
    %450 = arith.addf %430, %448 : vector<8x512xf32>
    %c3_150 = arith.constant 3 : index
    %c0_151 = arith.constant 0 : index
    %c0_152 = arith.constant 0 : index
    %451 = vector.load %arg12[%c3_150, %c0_151, %c0_152] : memref<8x8x512xf32, #tpu.memory_space<vmem>>, vector<1x8x512xf32>
    %452 = vector.shape_cast %451 : vector<1x8x512xf32> to vector<8x512xf32>
    %c3_153 = arith.constant 3 : index
    %c0_154 = arith.constant 0 : index
    %c0_155 = arith.constant 0 : index
    %453 = vector.load %arg13[%c3_153, %c0_154, %c0_155] : memref<8x8x512xf32, #tpu.memory_space<vmem>>, vector<1x8x512xf32>
    %454 = vector.shape_cast %453 : vector<1x8x512xf32> to vector<8x512xf32>
    %455 = vector.extract_strided_slice %55 {offsets = [3, 0, 2], sizes = [1, 8, 1], strides = [1, 1, 1]} : vector<8x8x4xf32> to vector<1x8x1xf32>
    %456 = vector.shape_cast %455 : vector<1x8x1xf32> to vector<8x1xf32>
    %457 = vector.extract_strided_slice %56 {offsets = [3, 0, 2], sizes = [1, 8, 1], strides = [1, 1, 1]} : vector<8x8x4xf32> to vector<1x8x1xf32>
    %458 = vector.shape_cast %457 : vector<1x8x1xf32> to vector<8x1xf32>
    %459 = vector.broadcast %456 : vector<8x1xf32> to vector<8x512xf32>
    %460 = arith.mulf %452, %459 : vector<8x512xf32>
    %461 = vector.broadcast %458 : vector<8x1xf32> to vector<8x512xf32>
    %462 = arith.mulf %454, %461 : vector<8x512xf32>
    %463 = arith.subf %460, %462 : vector<8x512xf32>
    %464 = vector.broadcast %458 : vector<8x1xf32> to vector<8x512xf32>
    %465 = arith.mulf %452, %464 : vector<8x512xf32>
    %466 = vector.broadcast %456 : vector<8x1xf32> to vector<8x512xf32>
    %467 = arith.mulf %454, %466 : vector<8x512xf32>
    %468 = arith.addf %465, %467 : vector<8x512xf32>
    %469 = arith.addf %449, %463 : vector<8x512xf32>
    %470 = arith.addf %450, %468 : vector<8x512xf32>
    %c4_156 = arith.constant 4 : index
    %c0_157 = arith.constant 0 : index
    %c0_158 = arith.constant 0 : index
    %471 = vector.load %arg12[%c4_156, %c0_157, %c0_158] : memref<8x8x512xf32, #tpu.memory_space<vmem>>, vector<1x8x512xf32>
    %472 = vector.shape_cast %471 : vector<1x8x512xf32> to vector<8x512xf32>
    %c4_159 = arith.constant 4 : index
    %c0_160 = arith.constant 0 : index
    %c0_161 = arith.constant 0 : index
    %473 = vector.load %arg13[%c4_159, %c0_160, %c0_161] : memref<8x8x512xf32, #tpu.memory_space<vmem>>, vector<1x8x512xf32>
    %474 = vector.shape_cast %473 : vector<1x8x512xf32> to vector<8x512xf32>
    %475 = vector.extract_strided_slice %55 {offsets = [4, 0, 2], sizes = [1, 8, 1], strides = [1, 1, 1]} : vector<8x8x4xf32> to vector<1x8x1xf32>
    %476 = vector.shape_cast %475 : vector<1x8x1xf32> to vector<8x1xf32>
    %477 = vector.extract_strided_slice %56 {offsets = [4, 0, 2], sizes = [1, 8, 1], strides = [1, 1, 1]} : vector<8x8x4xf32> to vector<1x8x1xf32>
    %478 = vector.shape_cast %477 : vector<1x8x1xf32> to vector<8x1xf32>
    %479 = vector.broadcast %476 : vector<8x1xf32> to vector<8x512xf32>
    %480 = arith.mulf %472, %479 : vector<8x512xf32>
    %481 = vector.broadcast %478 : vector<8x1xf32> to vector<8x512xf32>
    %482 = arith.mulf %474, %481 : vector<8x512xf32>
    %483 = arith.subf %480, %482 : vector<8x512xf32>
    %484 = vector.broadcast %478 : vector<8x1xf32> to vector<8x512xf32>
    %485 = arith.mulf %472, %484 : vector<8x512xf32>
    %486 = vector.broadcast %476 : vector<8x1xf32> to vector<8x512xf32>
    %487 = arith.mulf %474, %486 : vector<8x512xf32>
    %488 = arith.addf %485, %487 : vector<8x512xf32>
    %489 = arith.addf %469, %483 : vector<8x512xf32>
    %490 = arith.addf %470, %488 : vector<8x512xf32>
    %c5_162 = arith.constant 5 : index
    %c0_163 = arith.constant 0 : index
    %c0_164 = arith.constant 0 : index
    %491 = vector.load %arg12[%c5_162, %c0_163, %c0_164] : memref<8x8x512xf32, #tpu.memory_space<vmem>>, vector<1x8x512xf32>
    %492 = vector.shape_cast %491 : vector<1x8x512xf32> to vector<8x512xf32>
    %c5_165 = arith.constant 5 : index
    %c0_166 = arith.constant 0 : index
    %c0_167 = arith.constant 0 : index
    %493 = vector.load %arg13[%c5_165, %c0_166, %c0_167] : memref<8x8x512xf32, #tpu.memory_space<vmem>>, vector<1x8x512xf32>
    %494 = vector.shape_cast %493 : vector<1x8x512xf32> to vector<8x512xf32>
    %495 = vector.extract_strided_slice %55 {offsets = [5, 0, 2], sizes = [1, 8, 1], strides = [1, 1, 1]} : vector<8x8x4xf32> to vector<1x8x1xf32>
    %496 = vector.shape_cast %495 : vector<1x8x1xf32> to vector<8x1xf32>
    %497 = vector.extract_strided_slice %56 {offsets = [5, 0, 2], sizes = [1, 8, 1], strides = [1, 1, 1]} : vector<8x8x4xf32> to vector<1x8x1xf32>
    %498 = vector.shape_cast %497 : vector<1x8x1xf32> to vector<8x1xf32>
    %499 = vector.broadcast %496 : vector<8x1xf32> to vector<8x512xf32>
    %500 = arith.mulf %492, %499 : vector<8x512xf32>
    %501 = vector.broadcast %498 : vector<8x1xf32> to vector<8x512xf32>
    %502 = arith.mulf %494, %501 : vector<8x512xf32>
    %503 = arith.subf %500, %502 : vector<8x512xf32>
    %504 = vector.broadcast %498 : vector<8x1xf32> to vector<8x512xf32>
    %505 = arith.mulf %492, %504 : vector<8x512xf32>
    %506 = vector.broadcast %496 : vector<8x1xf32> to vector<8x512xf32>
    %507 = arith.mulf %494, %506 : vector<8x512xf32>
    %508 = arith.addf %505, %507 : vector<8x512xf32>
    %509 = arith.addf %489, %503 : vector<8x512xf32>
    %510 = arith.addf %490, %508 : vector<8x512xf32>
    %c6_168 = arith.constant 6 : index
    %c0_169 = arith.constant 0 : index
    %c0_170 = arith.constant 0 : index
    %511 = vector.load %arg12[%c6_168, %c0_169, %c0_170] : memref<8x8x512xf32, #tpu.memory_space<vmem>>, vector<1x8x512xf32>
    %512 = vector.shape_cast %511 : vector<1x8x512xf32> to vector<8x512xf32>
    %c6_171 = arith.constant 6 : index
    %c0_172 = arith.constant 0 : index
    %c0_173 = arith.constant 0 : index
    %513 = vector.load %arg13[%c6_171, %c0_172, %c0_173] : memref<8x8x512xf32, #tpu.memory_space<vmem>>, vector<1x8x512xf32>
    %514 = vector.shape_cast %513 : vector<1x8x512xf32> to vector<8x512xf32>
    %515 = vector.extract_strided_slice %55 {offsets = [6, 0, 2], sizes = [1, 8, 1], strides = [1, 1, 1]} : vector<8x8x4xf32> to vector<1x8x1xf32>
    %516 = vector.shape_cast %515 : vector<1x8x1xf32> to vector<8x1xf32>
    %517 = vector.extract_strided_slice %56 {offsets = [6, 0, 2], sizes = [1, 8, 1], strides = [1, 1, 1]} : vector<8x8x4xf32> to vector<1x8x1xf32>
    %518 = vector.shape_cast %517 : vector<1x8x1xf32> to vector<8x1xf32>
    %519 = vector.broadcast %516 : vector<8x1xf32> to vector<8x512xf32>
    %520 = arith.mulf %512, %519 : vector<8x512xf32>
    %521 = vector.broadcast %518 : vector<8x1xf32> to vector<8x512xf32>
    %522 = arith.mulf %514, %521 : vector<8x512xf32>
    %523 = arith.subf %520, %522 : vector<8x512xf32>
    %524 = vector.broadcast %518 : vector<8x1xf32> to vector<8x512xf32>
    %525 = arith.mulf %512, %524 : vector<8x512xf32>
    %526 = vector.broadcast %516 : vector<8x1xf32> to vector<8x512xf32>
    %527 = arith.mulf %514, %526 : vector<8x512xf32>
    %528 = arith.addf %525, %527 : vector<8x512xf32>
    %529 = arith.addf %509, %523 : vector<8x512xf32>
    %530 = arith.addf %510, %528 : vector<8x512xf32>
    %c7_174 = arith.constant 7 : index
    %c0_175 = arith.constant 0 : index
    %c0_176 = arith.constant 0 : index
    %531 = vector.load %arg12[%c7_174, %c0_175, %c0_176] : memref<8x8x512xf32, #tpu.memory_space<vmem>>, vector<1x8x512xf32>
    %532 = vector.shape_cast %531 : vector<1x8x512xf32> to vector<8x512xf32>
    %c7_177 = arith.constant 7 : index
    %c0_178 = arith.constant 0 : index
    %c0_179 = arith.constant 0 : index
    %533 = vector.load %arg13[%c7_177, %c0_178, %c0_179] : memref<8x8x512xf32, #tpu.memory_space<vmem>>, vector<1x8x512xf32>
    %534 = vector.shape_cast %533 : vector<1x8x512xf32> to vector<8x512xf32>
    %535 = vector.extract_strided_slice %55 {offsets = [7, 0, 2], sizes = [1, 8, 1], strides = [1, 1, 1]} : vector<8x8x4xf32> to vector<1x8x1xf32>
    %536 = vector.shape_cast %535 : vector<1x8x1xf32> to vector<8x1xf32>
    %537 = vector.extract_strided_slice %56 {offsets = [7, 0, 2], sizes = [1, 8, 1], strides = [1, 1, 1]} : vector<8x8x4xf32> to vector<1x8x1xf32>
    %538 = vector.shape_cast %537 : vector<1x8x1xf32> to vector<8x1xf32>
    %539 = vector.broadcast %536 : vector<8x1xf32> to vector<8x512xf32>
    %540 = arith.mulf %532, %539 : vector<8x512xf32>
    %541 = vector.broadcast %538 : vector<8x1xf32> to vector<8x512xf32>
    %542 = arith.mulf %534, %541 : vector<8x512xf32>
    %543 = arith.subf %540, %542 : vector<8x512xf32>
    %544 = vector.broadcast %538 : vector<8x1xf32> to vector<8x512xf32>
    %545 = arith.mulf %532, %544 : vector<8x512xf32>
    %546 = vector.broadcast %536 : vector<8x1xf32> to vector<8x512xf32>
    %547 = arith.mulf %534, %546 : vector<8x512xf32>
    %548 = arith.addf %545, %547 : vector<8x512xf32>
    %549 = arith.addf %529, %543 : vector<8x512xf32>
    %550 = arith.addf %530, %548 : vector<8x512xf32>
    %551 = arith.mulf %549, %549 : vector<8x512xf32>
    %552 = arith.mulf %550, %550 : vector<8x512xf32>
    %553 = arith.addf %551, %552 : vector<8x512xf32>
    %554 = vector.extract_strided_slice %52 {offsets = [0, 2], sizes = [8, 1], strides = [1, 1]} : vector<8x4xf32> to vector<8x1xf32>
    %555 = vector.broadcast %554 : vector<8x1xf32> to vector<8x512xf32>
    %556 = arith.mulf %553, %555 : vector<8x512xf32>
    %557 = vector.extract_strided_slice %54 {offsets = [0, 2], sizes = [8, 1], strides = [1, 1]} : vector<8x4xf32> to vector<8x1xf32>
    %558 = vector.broadcast %557 : vector<8x1xf32> to vector<8x512xf32>
    %559 = arith.mulf %553, %558 : vector<8x512xf32>
    %560 = arith.addf %391, %556 : vector<8x512xf32>
    %561 = arith.addf %392, %559 : vector<8x512xf32>
    %c0_180 = arith.constant 0 : index
    %c0_181 = arith.constant 0 : index
    %c0_182 = arith.constant 0 : index
    %562 = vector.load %arg12[%c0_180, %c0_181, %c0_182] : memref<8x8x512xf32, #tpu.memory_space<vmem>>, vector<1x8x512xf32>
    %563 = vector.shape_cast %562 : vector<1x8x512xf32> to vector<8x512xf32>
    %c0_183 = arith.constant 0 : index
    %c0_184 = arith.constant 0 : index
    %c0_185 = arith.constant 0 : index
    %564 = vector.load %arg13[%c0_183, %c0_184, %c0_185] : memref<8x8x512xf32, #tpu.memory_space<vmem>>, vector<1x8x512xf32>
    %565 = vector.shape_cast %564 : vector<1x8x512xf32> to vector<8x512xf32>
    %566 = vector.extract_strided_slice %55 {offsets = [0, 0, 3], sizes = [1, 8, 1], strides = [1, 1, 1]} : vector<8x8x4xf32> to vector<1x8x1xf32>
    %567 = vector.shape_cast %566 : vector<1x8x1xf32> to vector<8x1xf32>
    %568 = vector.extract_strided_slice %56 {offsets = [0, 0, 3], sizes = [1, 8, 1], strides = [1, 1, 1]} : vector<8x8x4xf32> to vector<1x8x1xf32>
    %569 = vector.shape_cast %568 : vector<1x8x1xf32> to vector<8x1xf32>
    %570 = vector.broadcast %567 : vector<8x1xf32> to vector<8x512xf32>
    %571 = arith.mulf %563, %570 : vector<8x512xf32>
    %572 = vector.broadcast %569 : vector<8x1xf32> to vector<8x512xf32>
    %573 = arith.mulf %565, %572 : vector<8x512xf32>
    %574 = arith.subf %571, %573 : vector<8x512xf32>
    %575 = vector.broadcast %569 : vector<8x1xf32> to vector<8x512xf32>
    %576 = arith.mulf %563, %575 : vector<8x512xf32>
    %577 = vector.broadcast %567 : vector<8x1xf32> to vector<8x512xf32>
    %578 = arith.mulf %565, %577 : vector<8x512xf32>
    %579 = arith.addf %576, %578 : vector<8x512xf32>
    %c1_186 = arith.constant 1 : index
    %c0_187 = arith.constant 0 : index
    %c0_188 = arith.constant 0 : index
    %580 = vector.load %arg12[%c1_186, %c0_187, %c0_188] : memref<8x8x512xf32, #tpu.memory_space<vmem>>, vector<1x8x512xf32>
    %581 = vector.shape_cast %580 : vector<1x8x512xf32> to vector<8x512xf32>
    %c1_189 = arith.constant 1 : index
    %c0_190 = arith.constant 0 : index
    %c0_191 = arith.constant 0 : index
    %582 = vector.load %arg13[%c1_189, %c0_190, %c0_191] : memref<8x8x512xf32, #tpu.memory_space<vmem>>, vector<1x8x512xf32>
    %583 = vector.shape_cast %582 : vector<1x8x512xf32> to vector<8x512xf32>
    %584 = vector.extract_strided_slice %55 {offsets = [1, 0, 3], sizes = [1, 8, 1], strides = [1, 1, 1]} : vector<8x8x4xf32> to vector<1x8x1xf32>
    %585 = vector.shape_cast %584 : vector<1x8x1xf32> to vector<8x1xf32>
    %586 = vector.extract_strided_slice %56 {offsets = [1, 0, 3], sizes = [1, 8, 1], strides = [1, 1, 1]} : vector<8x8x4xf32> to vector<1x8x1xf32>
    %587 = vector.shape_cast %586 : vector<1x8x1xf32> to vector<8x1xf32>
    %588 = vector.broadcast %585 : vector<8x1xf32> to vector<8x512xf32>
    %589 = arith.mulf %581, %588 : vector<8x512xf32>
    %590 = vector.broadcast %587 : vector<8x1xf32> to vector<8x512xf32>
    %591 = arith.mulf %583, %590 : vector<8x512xf32>
    %592 = arith.subf %589, %591 : vector<8x512xf32>
    %593 = vector.broadcast %587 : vector<8x1xf32> to vector<8x512xf32>
    %594 = arith.mulf %581, %593 : vector<8x512xf32>
    %595 = vector.broadcast %585 : vector<8x1xf32> to vector<8x512xf32>
    %596 = arith.mulf %583, %595 : vector<8x512xf32>
    %597 = arith.addf %594, %596 : vector<8x512xf32>
    %598 = arith.addf %574, %592 : vector<8x512xf32>
    %599 = arith.addf %579, %597 : vector<8x512xf32>
    %c2_192 = arith.constant 2 : index
    %c0_193 = arith.constant 0 : index
    %c0_194 = arith.constant 0 : index
    %600 = vector.load %arg12[%c2_192, %c0_193, %c0_194] : memref<8x8x512xf32, #tpu.memory_space<vmem>>, vector<1x8x512xf32>
    %601 = vector.shape_cast %600 : vector<1x8x512xf32> to vector<8x512xf32>
    %c2_195 = arith.constant 2 : index
    %c0_196 = arith.constant 0 : index
    %c0_197 = arith.constant 0 : index
    %602 = vector.load %arg13[%c2_195, %c0_196, %c0_197] : memref<8x8x512xf32, #tpu.memory_space<vmem>>, vector<1x8x512xf32>
    %603 = vector.shape_cast %602 : vector<1x8x512xf32> to vector<8x512xf32>
    %604 = vector.extract_strided_slice %55 {offsets = [2, 0, 3], sizes = [1, 8, 1], strides = [1, 1, 1]} : vector<8x8x4xf32> to vector<1x8x1xf32>
    %605 = vector.shape_cast %604 : vector<1x8x1xf32> to vector<8x1xf32>
    %606 = vector.extract_strided_slice %56 {offsets = [2, 0, 3], sizes = [1, 8, 1], strides = [1, 1, 1]} : vector<8x8x4xf32> to vector<1x8x1xf32>
    %607 = vector.shape_cast %606 : vector<1x8x1xf32> to vector<8x1xf32>
    %608 = vector.broadcast %605 : vector<8x1xf32> to vector<8x512xf32>
    %609 = arith.mulf %601, %608 : vector<8x512xf32>
    %610 = vector.broadcast %607 : vector<8x1xf32> to vector<8x512xf32>
    %611 = arith.mulf %603, %610 : vector<8x512xf32>
    %612 = arith.subf %609, %611 : vector<8x512xf32>
    %613 = vector.broadcast %607 : vector<8x1xf32> to vector<8x512xf32>
    %614 = arith.mulf %601, %613 : vector<8x512xf32>
    %615 = vector.broadcast %605 : vector<8x1xf32> to vector<8x512xf32>
    %616 = arith.mulf %603, %615 : vector<8x512xf32>
    %617 = arith.addf %614, %616 : vector<8x512xf32>
    %618 = arith.addf %598, %612 : vector<8x512xf32>
    %619 = arith.addf %599, %617 : vector<8x512xf32>
    %c3_198 = arith.constant 3 : index
    %c0_199 = arith.constant 0 : index
    %c0_200 = arith.constant 0 : index
    %620 = vector.load %arg12[%c3_198, %c0_199, %c0_200] : memref<8x8x512xf32, #tpu.memory_space<vmem>>, vector<1x8x512xf32>
    %621 = vector.shape_cast %620 : vector<1x8x512xf32> to vector<8x512xf32>
    %c3_201 = arith.constant 3 : index
    %c0_202 = arith.constant 0 : index
    %c0_203 = arith.constant 0 : index
    %622 = vector.load %arg13[%c3_201, %c0_202, %c0_203] : memref<8x8x512xf32, #tpu.memory_space<vmem>>, vector<1x8x512xf32>
    %623 = vector.shape_cast %622 : vector<1x8x512xf32> to vector<8x512xf32>
    %624 = vector.extract_strided_slice %55 {offsets = [3, 0, 3], sizes = [1, 8, 1], strides = [1, 1, 1]} : vector<8x8x4xf32> to vector<1x8x1xf32>
    %625 = vector.shape_cast %624 : vector<1x8x1xf32> to vector<8x1xf32>
    %626 = vector.extract_strided_slice %56 {offsets = [3, 0, 3], sizes = [1, 8, 1], strides = [1, 1, 1]} : vector<8x8x4xf32> to vector<1x8x1xf32>
    %627 = vector.shape_cast %626 : vector<1x8x1xf32> to vector<8x1xf32>
    %628 = vector.broadcast %625 : vector<8x1xf32> to vector<8x512xf32>
    %629 = arith.mulf %621, %628 : vector<8x512xf32>
    %630 = vector.broadcast %627 : vector<8x1xf32> to vector<8x512xf32>
    %631 = arith.mulf %623, %630 : vector<8x512xf32>
    %632 = arith.subf %629, %631 : vector<8x512xf32>
    %633 = vector.broadcast %627 : vector<8x1xf32> to vector<8x512xf32>
    %634 = arith.mulf %621, %633 : vector<8x512xf32>
    %635 = vector.broadcast %625 : vector<8x1xf32> to vector<8x512xf32>
    %636 = arith.mulf %623, %635 : vector<8x512xf32>
    %637 = arith.addf %634, %636 : vector<8x512xf32>
    %638 = arith.addf %618, %632 : vector<8x512xf32>
    %639 = arith.addf %619, %637 : vector<8x512xf32>
    %c4_204 = arith.constant 4 : index
    %c0_205 = arith.constant 0 : index
    %c0_206 = arith.constant 0 : index
    %640 = vector.load %arg12[%c4_204, %c0_205, %c0_206] : memref<8x8x512xf32, #tpu.memory_space<vmem>>, vector<1x8x512xf32>
    %641 = vector.shape_cast %640 : vector<1x8x512xf32> to vector<8x512xf32>
    %c4_207 = arith.constant 4 : index
    %c0_208 = arith.constant 0 : index
    %c0_209 = arith.constant 0 : index
    %642 = vector.load %arg13[%c4_207, %c0_208, %c0_209] : memref<8x8x512xf32, #tpu.memory_space<vmem>>, vector<1x8x512xf32>
    %643 = vector.shape_cast %642 : vector<1x8x512xf32> to vector<8x512xf32>
    %644 = vector.extract_strided_slice %55 {offsets = [4, 0, 3], sizes = [1, 8, 1], strides = [1, 1, 1]} : vector<8x8x4xf32> to vector<1x8x1xf32>
    %645 = vector.shape_cast %644 : vector<1x8x1xf32> to vector<8x1xf32>
    %646 = vector.extract_strided_slice %56 {offsets = [4, 0, 3], sizes = [1, 8, 1], strides = [1, 1, 1]} : vector<8x8x4xf32> to vector<1x8x1xf32>
    %647 = vector.shape_cast %646 : vector<1x8x1xf32> to vector<8x1xf32>
    %648 = vector.broadcast %645 : vector<8x1xf32> to vector<8x512xf32>
    %649 = arith.mulf %641, %648 : vector<8x512xf32>
    %650 = vector.broadcast %647 : vector<8x1xf32> to vector<8x512xf32>
    %651 = arith.mulf %643, %650 : vector<8x512xf32>
    %652 = arith.subf %649, %651 : vector<8x512xf32>
    %653 = vector.broadcast %647 : vector<8x1xf32> to vector<8x512xf32>
    %654 = arith.mulf %641, %653 : vector<8x512xf32>
    %655 = vector.broadcast %645 : vector<8x1xf32> to vector<8x512xf32>
    %656 = arith.mulf %643, %655 : vector<8x512xf32>
    %657 = arith.addf %654, %656 : vector<8x512xf32>
    %658 = arith.addf %638, %652 : vector<8x512xf32>
    %659 = arith.addf %639, %657 : vector<8x512xf32>
    %c5_210 = arith.constant 5 : index
    %c0_211 = arith.constant 0 : index
    %c0_212 = arith.constant 0 : index
    %660 = vector.load %arg12[%c5_210, %c0_211, %c0_212] : memref<8x8x512xf32, #tpu.memory_space<vmem>>, vector<1x8x512xf32>
    %661 = vector.shape_cast %660 : vector<1x8x512xf32> to vector<8x512xf32>
    %c5_213 = arith.constant 5 : index
    %c0_214 = arith.constant 0 : index
    %c0_215 = arith.constant 0 : index
    %662 = vector.load %arg13[%c5_213, %c0_214, %c0_215] : memref<8x8x512xf32, #tpu.memory_space<vmem>>, vector<1x8x512xf32>
    %663 = vector.shape_cast %662 : vector<1x8x512xf32> to vector<8x512xf32>
    %664 = vector.extract_strided_slice %55 {offsets = [5, 0, 3], sizes = [1, 8, 1], strides = [1, 1, 1]} : vector<8x8x4xf32> to vector<1x8x1xf32>
    %665 = vector.shape_cast %664 : vector<1x8x1xf32> to vector<8x1xf32>
    %666 = vector.extract_strided_slice %56 {offsets = [5, 0, 3], sizes = [1, 8, 1], strides = [1, 1, 1]} : vector<8x8x4xf32> to vector<1x8x1xf32>
    %667 = vector.shape_cast %666 : vector<1x8x1xf32> to vector<8x1xf32>
    %668 = vector.broadcast %665 : vector<8x1xf32> to vector<8x512xf32>
    %669 = arith.mulf %661, %668 : vector<8x512xf32>
    %670 = vector.broadcast %667 : vector<8x1xf32> to vector<8x512xf32>
    %671 = arith.mulf %663, %670 : vector<8x512xf32>
    %672 = arith.subf %669, %671 : vector<8x512xf32>
    %673 = vector.broadcast %667 : vector<8x1xf32> to vector<8x512xf32>
    %674 = arith.mulf %661, %673 : vector<8x512xf32>
    %675 = vector.broadcast %665 : vector<8x1xf32> to vector<8x512xf32>
    %676 = arith.mulf %663, %675 : vector<8x512xf32>
    %677 = arith.addf %674, %676 : vector<8x512xf32>
    %678 = arith.addf %658, %672 : vector<8x512xf32>
    %679 = arith.addf %659, %677 : vector<8x512xf32>
    %c6_216 = arith.constant 6 : index
    %c0_217 = arith.constant 0 : index
    %c0_218 = arith.constant 0 : index
    %680 = vector.load %arg12[%c6_216, %c0_217, %c0_218] : memref<8x8x512xf32, #tpu.memory_space<vmem>>, vector<1x8x512xf32>
    %681 = vector.shape_cast %680 : vector<1x8x512xf32> to vector<8x512xf32>
    %c6_219 = arith.constant 6 : index
    %c0_220 = arith.constant 0 : index
    %c0_221 = arith.constant 0 : index
    %682 = vector.load %arg13[%c6_219, %c0_220, %c0_221] : memref<8x8x512xf32, #tpu.memory_space<vmem>>, vector<1x8x512xf32>
    %683 = vector.shape_cast %682 : vector<1x8x512xf32> to vector<8x512xf32>
    %684 = vector.extract_strided_slice %55 {offsets = [6, 0, 3], sizes = [1, 8, 1], strides = [1, 1, 1]} : vector<8x8x4xf32> to vector<1x8x1xf32>
    %685 = vector.shape_cast %684 : vector<1x8x1xf32> to vector<8x1xf32>
    %686 = vector.extract_strided_slice %56 {offsets = [6, 0, 3], sizes = [1, 8, 1], strides = [1, 1, 1]} : vector<8x8x4xf32> to vector<1x8x1xf32>
    %687 = vector.shape_cast %686 : vector<1x8x1xf32> to vector<8x1xf32>
    %688 = vector.broadcast %685 : vector<8x1xf32> to vector<8x512xf32>
    %689 = arith.mulf %681, %688 : vector<8x512xf32>
    %690 = vector.broadcast %687 : vector<8x1xf32> to vector<8x512xf32>
    %691 = arith.mulf %683, %690 : vector<8x512xf32>
    %692 = arith.subf %689, %691 : vector<8x512xf32>
    %693 = vector.broadcast %687 : vector<8x1xf32> to vector<8x512xf32>
    %694 = arith.mulf %681, %693 : vector<8x512xf32>
    %695 = vector.broadcast %685 : vector<8x1xf32> to vector<8x512xf32>
    %696 = arith.mulf %683, %695 : vector<8x512xf32>
    %697 = arith.addf %694, %696 : vector<8x512xf32>
    %698 = arith.addf %678, %692 : vector<8x512xf32>
    %699 = arith.addf %679, %697 : vector<8x512xf32>
    %c7_222 = arith.constant 7 : index
    %c0_223 = arith.constant 0 : index
    %c0_224 = arith.constant 0 : index
    %700 = vector.load %arg12[%c7_222, %c0_223, %c0_224] : memref<8x8x512xf32, #tpu.memory_space<vmem>>, vector<1x8x512xf32>
    %701 = vector.shape_cast %700 : vector<1x8x512xf32> to vector<8x512xf32>
    %c7_225 = arith.constant 7 : index
    %c0_226 = arith.constant 0 : index
    %c0_227 = arith.constant 0 : index
    %702 = vector.load %arg13[%c7_225, %c0_226, %c0_227] : memref<8x8x512xf32, #tpu.memory_space<vmem>>, vector<1x8x512xf32>
    %703 = vector.shape_cast %702 : vector<1x8x512xf32> to vector<8x512xf32>
    %704 = vector.extract_strided_slice %55 {offsets = [7, 0, 3], sizes = [1, 8, 1], strides = [1, 1, 1]} : vector<8x8x4xf32> to vector<1x8x1xf32>
    %705 = vector.shape_cast %704 : vector<1x8x1xf32> to vector<8x1xf32>
    %706 = vector.extract_strided_slice %56 {offsets = [7, 0, 3], sizes = [1, 8, 1], strides = [1, 1, 1]} : vector<8x8x4xf32> to vector<1x8x1xf32>
    %707 = vector.shape_cast %706 : vector<1x8x1xf32> to vector<8x1xf32>
    %708 = vector.broadcast %705 : vector<8x1xf32> to vector<8x512xf32>
    %709 = arith.mulf %701, %708 : vector<8x512xf32>
    %710 = vector.broadcast %707 : vector<8x1xf32> to vector<8x512xf32>
    %711 = arith.mulf %703, %710 : vector<8x512xf32>
    %712 = arith.subf %709, %711 : vector<8x512xf32>
    %713 = vector.broadcast %707 : vector<8x1xf32> to vector<8x512xf32>
    %714 = arith.mulf %701, %713 : vector<8x512xf32>
    %715 = vector.broadcast %705 : vector<8x1xf32> to vector<8x512xf32>
    %716 = arith.mulf %703, %715 : vector<8x512xf32>
    %717 = arith.addf %714, %716 : vector<8x512xf32>
    %718 = arith.addf %698, %712 : vector<8x512xf32>
    %719 = arith.addf %699, %717 : vector<8x512xf32>
    %720 = arith.mulf %718, %718 : vector<8x512xf32>
    %721 = arith.mulf %719, %719 : vector<8x512xf32>
    %722 = arith.addf %720, %721 : vector<8x512xf32>
    %723 = vector.extract_strided_slice %52 {offsets = [0, 3], sizes = [8, 1], strides = [1, 1]} : vector<8x4xf32> to vector<8x1xf32>
    %724 = vector.broadcast %723 : vector<8x1xf32> to vector<8x512xf32>
    %725 = arith.mulf %722, %724 : vector<8x512xf32>
    %726 = vector.extract_strided_slice %54 {offsets = [0, 3], sizes = [8, 1], strides = [1, 1]} : vector<8x4xf32> to vector<8x1xf32>
    %727 = vector.broadcast %726 : vector<8x1xf32> to vector<8x512xf32>
    %728 = arith.mulf %722, %727 : vector<8x512xf32>
    %729 = arith.addf %560, %725 : vector<8x512xf32>
    %730 = arith.addf %561, %728 : vector<8x512xf32>
    %731 = arith.subf %729, %730 : vector<8x512xf32>
    %cst_228 = arith.constant 1.000000e+00 : f32
    %732 = vector.broadcast %cst_228 : f32 to vector<8x512xf32>
    %733 = arith.addf %731, %732 : vector<8x512xf32>
    %734 = arith.divf %730, %733 : vector<8x512xf32>
    %c0_229 = arith.constant 0 : index
    %c0_230 = arith.constant 0 : index
    %735 = vector.load %arg18[%c0_229, %c0_230] : memref<8x512xf32, #tpu.memory_space<vmem>>, vector<8x512xf32>
    tpu.vector_store %arg18[%c0_229, %c0_230], %734 {strides = array<i32>} : memref<8x512xf32, #tpu.memory_space<vmem>>, vector<8x512xf32>,
    return
  }
  func.func @transform_0(%arg0: i32) -> (i32, i32) {
    %c0_i32 = arith.constant 0 : i32
    %c0_i32_0 = arith.constant 0 : i32
    %c0_i32_1 = arith.constant 0 : i32
    return %c0_i32, %c0_i32_0 : i32, i32
  }
  func.func @transform_1(%arg0: i32) -> (i32, i32) {
    %c0_i32 = arith.constant 0 : i32
    %c0_i32_0 = arith.constant 0 : i32
    %c0_i32_1 = arith.constant 0 : i32
    return %c0_i32, %c0_i32_0 : i32, i32
  }
  func.func @transform_2(%arg0: i32) -> (i32, i32) {
    %c0_i32 = arith.constant 0 : i32
    %c0_i32_0 = arith.constant 0 : i32
    %c0_i32_1 = arith.constant 0 : i32
    return %c0_i32, %c0_i32_0 : i32, i32
  }
  func.func @transform_3(%arg0: i32) -> (i32, i32) {
    %c0_i32 = arith.constant 0 : i32
    %c0_i32_0 = arith.constant 0 : i32
    %c0_i32_1 = arith.constant 0 : i32
    return %c0_i32, %c0_i32_0 : i32, i32
  }
  func.func @transform_4(%arg0: i32) -> (i32, i32) {
    %c0_i32 = arith.constant 0 : i32
    %c0_i32_0 = arith.constant 0 : i32
    %c0_i32_1 = arith.constant 0 : i32
    return %c0_i32, %c0_i32_0 : i32, i32
  }
  func.func @transform_5(%arg0: i32) -> (i32, i32) {
    %c0_i32 = arith.constant 0 : i32
    %c0_i32_0 = arith.constant 0 : i32
    %c0_i32_1 = arith.constant 0 : i32
    return %c0_i32, %c0_i32_0 : i32, i32
  }
  func.func @transform_6(%arg0: i32) -> (i32, i32) {
    %c0_i32 = arith.constant 0 : i32
    %c0_i32_0 = arith.constant 0 : i32
    %c0_i32_1 = arith.constant 0 : i32
    return %c0_i32, %c0_i32_0 : i32, i32
  }
  func.func @transform_7(%arg0: i32) -> (i32, i32) {
    %c0_i32 = arith.constant 0 : i32
    %c0_i32_0 = arith.constant 0 : i32
    %c0_i32_1 = arith.constant 0 : i32
    return %c0_i32, %c0_i32_0 : i32, i32
  }
  func.func @transform_8(%arg0: i32) -> (i32, i32) {
    %c0_i32 = arith.constant 0 : i32
    %c0_i32_0 = arith.constant 0 : i32
    %c0_i32_1 = arith.constant 0 : i32
    return %c0_i32, %c0_i32_0 : i32, i32
  }
  func.func @transform_9(%arg0: i32) -> (i32, i32) {
    %c0_i32 = arith.constant 0 : i32
    %c0_i32_0 = arith.constant 0 : i32
    %c0_i32_1 = arith.constant 0 : i32
    return %c0_i32, %c0_i32_0 : i32, i32
  }
  func.func @transform_10(%arg0: i32) -> (i32, i32) {
    %c0_i32 = arith.constant 0 : i32
    %c0_i32_0 = arith.constant 0 : i32
    %c0_i32_1 = arith.constant 0 : i32
    return %c0_i32, %c0_i32_0 : i32, i32
  }
  func.func @transform_11(%arg0: i32) -> (i32, i32, i32) {
    %c0_i32 = arith.constant 0 : i32
    %c0_i32_0 = arith.constant 0 : i32
    %c0_i32_1 = arith.constant 0 : i32
    return %c0_i32, %c0_i32_0, %arg0 : i32, i32, i32
  }
  func.func @transform_12(%arg0: i32) -> (i32, i32, i32) {
    %c0_i32 = arith.constant 0 : i32
    %c0_i32_0 = arith.constant 0 : i32
    %c0_i32_1 = arith.constant 0 : i32
    return %c0_i32, %c0_i32_0, %arg0 : i32, i32, i32
  }
  func.func @transform_13(%arg0: i32) -> (i32, i32, i32) {
    %c0_i32 = arith.constant 0 : i32
    %c0_i32_0 = arith.constant 0 : i32
    %c0_i32_1 = arith.constant 0 : i32
    %c0_i32_2 = arith.constant 0 : i32
    return %c0_i32, %c0_i32_0, %c0_i32_1 : i32, i32, i32
  }
  func.func @transform_14(%arg0: i32) -> (i32, i32, i32) {
    %c0_i32 = arith.constant 0 : i32
    %c0_i32_0 = arith.constant 0 : i32
    %c0_i32_1 = arith.constant 0 : i32
    %c0_i32_2 = arith.constant 0 : i32
    return %c0_i32, %c0_i32_0, %c0_i32_1 : i32, i32, i32
  }
  func.func @transform_15(%arg0: i32) -> (i32, i32) {
    %c0_i32 = arith.constant 0 : i32
    %c0_i32_0 = arith.constant 0 : i32
    %c0_i32_1 = arith.constant 0 : i32
    return %c0_i32, %c0_i32_0 : i32, i32
  }
  func.func @transform_16(%arg0: i32) -> (i32, i32, i32) {
    %c0_i32 = arith.constant 0 : i32
    %c0_i32_0 = arith.constant 0 : i32
    %c0_i32_1 = arith.constant 0 : i32
    return %arg0, %c0_i32, %c0_i32_0 : i32, i32, i32
  }
  func.func @transform_17(%arg0: i32) -> (i32, i32) {
    %c0_i32 = arith.constant 0 : i32
    %c0_i32_0 = arith.constant 0 : i32
    return %c0_i32, %arg0 : i32, i32
  }
}

</mosaic_0001>

<bundles_post_ra>
// kernel: custom-call
= control target key start
LH: loop header
LB: loop body
LE: loop exit
PB: predicated region body
PF: predicated region fallthrough
CT: control target
= control target key end

     0   :  { %2 = vsyncpa [#allocation0], 0  ;;  %s55_s0 = inlined_call_operand.hbm [shape: c64[2,8,4], index: 0, kind: input, shape index: {}]   ;;  %s56_s1 = inlined_call_operand.vmem [shape: f32[2,8,4], index: 1, kind: output, shape index: {}]  }
   0x1   :  { %s4_s8 = sshll.u32 %s55_s0, 4  ;;  %s6_s11 = sshll.u32 %s56_s1, 4  ;;  %s5_s8 = int_to_ptr.hbm [resolvable:$true] %s4_s8  ;;  %s7_s11 = int_to_ptr.vmem [resolvable:$true] %s6_s11 }
   0x2   :  { %9 = dma.hbm_to_vmem [thread:$0]  %s5_s8, 128, %s7_s11, [#allocation0] }
   0x3   :  { %37 = dma.done.wait [#allocation0], 128  }
   0x4   :  { %38 = vsyncadd [#allocation0], 4294967168 }
   0x5   :  { %12 = vsyncpa [#allocation0], 1 }

// kernel: custom-call.1
= control target key start
LH: loop header
LB: loop body
LE: loop exit
PB: predicated region body
PF: predicated region fallthrough
CT: control target
= control target key end

     0   :  { %s56_s0 = inlined_call_operand.hbm [shape: c64[2,8,4], index: 0, kind: input, shape index: {}]   ;;  %s57_s1 = inlined_call_operand.vmem [shape: f32[2,8,4], index: 1, kind: output, shape index: {}]  }
   0x1   :  { %s2_s8 = scalar_lea.hbm %s56_s0, 8 }
   0x2   :  { %3 = vsyncpa [#allocation0], 0  ;;  %s5_s9 = sshll.u32 %s2_s8, 4  ;;  %s7_s12 = sshll.u32 %s57_s1, 4  ;;  %s6_s9 = int_to_ptr.hbm [resolvable:$true] %s5_s9  ;;  %s8_s12 = int_to_ptr.vmem [resolvable:$true] %s7_s12 }
   0x3   :  { %10 = dma.hbm_to_vmem [thread:$0]  %s6_s9, 128, %s8_s12, [#allocation0] }
   0x4   :  { %38 = dma.done.wait [#allocation0], 128  }
   0x5   :  { %39 = vsyncadd [#allocation0], 4294967168 }
   0x6   :  { %13 = vsyncpa [#allocation0], 1 }

// kernel: custom-call.11
= control target key start
LH: loop header
LB: loop body
LE: loop exit
PB: predicated region body
PF: predicated region fallthrough
CT: control target
= control target key end

     0   :  { %5 = vsyncpa [#allocation4], 0  ;;  %s901_s0 = inlined_call_operand.vmem [shape: f32[2,8,8], index: 0, kind: input, shape index: {}]   ;;  %s902_s1 = inlined_call_operand.vmem [shape: f32[2,8,8], index: 1, kind: output, shape index: {0}]   ;;  %s903_s2 = inlined_call_operand.hbm [shape: s32[2,8], index: 2, kind: output, shape index: {1}]   ;;  %s904_s3 = inlined_call_operand.vmem [shape: s32[2,8], index: 3, kind: output, shape index: {2}]  }
   0x1   :  { %7 = vsyncpa [#allocation4 + $0x1], 0  ;;  %s725_s12 = smov 0   ;;  %s727_s13 = smov 0  }
   0x2   :  { %s729_s14 = smov 0   ;;  %s731_s15 = smov 0  }
   0x3 LB: > { %s746_s16 = sadd.s32 4294967295, %s698_s15   ;;  %s561_s17 = sadd.s32 4294967294, %s698_s15   ;;  %s698_s15 = sphi %s731_s15, %s910_s15   ;;  %s694_s14 = sphi %s729_s14, %s909_s14   ;;  %s690_s13 = sphi %s727_s13, %s908_s13   ;;  %s686_s12 = sphi %s725_s12, %s907_s12  }
   0x4   : > { %s750_s18 = sadd.s32 1, %s698_s15   ;;  %s17_s19 = sshrl.u32 %s698_s15, 3 }
   0x5   : > { %s18_s20 = sshrl.u32 %s750_s18, 3  ;;  %s22_s21 = sadd.s32 1, %s694_s14 }
   0x6   : > { %s19_s22 = ssub.s32 %s17_s19, %s18_s20  ;;  %p32_p0 = scmp.ne.s32.totalorder %s694_s14, %s690_s13 }
   0x7   : > { %p20_p1 = scmp.eq.s32.totalorder %s19_s22, 0  ;;  %p33_p2 = scmp.eq.s32.totalorder %s746_s16, 1 }
   0x8   : > { %p38_p3 = scmp.ne.s32.totalorder %s690_s13, %s686_s12  ;;  %p39_p4 = scmp.eq.s32.totalorder %s561_s17, 1 }
   0x9   : > { %s761_s23 = scalar_select %p20_p1, %s694_s14, %s22_s21  }
   0xa   : > { %p763_p5 = por %p33_p2, %p32_p0  ;;  %p767_p6 = por %p39_p4, %p38_p3 }
   0xb   : > { %p563_p7 = scmp.ge.s32.totalorder %s698_s15, 2 }
   0xc   : > { %s85_s26 = sand.u32 (!%p563_p7), 1, %s698_s15   ;;  %s565_s27 = sshll.u32 (!%p563_p7), %s698_s15, 3 }
   0xd   : > { %83 = sbr.rel (%p563_p7) target bundleno = 20 (0x14), region = 16  ;;  %s564_s28 = sshll.u32 (!%p563_p7), %s85_s26, 3 }
   0xe   : > { %s89_s4 = scalar_lea.vmem (!%p563_p7), %s901_s0, %s565_s27  ;;  %s87_s5 = scalar_lea.vmem (!%p563_p7), [#allocation0], %s564_s28 }
  0x12   : > { %v118_v0 = vld [vmem:[%s89_s4] sm:$0xff] }
  0x13   : > { %119 = vst [vmem:[%s87_s5] sm:$0xff] %v118_v0 }
  0x14 PF: > { %p566_p8 = scmp.ge.s32.totalorder %s698_s15, 1  ;;  %p124_p9 = scmp.lt.s32.totalorder %s698_s15, 3 }
  0x16   : > { %p125_p10 = pnand %p566_p8, %p124_p9 }
  0x18   : > { %128 = sbr.rel (%p125_p10) target bundleno = 476 (0x1dc), region = 54 }
  0x1d   : > { %s131_s6 = sand.u32 1, %s746_s16   ;;  %s146_s7 = sand.u32 1, %s690_s13   ;;  %v164_v1 = vlaneseq  ;;  %v704_v4 = vmov 0  }
  0x1e   : > { %s567_s8 = sshll.u32 %s131_s6, 3  ;;  %s785_s9 = sshll.u32 %s146_s7, 1 }
  0x1f   : > { %v788_v2 = vshrl.u32 %v164_v1, 7  ;;  %s133_s10 = scalar_lea.vmem [#allocation0], %s567_s8  ;;  %s790_s11 = scalar_lea.vmem [#allocation1], %s567_s8 }
  0x20   : > { %v157_v3 = vld [vmem:[%s133_s10] sm:$0xff]  ;;  %s159_s17 = sand.u32 7, %s746_s16   ;;  %s148_s20 = scalar_lea.vmem [#allocation3], %s785_s9 }
  0x21   : > { %158 = vst [vmem:[%s790_s11] sm:$0xff] %v157_v3  ;;  %s795_s19 = scalar_lea.vmem [#allocation2], %s159_s17  ;;  %s154_s21 = scalar_lea.vmem [#allocation6], %s785_s9 }
  0x22   : > { %168 = vst [vmem:[#allocation7] sm:$0xff] %v788_v2  ;;  %s800_s22 = scalar_lea.vmem [#allocation5], %s159_s17  ;;  %s802_s26 = smov 0  }
  0x23   : > { %163 = vst [vmem:[%s795_s19] sm:$0x1] %v704_v4 }
  0x24 LB: >> { %v809_v7 = vstv %s702_s26  ;;  %s225_s27 = ssub.s32 128, %s702_s26  ;;  %s237_s28 = scalar_lea.vmem %s790_s11, %s702_s26 [#allocation1]  ;;  %v231_v38 = vand.u32 127, %v164_v1  ;;  %s702_s26 = sphi %s802_s26, %s174_s26  }
  0x25   : >> { %vm183_vm0 = vcmp.ge.s32.totalorder %v788_v2, %v809_v7  ;;  %s243_s4 = scalar_lea.vmem [#allocation7], %s702_s26  ;;  %vm263_vm12 = vcmp.gt.s32.totalorder %v788_v2, %v809_v7  ;;  %s174_s26 = sadd.s32 1, %s702_s26  }
  0x26   : >> { %vm232_vm10 = vcmp.eq.s32.totalorder %v231_v38, %v809_v7  ;;  %p171_p11 = scmp.ge.s32.totalorder %s174_s26, 8  }
  0x27   : > { %s399_s6 = sshrl.u32 (%p171_p11), %s746_s16, 3  ;;  %s405_s26 = sshll.u32 (%p171_p11), %s148_s20, 4  ;;  %s406_s26 = int_to_ptr.vmem [resolvable:$true] %s405_s26 }
  0x28   : >> { %v179_v5 = vld [vmem:[%s790_s11] sm:$0xff]  ;;  %v239_v39 = vld [vmem:[%s237_s28] ss:$0 sm:$0xff]  ;;  %s845_s8 = sshll.u32 (%p171_p11), %s399_s6, 1 }
  0x29   : >> { %v180_v6 = vand.u32 2147483647, %v179_v5  ;;  %v245_v43 = vld [vmem:[%s243_s4] ss:$0 sm:$0xff] }
  0x2a   : >> { %v234_v41 = vld [vmem:[%s795_s19] ss:$0 sm:$0xff] }
  0x2b   : >> { %vm571_vm1 = vcmp.gt.f32.partialorder %v180_v6, -inf }
  0x2c   : >> { %vm187_vm2 = vmand %vm183_vm0, %vm571_vm1 }
  0x2d   : >> { %v188_v8 = vsel %vm187_vm2, %v788_v2, %v809_v7  ;;  %v189_v9 = vsel %vm187_vm2, %v180_v6, -inf  ;;  %vm280_vm2 = vmand %vm263_vm12, %vm232_vm10 }
  0x2e   : >> { %v190_v10 = vrot.slane %v189_v9, 1  ;;  %v191_v11 = vrot.slane %v188_v8, 1 }
  0x30   : >> { %vm192_vm3 = vcmp.ge.f32.partialorder %v190_v10, %v189_v9  ;;  %v195_v12 = vrot.slane %v190_v10, 1  ;;  %v196_v13 = vrot.slane %v191_v11, 1 }
  0x31   : >> { %v193_v14 = vsel %vm192_vm3, %v190_v10, %v189_v9  ;;  %v194_v15 = vsel %vm192_vm3, %v191_v11, %v188_v8  ;;  %vm255_vm3 = vcmp.gt.s32.totalorder %v231_v38, %v809_v7 }
  0x32   : >> { %vm197_vm4 = vcmp.ge.f32.partialorder %v195_v12, %v193_v14  ;;  %v200_v16 = vrot.slane %v195_v12, 1  ;;  %v201_v17 = vrot.slane %v196_v13, 1 }
  0x33   : >> { %v198_v18 = vsel %vm197_vm4, %v195_v12, %v193_v14  ;;  %v199_v19 = vsel %vm197_vm4, %v196_v13, %v194_v15 }
  0x34   : >> { %vm202_vm5 = vcmp.ge.f32.partialorder %v200_v16, %v198_v18  ;;  %v205_v20 = vrot.slane %v200_v16, 1  ;;  %v206_v21 = vrot.slane %v201_v17, 1 }
  0x35   : >> { %v203_v22 = vsel %vm202_vm5, %v200_v16, %v198_v18  ;;  %v204_v23 = vsel %vm202_vm5, %v201_v17, %v199_v19 }
  0x36   : >> { %vm207_vm6 = vcmp.ge.f32.partialorder %v205_v20, %v203_v22  ;;  %v210_v24 = vrot.slane %v205_v20, 1  ;;  %v211_v25 = vrot.slane %v206_v21, 1 }
  0x37   : >> { %v208_v26 = vsel %vm207_vm6, %v205_v20, %v203_v22  ;;  %v209_v27 = vsel %vm207_vm6, %v206_v21, %v204_v23 }
  0x38   : >> { %vm212_vm7 = vcmp.ge.f32.partialorder %v210_v24, %v208_v26  ;;  %v215_v28 = vrot.slane %v210_v24, 1  ;;  %v216_v29 = vrot.slane %v211_v25, 1 }
  0x39   : >> { %v213_v30 = vsel %vm212_vm7, %v210_v24, %v208_v26  ;;  %v214_v31 = vsel %vm212_vm7, %v211_v25, %v209_v27 }
  0x3a   : >> { %vm217_vm8 = vcmp.ge.f32.partialorder %v215_v28, %v213_v30  ;;  %v220_v32 = vrot.slane %v215_v28, 1  ;;  %v221_v33 = vrot.slane %v216_v29, 1 }
  0x3b   : >> { %v218_v34 = vsel %vm217_vm8, %v215_v28, %v213_v30  ;;  %v219_v35 = vsel %vm217_vm8, %v216_v29, %v214_v31 }
  0x3c   : >> { %vm222_vm9 = vcmp.ge.f32.partialorder %v220_v32, %v218_v34 }
  0x3d   : >> { %v224_v36 = vsel %vm222_vm9, %v221_v33, %v219_v35 }
  0x3e   : >> { %226 = vrot.lane.b32.xlu0 %v224_v36, %s225_s27  ;;  %s403_s27 = scalar_lea.hbm (%p171_p11), %s903_s2, %s845_s8 }
  0xb0   : >> { %v227_v37 = vpop.permute.xlu0 %226 }
  0xb1   : >> { %580 = vpush %v227_v37 }
  0xe2   : >> { %s581_s29 = spop %580 }
  0xe3   : >> { %v233_v40 = vstv %s581_s29  ;;  %s238_s30 = scalar_lea.vmem %s790_s11, %s581_s29 [#allocation1]  ;;  %s244_s5 = scalar_lea.vmem [#allocation7], %s581_s29 }
  0xe4   : >> { %v240_v42 = vld [vmem:[%s238_s30] ss:$0 sm:$0xff]  ;;  %v235_v45 = vsel %vm232_vm10, %v233_v40, %v234_v41 }
  0xe5   : >> { %v246_v44 = vld [vmem:[%s244_s5] ss:$0 sm:$0xff]  ;;  %241 = vst [vmem:[%s238_s30] sm:$0x1] %v239_v39  ;;  %vm249_vm11 = vcmp.ne.f32.partialorder %v240_v42, 0.0  ;;  %v256_v61 = vsel %vm255_vm3, %v240_v42, 0.0 }
  0xe6   : >> { %242 = vst [vmem:[%s237_s28] sm:$0x1] %v240_v42  ;;  %vm250_vm13 = vmand %vm232_vm10, %vm249_vm11  ;;  %s575_s28 = sshll.u32 (%p171_p11), %s746_s16, 3 }
  0xe7   : >> { %247 = vst [vmem:[%s244_s5] sm:$0x1] %v245_v43  ;;  %v251_v46 = vsel %vm250_vm13, %v240_v42, 1.0  ;;  %s353_s5 = scalar_lea.sflag (%p171_p11), [#allocation4], %s146_s7 }
  0xe8   : >> { %248 = vst [vmem:[%s243_s4] sm:$0x1] %v246_v44  ;;  %v264_v47 = vsel %vm263_vm12, %v251_v46, 1.0  ;;  %s362_s4 = scalar_lea.vmem (%p171_p11), %s902_s1, %s575_s28 }
  0xe9   : >> { %630 = vrcp.f32 %v264_v47  ;;  %236 = vst [vmem:[%s795_s19] sm:$0x1] %v235_v45  ;;  %v276_v51 = vand.u32 2147483648, %v264_v47  ;;  %v274_v53 = vand.u32 2147483647, %v264_v47  ;;  %vm270_vm15 = vweird.f32 %v264_v47  ;;  %s407_s19 = sshll.u32 (%p171_p11), %s403_s27, 4  ;;  %s652_s27 = scalar_lea.hbm (%p171_p11), %s903_s2, 2  ;;  %s408_s19 = int_to_ptr.hbm [resolvable:$true] %s407_s19 }
  0xea   : > { %s646_s6 = sshra.s32 (%p171_p11), %s408_s19, 4  ;;  %s647_s6 = int_to_ptr.hbm [resolvable:$true] %s646_s6 }
  0xeb   : >> { %v277_v55 = vor.u32 1.1754944e-38, %v276_v51  ;;  %vm275_vm1 = vcmp.eq.f32.partialorder %v274_v53, 8.507059e+37  ;;  %s648_s10 = scalar_lea.hbm (%p171_p11), %s647_s6, 2  ;;  %p653_p1 = scmp.lt.s32.totalorder (%p171_p11), %s647_s6, %s903_s2 }
  0xec   : > { %p649_p12 = scmp.ne.s32.totalorder (%p171_p11), %s647_s6, %s648_s10  ;;  %p654_p2 = scmp.lt.s32.totalorder (%p171_p11), %s652_s27, %s648_s10 }
  0xed   : >> { %v260_v57 = vld [vmem:[%s790_s11] sm:$0xff] }
  0xee   : > { %p650_p13 = pnand (%p171_p11), %p649_p12, %p763_p5  ;;  %p655_p3 = por (%p171_p11), %p654_p2, %p653_p1 }
  0xef   : >> { %v631_v48 = vpop.eup %630  ;;  %v287_v3 = vld [vmem:[#allocation7] sm:$0xff] (%p171_p11) }
  0xf0   : >> { %v266_v49 = vmul.f32 %v631_v48, %v264_v47  ;;  %vm271_vm14 = vweird.f32 %v631_v48  ;;  %v338_v1 = vld [vmem:[#allocation2] sm:$0x3] (%p171_p11)  ;;  %p651_p0 = pneg (%p171_p11), %p650_p13 }
  0xf1   : >> { %vm272_vm0 = vmor %vm270_vm15, %vm271_vm14  ;;  %341 = vst [vmem:[%s148_s20] sm:$0x3] (%p171_p11), %v338_v1 }
  0xf2   : >> { %v267_v50 = vsub.f32 1.0, %v266_v49  ;;  %p656_p4 = pnand (%p171_p11), %p655_p3, %p651_p0 }
  0xf4   : >> { %v268_v52 = vmul.f32 %v631_v48, %v267_v50 }
  0xf6   : >> { %v269_v54 = vadd.f32 %v631_v48, %v268_v52 }
  0xf8   : >> { %v273_v56 = vsel %vm272_vm0, %v631_v48, %v269_v54 }
  0xf9   : >> { %v278_v58 = vsel %vm275_vm1, %v277_v55, %v273_v56 }
  0xfa   : >> { %v279_v59 = vmul.f32 %v278_v58, %v260_v57 }
  0xfc   : >> { %v281_v60 = vsel %vm280_vm2, %v279_v59, 0.0 }
  0xfd   : >> { %282 = vadd.xlane.f32.xlu0 %v281_v60 }
 0x126   : > { %303 = vxpose.xlu0.b32.start.end [1/1] (short) (narrow) (%p171_p11), %v287_v3, 8 }
 0x170   : >> { %v283_v62 = vpop.xlane.xlu0 %282 }
 0x171   : >> { %v284_v63 = vmul.f32 %v283_v62, %v256_v61  ;;  %173 = sbr.rel (!%p171_p11) target bundleno = 36 (0x24), region = 210 }
 0x173   : >> { %v285_v0 = vsub.f32 %v279_v59, %v284_v63 }
 0x175   : >> { %286 = vst [vmem:[%s790_s11] sm:$0xff] %v285_v0 }
 0x17c   : > { %v391_v2 = vld [vmem:[%s790_s11] sm:$0xff] }
 0x17d   : > { %392 = vst [vmem:[%s362_s4] sm:$0xff] %v391_v2 }
 0x17e   : > { %659 = shalt.err (!%p656_p4)
}
 0x17f   : > { %582 = dma.vmem_to_hbm [thread:$0]  (%p763_p5), %s406_s26, 32, %s408_s19, %s353_s5  }
 0x180   : > { %s416_s20 = scalar_lea.vmem (%p763_p5), %s904_s3, %s845_s8 }
 0x1ca   : > { %v319_v4 = vpop.trf.xlu0 }
 0x1cb   : > { %335 = vst [vmem:[%s800_s22] sm:$0x1] %v319_v4 }
 0x1cf   : > { %413 = sbr.rel (!%p763_p5) target bundleno = 476 (0x1dc), region = 104 }
 0x1d2   : > { %v344_v5 = vld [vmem:[#allocation5] sm:$0x3] }
 0x1d3   : > { %347 = vst [vmem:[%s154_s21] sm:$0x3] %v344_v5 }
 0x1da   : > { %v433_v6 = vld [vmem:[%s154_s21] sm:$0x3] }
 0x1db   : > { %434 = vst [vmem:[%s416_s20] sm:$0x3] %v433_v6 }
 0x1dc PF: > { %s462_s22 = sand.u32 1, %s686_s12   ;;  %p585_p8 = pnand %p563_p7, %p767_p6 }
 0x1dd   : > { %s463_s24 = scalar_lea.sflag [#allocation4], %s462_s22 }
 0x1de   : > { %p586_p9 = pneg %p585_p8 }
 0x1e0   : > { %681 = dma.done.wait (%p586_p9), %s463_s24, 32  }
 0x1e1   : > { %683 = vsyncadd (%p586_p9), %s463_s24, 4294967264  ;;  %p10_p5 = scmp.ge.s32.totalorder %s750_s18, 4   ;;  %s907_s12 = smov %s690_s13 }
 0x1e2   : > { %s908_s13 = smov %s694_s14  ;;  %s909_s14 = smov %s761_s23 }
 0x1e3   : > { %s910_s15 = smov %s750_s18  ;;  %12 = sbr.rel (!%p10_p5) target bundleno = 3 (0x3), region = 221 }
 0x1e8   :  { %476 = vsyncpa [#allocation4], 1 }
 0x1e9   :  { %478 = vsyncpa [#allocation4 + $0x1], 1 }

// kernel: custom-call.13
= control target key start
LH: loop header
LB: loop body
LE: loop exit
PB: predicated region body
PF: predicated region fallthrough
CT: control target
= control target key end

     0   :  { %s413_s6 = smov 0   ;;  %s415_s7 = smov 0   ;;  %s478_s0 = inlined_call_operand.vmem [shape: f32[2,1,8,8], index: 0, kind: input, shape index: {}]   ;;  %s479_s1 = inlined_call_operand.vmem [shape: f32[2,1,8,8], index: 1, kind: output, shape index: {}]  }
   0x1   :  { %s417_s8 = smov 0  }
   0x2 LB: > { %s339_s9 = sadd.s32 4294967295, %s400_s8   ;;  %s33_s10 = sadd.s32 1, %s396_s7  ;;  %s400_s8 = sphi %s417_s8, %s7_s8   ;;  %s396_s7 = sphi %s415_s7, %s481_s7   ;;  %s392_s6 = sphi %s413_s6, %s480_s6  }
   0x3   : > { %p35_p0 = scmp.ge.s32.totalorder %s33_s10, 2  ;;  %p341_p1 = scmp.ge.s32.totalorder %s400_s8, 2 }
   0x4   : > { %s49_s11 = sand.u32 (!%p341_p1), 1, %s400_s8   ;;  %s343_s12 = sshll.u32 (!%p341_p1), %s396_s7, 3 }
   0x5   : > { %s483_s10 = smov (%p35_p0, %s33_s10), 0  ;;  %47 = sbr.rel (%p341_p1) target bundleno = 12 (0xc), region = 16 }
   0x6   : > { %s342_s13 = sshll.u32 (!%p341_p1), %s49_s11, 3  ;;  %s56_s16 = scalar_lea.vmem (!%p341_p1), %s478_s0, %s343_s12 }
   0x7   : > { %s51_s17 = scalar_lea.vmem (!%p341_p1), [#allocation0], %s342_s13 }
   0xa   : > { %v85_v0 = vld [vmem:[%s56_s16] sm:$0xff] }
   0xb   : > { %86 = vst [vmem:[%s51_s17] sm:$0xff] %v85_v0 }
   0xc PF: > { %p344_p2 = scmp.ge.s32.totalorder %s400_s8, 1  ;;  %p91_p3 = scmp.lt.s32.totalorder %s400_s8, 3 }
   0xe   : > { %p92_p4 = pnand %p344_p2, %p91_p3 }
  0x10   : > { %95 = sbr.rel (%p92_p4) target bundleno = 1009 (0x3f1), region = 54 }
  0x15   : > { %s98_s18 = sand.u32 1, %s339_s9   ;;  %v109_v1 = vlaneseq  ;;  %v402_v19 = vmov -1.0   ;;  %s348_s21 = sshll.u32 %s392_s6, 3 }
  0x16   : > { %s345_s19 = sshll.u32 %s98_s18, 3  ;;  %s246_s24 = scalar_lea.vmem %s479_s1, %s348_s21 }
  0x17   : > { %v440_v2 = vand.u32 127, %v109_v1  ;;  %v113_v3 = vshrl.u32 %v109_v1, 7  ;;  %s100_s20 = scalar_lea.vmem [#allocation0], %s345_s19 }
  0x18   : > { %v116_v4 = vld [vmem:[%s100_s20] sm:$0xff] }
  0x19   : > { %vm115_vm0 = vcmp.eq.s32.totalorder %v113_v3, %v440_v2  ;;  %vm111_vm1 = vcmp.lt.s32.totalorder %v440_v2, 8  ;;  %vm120_vm2 = vcmp.ge.s32.totalorder %v113_v3, %v440_v2  ;;  %vm147_vm8 = vcmp.eq.s32.totalorder %v440_v2, 0 }
  0x1a   : > { %v117_v5 = vsel %vm115_vm0, %v116_v4, 0.0  ;;  %vm121_vm3 = vmand %vm120_vm2, %vm111_vm1  ;;  %vm144_vm9 = vcmp.eq.s32.totalorder %v440_v2, %v113_v3  ;;  %v148_v20 = vsel %vm147_vm8, 1.0, %v402_v19  ;;  %vm155_vm10 = vcmp.eq.s32.totalorder %v440_v2, 1 }
  0x1b   : > { %118 = vadd.xlane.f32.xlu0 %v117_v5  ;;  %v122_v14 = vsel %vm121_vm3, %v116_v4, 0.0  ;;  %v149_v21 = vsel %vm144_vm9, %v148_v20, 0.0  ;;  %vm165_vm11 = vcmp.eq.s32.totalorder %v440_v2, 2  ;;  %vm175_vm12 = vcmp.eq.s32.totalorder %v440_v2, 3 }
  0x1c   : > { %vm185_vm13 = vcmp.eq.s32.totalorder %v440_v2, 4  ;;  %vm195_vm14 = vcmp.eq.s32.totalorder %v440_v2, 5  ;;  %vm205_vm15 = vcmp.eq.s32.totalorder %v440_v2, 6  ;;  %vm215_vm0 = vcmp.eq.s32.totalorder %v440_v2, 7 }
  0x8e   : > { %v443_v6 = vpop.xlane.xlu0 %118 }
  0x8f   : > { %376 = vrcp.f32 %v443_v6  ;;  %v134_v10 = vand.u32 2147483648, %v443_v6  ;;  %v132_v12 = vand.u32 2147483647, %v443_v6  ;;  %vm128_vm5 = vweird.f32 %v443_v6 }
  0x91   : > { %v135_v15 = vor.u32 1.1754944e-38, %v134_v10  ;;  %vm133_vm7 = vcmp.eq.f32.partialorder %v132_v12, 8.507059e+37 }
  0x95   : > { %v377_v7 = vpop.eup %376 }
  0x96   : > { %v124_v8 = vmul.f32 %v377_v7, %v443_v6  ;;  %vm129_vm4 = vweird.f32 %v377_v7 }
  0x97   : > { %vm130_vm6 = vmor %vm128_vm5, %vm129_vm4 }
  0x98   : > { %v125_v9 = vsub.f32 1.0, %v124_v8 }
  0x9a   : > { %v126_v11 = vmul.f32 %v377_v7, %v125_v9 }
  0x9c   : > { %v127_v13 = vadd.f32 %v377_v7, %v126_v11 }
  0x9e   : > { %v131_v16 = vsel %vm130_vm6, %v377_v7, %v127_v13 }
  0x9f   : > { %v136_v17 = vsel %vm133_vm7, %v135_v15, %v131_v16 }
  0xa0   : > { %v137_v18 = vmul.f32 %v136_v17, %v122_v14 }
  0xa2   : > { %138 = vst [vmem:[#allocation2] sm:$0xff] %v137_v18 }
  0xa9   : > { %v151_v22 = vld [vmem:[#allocation2 + $0x1] ss:$0 sm:$0xff]  ;;  %v161_v25 = vld [vmem:[#allocation2 + $0x2] ss:$0 sm:$0xff]  ;;  %v171_v30 = vld [vmem:[#allocation2 + $0x3] ss:$0 sm:$0xff] }
  0xaa   : > { %v152_v23 = vxor.u32 2147483648, %v151_v22  ;;  %v162_v27 = vxor.u32 2147483648, %v161_v25  ;;  %v172_v32 = vxor.u32 2147483648, %v171_v30  ;;  %v181_v35 = vld [vmem:[#allocation2 + $0x4] ss:$0 sm:$0xff] }
  0xab   : > { %v182_v37 = vxor.u32 2147483648, %v181_v35  ;;  %v191_v40 = vld [vmem:[#allocation2 + $0x5] ss:$0 sm:$0xff]  ;;  %v201_v45 = vld [vmem:[#allocation2 + $0x6] ss:$0 sm:$0xff] }
  0xac   : > { %v156_v24 = vmul.f32 %v152_v23, %v149_v21  ;;  %v192_v42 = vxor.u32 2147483648, %v191_v40  ;;  %v202_v47 = vxor.u32 2147483648, %v201_v45  ;;  %v211_v50 = vld [vmem:[#allocation2 + $0x7] ss:$0 sm:$0xff] }
  0xad   : > { %v212_v52 = vxor.u32 2147483648, %v211_v50 }
  0xae   : > { %157 = vadd.xlane.f32.xlu0 %v156_v24 }
 0x121   : > { %v158_v26 = vpop.xlane.xlu0 %157 }
 0x122   : > { %v159_v28 = vsel %vm155_vm10, %v158_v26, %v149_v21 }
 0x123   : > { %v166_v29 = vmul.f32 %v162_v27, %v159_v28 }
 0x125   : > { %167 = vadd.xlane.f32.xlu1 %v166_v29 }
 0x198   : > { %v168_v31 = vpop.xlane.xlu1 %167 }
 0x199   : > { %v169_v33 = vsel %vm165_vm11, %v168_v31, %v159_v28 }
 0x19a   : > { %v176_v34 = vmul.f32 %v172_v32, %v169_v33 }
 0x19c   : > { %177 = vadd.xlane.f32.xlu1 %v176_v34 }
 0x20f   : > { %v178_v36 = vpop.xlane.xlu1 %177 }
 0x210   : > { %v179_v38 = vsel %vm175_vm12, %v178_v36, %v169_v33 }
 0x211   : > { %v186_v39 = vmul.f32 %v182_v37, %v179_v38 }
 0x213   : > { %187 = vadd.xlane.f32.xlu2 %v186_v39 }
 0x286   : > { %v188_v41 = vpop.xlane.xlu2 %187 }
 0x287   : > { %v189_v43 = vsel %vm185_vm13, %v188_v41, %v179_v38 }
 0x288   : > { %v196_v44 = vmul.f32 %v192_v42, %v189_v43 }
 0x28a   : > { %197 = vadd.xlane.f32.xlu2 %v196_v44 }
 0x2fd   : > { %v198_v46 = vpop.xlane.xlu2 %197 }
 0x2fe   : > { %v199_v48 = vsel %vm195_vm14, %v198_v46, %v189_v43 }
 0x2ff   : > { %v206_v49 = vmul.f32 %v202_v47, %v199_v48 }
 0x301   : > { %207 = vadd.xlane.f32.xlu0 %v206_v49 }
 0x374   : > { %v208_v51 = vpop.xlane.xlu0 %207 }
 0x375   : > { %v209_v53 = vsel %vm205_vm15, %v208_v51, %v199_v48 }
 0x376   : > { %v216_v54 = vmul.f32 %v212_v52, %v209_v53 }
 0x378   : > { %217 = vadd.xlane.f32.xlu1 %v216_v54 }
 0x3eb   : > { %v218_v55 = vpop.xlane.xlu1 %217 }
 0x3ec   : > { %v219_v56 = vsel %vm215_vm0, %v218_v55, %v209_v53 }
 0x3ed   : > { %v234_v57 = vmul.f32 %v219_v56, %v136_v17 }
 0x3ef   : > { %v236_v58 = vsel %vm128_vm5, %v219_v56, %v234_v57 }
 0x3f0   : > { %276 = vst [vmem:[%s246_s24] sm:$0xff] %v236_v58 }
 0x3f1 PF: > { %s7_s8 = sadd.s32 1, %s400_s8   ;;  %s480_s6 = smov %s396_s7 }
 0x3f2   : > { %p4_p5 = scmp.ge.s32.totalorder %s7_s8, 4   ;;  %s481_s7 = smov %s483_s10 }
 0x3f4   :  { %6 = sbr.rel (!%p4_p5) target bundleno = 2 (0x2), region = 125 }

// kernel: custom-call.12
= control target key start
LH: loop header
LB: loop body
LE: loop exit
PB: predicated region body
PF: predicated region fallthrough
CT: control target
= control target key end

     0   :  { %s412_s6 = smov 0   ;;  %s414_s7 = smov 0   ;;  %s477_s0 = inlined_call_operand.vmem [shape: f32[2,1,8,8], index: 0, kind: input, shape index: {}]   ;;  %s478_s1 = inlined_call_operand.vmem [shape: f32[2,1,8,8], index: 1, kind: output, shape index: {}]  }
   0x1   :  { %s416_s8 = smov 0  }
   0x2 LB: > { %s338_s9 = sadd.s32 4294967295, %s399_s8   ;;  %s33_s10 = sadd.s32 1, %s395_s7  ;;  %s399_s8 = sphi %s416_s8, %s7_s8   ;;  %s395_s7 = sphi %s414_s7, %s480_s7   ;;  %s391_s6 = sphi %s412_s6, %s479_s6  }
   0x3   : > { %p35_p0 = scmp.ge.s32.totalorder %s33_s10, 2  ;;  %p340_p1 = scmp.ge.s32.totalorder %s399_s8, 2 }
   0x4   : > { %s49_s11 = sand.u32 (!%p340_p1), 1, %s399_s8   ;;  %s342_s12 = sshll.u32 (!%p340_p1), %s395_s7, 3 }
   0x5   : > { %s482_s10 = smov (%p35_p0, %s33_s10), 0  ;;  %47 = sbr.rel (%p340_p1) target bundleno = 12 (0xc), region = 16 }
   0x6   : > { %s341_s13 = sshll.u32 (!%p340_p1), %s49_s11, 3  ;;  %s56_s16 = scalar_lea.vmem (!%p340_p1), %s477_s0, %s342_s12 }
   0x7   : > { %s51_s17 = scalar_lea.vmem (!%p340_p1), [#allocation0], %s341_s13 }
   0xa   : > { %v85_v0 = vld [vmem:[%s56_s16] sm:$0xff] }
   0xb   : > { %86 = vst [vmem:[%s51_s17] sm:$0xff] %v85_v0 }
   0xc PF: > { %p343_p2 = scmp.ge.s32.totalorder %s399_s8, 1  ;;  %p91_p3 = scmp.lt.s32.totalorder %s399_s8, 3 }
   0xe   : > { %p92_p4 = pnand %p343_p2, %p91_p3 }
  0x10   : > { %95 = sbr.rel (%p92_p4) target bundleno = 1009 (0x3f1), region = 54 }
  0x15   : > { %s98_s18 = sand.u32 1, %s338_s9   ;;  %v109_v1 = vlaneseq  ;;  %v401_v19 = vmov -1.0   ;;  %s347_s21 = sshll.u32 %s391_s6, 3 }
  0x16   : > { %s344_s19 = sshll.u32 %s98_s18, 3  ;;  %s245_s24 = scalar_lea.vmem %s478_s1, %s347_s21 }
  0x17   : > { %v439_v2 = vand.u32 127, %v109_v1  ;;  %v113_v3 = vshrl.u32 %v109_v1, 7  ;;  %s100_s20 = scalar_lea.vmem [#allocation0], %s344_s19 }
  0x18   : > { %v116_v4 = vld [vmem:[%s100_s20] sm:$0xff] }
  0x19   : > { %vm115_vm0 = vcmp.eq.s32.totalorder %v113_v3, %v439_v2  ;;  %vm111_vm1 = vcmp.lt.s32.totalorder %v439_v2, 8  ;;  %vm120_vm2 = vcmp.le.s32.totalorder %v113_v3, %v439_v2  ;;  %vm147_vm8 = vcmp.eq.s32.totalorder %v439_v2, 7 }
  0x1a   : > { %v117_v5 = vsel %vm115_vm0, %v116_v4, 0.0  ;;  %vm121_vm3 = vmand %vm120_vm2, %vm111_vm1  ;;  %vm144_vm9 = vcmp.eq.s32.totalorder %v439_v2, %v113_v3  ;;  %v148_v20 = vsel %vm147_vm8, 1.0, %v401_v19  ;;  %vm155_vm10 = vcmp.eq.s32.totalorder %v439_v2, 6 }
  0x1b   : > { %118 = vadd.xlane.f32.xlu0 %v117_v5  ;;  %v122_v14 = vsel %vm121_vm3, %v116_v4, 0.0  ;;  %v149_v21 = vsel %vm144_vm9, %v148_v20, 0.0  ;;  %vm165_vm11 = vcmp.eq.s32.totalorder %v439_v2, 5  ;;  %vm175_vm12 = vcmp.eq.s32.totalorder %v439_v2, 4 }
  0x1c   : > { %vm185_vm13 = vcmp.eq.s32.totalorder %v439_v2, 3  ;;  %vm195_vm14 = vcmp.eq.s32.totalorder %v439_v2, 2  ;;  %vm205_vm15 = vcmp.eq.s32.totalorder %v439_v2, 1  ;;  %vm214_vm0 = vcmp.eq.s32.totalorder %v439_v2, 0 }
  0x8e   : > { %v442_v6 = vpop.xlane.xlu0 %118 }
  0x8f   : > { %375 = vrcp.f32 %v442_v6  ;;  %v134_v10 = vand.u32 2147483648, %v442_v6  ;;  %v132_v12 = vand.u32 2147483647, %v442_v6  ;;  %vm128_vm5 = vweird.f32 %v442_v6 }
  0x91   : > { %v135_v15 = vor.u32 1.1754944e-38, %v134_v10  ;;  %vm133_vm7 = vcmp.eq.f32.partialorder %v132_v12, 8.507059e+37 }
  0x95   : > { %v376_v7 = vpop.eup %375 }
  0x96   : > { %v124_v8 = vmul.f32 %v376_v7, %v442_v6  ;;  %vm129_vm4 = vweird.f32 %v376_v7 }
  0x97   : > { %vm130_vm6 = vmor %vm128_vm5, %vm129_vm4 }
  0x98   : > { %v125_v9 = vsub.f32 1.0, %v124_v8 }
  0x9a   : > { %v126_v11 = vmul.f32 %v376_v7, %v125_v9 }
  0x9c   : > { %v127_v13 = vadd.f32 %v376_v7, %v126_v11 }
  0x9e   : > { %v131_v16 = vsel %vm130_vm6, %v376_v7, %v127_v13 }
  0x9f   : > { %v136_v17 = vsel %vm133_vm7, %v135_v15, %v131_v16 }
  0xa0   : > { %v137_v18 = vmul.f32 %v136_v17, %v122_v14 }
  0xa2   : > { %138 = vst [vmem:[#allocation2] sm:$0xff] %v137_v18 }
  0xa9   : > { %v151_v22 = vld [vmem:[#allocation2 + $0x6] ss:$0 sm:$0xff]  ;;  %v161_v25 = vld [vmem:[#allocation2 + $0x5] ss:$0 sm:$0xff]  ;;  %v171_v30 = vld [vmem:[#allocation2 + $0x4] ss:$0 sm:$0xff] }
  0xaa   : > { %v152_v23 = vxor.u32 2147483648, %v151_v22  ;;  %v162_v27 = vxor.u32 2147483648, %v161_v25  ;;  %v172_v32 = vxor.u32 2147483648, %v171_v30  ;;  %v181_v35 = vld [vmem:[#allocation2 + $0x3] ss:$0 sm:$0xff] }
  0xab   : > { %v182_v37 = vxor.u32 2147483648, %v181_v35  ;;  %v191_v40 = vld [vmem:[#allocation2 + $0x2] ss:$0 sm:$0xff]  ;;  %v201_v45 = vld [vmem:[#allocation2 + $0x1] ss:$0 sm:$0xff] }
  0xac   : > { %v156_v24 = vmul.f32 %v152_v23, %v149_v21  ;;  %v192_v42 = vxor.u32 2147483648, %v191_v40  ;;  %v202_v47 = vxor.u32 2147483648, %v201_v45  ;;  %v210_v50 = vld [vmem:[#allocation2] ss:$0 sm:$0xff] }
  0xad   : > { %v211_v52 = vxor.u32 2147483648, %v210_v50 }
  0xae   : > { %157 = vadd.xlane.f32.xlu0 %v156_v24 }
 0x121   : > { %v158_v26 = vpop.xlane.xlu0 %157 }
 0x122   : > { %v159_v28 = vsel %vm155_vm10, %v158_v26, %v149_v21 }
 0x123   : > { %v166_v29 = vmul.f32 %v162_v27, %v159_v28 }
 0x125   : > { %167 = vadd.xlane.f32.xlu1 %v166_v29 }
 0x198   : > { %v168_v31 = vpop.xlane.xlu1 %167 }
 0x199   : > { %v169_v33 = vsel %vm165_vm11, %v168_v31, %v159_v28 }
 0x19a   : > { %v176_v34 = vmul.f32 %v172_v32, %v169_v33 }
 0x19c   : > { %177 = vadd.xlane.f32.xlu1 %v176_v34 }
 0x20f   : > { %v178_v36 = vpop.xlane.xlu1 %177 }
 0x210   : > { %v179_v38 = vsel %vm175_vm12, %v178_v36, %v169_v33 }
 0x211   : > { %v186_v39 = vmul.f32 %v182_v37, %v179_v38 }
 0x213   : > { %187 = vadd.xlane.f32.xlu2 %v186_v39 }
 0x286   : > { %v188_v41 = vpop.xlane.xlu2 %187 }
 0x287   : > { %v189_v43 = vsel %vm185_vm13, %v188_v41, %v179_v38 }
 0x288   : > { %v196_v44 = vmul.f32 %v192_v42, %v189_v43 }
 0x28a   : > { %197 = vadd.xlane.f32.xlu2 %v196_v44 }
 0x2fd   : > { %v198_v46 = vpop.xlane.xlu2 %197 }
 0x2fe   : > { %v199_v48 = vsel %vm195_vm14, %v198_v46, %v189_v43 }
 0x2ff   : > { %v206_v49 = vmul.f32 %v202_v47, %v199_v48 }
 0x301   : > { %207 = vadd.xlane.f32.xlu0 %v206_v49 }
 0x374   : > { %v208_v51 = vpop.xlane.xlu0 %207 }
 0x375   : > { %v209_v53 = vsel %vm205_vm15, %v208_v51, %v199_v48 }
 0x376   : > { %v215_v54 = vmul.f32 %v211_v52, %v209_v53 }
 0x378   : > { %216 = vadd.xlane.f32.xlu1 %v215_v54 }
 0x3eb   : > { %v217_v55 = vpop.xlane.xlu1 %216 }
 0x3ec   : > { %v218_v56 = vsel %vm214_vm0, %v217_v55, %v209_v53 }
 0x3ed   : > { %v233_v57 = vmul.f32 %v218_v56, %v136_v17 }
 0x3ef   : > { %v235_v58 = vsel %vm128_vm5, %v218_v56, %v233_v57 }
 0x3f0   : > { %275 = vst [vmem:[%s245_s24] sm:$0xff] %v235_v58 }
 0x3f1 PF: > { %s7_s8 = sadd.s32 1, %s399_s8   ;;  %s479_s6 = smov %s395_s7 }
 0x3f2   : > { %p4_p5 = scmp.ge.s32.totalorder %s7_s8, 4   ;;  %s480_s7 = smov %s482_s10 }
 0x3f4   :  { %6 = sbr.rel (!%p4_p5) target bundleno = 2 (0x2), region = 124 }

// kernel: robust_net_forward.3
= control target key start
LH: loop header
LB: loop body
LE: loop exit
PB: predicated region body
PF: predicated region fallthrough
CT: control target
= control target key end

     0   :  { %s7142_s0 = inlined_call_operand.vmem [shape: f32[8,32], index: 0, kind: input, shape index: {}]   ;;  %s7143_s1 = inlined_call_operand.vmem [shape: bf16[32,256], index: 1, kind: input, shape index: {}]   ;;  %s7144_s2 = inlined_call_operand.vmem [shape: f32[1,256], index: 2, kind: input, shape index: {}]   ;;  %s7145_s3 = inlined_call_operand.vmem [shape: bf16[256,256], index: 3, kind: input, shape index: {}]   ;;  %s7146_s4 = inlined_call_operand.vmem [shape: f32[1,256], index: 4, kind: input, shape index: {}]   ;;  %s7147_s5 = inlined_call_operand.vmem [shape: bf16[256,256], index: 5, kind: input, shape index: {}]   ;;  %s7148_s6 = inlined_call_operand.vmem [shape: f32[1,256], index: 6, kind: input, shape index: {}]   ;;  %s7149_s7 = inlined_call_operand.vmem [shape: bf16[256,256], index: 7, kind: input, shape index: {}]   ;;  %s7150_s8 = inlined_call_operand.vmem [shape: f32[1,256], index: 8, kind: input, shape index: {}]   ;;  %s7151_s9 = inlined_call_operand.vmem [shape: bf16[256,4], index: 9, kind: input, shape index: {}]   ;;  %s7152_s10 = inlined_call_operand.vmem [shape: f32[1,4], index: 10, kind: input, shape index: {}]   ;;  %s7153_s11 = inlined_call_operand.vmem [shape: f32[8,8,1024], index: 11, kind: input, shape index: {}]   ;;  %s7154_s12 = inlined_call_operand.vmem [shape: f32[8,8,1024], index: 12, kind: input, shape index: {}]   ;;  %s7155_s13 = inlined_call_operand.vmem [shape: f32[8,8,4], index: 13, kind: input, shape index: {}]   ;;  %s7156_s14 = inlined_call_operand.vmem [shape: f32[8,8,4], index: 14, kind: input, shape index: {}]   ;;  %s7157_s15 = inlined_call_operand.vmem [shape: f32[8,4], index: 15, kind: input, shape index: {}]   ;;  %s7158_s16 = inlined_call_operand.vmem [shape: f32[2,8,4], index: 16, kind: output, shape index: {0}]   ;;  %s7159_s17 = inlined_call_operand.vmem [shape: f32[8,1024], index: 17, kind: output, shape index: {1}]  }
   0x1   :  { %7387 = sst [smem:[#allocation144_spill]] %s7142_s0 }
   0x2   :  { %7388 = sst [smem:[#allocation145_spill]] %s7143_s1 }
   0x3   :  { %7389 = sst [smem:[#allocation146_spill]] %s7153_s11 }
   0x4   :  { %7390 = sst [smem:[#allocation147_spill]] %s7154_s12 }
   0x5   :  { %s4312_s24 = smov 0   ;;  %s4314_s25 = smov 0  }
   0x6   :  { %s4316_s26 = smov 0  }
   0x7 LB: > { %s4328_s27 = sadd.s32 4294967295, %s4216_s26   ;;  %s4331_s28 = sadd.s32 1, %s4216_s26   ;;  %s4216_s26 = sphi %s4316_s26, %s7900_s26   ;;  %s4212_s25 = sphi %s4314_s25, %s7899_s25   ;;  %s4208_s24 = sphi %s4312_s24, %s7898_s24  }
   0x8   : > { %s263_s29 = ssub.s32 %s4216_s26, %s4331_s28  ;;  %s266_s0 = sadd.s32 1, %s4212_s25 }
   0x9   : > { %p264_p0 = scmp.eq.s32.totalorder %s263_s29, 0  ;;  %p273_p1 = scmp.ne.s32.totalorder %s4212_s25, %s4208_s24 }
   0xa   : > { %p274_p2 = scmp.eq.s32.totalorder %s4216_s26, 0  ;;  %p3444_p4 = scmp.ge.s32.totalorder %s4216_s26, 2 }
   0xb   : > { %s4340_s30 = scalar_select %p264_p0, %s4212_s25, %s266_s0  }
   0xc   : > { %p4342_p3 = por %p274_p2, %p273_p1  ;;  %482 = sbr.rel (%p3444_p4) target bundleno = 101 (0x65), region = 72 }
  0x11   : > { %485 = sbr.rel (!%p4342_p3) target bundleno = 59 (0x3b), region = 76  ;;  %s487_s19 = sand.u32 (%p4342_p3), 1, %s4212_s25  }
  0x12   : > { %s3981_s1 = sshll.u32 (%p4342_p3), %s4216_s26, 5  ;;  %s3445_s20 = sshll.u32 (%p4342_p3), %s487_s19, 8 }
  0x13   : > { %s7392_s11 = sld [smem:[#allocation146_spill]] (%p4342_p3)  ;;  %s4359_s29 = scalar_lea.vmem (%p4342_p3), [#allocation2], %s3445_s20 }
  0x19   : > { %s4354_s23 = scalar_lea.vmem %s7392_s11, %s3981_s1 }
  0x1a   : > { %v505_v0 = vld [vmem:[%s4354_s23] sm:$0xff]  ;;  %v507_v1 = vld [vmem:[%s4354_s23 + $0x8] sm:$0xff]  ;;  %v509_v2 = vld [vmem:[%s4354_s23 + $0x10] sm:$0xff] }
  0x1b   : > { %506 = vst [vmem:[%s4359_s29] sm:$0xff] %v505_v0  ;;  %v511_v3 = vld [vmem:[%s4354_s23 + $0x18] sm:$0xff]  ;;  %v513_v4 = vld [vmem:[%s4354_s23 + $0x40] sm:$0xff]  ;;  %v515_v5 = vld [vmem:[%s4354_s23 + $0x48] sm:$0xff] }
  0x1c   : > { %508 = vst [vmem:[%s4359_s29 + $0x8] sm:$0xff] %v507_v1  ;;  %v517_v6 = vld [vmem:[%s4354_s23 + $0x50] sm:$0xff]  ;;  %v519_v7 = vld [vmem:[%s4354_s23 + $0x58] sm:$0xff]  ;;  %v521_v8 = vld [vmem:[%s4354_s23 + $0x80] sm:$0xff] }
  0x1d   : > { %510 = vst [vmem:[%s4359_s29 + $0x10] sm:$0xff] %v509_v2  ;;  %v523_v9 = vld [vmem:[%s4354_s23 + $0x88] sm:$0xff]  ;;  %v525_v10 = vld [vmem:[%s4354_s23 + $0x90] sm:$0xff]  ;;  %v527_v11 = vld [vmem:[%s4354_s23 + $0x98] sm:$0xff] }
  0x1e   : > { %512 = vst [vmem:[%s4359_s29 + $0x18] sm:$0xff] %v511_v3  ;;  %v529_v12 = vld [vmem:[%s4354_s23 + $0xc0] sm:$0xff]  ;;  %v531_v13 = vld [vmem:[%s4354_s23 + $0xc8] sm:$0xff]  ;;  %v533_v14 = vld [vmem:[%s4354_s23 + $0xd0] sm:$0xff] }
  0x1f   : > { %514 = vst [vmem:[%s4359_s29 + $0x20] sm:$0xff] %v513_v4  ;;  %v535_v15 = vld [vmem:[%s4354_s23 + $0xd8] sm:$0xff]  ;;  %v537_v16 = vld [vmem:[%s4354_s23 + $0x100] sm:$0xff]  ;;  %v539_v17 = vld [vmem:[%s4354_s23 + $0x108] sm:$0xff] }
  0x20   : > { %516 = vst [vmem:[%s4359_s29 + $0x28] sm:$0xff] %v515_v5  ;;  %v541_v18 = vld [vmem:[%s4354_s23 + $0x110] sm:$0xff]  ;;  %v543_v19 = vld [vmem:[%s4354_s23 + $0x118] sm:$0xff]  ;;  %v545_v20 = vld [vmem:[%s4354_s23 + $0x140] sm:$0xff] }
  0x21   : > { %518 = vst [vmem:[%s4359_s29 + $0x30] sm:$0xff] %v517_v6  ;;  %v547_v21 = vld [vmem:[%s4354_s23 + $0x148] sm:$0xff]  ;;  %v549_v22 = vld [vmem:[%s4354_s23 + $0x150] sm:$0xff]  ;;  %v551_v23 = vld [vmem:[%s4354_s23 + $0x158] sm:$0xff] }
  0x22   : > { %520 = vst [vmem:[%s4359_s29 + $0x38] sm:$0xff] %v519_v7  ;;  %v553_v24 = vld [vmem:[%s4354_s23 + $0x180] sm:$0xff]  ;;  %v555_v25 = vld [vmem:[%s4354_s23 + $0x188] sm:$0xff]  ;;  %v557_v26 = vld [vmem:[%s4354_s23 + $0x190] sm:$0xff] }
  0x23   : > { %522 = vst [vmem:[%s4359_s29 + $0x40] sm:$0xff] %v521_v8  ;;  %v559_v27 = vld [vmem:[%s4354_s23 + $0x198] sm:$0xff]  ;;  %v561_v28 = vld [vmem:[%s4354_s23 + $0x1c0] sm:$0xff]  ;;  %v563_v29 = vld [vmem:[%s4354_s23 + $0x1c8] sm:$0xff] }
  0x24   : > { %524 = vst [vmem:[%s4359_s29 + $0x48] sm:$0xff] %v523_v9  ;;  %v565_v30 = vld [vmem:[%s4354_s23 + $0x1d0] sm:$0xff]  ;;  %v567_v31 = vld [vmem:[%s4354_s23 + $0x1d8] sm:$0xff] }
  0x25   : > { %526 = vst [vmem:[%s4359_s29 + $0x50] sm:$0xff] %v525_v10 }
  0x26   : > { %528 = vst [vmem:[%s4359_s29 + $0x58] sm:$0xff] %v527_v11 }
  0x27   : > { %530 = vst [vmem:[%s4359_s29 + $0x60] sm:$0xff] %v529_v12 }
  0x28   : > { %532 = vst [vmem:[%s4359_s29 + $0x68] sm:$0xff] %v531_v13 }
  0x29   : > { %534 = vst [vmem:[%s4359_s29 + $0x70] sm:$0xff] %v533_v14 }
  0x2a   : > { %536 = vst [vmem:[%s4359_s29 + $0x78] sm:$0xff] %v535_v15 }
  0x2b   : > { %538 = vst [vmem:[%s4359_s29 + $0x80] sm:$0xff] %v537_v16 }
  0x2c   : > { %540 = vst [vmem:[%s4359_s29 + $0x88] sm:$0xff] %v539_v17 }
  0x2d   : > { %542 = vst [vmem:[%s4359_s29 + $0x90] sm:$0xff] %v541_v18 }
  0x2e   : > { %544 = vst [vmem:[%s4359_s29 + $0x98] sm:$0xff] %v543_v19 }
  0x2f   : > { %546 = vst [vmem:[%s4359_s29 + $0xa0] sm:$0xff] %v545_v20 }
  0x30   : > { %548 = vst [vmem:[%s4359_s29 + $0xa8] sm:$0xff] %v547_v21 }
  0x31   : > { %550 = vst [vmem:[%s4359_s29 + $0xb0] sm:$0xff] %v549_v22 }
  0x32   : > { %552 = vst [vmem:[%s4359_s29 + $0xb8] sm:$0xff] %v551_v23 }
  0x33   : > { %554 = vst [vmem:[%s4359_s29 + $0xc0] sm:$0xff] %v553_v24 }
  0x34   : > { %556 = vst [vmem:[%s4359_s29 + $0xc8] sm:$0xff] %v555_v25 }
  0x35   : > { %558 = vst [vmem:[%s4359_s29 + $0xd0] sm:$0xff] %v557_v26 }
  0x36   : > { %560 = vst [vmem:[%s4359_s29 + $0xd8] sm:$0xff] %v559_v27 }
  0x37   : > { %562 = vst [vmem:[%s4359_s29 + $0xe0] sm:$0xff] %v561_v28 }
  0x38   : > { %564 = vst [vmem:[%s4359_s29 + $0xe8] sm:$0xff] %v563_v29 }
  0x39   : > { %566 = vst [vmem:[%s4359_s29 + $0xf0] sm:$0xff] %v565_v30 }
  0x3a   : > { %568 = vst [vmem:[%s4359_s29 + $0xf8] sm:$0xff] %v567_v31 }
  0x3b PF: > { %574 = sbr.rel (!%p4342_p3) target bundleno = 101 (0x65), region = 99  ;;  %s576_s0 = sand.u32 (%p4342_p3), 1, %s4212_s25  }
  0x3c   : > { %s3982_s19 = sshll.u32 (%p4342_p3), %s4216_s26, 5  ;;  %s3448_s1 = sshll.u32 (%p4342_p3), %s576_s0, 8 }
  0x3d   : > { %s7393_s12 = sld [smem:[#allocation147_spill]] (%p4342_p3)  ;;  %s4434_s18 = scalar_lea.vmem (%p4342_p3), [#allocation3], %s3448_s1 }
  0x43   : > { %s4429_s22 = scalar_lea.vmem %s7393_s12, %s3982_s19 }
  0x44   : > { %v594_v32 = vld [vmem:[%s4429_s22] sm:$0xff]  ;;  %v596_v33 = vld [vmem:[%s4429_s22 + $0x8] sm:$0xff]  ;;  %v598_v34 = vld [vmem:[%s4429_s22 + $0x10] sm:$0xff] }
  0x45   : > { %595 = vst [vmem:[%s4434_s18] sm:$0xff] %v594_v32  ;;  %v600_v35 = vld [vmem:[%s4429_s22 + $0x18] sm:$0xff]  ;;  %v602_v36 = vld [vmem:[%s4429_s22 + $0x40] sm:$0xff]  ;;  %v604_v37 = vld [vmem:[%s4429_s22 + $0x48] sm:$0xff] }
  0x46   : > { %597 = vst [vmem:[%s4434_s18 + $0x8] sm:$0xff] %v596_v33  ;;  %v606_v38 = vld [vmem:[%s4429_s22 + $0x50] sm:$0xff]  ;;  %v608_v39 = vld [vmem:[%s4429_s22 + $0x58] sm:$0xff]  ;;  %v610_v40 = vld [vmem:[%s4429_s22 + $0x80] sm:$0xff] }
  0x47   : > { %599 = vst [vmem:[%s4434_s18 + $0x10] sm:$0xff] %v598_v34  ;;  %v612_v41 = vld [vmem:[%s4429_s22 + $0x88] sm:$0xff]  ;;  %v614_v42 = vld [vmem:[%s4429_s22 + $0x90] sm:$0xff]  ;;  %v616_v43 = vld [vmem:[%s4429_s22 + $0x98] sm:$0xff] }
  0x48   : > { %601 = vst [vmem:[%s4434_s18 + $0x18] sm:$0xff] %v600_v35  ;;  %v618_v44 = vld [vmem:[%s4429_s22 + $0xc0] sm:$0xff]  ;;  %v620_v45 = vld [vmem:[%s4429_s22 + $0xc8] sm:$0xff]  ;;  %v622_v46 = vld [vmem:[%s4429_s22 + $0xd0] sm:$0xff] }
  0x49   : > { %603 = vst [vmem:[%s4434_s18 + $0x20] sm:$0xff] %v602_v36  ;;  %v624_v47 = vld [vmem:[%s4429_s22 + $0xd8] sm:$0xff]  ;;  %v626_v48 = vld [vmem:[%s4429_s22 + $0x100] sm:$0xff]  ;;  %v628_v49 = vld [vmem:[%s4429_s22 + $0x108] sm:$0xff] }
  0x4a   : > { %605 = vst [vmem:[%s4434_s18 + $0x28] sm:$0xff] %v604_v37  ;;  %v630_v50 = vld [vmem:[%s4429_s22 + $0x110] sm:$0xff]  ;;  %v632_v51 = vld [vmem:[%s4429_s22 + $0x118] sm:$0xff]  ;;  %v634_v52 = vld [vmem:[%s4429_s22 + $0x140] sm:$0xff] }
  0x4b   : > { %607 = vst [vmem:[%s4434_s18 + $0x30] sm:$0xff] %v606_v38  ;;  %v636_v53 = vld [vmem:[%s4429_s22 + $0x148] sm:$0xff]  ;;  %v638_v54 = vld [vmem:[%s4429_s22 + $0x150] sm:$0xff]  ;;  %v640_v55 = vld [vmem:[%s4429_s22 + $0x158] sm:$0xff] }
  0x4c   : > { %609 = vst [vmem:[%s4434_s18 + $0x38] sm:$0xff] %v608_v39  ;;  %v642_v56 = vld [vmem:[%s4429_s22 + $0x180] sm:$0xff]  ;;  %v644_v57 = vld [vmem:[%s4429_s22 + $0x188] sm:$0xff]  ;;  %v646_v58 = vld [vmem:[%s4429_s22 + $0x190] sm:$0xff] }
  0x4d   : > { %611 = vst [vmem:[%s4434_s18 + $0x40] sm:$0xff] %v610_v40  ;;  %v648_v59 = vld [vmem:[%s4429_s22 + $0x198] sm:$0xff]  ;;  %v650_v60 = vld [vmem:[%s4429_s22 + $0x1c0] sm:$0xff]  ;;  %v652_v61 = vld [vmem:[%s4429_s22 + $0x1c8] sm:$0xff] }
  0x4e   : > { %613 = vst [vmem:[%s4434_s18 + $0x48] sm:$0xff] %v612_v41  ;;  %v654_v62 = vld [vmem:[%s4429_s22 + $0x1d0] sm:$0xff]  ;;  %v656_v63 = vld [vmem:[%s4429_s22 + $0x1d8] sm:$0xff] }
  0x4f   : > { %615 = vst [vmem:[%s4434_s18 + $0x50] sm:$0xff] %v614_v42 }
  0x50   : > { %617 = vst [vmem:[%s4434_s18 + $0x58] sm:$0xff] %v616_v43 }
  0x51   : > { %619 = vst [vmem:[%s4434_s18 + $0x60] sm:$0xff] %v618_v44 }
  0x52   : > { %621 = vst [vmem:[%s4434_s18 + $0x68] sm:$0xff] %v620_v45 }
  0x53   : > { %623 = vst [vmem:[%s4434_s18 + $0x70] sm:$0xff] %v622_v46 }
  0x54   : > { %625 = vst [vmem:[%s4434_s18 + $0x78] sm:$0xff] %v624_v47 }
  0x55   : > { %627 = vst [vmem:[%s4434_s18 + $0x80] sm:$0xff] %v626_v48 }
  0x56   : > { %629 = vst [vmem:[%s4434_s18 + $0x88] sm:$0xff] %v628_v49 }
  0x57   : > { %631 = vst [vmem:[%s4434_s18 + $0x90] sm:$0xff] %v630_v50 }
  0x58   : > { %633 = vst [vmem:[%s4434_s18 + $0x98] sm:$0xff] %v632_v51 }
  0x59   : > { %635 = vst [vmem:[%s4434_s18 + $0xa0] sm:$0xff] %v634_v52 }
  0x5a   : > { %637 = vst [vmem:[%s4434_s18 + $0xa8] sm:$0xff] %v636_v53 }
  0x5b   : > { %639 = vst [vmem:[%s4434_s18 + $0xb0] sm:$0xff] %v638_v54 }
  0x5c   : > { %641 = vst [vmem:[%s4434_s18 + $0xb8] sm:$0xff] %v640_v55 }
  0x5d   : > { %643 = vst [vmem:[%s4434_s18 + $0xc0] sm:$0xff] %v642_v56 }
  0x5e   : > { %645 = vst [vmem:[%s4434_s18 + $0xc8] sm:$0xff] %v644_v57 }
  0x5f   : > { %647 = vst [vmem:[%s4434_s18 + $0xd0] sm:$0xff] %v646_v58 }
  0x60   : > { %649 = vst [vmem:[%s4434_s18 + $0xd8] sm:$0xff] %v648_v59 }
  0x61   : > { %651 = vst [vmem:[%s4434_s18 + $0xe0] sm:$0xff] %v650_v60 }
  0x62   : > { %653 = vst [vmem:[%s4434_s18 + $0xe8] sm:$0xff] %v652_v61 }
  0x63   : > { %655 = vst [vmem:[%s4434_s18 + $0xf0] sm:$0xff] %v654_v62 }
  0x64   : > { %657 = vst [vmem:[%s4434_s18 + $0xf8] sm:$0xff] %v656_v63 }
  0x65 PF: > { %p3451_p5 = scmp.ge.s32.totalorder %s4216_s26, 1  ;;  %p662_p6 = scmp.lt.s32.totalorder %s4216_s26, 3 }
  0x67   : > { %p663_p7 = pnand %p3451_p5, %p662_p6 }
  0x69   : > { %666 = sbr.rel (%p663_p7) target bundleno = 1270 (0x4f6), region = 122 }
  0x6e   : > { %s7394_s0 = sld [smem:[#allocation145_spill]]  ;;  %vm780_vm0 = vcmask 261120   ;;  %v3533_v12 = vld [vmem:[%s7145_s3 + $0x70] sm:$0xf]  ;;  %v4002_v13 = vld [vmem:[%s7145_s3 + $0x74] sm:$0xf0] }
  0x6f   : > { %s7395_s18 = sld [smem:[#allocation144_spill]]  ;;  %v3597_v14 = vld [vmem:[%s7145_s3 + $0xf0] sm:$0xf]  ;;  %v3534_v16 = vor.u32 %v4002_v13, %v3533_v12  ;;  %v4018_v17 = vld [vmem:[%s7145_s3 + $0xf4] sm:$0xf0]  ;;  %s669_s19 = sand.u32 1, %s4208_s24  }
  0x70   : > { %v4001_v18 = vld [vmem:[%s7145_s3 + $0x74] sm:$0xf]  ;;  %v3535_v19 = vld [vmem:[%s7145_s3 + $0x78] sm:$0xf0]  ;;  %v3598_v20 = vor.u32 %v4018_v17, %v3597_v14  ;;  %v3525_v24 = vld [vmem:[%s7145_s3 + $0x60] sm:$0xf] }
  0x71   : > { %v3538_v21 = vor.u32 %v4001_v18, %v3535_v19  ;;  %v4017_v22 = vld [vmem:[%s7145_s3 + $0xf4] sm:$0xf]  ;;  %v3599_v23 = vld [vmem:[%s7145_s3 + $0xf8] sm:$0xf0]  ;;  %1012 = vmatpush.bf16.msra.mxu2 %v3534_v16  ;;  %v4000_v27 = vld [vmem:[%s7145_s3 + $0x64] sm:$0xf0] }
  0x72   : > { %v3602_v26 = vor.u32 %v4017_v22, %v3599_v23  ;;  %v3589_v28 = vld [vmem:[%s7145_s3 + $0xe0] sm:$0xf]  ;;  %v4016_v29 = vld [vmem:[%s7145_s3 + $0xe4] sm:$0xf0]  ;;  %1025 = vmatpush.bf16.msra.mxu3 %v3598_v20  ;;  %v3526_v30 = vor.u32 %v4000_v27, %v3525_v24  ;;  %v3999_v32 = vld [vmem:[%s7145_s3 + $0x64] sm:$0xf] }
  0x73   : > { %v3590_v31 = vor.u32 %v4016_v29, %v3589_v28  ;;  %v3527_v33 = vld [vmem:[%s7145_s3 + $0x68] sm:$0xf0]  ;;  %v4015_v34 = vld [vmem:[%s7145_s3 + $0xe4] sm:$0xf]  ;;  %v3517_v37 = vld [vmem:[%s7145_s3 + $0x50] sm:$0xf] }
  0x74   : > { %v3467_v0 = vld [vmem:[%s7394_s0 + $0x10] sm:$0xf]  ;;  %v3986_v1 = vld [vmem:[%s7394_s0 + $0x14] sm:$0xf0]  ;;  %v3985_v2 = vld [vmem:[%s7394_s0 + $0x14] sm:$0xf]  ;;  %v3530_v35 = vor.u32 %v3999_v32, %v3527_v33 }
  0x75   : > { %v3468_v3 = vor.u32 %v3986_v1, %v3467_v0  ;;  %v3469_v4 = vld [vmem:[%s7394_s0 + $0x18] sm:$0xf0]  ;;  %v3459_v5 = vld [vmem:[%s7394_s0] sm:$0xf]  ;;  %v3984_v6 = vld [vmem:[%s7394_s0 + $0x4] sm:$0xf0]  ;;  %1013 = vmatpush.bf16.msra.mxu2 %v3526_v30 }
  0x76   : > { %v3472_v7 = vor.u32 %v3985_v2, %v3469_v4  ;;  %v3983_v8 = vld [vmem:[%s7394_s0 + $0x4] sm:$0xf]  ;;  %v3461_v9 = vld [vmem:[%s7394_s0 + $0x8] sm:$0xf0]  ;;  %v3460_v11 = vor.u32 %v3984_v6, %v3459_v5  ;;  %v3998_v38 = vld [vmem:[%s7145_s3 + $0x54] sm:$0xf0]  ;;  %1026 = vmatpush.bf16.msra.mxu3 %v3590_v31 }
  0x77   : > { %v748_v10 = vld [vmem:[%s7395_s18] sm:$0xff]  ;;  %790 = vmatpush.bf16.msra.mxu0 %v3468_v3  ;;  %v3464_v15 = vor.u32 %v3983_v8, %v3461_v9  ;;  %v3591_v36 = vld [vmem:[%s7145_s3 + $0xe8] sm:$0xf0]  ;;  %v3581_v40 = vld [vmem:[%s7145_s3 + $0xd0] sm:$0xf]  ;;  %v3518_v43 = vor.u32 %v3998_v38, %v3517_v37  ;;  %s3452_s1 = sshll.u32 %s669_s19, 8 }
  0x78   : > { %803 = vmatpush.bf16.msra.mxu1 %v3472_v7  ;;  %v749_v25 = vpack.c.bf16 %v748_v10, %v748_v10  ;;  %v3594_v39 = vor.u32 %v4015_v34, %v3591_v36  ;;  %v4014_v41 = vld [vmem:[%s7145_s3 + $0xd4] sm:$0xf0]  ;;  %v3997_v42 = vld [vmem:[%s7145_s3 + $0x54] sm:$0xf]  ;;  %v3519_v44 = vld [vmem:[%s7145_s3 + $0x58] sm:$0xf0] }
  0x79   : > { %v4013_v45 = vld [vmem:[%s7145_s3 + $0xd4] sm:$0xf]  ;;  %v3583_v46 = vld [vmem:[%s7145_s3 + $0xd8] sm:$0xf0]  ;;  %v3582_v47 = vor.u32 %v4014_v41, %v3581_v40  ;;  %v3509_v48 = vld [vmem:[%s7145_s3 + $0x40] sm:$0xf]  ;;  %v3522_v50 = vor.u32 %v3997_v42, %v3519_v44  ;;  %1014 = vmatpush.bf16.msra.mxu2 %v3518_v43 }
  0x7a   : > { %v3996_v49 = vld [vmem:[%s7145_s3 + $0x44] sm:$0xf0]  ;;  %v3573_v51 = vld [vmem:[%s7145_s3 + $0xc0] sm:$0xf]  ;;  %v3586_v53 = vor.u32 %v4013_v45, %v3583_v46  ;;  %v3995_v54 = vld [vmem:[%s7145_s3 + $0x44] sm:$0xf] }
  0x7b   : > { %791 = vmatpush.bf16.msra.mxu0 %v3460_v11  ;;  %v4012_v52 = vld [vmem:[%s7145_s3 + $0xc4] sm:$0xf0]  ;;  %v3511_v55 = vld [vmem:[%s7145_s3 + $0x48] sm:$0xf0]  ;;  %v3510_v56 = vor.u32 %v3996_v49, %v3509_v48  ;;  %v4011_v57 = vld [vmem:[%s7145_s3 + $0xc4] sm:$0xf]  ;;  %1027 = vmatpush.bf16.msra.mxu3 %v3582_v47 }
  0x7c   : > { %804 = vmatpush.bf16.msra.mxu1 %v3464_v15  ;;  %v3575_v58 = vld [vmem:[%s7145_s3 + $0xc8] sm:$0xf0]  ;;  %v3574_v59 = vor.u32 %v4012_v52, %v3573_v51  ;;  %v3501_v60 = vld [vmem:[%s7145_s3 + $0x30] sm:$0xf]  ;;  %v3994_v61 = vld [vmem:[%s7145_s3 + $0x34] sm:$0xf0]  ;;  %v3514_v62 = vor.u32 %v3995_v54, %v3511_v55 }
  0x7d   : > { %v3565_v63 = vld [vmem:[%s7145_s3 + $0xb0] sm:$0xf]  ;;  %v4010_v0 = vld [vmem:[%s7145_s3 + $0xb4] sm:$0xf0]  ;;  %v3578_v1 = vor.u32 %v4011_v57, %v3575_v58  ;;  %v3993_v2 = vld [vmem:[%s7145_s3 + $0x34] sm:$0xf]  ;;  %1015 = vmatpush.bf16.msra.mxu2 %v3510_v56  ;;  %v3502_v4 = vor.u32 %v3994_v61, %v3501_v60 }
  0x7e   : > { %3473 = vmatmul.msk.bf16.vlgmr.msra.gmra.mxu0 %vm780_vm0, %v749_v25  ;;  %v3503_v3 = vld [vmem:[%s7145_s3 + $0x38] sm:$0xf0]  ;;  %v4009_v5 = vld [vmem:[%s7145_s3 + $0xb4] sm:$0xf]  ;;  %v3566_v7 = vor.u32 %v4010_v0, %v3565_v63  ;;  %v3493_v8 = vld [vmem:[%s7145_s3 + $0x20] sm:$0xf] }
  0x7f   : > { %1038 = vmatpush.bf16.msrb.mxu0 %v3538_v21  ;;  %3474 = vmatmul.msk.bf16.vlgmr.msra.gmra.mxu1 %vm780_vm0, %v749_v25  ;;  %v3567_v6 = vld [vmem:[%s7145_s3 + $0xb8] sm:$0xf0]  ;;  %v3992_v9 = vld [vmem:[%s7145_s3 + $0x24] sm:$0xf0]  ;;  %v3506_v10 = vor.u32 %v3993_v2, %v3503_v3  ;;  %v3557_v11 = vld [vmem:[%s7145_s3 + $0xa0] sm:$0xf] }
  0x80   : > { %1051 = vmatpush.bf16.msrb.mxu1 %v3602_v26  ;;  %1028 = vmatpush.bf16.msra.mxu3 %v3574_v59  ;;  %v4008_v12 = vld [vmem:[%s7145_s3 + $0xa4] sm:$0xf0]  ;;  %v3570_v13 = vor.u32 %v4009_v5, %v3567_v6  ;;  %v3991_v14 = vld [vmem:[%s7145_s3 + $0x24] sm:$0xf]  ;;  %v3495_v15 = vld [vmem:[%s7145_s3 + $0x28] sm:$0xf0]  ;;  %v3494_v16 = vor.u32 %v3992_v9, %v3493_v8 }
  0x81   : > { %1016 = vmatpush.bf16.msra.mxu2 %v3502_v4  ;;  %v4007_v17 = vld [vmem:[%s7145_s3 + $0xa4] sm:$0xf]  ;;  %v3559_v18 = vld [vmem:[%s7145_s3 + $0xa8] sm:$0xf0]  ;;  %v3558_v19 = vor.u32 %v4008_v12, %v3557_v11  ;;  %v3498_v20 = vor.u32 %v3991_v14, %v3495_v15  ;;  %v3485_v22 = vld [vmem:[%s7145_s3 + $0x10] sm:$0xf] }
  0x82   : > { %v3562_v21 = vor.u32 %v4007_v17, %v3559_v18  ;;  %v3990_v23 = vld [vmem:[%s7145_s3 + $0x14] sm:$0xf0]  ;;  %v3549_v24 = vld [vmem:[%s7145_s3 + $0x90] sm:$0xf]  ;;  %v3989_v27 = vld [vmem:[%s7145_s3 + $0x14] sm:$0xf] }
  0x83   : > { %1039 = vmatpush.bf16.msrb.mxu0 %v3530_v35  ;;  %v3486_v25 = vor.u32 %v3990_v23, %v3485_v22  ;;  %v4006_v26 = vld [vmem:[%s7145_s3 + $0x94] sm:$0xf0]  ;;  %v3487_v28 = vld [vmem:[%s7145_s3 + $0x18] sm:$0xf0]  ;;  %v4005_v31 = vld [vmem:[%s7145_s3 + $0x94] sm:$0xf] }
  0x84   : > { %1052 = vmatpush.bf16.msrb.mxu1 %v3594_v39  ;;  %1029 = vmatpush.bf16.msra.mxu3 %v3566_v7  ;;  %v3550_v29 = vor.u32 %v4006_v26, %v3549_v24  ;;  %v3490_v30 = vor.u32 %v3989_v27, %v3487_v28  ;;  %v3551_v32 = vld [vmem:[%s7145_s3 + $0x98] sm:$0xf0]  ;;  %v3477_v34 = vld [vmem:[%s7145_s3] sm:$0xf]  ;;  %v3988_v35 = vld [vmem:[%s7145_s3 + $0x4] sm:$0xf0] }
  0x85   : > { %1017 = vmatpush.bf16.msra.mxu2 %v3494_v16  ;;  %v3554_v33 = vor.u32 %v4005_v31, %v3551_v32  ;;  %v3541_v36 = vld [vmem:[%s7145_s3 + $0x80] sm:$0xf]  ;;  %v3478_v37 = vor.u32 %v3988_v35, %v3477_v34  ;;  %v4004_v38 = vld [vmem:[%s7145_s3 + $0x84] sm:$0xf0]  ;;  %v3987_v39 = vld [vmem:[%s7145_s3 + $0x4] sm:$0xf] }
  0x86   : > { %v3479_v40 = vld [vmem:[%s7145_s3 + $0x8] sm:$0xf0]  ;;  %v3542_v41 = vor.u32 %v4004_v38, %v3541_v36  ;;  %v4003_v43 = vld [vmem:[%s7145_s3 + $0x84] sm:$0xf]  ;;  %v3725_v46 = vld [vmem:[%s7147_s5 + $0xf0] sm:$0xf] }
  0x87   : > { %1040 = vmatpush.bf16.msrb.mxu0 %v3522_v50  ;;  %v3482_v42 = vor.u32 %v3987_v39, %v3479_v40  ;;  %v3543_v44 = vld [vmem:[%s7145_s3 + $0x88] sm:$0xf0]  ;;  %v4050_v47 = vld [vmem:[%s7147_s5 + $0xf4] sm:$0xf0]  ;;  %v4049_v48 = vld [vmem:[%s7147_s5 + $0xf4] sm:$0xf] }
  0x88   : > { %1053 = vmatpush.bf16.msrb.mxu1 %v3586_v53  ;;  %1030 = vmatpush.bf16.msra.mxu3 %v3558_v19  ;;  %v3546_v45 = vor.u32 %v4003_v43, %v3543_v44  ;;  %v3726_v49 = vor.u32 %v4050_v47, %v3725_v46  ;;  %v3727_v50 = vld [vmem:[%s7147_s5 + $0xf8] sm:$0xf0]  ;;  %v3717_v51 = vld [vmem:[%s7147_s5 + $0xe0] sm:$0xf]  ;;  %v4048_v52 = vld [vmem:[%s7147_s5 + $0xe4] sm:$0xf0] }
  0x89   : > { %1018 = vmatpush.bf16.msra.mxu2 %v3486_v25  ;;  %v3730_v53 = vor.u32 %v4049_v48, %v3727_v50  ;;  %v4047_v54 = vld [vmem:[%s7147_s5 + $0xe4] sm:$0xf]  ;;  %v3719_v55 = vld [vmem:[%s7147_s5 + $0xe8] sm:$0xf0]  ;;  %v3661_v56 = vld [vmem:[%s7147_s5 + $0x70] sm:$0xf]  ;;  %v3718_v57 = vor.u32 %v4048_v52, %v3717_v51 }
  0x8a   : > { %v4034_v58 = vld [vmem:[%s7147_s5 + $0x74] sm:$0xf0]  ;;  %v4033_v59 = vld [vmem:[%s7147_s5 + $0x74] sm:$0xf]  ;;  %v3663_v60 = vld [vmem:[%s7147_s5 + $0x78] sm:$0xf0]  ;;  %v3722_v61 = vor.u32 %v4047_v54, %v3719_v55 }
  0x8b   : > { %1041 = vmatpush.bf16.msrb.mxu0 %v3514_v62  ;;  %v3662_v62 = vor.u32 %v4034_v58, %v3661_v56  ;;  %v3666_v63 = vor.u32 %v4033_v59, %v3663_v60  ;;  %v3709_v0 = vld [vmem:[%s7147_s5 + $0xd0] sm:$0xf]  ;;  %v4045_v2 = vld [vmem:[%s7147_s5 + $0xd4] sm:$0xf]  ;;  %v3711_v3 = vld [vmem:[%s7147_s5 + $0xd8] sm:$0xf0] }
  0x8c   : > { %1054 = vmatpush.bf16.msrb.mxu1 %v3578_v1  ;;  %1031 = vmatpush.bf16.msra.mxu3 %v3550_v29  ;;  %v4046_v1 = vld [vmem:[%s7147_s5 + $0xd4] sm:$0xf0]  ;;  %v3653_v4 = vld [vmem:[%s7147_s5 + $0x60] sm:$0xf]  ;;  %v4032_v5 = vld [vmem:[%s7147_s5 + $0x64] sm:$0xf0] }
  0x8d   : > { %1019 = vmatpush.bf16.msra.mxu2 %v3478_v37  ;;  %v3654_v6 = vor.u32 %v4032_v5, %v3653_v4  ;;  %v4031_v7 = vld [vmem:[%s7147_s5 + $0x64] sm:$0xf]  ;;  %v3655_v8 = vld [vmem:[%s7147_s5 + $0x68] sm:$0xf0]  ;;  %v3710_v9 = vor.u32 %v4046_v1, %v3709_v0  ;;  %v3701_v11 = vld [vmem:[%s7147_s5 + $0xc0] sm:$0xf] }
  0x8e   : > { %v4044_v12 = vld [vmem:[%s7147_s5 + $0xc4] sm:$0xf0]  ;;  %v3645_v14 = vld [vmem:[%s7147_s5 + $0x50] sm:$0xf]  ;;  %v4030_v15 = vld [vmem:[%s7147_s5 + $0x54] sm:$0xf0] }
  0x8f   : > { %1042 = vmatpush.bf16.msrb.mxu0 %v3506_v10  ;;  %v3658_v10 = vor.u32 %v4031_v7, %v3655_v8  ;;  %v4029_v16 = vld [vmem:[%s7147_s5 + $0x54] sm:$0xf]  ;;  %v4043_v17 = vld [vmem:[%s7147_s5 + $0xc4] sm:$0xf]  ;;  %v3703_v18 = vld [vmem:[%s7147_s5 + $0xc8] sm:$0xf0]  ;;  %v3702_v23 = vor.u32 %v4044_v12, %v3701_v11 }
  0x90   : > { %1055 = vmatpush.bf16.msrb.mxu1 %v3570_v13  ;;  %1032 = vmatpush.bf16.msra.mxu3 %v3542_v41  ;;  %v3714_v13 = vor.u32 %v4045_v2, %v3711_v3  ;;  %v3647_v19 = vld [vmem:[%s7147_s5 + $0x58] sm:$0xf0]  ;;  %v3637_v22 = vld [vmem:[%s7147_s5 + $0x40] sm:$0xf]  ;;  %v4028_v24 = vld [vmem:[%s7147_s5 + $0x44] sm:$0xf0]  ;;  %v3706_v27 = vor.u32 %v4043_v17, %v3703_v18 }
  0x91   : > { %1266 = vmatpush.bf16.msrb.mxu2 %v3662_v62  ;;  %v4027_v25 = vld [vmem:[%s7147_s5 + $0x44] sm:$0xf]  ;;  %v3639_v26 = vld [vmem:[%s7147_s5 + $0x48] sm:$0xf0]  ;;  %v3693_v28 = vld [vmem:[%s7147_s5 + $0xb0] sm:$0xf]  ;;  %v3638_v32 = vor.u32 %v4028_v24, %v3637_v22 }
  0x92   : > { %v4042_v29 = vld [vmem:[%s7147_s5 + $0xb4] sm:$0xf0]  ;;  %v3695_v31 = vld [vmem:[%s7147_s5 + $0xb8] sm:$0xf0]  ;;  %v3685_v36 = vld [vmem:[%s7147_s5 + $0xa0] sm:$0xf] }
  0x93   : > { %1043 = vmatpush.bf16.msrb.mxu0 %v3498_v20  ;;  %v3646_v20 = vor.u32 %v4030_v15, %v3645_v14  ;;  %v3694_v34 = vor.u32 %v4042_v29, %v3693_v28  ;;  %v4040_v37 = vld [vmem:[%s7147_s5 + $0xa4] sm:$0xf0]  ;;  %v754_v38 = vld [vmem:[%s7144_s2] sm:$0x3]  ;;  %v4039_v39 = vld [vmem:[%s7147_s5 + $0xa4] sm:$0xf] }
  0x94   : > { %1056 = vmatpush.bf16.msrb.mxu1 %v3562_v21  ;;  %1279 = vmatpush.bf16.msrb.mxu3 %v3726_v49  ;;  %v3650_v21 = vor.u32 %v4029_v16, %v3647_v19  ;;  %v3687_v40 = vld [vmem:[%s7147_s5 + $0xa8] sm:$0xf0]  ;;  %v3686_v41 = vor.u32 %v4040_v37, %v3685_v36  ;;  %v757_v44 = vperm.slane %v754_v38, 1  ;;  %v3629_v55 = vld [vmem:[%s7147_s5 + $0x30] sm:$0xf]  ;;  %s5259_s20 = scalar_lea.vmem [#allocation2], %s3452_s1 }
  0x95   : > { %1267 = vmatpush.bf16.msrb.mxu2 %v3654_v6  ;;  %v3690_v43 = vor.u32 %v4039_v39, %v3687_v40  ;;  %v4026_v56 = vld [vmem:[%s7147_s5 + $0x34] sm:$0xf0]  ;;  %v3631_v59 = vld [vmem:[%s7147_s5 + $0x38] sm:$0xf0]  ;;  %v3621_v3 = vld [vmem:[%s7147_s5 + $0x20] sm:$0xf] }
  0x96   : > { %v3630_v58 = vor.u32 %v4026_v56, %v3629_v55  ;;  %v4038_v62 = vld [vmem:[%s7147_s5 + $0x94] sm:$0xf0]  ;;  %v3679_v1 = vld [vmem:[%s7147_s5 + $0x98] sm:$0xf0]  ;;  %v4024_v4 = vld [vmem:[%s7147_s5 + $0x24] sm:$0xf0] }
  0x97   : > { %1044 = vmatpush.bf16.msrb.mxu0 %v3490_v30  ;;  %v4041_v30 = vld [vmem:[%s7147_s5 + $0xb4] sm:$0xf]  ;;  %v4023_v5 = vld [vmem:[%s7147_s5 + $0x24] sm:$0xf]  ;;  %v3622_v6 = vor.u32 %v4024_v4, %v3621_v3  ;;  %v3623_v7 = vld [vmem:[%s7147_s5 + $0x28] sm:$0xf0] }
  0x98   : > { %1057 = vmatpush.bf16.msrb.mxu1 %v3554_v33  ;;  %1280 = vmatpush.bf16.msrb.mxu3 %v3718_v57  ;;  %v3642_v33 = vor.u32 %v4027_v25, %v3639_v26  ;;  %v3698_v35 = vor.u32 %v4041_v30, %v3695_v31  ;;  %v4025_v57 = vld [vmem:[%s7147_s5 + $0x34] sm:$0xf]  ;;  %v3626_v8 = vor.u32 %v4023_v5, %v3623_v7  ;;  %v4035_v11 = vld [vmem:[%s7147_s5 + $0x84] sm:$0xf]  ;;  %v3613_v15 = vld [vmem:[%s7147_s5 + $0x10] sm:$0xf] }
  0x99   : > { %1268 = vmatpush.bf16.msrb.mxu2 %v3646_v20  ;;  %v3634_v60 = vor.u32 %v4025_v57, %v3631_v59  ;;  %v4022_v16 = vld [vmem:[%s7147_s5 + $0x14] sm:$0xf0]  ;;  %v4021_v18 = vld [vmem:[%s7147_s5 + $0x14] sm:$0xf]  ;;  %v3615_v19 = vld [vmem:[%s7147_s5 + $0x18] sm:$0xf0] }
  0x9a   : > { %v3614_v17 = vor.u32 %v4022_v16, %v3613_v15  ;;  %v3618_v20 = vor.u32 %v4021_v18, %v3615_v19  ;;  %v4020_v22 = vld [vmem:[%s7147_s5 + $0x4] sm:$0xf0]  ;;  %v3607_v25 = vld [vmem:[%s7147_s5 + $0x8] sm:$0xf0]  ;;  %v4082_v28 = vld [vmem:[%s7149_s7 + $0xf4] sm:$0xf0] }
  0x9b   : > { %1045 = vmatpush.bf16.msrb.mxu0 %v3482_v42  ;;  %v756_v42 = vperm.slane %v754_v38, 0  ;;  %v4081_v29 = vld [vmem:[%s7149_s7 + $0xf4] sm:$0xf]  ;;  %v3855_v31 = vld [vmem:[%s7149_s7 + $0xf8] sm:$0xf0]  ;;  %s5274_s24 = scalar_lea.vmem [#allocation3], %s3452_s1 }
  0x9c   : > { %1058 = vmatpush.bf16.msrb.mxu1 %v3546_v45  ;;  %1281 = vmatpush.bf16.msrb.mxu3 %v3710_v9  ;;  %v3669_v9 = vld [vmem:[%s7147_s5 + $0x80] sm:$0xf]  ;;  %v3847_v36 = vld [vmem:[%s7149_s7 + $0xe8] sm:$0xf0]  ;;  %v3789_v37 = vld [vmem:[%s7149_s7 + $0x70] sm:$0xf] }
  0x9d   : > { %1269 = vmatpush.bf16.msrb.mxu2 %v3638_v32  ;;  %v3845_v32 = vld [vmem:[%s7149_s7 + $0xe0] sm:$0xf]  ;;  %v4066_v39 = vld [vmem:[%s7149_s7 + $0x74] sm:$0xf0]  ;;  %v4065_v40 = vld [vmem:[%s7149_s7 + $0x74] sm:$0xf] }
  0x9e   : > { %v3829_v56 = vld [vmem:[%s7149_s7 + $0xc0] sm:$0xf]  ;;  %v4076_v57 = vld [vmem:[%s7149_s7 + $0xc4] sm:$0xf0]  ;;  %v3773_v59 = vld [vmem:[%s7149_s7 + $0x50] sm:$0xf] }
  0x9f   : > { %1292 = vmatpush.bf16.msra.mxu0 %v3666_v63  ;;  %v4037_v63 = vld [vmem:[%s7147_s5 + $0x94] sm:$0xf]  ;;  %v846_v3 = vld [vmem:[%s7146_s4] sm:$0x3]  ;;  %v3830_v4 = vor.u32 %v4076_v57, %v3829_v56  ;;  %v4055_v56 = vld [vmem:[%s7149_s7 + $0x24] sm:$0xf] }
  0xa0   : > { %1305 = vmatpush.bf16.msra.mxu1 %v3730_v53  ;;  %1282 = vmatpush.bf16.msrb.mxu3 %v3702_v23  ;;  %v3682_v2 = vor.u32 %v4037_v63, %v3679_v1  ;;  %v4019_v23 = vld [vmem:[%s7147_s5 + $0x4] sm:$0xf]  ;;  %v3831_v63 = vld [vmem:[%s7149_s7 + $0xc8] sm:$0xf0]  ;;  %vm1734_vm1 = vcmask 31744   ;;  %p737_p8 = scmp.lt.s32.totalorder %s4328_s27, 1 }
  0xa1   : > { %1270 = vmatpush.bf16.msrb.mxu2 %v3630_v58  ;;  %v3610_v26 = vor.u32 %v4019_v23, %v3607_v25  ;;  %v4074_v25 = vld [vmem:[%s7149_s7 + $0xb4] sm:$0xf0] }
  0xa2   : > { %s738_s18 = scalar_select %p737_p8, %s4328_s27, 1 }
  0xa3   : > { %1293 = vmatpush.bf16.msra.mxu0 %v3658_v10  ;;  %v4036_v10 = vld [vmem:[%s7147_s5 + $0x84] sm:$0xf0] }
  0xa4   : > { %1306 = vmatpush.bf16.msra.mxu1 %v3722_v61  ;;  %1283 = vmatpush.bf16.msrb.mxu3 %v3694_v34  ;;  %v3677_v61 = vld [vmem:[%s7147_s5 + $0x90] sm:$0xf]  ;;  %v3670_v12 = vor.u32 %v4036_v10, %v3669_v9  ;;  %v3858_v34 = vor.u32 %v4081_v29, %v3855_v31  ;;  %v4060_v31 = vld [vmem:[%s7149_s7 + $0x44] sm:$0xf0]  ;;  %s3454_s11 = sshll.u32 %s738_s18, 3 }
  0xa5   : > { %v3678_v0 = vor.u32 %v4038_v62, %v3677_v61  ;;  %1271 = vmatpush.bf16.msrb.mxu2 %v3622_v6  ;;  %v4061_v61 = vld [vmem:[%s7149_s7 + $0x54] sm:$0xf]  ;;  %v4075_v62 = vld [vmem:[%s7149_s7 + $0xc4] sm:$0xf]  ;;  %v849_v6 = vperm.slane %v846_v3, 1  ;;  %s740_s23 = scalar_lea.vmem %s7158_s16, %s3454_s11 }
  0xa6   : > { %v3834_v5 = vor.u32 %v4075_v62, %v3831_v63  ;;  %v4067_v62 = vld [vmem:[%s7149_s7 + $0x84] sm:$0xf] }
  0xa7   : > { %1294 = vmatpush.bf16.msra.mxu0 %v3650_v21  ;;  %v3605_v21 = vld [vmem:[%s7147_s5] sm:$0xf] }
  0xa8   : > { %1307 = vmatpush.bf16.msra.mxu1 %v3714_v13  ;;  %1284 = vmatpush.bf16.msrb.mxu3 %v3686_v41  ;;  %v3671_v13 = vld [vmem:[%s7147_s5 + $0x88] sm:$0xf0]  ;;  %v3606_v24 = vor.u32 %v4020_v22, %v3605_v21  ;;  %v3791_v41 = vld [vmem:[%s7149_s7 + $0x78] sm:$0xf0] }
  0xa9   : > { %v3674_v14 = vor.u32 %v4035_v11, %v3671_v13  ;;  %1272 = vmatpush.bf16.msrb.mxu2 %v3614_v17  ;;  %v848_v11 = vperm.slane %v846_v3, 0  ;;  %v4054_v3 = vld [vmem:[%s7149_s7 + $0x14] sm:$0xf0] }
  0xab   : > { %1295 = vmatpush.bf16.msra.mxu0 %v3642_v33  ;;  %v4080_v33 = vld [vmem:[%s7149_s7 + $0xe4] sm:$0xf0] }
  0xac   : > { %1308 = vmatpush.bf16.msra.mxu1 %v3706_v27  ;;  %1285 = vmatpush.bf16.msrb.mxu3 %v3678_v0  ;;  %v3853_v27 = vld [vmem:[%s7149_s7 + $0xf0] sm:$0xf]  ;;  %v3846_v38 = vor.u32 %v4080_v33, %v3845_v32  ;;  %v3775_v0 = vld [vmem:[%s7149_s7 + $0x58] sm:$0xf0]  ;;  %v4059_v32 = vld [vmem:[%s7149_s7 + $0x44] sm:$0xf] }
  0xad   : > { %1273 = vmatpush.bf16.msrb.mxu2 %v3606_v24  ;;  %v3854_v30 = vor.u32 %v4082_v28, %v3853_v27  ;;  %v3821_v24 = vld [vmem:[%s7149_s7 + $0xb0] sm:$0xf]  ;;  %v3823_v28 = vld [vmem:[%s7149_s7 + $0xb8] sm:$0xf0] }
  0xae   : > { %v3822_v27 = vor.u32 %v4074_v25, %v3821_v24 }
  0xaf   : > { %1296 = vmatpush.bf16.msra.mxu0 %v3634_v60  ;;  %v4062_v60 = vld [vmem:[%s7149_s7 + $0x54] sm:$0xf0] }
  0xb0   : > { %1309 = vmatpush.bf16.msra.mxu1 %v3698_v35  ;;  %1286 = vmatpush.bf16.msrb.mxu3 %v3670_v12  ;;  %v4079_v35 = vld [vmem:[%s7149_s7 + $0xe4] sm:$0xf]  ;;  %v3774_v1 = vor.u32 %v4062_v60, %v3773_v59  ;;  %v3797_v60 = vld [vmem:[%s7149_s7 + $0x80] sm:$0xf] }
  0xb3   : > { %1297 = vmatpush.bf16.msra.mxu0 %v3626_v8 }
  0xb4   : > { %1310 = vmatpush.bf16.msra.mxu1 %v3690_v43  ;;  %v3790_v43 = vor.u32 %v4066_v39, %v3789_v37  ;;  %v4071_v39 = vld [vmem:[%s7149_s7 + $0xa4] sm:$0xf] }
  0xb7   : > { %1298 = vmatpush.bf16.msra.mxu0 %v3618_v20 }
  0xb8   : > { %1311 = vmatpush.bf16.msra.mxu1 %v3682_v2  ;;  %v3778_v2 = vor.u32 %v4061_v61, %v3775_v0  ;;  %v4068_v61 = vld [vmem:[%s7149_s7 + $0x84] sm:$0xf0]  ;;  %v3799_v0 = vld [vmem:[%s7149_s7 + $0x88] sm:$0xf0] }
  0xb9   : > { %v3798_v63 = vor.u32 %v4068_v61, %v3797_v60  ;;  %v5262_v60 = vld [vmem:[%s5259_s20] sm:$0xff]  ;;  %v5265_v61 = vld [vmem:[%s5259_s20 + $0x8] sm:$0xff] }
  0xba   : > { %7396 = vst [vmem:[#allocation4_spill] sm:$0xff] %v5262_v60 }
  0xbb   : > { %1299 = vmatpush.bf16.msra.mxu0 %v3610_v26  ;;  %v4073_v26 = vld [vmem:[%s7149_s7 + $0xb4] sm:$0xf]  ;;  %7397 = vst [vmem:[#allocation5_spill] sm:$0xff] %v5265_v61 }
  0xbc   : > { %1312 = vmatpush.bf16.msra.mxu1 %v3674_v14  ;;  %v3826_v29 = vor.u32 %v4073_v26, %v3823_v28 }
  0xfb   : > { %v793_v45 = vpop.f32.mrf.mxu0 }
  0xfc   : > { %v794_v46 = vadd.f32 %v793_v45, %v756_v42  ;;  %v806_v47 = vpop.f32.mrf.mxu1  ;;  %v3850_v42 = vor.u32 %v4079_v35, %v3847_v36  ;;  %v3837_v45 = vld [vmem:[%s7149_s7 + $0xd0] sm:$0xf]  ;;  %v3813_v35 = vld [vmem:[%s7149_s7 + $0xa0] sm:$0xf]  ;;  %v4072_v36 = vld [vmem:[%s7149_s7 + $0xa4] sm:$0xf0] }
  0xfd   : > { %v807_v48 = vadd.f32 %v806_v47, %v757_v44  ;;  %v3794_v44 = vor.u32 %v4065_v40, %v3791_v41  ;;  %v4077_v47 = vld [vmem:[%s7149_s7 + $0xd4] sm:$0xf]  ;;  %v3815_v40 = vld [vmem:[%s7149_s7 + $0xa8] sm:$0xf0] }
  0xfe   : > { %v810_v49 = vmax.f32 %v794_v46, 0.0  ;;  %v4078_v46 = vld [vmem:[%s7149_s7 + $0xd4] sm:$0xf0]  ;;  %v3818_v41 = vor.u32 %v4071_v39, %v3815_v40 }
  0xff   : > { %v811_v50 = vmax.f32 %v807_v48, 0.0  ;;  %v3839_v48 = vld [vmem:[%s7149_s7 + $0xd8] sm:$0xf0] }
 0x100   : > { %v812_v51 = vpack.c.bf16 %v810_v49, %v810_v49  ;;  %v3781_v49 = vld [vmem:[%s7149_s7 + $0x60] sm:$0xf]  ;;  %v3842_v58 = vor.u32 %v4077_v47, %v3839_v48  ;;  %v3805_v48 = vld [vmem:[%s7149_s7 + $0x90] sm:$0xf] }
 0x101   : > { %v813_v52 = vpack.c.bf16 %v811_v50, %v811_v50  ;;  %v4064_v50 = vld [vmem:[%s7149_s7 + $0x64] sm:$0xf0] }
 0x102   : > { %1020 = vmatmul.bf16.vlgmr.msra.gmra.mxu2 %v812_v51  ;;  %1046 = vmatmul.bf16.vlgmr.msrb.gmra.mxu0 %v812_v51  ;;  %v3782_v51 = vor.u32 %v4064_v50, %v3781_v49  ;;  %v4070_v49 = vld [vmem:[%s7149_s7 + $0x94] sm:$0xf0] }
 0x103   : > { %1033 = vmatmul.bf16.vlgmr.msra.gmra.mxu3 %v813_v52  ;;  %1059 = vmatmul.bf16.vlgmr.msrb.gmra.mxu1 %v813_v52  ;;  %v795_v53 = vpop.f32.mrf.mxu0  ;;  %v4063_v52 = vld [vmem:[%s7149_s7 + $0x64] sm:$0xf]  ;;  %v3806_v50 = vor.u32 %v4070_v49, %v3805_v48  ;;  %v7162_v48 = vmov 1   ;;  %v5205_v49 = vld [vmem:[%s7155_s13 + $0x10] sm:$0xff] }
 0x104   : > { %v808_v54 = vpop.f32.mrf.mxu1  ;;  %1533 = vmatpush.bf16.msra.mxu3 %v3854_v30  ;;  %1559 = vmatpush.bf16.msrb.mxu1 %v3858_v34  ;;  %v3783_v53 = vld [vmem:[%s7149_s7 + $0x68] sm:$0xf0]  ;;  %v3765_v30 = vld [vmem:[%s7149_s7 + $0x40] sm:$0xf] }
 0x105   : > { %1520 = vmatpush.bf16.msra.mxu2 %v3790_v43  ;;  %1546 = vmatpush.bf16.msrb.mxu0 %v3794_v44  ;;  %v3838_v54 = vor.u32 %v4078_v46, %v3837_v45  ;;  %v3786_v55 = vor.u32 %v4063_v52, %v3783_v53  ;;  %v3766_v33 = vor.u32 %v4060_v31, %v3765_v30  ;;  %v3767_v34 = vld [vmem:[%s7149_s7 + $0x48] sm:$0xf0]  ;;  %v4058_v43 = vld [vmem:[%s7149_s7 + $0x34] sm:$0xf0]  ;;  %v4057_v44 = vld [vmem:[%s7149_s7 + $0x34] sm:$0xf] }
 0x106   : > { %v3770_v37 = vor.u32 %v4059_v32, %v3767_v34  ;;  %v3759_v46 = vld [vmem:[%s7149_s7 + $0x38] sm:$0xf0] }
 0x107   : > { %v3762_v47 = vor.u32 %v4057_v44, %v3759_v46  ;;  %v3807_v52 = vld [vmem:[%s7149_s7 + $0x98] sm:$0xf0]  ;;  %v5179_v44 = vld [vmem:[%s7156_s14 + $0x28] sm:$0xff]  ;;  %v5191_v46 = vld [vmem:[%s7156_s14 + $0x30] sm:$0xff] }
 0x108   : > { %1534 = vmatpush.bf16.msra.mxu3 %v3846_v38  ;;  %1560 = vmatpush.bf16.msrb.mxu1 %v3850_v42  ;;  %v3814_v38 = vor.u32 %v4072_v36, %v3813_v35  ;;  %v3757_v42 = vld [vmem:[%s7149_s7 + $0x30] sm:$0xf]  ;;  %v5155_v30 = vld [vmem:[%s7156_s14 + $0x18] sm:$0xff]  ;;  %v5161_v35 = vld [vmem:[%s7155_s13 + $0x20] sm:$0xff] }
 0x109   : > { %1521 = vmatpush.bf16.msra.mxu2 %v3782_v51  ;;  %1547 = vmatpush.bf16.msrb.mxu0 %v3786_v55  ;;  %v3758_v45 = vor.u32 %v4058_v43, %v3757_v42  ;;  %v4069_v51 = vld [vmem:[%s7149_s7 + $0x94] sm:$0xf]  ;;  %v4056_v55 = vld [vmem:[%s7149_s7 + $0x24] sm:$0xf0] }
 0x10a   : > { %v3810_v53 = vor.u32 %v4069_v51, %v3807_v52  ;;  %v5172_v43 = vld [vmem:[%s7155_s13 + $0x28] sm:$0xff]  ;;  %v4098_v51 = vld [vmem:[%s7151_s9 + $0x78] sm:$0xff]  ;;  %v4097_v52 = vld [vmem:[%s7151_s9 + $0x70] sm:$0xff] }
 0x10c   : > { %1535 = vmatpush.bf16.msra.mxu3 %v3838_v54  ;;  %1561 = vmatpush.bf16.msrb.mxu1 %v3842_v58  ;;  %v3749_v54 = vld [vmem:[%s7149_s7 + $0x20] sm:$0xf]  ;;  %v3751_v58 = vld [vmem:[%s7149_s7 + $0x28] sm:$0xf0] }
 0x10d   : > { %1522 = vmatpush.bf16.msra.mxu2 %v3774_v1  ;;  %1548 = vmatpush.bf16.msrb.mxu0 %v3778_v2  ;;  %v3750_v57 = vor.u32 %v4056_v55, %v3749_v54  ;;  %v3754_v59 = vor.u32 %v4055_v56, %v3751_v58  ;;  %v3802_v1 = vor.u32 %v4067_v62, %v3799_v0  ;;  %v3741_v2 = vld [vmem:[%s7149_s7 + $0x10] sm:$0xf]  ;;  %v4096_v54 = vld [vmem:[%s7151_s9 + $0x68] sm:$0xff]  ;;  %v4095_v56 = vld [vmem:[%s7151_s9 + $0x60] sm:$0xff]  ;;  %v7166_v58 = vmov 2  }
 0x10e   : > { %v4089_v55 = vld [vmem:[%s7151_s9 + $0x30] sm:$0xff]  ;;  %v5277_v0 = vld [vmem:[%s5274_s24] sm:$0xff] }
 0x10f   : > { %v5268_v62 = vld [vmem:[%s5259_s20 + $0x10] sm:$0xff]  ;;  %7400 = vst [vmem:[#allocation8_spill] sm:$0xff] %v5277_v0 }
 0x110   : > { %1536 = vmatpush.bf16.msra.mxu3 %v3830_v4  ;;  %1562 = vmatpush.bf16.msrb.mxu1 %v3834_v5  ;;  %v3742_v4 = vor.u32 %v4054_v3, %v3741_v2  ;;  %v4053_v5 = vld [vmem:[%s7149_s7 + $0x14] sm:$0xf]  ;;  %7398 = vst [vmem:[#allocation6_spill] sm:$0xff] %v5268_v62  ;;  %v4094_v2 = vld [vmem:[%s7151_s9 + $0x58] sm:$0xff] }
 0x111   : > { %1523 = vmatpush.bf16.msra.mxu2 %v3766_v33  ;;  %1549 = vmatpush.bf16.msrb.mxu0 %v3770_v37  ;;  %v5286_v3 = vld [vmem:[%s5274_s24 + $0x10] sm:$0xff] }
 0x112   : > { %7402 = vst [vmem:[#allocation10_spill] sm:$0xff] %v5286_v3 }
 0x114   : > { %1537 = vmatpush.bf16.msra.mxu3 %v3822_v27  ;;  %1563 = vmatpush.bf16.msrb.mxu1 %v3826_v29 }
 0x115   : > { %1524 = vmatpush.bf16.msra.mxu2 %v3758_v45  ;;  %1550 = vmatpush.bf16.msrb.mxu0 %v3762_v47  ;;  %v5184_v45 = vld [vmem:[%s7155_s13 + $0x30] sm:$0xff]  ;;  %v5196_v47 = vld [vmem:[%s7155_s13 + $0x38] sm:$0xff] }
 0x118   : > { %1538 = vmatpush.bf16.msra.mxu3 %v3814_v38  ;;  %1564 = vmatpush.bf16.msrb.mxu1 %v3818_v41  ;;  %v5167_v41 = vld [vmem:[%s7156_s14 + $0x20] sm:$0xff] }
 0x119   : > { %1525 = vmatpush.bf16.msra.mxu2 %v3750_v57  ;;  %1551 = vmatpush.bf16.msrb.mxu0 %v3754_v59  ;;  %v4088_v57 = vld [vmem:[%s7151_s9 + $0x28] sm:$0xff] }
 0x11c   : > { %1539 = vmatpush.bf16.msra.mxu3 %v3806_v50  ;;  %1565 = vmatpush.bf16.msrb.mxu1 %v3810_v53  ;;  %v5214_v50 = vld [vmem:[%s7156_s14 + $0x38] sm:$0xff] }
 0x11d   : > { %1526 = vmatpush.bf16.msra.mxu2 %v3742_v4  ;;  %v4090_v53 = vld [vmem:[%s7151_s9 + $0x38] sm:$0xff] }
 0x11e   : > { %v5289_v4 = vld [vmem:[%s5274_s24 + $0x18] sm:$0xff] }
 0x11f   : > { %7403 = vst [vmem:[#allocation11_spill] sm:$0xff] %v5289_v4 }
 0x120   : > { %1540 = vmatpush.bf16.msra.mxu3 %v3798_v63  ;;  %1566 = vmatpush.bf16.msrb.mxu1 %v3802_v1  ;;  %v5271_v63 = vld [vmem:[%s5259_s20 + $0x18] sm:$0xff]  ;;  %v5280_v1 = vld [vmem:[%s5274_s24 + $0x8] sm:$0xff] }
 0x121   : > { %7399 = vst [vmem:[#allocation7_spill] sm:$0xff] %v5271_v63 }
 0x122   : > { %7401 = vst [vmem:[#allocation9_spill] sm:$0xff] %v5280_v1 }
 0x17f   : > { %v1047_v7 = vpop.f32.mrf.mxu0 }
 0x180   : > { %v1048_v8 = vadd.f32 %v1047_v7, %v849_v6  ;;  %v1060_v9 = vpop.f32.mrf.mxu1  ;;  %v3743_v6 = vld [vmem:[%s7149_s7 + $0x18] sm:$0xf0] }
 0x181   : > { %v3746_v7 = vor.u32 %v4053_v5, %v3743_v6  ;;  %v4087_v5 = vld [vmem:[%s7151_s9 + $0x20] sm:$0xff] }
 0x182   : > { %v1061_v10 = vadd.f32 %v1060_v9, %v1048_v8  ;;  %v3733_v8 = vld [vmem:[%s7149_s7] sm:$0xf]  ;;  %v4052_v9 = vld [vmem:[%s7149_s7 + $0x4] sm:$0xf0] }
 0x183   : > { %1552 = vmatpush.bf16.msrb.mxu0 %v3746_v7 }
 0x184   : > { %v1065_v12 = vmax.f32 %v1061_v10, 0.0  ;;  %v4051_v10 = vld [vmem:[%s7149_s7 + $0x4] sm:$0xf] }
 0x185   : > { %v1021_v13 = vpop.f32.mrf.mxu2 }
 0x186   : > { %v1067_v14 = vpack.c.bf16 %v1065_v12, %v1065_v12  ;;  %v1022_v15 = vadd.f32 %v1021_v13, %v848_v11  ;;  %v1034_v16 = vpop.f32.mrf.mxu3  ;;  %v3734_v11 = vor.u32 %v4052_v9, %v3733_v8  ;;  %v3735_v12 = vld [vmem:[%s7149_s7 + $0x8] sm:$0xf0] }
 0x187   : > { %v1049_v17 = vpop.f32.mrf.mxu0  ;;  %v3738_v13 = vor.u32 %v4051_v10, %v3735_v12 }
 0x188   : > { %v1035_v18 = vadd.f32 %v1034_v16, %v1022_v15  ;;  %v1062_v19 = vpop.f32.mrf.mxu1  ;;  %1287 = vmatmul.bf16.vlgmr.msrb.gmra.mxu3 %v1067_v14  ;;  %1313 = vmatmul.bf16.vlgmr.msra.gmra.mxu1 %v1067_v14  ;;  %v5113_v14 = vld [vmem:[%s7155_s13] sm:$0xff]  ;;  %v7164_v15 = vmov 0   ;;  %v5121_v16 = vld [vmem:[%s7155_s13 + $0x8] sm:$0xff] }
 0x189   : > { %1527 = vmatpush.bf16.msra.mxu2 %v3734_v11  ;;  %1553 = vmatpush.bf16.msrb.mxu0 %v3738_v13  ;;  %v5128_v17 = vld [vmem:[%s7156_s14] sm:$0xff] }
 0x18a   : > { %v1064_v20 = vmax.f32 %v1035_v18, 0.0  ;;  %4127 = vset.pattern.permute.xlu1 %v7164_v15  ;;  %4128 = vset.pattern.permute.xlu2 %v7164_v15  ;;  %v5133_v18 = vld [vmem:[%s7156_s14 + $0x8] sm:$0xff] }
 0x18b   : > { %1788 = vperm.xlu1 %4127, %v5113_v14   ;;  %4129 = vset.pattern.permute.xlu0 %v7164_v15 }
 0x18c   : > { %v1066_v21 = vpack.c.bf16 %v1064_v20, %v1064_v20  ;;  %1832 = vperm.xlu2 %4128, %v5121_v16   ;;  %v1100_v20 = vld [vmem:[%s7148_s6] sm:$0x3]  ;;  %1884 = vperm.xlu0 %4129, %v5205_v49  }
 0x18d   : > { %v1023_v22 = vpop.f32.mrf.mxu2  ;;  %v1102_v29 = vperm.slane %v1100_v20, 0  ;;  %1721 = vmatpush.bf16.msrb.mxu3 %v4098_v51 }
 0x18e   : > { %v1036_v23 = vpop.f32.mrf.mxu3  ;;  %1274 = vmatmul.bf16.vlgmr.msrb.gmra.mxu2 %v1066_v21  ;;  %1300 = vmatmul.bf16.vlgmr.msra.gmra.mxu0 %v1066_v21  ;;  %v5143_v21 = vld [vmem:[%s7156_s14 + $0x10] sm:$0xff]  ;;  %v1103_v22 = vperm.slane %v1100_v20, 1 }
 0x18f   : > { %v5148_v23 = vld [vmem:[%s7155_s13 + $0x18] sm:$0xff]  ;;  %1708 = vmatpush.bf16.msrb.mxu2 %v4090_v53  ;;  %v4093_v20 = vld [vmem:[%s7151_s9 + $0x50] sm:$0xff] }
 0x191   : > { %1722 = vmatpush.bf16.msrb.mxu3 %v4097_v52 }
 0x193   : > { %1797 = vperm.xlu1 %4127, %v5128_v17   ;;  %1709 = vmatpush.bf16.msrb.mxu2 %v4089_v55  ;;  %v4092_v55 = vld [vmem:[%s7151_s9 + $0x48] sm:$0xff] }
 0x194   : > { %1841 = vperm.xlu2 %4128, %v5133_v18   ;;  %2153 = vperm.xlu0 %4129, %v5214_v50  }
 0x195   : > { %1723 = vmatpush.bf16.msrb.mxu3 %v4096_v54 }
 0x197   : > { %1710 = vmatpush.bf16.msrb.mxu2 %v4088_v57  ;;  %v5366_v57 = vld [vmem:[%s5274_s24 + $0x20] sm:$0xff] }
 0x198   : > { %7420 = vst [vmem:[#allocation28_spill] sm:$0xff] %v5366_v57 }
 0x199   : > { %1724 = vmatpush.bf16.msrb.mxu3 %v4095_v56  ;;  %v5363_v56 = vld [vmem:[%s5259_s20 + $0x38] sm:$0xff] }
 0x19a   : > { %7419 = vst [vmem:[#allocation27_spill] sm:$0xff] %v5363_v56 }
 0x19b   : > { %1893 = vperm.xlu1 %4127, %v5143_v21   ;;  %1711 = vmatpush.bf16.msrb.mxu2 %v4087_v5  ;;  %v5375_v5 = vld [vmem:[%s5274_s24 + $0x38] sm:$0xff] }
 0x19c   : > { %1936 = vperm.xlu2 %4128, %v5148_v23   ;;  %4130 = vset.pattern.permute.xlu0 %v7162_v48  ;;  %7423 = vst [vmem:[#allocation31_spill] sm:$0xff] %v5375_v5 }
 0x19d   : > { %2215 = vperm.xlu0 %4130, %v5113_v14   ;;  %1725 = vmatpush.bf16.msrb.mxu3 %v4094_v2  ;;  %v5372_v2 = vld [vmem:[%s5274_s24 + $0x30] sm:$0xff] }
 0x19e   : > { %7422 = vst [vmem:[#allocation30_spill] sm:$0xff] %v5372_v2 }
 0x1a1   : > { %1726 = vmatpush.bf16.msrb.mxu3 %v4093_v20 }
 0x1a3   : > { %1945 = vperm.xlu1 %4127, %v5155_v30  }
 0x1a4   : > { %1988 = vperm.xlu2 %4128, %v5161_v35  }
 0x1a5   : > { %2295 = vperm.xlu0 %4130, %v5143_v21   ;;  %1727 = vmatpush.bf16.msrb.mxu3 %v4092_v55 }
 0x1ab   : > { %1997 = vperm.xlu1 %4127, %v5167_v41  }
 0x1ac   : > { %2040 = vperm.xlu2 %4128, %v5172_v43  }
 0x1ad   : > { %2367 = vperm.xlu0 %4130, %v5161_v35  }
 0x1b3   : > { %2049 = vperm.xlu1 %4127, %v5179_v44  }
 0x1b4   : > { %2092 = vperm.xlu2 %4128, %v5184_v45  }
 0x1b5   : > { %2415 = vperm.xlu0 %4130, %v5179_v44  }
 0x1bb   : > { %2101 = vperm.xlu1 %4127, %v5191_v46  }
 0x1bc   : > { %2144 = vperm.xlu2 %4128, %v5196_v47  }
 0x1bd   : > { %2487 = vperm.xlu0 %4130, %v5196_v47  }
 0x1c3   : > { %4131 = vset.pattern.permute.xlu1 %v7162_v48 }
 0x1c4   : > { %2223 = vperm.xlu1 %4131, %v5128_v17   ;;  %4132 = vset.pattern.permute.xlu2 %v7162_v48 }
 0x1c5   : > { %2247 = vperm.xlu2 %4132, %v5121_v16  }
 0x1cc   : > { %2255 = vperm.xlu1 %4131, %v5133_v18  }
 0x1cd   : > { %2287 = vperm.xlu2 %4132, %v5205_v49  }
 0x1d4   : > { %2327 = vperm.xlu1 %4131, %v5148_v23  }
 0x1d5   : > { %2335 = vperm.xlu2 %4132, %v5155_v30  }
 0x1dc   : > { %2375 = vperm.xlu1 %4131, %v5167_v41  }
 0x1dd   : > { %2407 = vperm.xlu2 %4132, %v5172_v43  }
 0x1e4   : > { %2447 = vperm.xlu1 %4131, %v5184_v45  }
 0x1e5   : > { %2455 = vperm.xlu2 %4132, %v5191_v46  }
 0x1e6   : > { %v1833_v10 = vpop.permute.xlu2 %1832 }
 0x1e7   : > { %v5390_v20 = vmul.f32 %v5363_v56, %v1833_v10 }
 0x1e9   : > { %7427 = vst [vmem:[#allocation35_spill] sm:$0xff] %v5390_v20 }
 0x1ec   : > { %2495 = vperm.xlu1 %4131, %v5214_v50  }
 0x1ed   : > { %4134 = vset.pattern.permute.xlu2 %v7166_v58 }
 0x1ee   : > { %2571 = vperm.xlu2 %4134, %v5128_v17  }
 0x1f4   : > { %4133 = vset.pattern.permute.xlu1 %v7166_v58 }
 0x1f5   : > { %2563 = vperm.xlu1 %4133, %v5113_v14  }
 0x1f6   : > { %2635 = vperm.xlu2 %4134, %v5205_v49  }
 0x1fd   : > { %v1789_v59 = vpop.permute.xlu1 %1788  ;;  %2603 = vperm.xlu1 %4133, %v5133_v18  }
 0x1fe   : > { %2675 = vperm.xlu2 %4134, %v5148_v23   ;;  %v5295_v6 = vmul.f32 %v1789_v59, %v5262_v60  ;;  %v5298_v7 = vmul.f32 %v1789_v59, %v5265_v61  ;;  %v5301_v8 = vmul.f32 %v1789_v59, %v5268_v62  ;;  %v5304_v9 = vmul.f32 %v1789_v59, %v5271_v63 }
 0x1ff   : > { %v1812_v11 = vmul.f32 %v1789_v59, %v5277_v0  ;;  %v1813_v12 = vmul.f32 %v1789_v59, %v5280_v1  ;;  %v1814_v13 = vmul.f32 %v1789_v59, %v5286_v3 }
 0x200   : > { %7404 = vst [vmem:[#allocation12_spill] sm:$0xff] %v5295_v6 }
 0x201   : > { %7405 = vst [vmem:[#allocation13_spill] sm:$0xff] %v5298_v7 }
 0x202   : > { %7406 = vst [vmem:[#allocation14_spill] sm:$0xff] %v5301_v8 }
 0x203   : > { %7407 = vst [vmem:[#allocation15_spill] sm:$0xff] %v5304_v9 }
 0x205   : > { %v1314_v19 = vpop.f32.mrf.mxu1  ;;  %2643 = vperm.xlu1 %4133, %v5143_v21  }
 0x206   : > { %2723 = vperm.xlu2 %4134, %v5167_v41  }
 0x20b   : > { %v1288_v24 = vpop.f32.mrf.mxu3  ;;  %v1301_v25 = vpop.f32.mrf.mxu0 }
 0x20c   : > { %v1302_v26 = vadd.f32 %v1301_v25, %v1103_v22  ;;  %v1798_v22 = vpop.permute.xlu1 %1797 }
 0x20d   : > { %v1316_v27 = vpop.f32.mrf.mxu1  ;;  %v5318_v25 = vmul.f32 %v1798_v22, %v5280_v1  ;;  %2715 = vperm.xlu1 %4133, %v5161_v35  }
 0x20e   : > { %v1315_v28 = vadd.f32 %v1314_v19, %v1302_v26  ;;  %v1815_v19 = vmul.f32 %v1789_v59, %v5289_v4  ;;  %v5321_v26 = vmul.f32 %v1798_v22, %v5286_v3  ;;  %v5324_v27 = vmul.f32 %v1798_v22, %v5289_v4  ;;  %v5369_v59 = vld [vmem:[%s5274_s24 + $0x28] sm:$0xff]  ;;  %2795 = vperm.xlu2 %4134, %v5184_v45  }
 0x20f   : > { %7409 = vst [vmem:[#allocation17_spill] sm:$0xff] %v5318_v25 }
 0x210   : > { %v1319_v31 = vmax.f32 %v1315_v28, 0.0  ;;  %7410 = vst [vmem:[#allocation18_spill] sm:$0xff] %v5321_v26  ;;  %v1808_v28 = vmul.f32 %v1798_v22, %v5262_v60 }
 0x211   : > { %v1275_v32 = vpop.f32.mrf.mxu2  ;;  %7411 = vst [vmem:[#allocation19_spill] sm:$0xff] %v5324_v27 }
 0x212   : > { %v1321_v33 = vpack.c.bf16 %v1319_v31, %v1319_v31  ;;  %v1276_v34 = vadd.f32 %v1275_v32, %v1102_v29  ;;  %v1809_v29 = vmul.f32 %v1798_v22, %v5265_v61  ;;  %v1810_v31 = vmul.f32 %v1798_v22, %v5268_v62  ;;  %7421 = vst [vmem:[#allocation29_spill] sm:$0xff] %v5369_v59 }
 0x213   : > { %v1290_v36 = vpop.f32.mrf.mxu3  ;;  %v1303_v37 = vpop.f32.mrf.mxu0  ;;  %v1811_v32 = vmul.f32 %v1798_v22, %v5271_v63  ;;  %v5351_v51 = vadd.f32 %v1812_v11, %v1808_v28  ;;  %v4085_v11 = vld [vmem:[%s7151_s9 + $0x10] sm:$0xff]  ;;  %v1856_v28 = vmul.f32 %v5366_v57, %v1833_v10 }
 0x214   : > { %v1289_v38 = vadd.f32 %v1288_v24, %v1276_v34  ;;  %1541 = vmatmul.bf16.vlgmr.msra.gmra.mxu3 %v1321_v33  ;;  %1567 = vmatmul.bf16.vlgmr.msrb.gmra.mxu1 %v1321_v33  ;;  %v5315_v24 = vmul.f32 %v1798_v22, %v5277_v0  ;;  %v4086_v33 = vld [vmem:[%s7151_s9 + $0x18] sm:$0xff]  ;;  %v5334_v34 = vld [vmem:[%s5259_s20 + $0x20] sm:$0xff]  ;;  %v5353_v52 = vadd.f32 %v1813_v12, %v1809_v29  ;;  %v5419_v58 = vpop.permute.xlu1 %1893 }
 0x215   : > { %7412 = vst [vmem:[#allocation20_spill] sm:$0xff] %v5334_v34  ;;  %v5355_v53 = vadd.f32 %v1814_v13, %v1810_v31  ;;  %v5357_v54 = vadd.f32 %v1815_v19, %v1811_v32  ;;  %1712 = vmatpush.bf16.msrb.mxu2 %v4086_v33  ;;  %v5381_v12 = vmul.f32 %v5334_v34, %v1833_v10  ;;  %v4091_v22 = vld [vmem:[%s7151_s9 + $0x40] sm:$0xff]  ;;  %v1842_v33 = vpop.permute.xlu2 %1841 }
 0x216   : > { %v1318_v39 = vmax.f32 %v1289_v38, 0.0  ;;  %7408 = vst [vmem:[#allocation16_spill] sm:$0xff] %v5315_v24  ;;  %v1857_v29 = vmul.f32 %v5369_v59, %v1833_v10  ;;  %v1858_v31 = vmul.f32 %v5372_v2, %v1833_v10  ;;  %v1859_v32 = vmul.f32 %v5375_v5, %v1833_v10  ;;  %1728 = vmatpush.bf16.msrb.mxu3 %v4091_v22 }
 0x217   : > { %7415 = vst [vmem:[#allocation23_spill] sm:$0xff] %v5351_v51  ;;  %v5401_v55 = vmul.f32 %v5366_v57, %v1842_v33  ;;  %v5410_v38 = vmul.f32 %v5375_v5, %v1842_v33  ;;  %v1852_v37 = vmul.f32 %v5334_v34, %v1842_v33  ;;  %v1855_v15 = vmul.f32 %v5363_v56, %v1842_v33 }
 0x218   : > { %v1320_v40 = vpack.c.bf16 %v1318_v39, %v1318_v39  ;;  %7416 = vst [vmem:[#allocation24_spill] sm:$0xff] %v5353_v52  ;;  %v5407_v39 = vmul.f32 %v5372_v2, %v1842_v33  ;;  %2763 = vperm.xlu1 %4133, %v5179_v44   ;;  %2843 = vperm.xlu2 %4134, %v5214_v50  }
 0x219   : > { %v1277_v42 = vpop.f32.mrf.mxu2  ;;  %7417 = vst [vmem:[#allocation25_spill] sm:$0xff] %v5355_v53  ;;  %1713 = vmatpush.bf16.msrb.mxu2 %v4085_v11  ;;  %v5404_v11 = vmul.f32 %v5369_v59, %v1842_v33  ;;  %v5430_v51 = vadd.f32 %v1856_v28, %v1852_v37  ;;  %v5436_v9 = vadd.f32 %v1859_v32, %v1855_v15  ;;  %v1354_v37 = vld [vmem:[%s7150_s8] sm:$0x3] }
 0x21a   : > { %1528 = vmatmul.bf16.vlgmr.msra.gmra.mxu2 %v1320_v40  ;;  %1554 = vmatmul.bf16.vlgmr.msrb.gmra.mxu0 %v1320_v40  ;;  %v5346_v40 = vld [vmem:[%s5259_s20 + $0x28] sm:$0xff]  ;;  %v5349_v42 = vld [vmem:[%s5259_s20 + $0x30] sm:$0xff]  ;;  %7418 = vst [vmem:[#allocation26_spill] sm:$0xff] %v5357_v54  ;;  %v4083_v54 = vld [vmem:[%s7151_s9] sm:$0xff]  ;;  %v1357_v50 = vperm.slane %v1354_v37, 1  ;;  %v1356_v52 = vperm.slane %v1354_v37, 0 }
 0x21b   : > { %7413 = vst [vmem:[#allocation21_spill] sm:$0xff] %v5346_v40  ;;  %v5384_v13 = vmul.f32 %v5346_v40, %v1833_v10  ;;  %v5387_v19 = vmul.f32 %v5349_v42, %v1833_v10  ;;  %v4084_v10 = vld [vmem:[%s7151_s9 + $0x8] sm:$0xff]  ;;  %v1853_v36 = vmul.f32 %v5346_v40, %v1842_v33  ;;  %v1854_v48 = vmul.f32 %v5349_v42, %v1842_v33  ;;  %v5492_v37 = vld [vmem:[%s5274_s24 + $0x58] sm:$0xff] }
 0x21c   : > { %7414 = vst [vmem:[#allocation22_spill] sm:$0xff] %v5349_v42  ;;  %v5444_v22 = vpop.permute.xlu1 %1945 }
 0x21d   : > { %7424 = vst [vmem:[#allocation32_spill] sm:$0xff] %v5381_v12  ;;  %1714 = vmatpush.bf16.msrb.mxu2 %v4084_v10  ;;  %v5432_v33 = vadd.f32 %v1857_v29, %v1853_v36  ;;  %v5434_v27 = vadd.f32 %v1858_v31, %v1854_v48  ;;  %v5442_v53 = vpop.permute.xlu2 %1936  ;;  %v7170_v10 = vmov 3  }
 0x21e   : > { %7425 = vst [vmem:[#allocation33_spill] sm:$0xff] %v5384_v13  ;;  %4136 = vset.pattern.permute.xlu0 %v7170_v10 }
 0x21f   : > { %7426 = vst [vmem:[#allocation34_spill] sm:$0xff] %v5387_v19  ;;  %2919 = vperm.xlu0 %4136, %v5128_v17  }
 0x220   : > { %7428 = vst [vmem:[#allocation36_spill] sm:$0xff] %v5401_v55  ;;  %2835 = vperm.xlu1 %4133, %v5196_v47   ;;  %4135 = vset.pattern.permute.xlu2 %v7170_v10 }
 0x221   : > { %7429 = vst [vmem:[#allocation37_spill] sm:$0xff] %v5404_v11  ;;  %1715 = vmatpush.bf16.msrb.mxu2 %v4083_v54  ;;  %2911 = vperm.xlu2 %4135, %v5113_v14  }
 0x222   : > { %7430 = vst [vmem:[#allocation38_spill] sm:$0xff] %v5407_v39 }
 0x223   : > { %7431 = vst [vmem:[#allocation39_spill] sm:$0xff] %v5410_v38 }
 0x224   : > { %7432 = vst [vmem:[#allocation40_spill] sm:$0xff] %v5430_v51  ;;  %v5452_v48 = vpop.permute.xlu1 %1997 }
 0x225   : > { %7433 = vst [vmem:[#allocation41_spill] sm:$0xff] %v5432_v33  ;;  %v5450_v15 = vpop.permute.xlu2 %1988 }
 0x226   : > { %7434 = vst [vmem:[#allocation42_spill] sm:$0xff] %v5434_v27 }
 0x227   : > { %7435 = vst [vmem:[#allocation43_spill] sm:$0xff] %v5436_v9  ;;  %3023 = vperm.xlu0 %4136, %v5148_v23  }
 0x228   : > { %7436 = vst [vmem:[#allocation44_spill] sm:$0xff] %v5442_v53  ;;  %4137 = vset.pattern.permute.xlu1 %v7170_v10 }
 0x229   : > { %7437 = vst [vmem:[#allocation45_spill] sm:$0xff] %v5444_v22  ;;  %2943 = vperm.xlu1 %4137, %v5121_v16   ;;  %2951 = vperm.xlu2 %4135, %v5133_v18  }
 0x22a   : > { %7438 = vst [vmem:[#allocation46_spill] sm:$0xff] %v5450_v15 }
 0x22b   : > { %7439 = vst [vmem:[#allocation47_spill] sm:$0xff] %v5452_v48 }
 0x22c   : > { %v5464_v31 = vpop.permute.xlu1 %2049  ;;  %7449 = vst [vmem:[#allocation56_spill] sm:$0xff] %v5492_v37 }
 0x22d   : > { %v5461_v17 = vpop.permute.xlu2 %2040  ;;  %7441 = vst [vmem:[#allocation49_spill] sm:$0xff] %v5464_v31 }
 0x22e   : > { %7440 = vst [vmem:[#allocation48_spill] sm:$0xff] %v5461_v17 }
 0x22f   : > { %3071 = vperm.xlu0 %4136, %v5167_v41  }
 0x231   : > { %2983 = vperm.xlu1 %4137, %v5205_v49   ;;  %2991 = vperm.xlu2 %4135, %v5143_v21   ;;  %v5486_v21 = vld [vmem:[%s5274_s24 + $0x48] sm:$0xff] }
 0x232   : > { %7447 = vst [vmem:[#allocation54_spill] sm:$0xff] %v5486_v21 }
 0x234   : > { %v5471_v41 = vpop.permute.xlu1 %2101 }
 0x235   : > { %v5468_v27 = vpop.permute.xlu2 %2092  ;;  %7443 = vst [vmem:[#allocation51_spill] sm:$0xff] %v5471_v41 }
 0x236   : > { %7442 = vst [vmem:[#allocation50_spill] sm:$0xff] %v5468_v27 }
 0x237   : > { %3143 = vperm.xlu0 %4136, %v5184_v45   ;;  %v5489_v45 = vld [vmem:[%s5274_s24 + $0x50] sm:$0xff] }
 0x238   : > { %7448 = vst [vmem:[#allocation55_spill] sm:$0xff] %v5489_v45 }
 0x239   : > { %3031 = vperm.xlu1 %4137, %v5155_v30   ;;  %3063 = vperm.xlu2 %4135, %v5161_v35   ;;  %v5513_v35 = vmul.f32 %v5486_v21, %v5419_v58 }
 0x23b   : > { %7455 = vst [vmem:[#allocation62_spill] sm:$0xff] %v5513_v35 }
 0x241   : > { %3103 = vperm.xlu1 %4137, %v5172_v43   ;;  %3111 = vperm.xlu2 %4135, %v5179_v44  }
 0x249   : > { %3151 = vperm.xlu1 %4137, %v5191_v46   ;;  %3183 = vperm.xlu2 %4135, %v5196_v47  }
 0x291   : > { %v1568_v36 = vpop.f32.mrf.mxu1 }
 0x297   : > { %v1542_v54 = vpop.f32.mrf.mxu3  ;;  %v1555_v28 = vpop.f32.mrf.mxu0 }
 0x298   : > { %v1556_v29 = vadd.f32 %v1555_v28, %v1357_v50 }
 0x299   : > { %v1570_v23 = vpop.f32.mrf.mxu1 }
 0x29a   : > { %v1569_v32 = vadd.f32 %v1568_v36, %v1556_v29  ;;  %v5482_v36 = vld [vmem:[%s5274_s24 + $0x40] sm:$0xff]  ;;  %v5502_v29 = vld [vmem:[%s5259_s20 + $0x50] sm:$0xff]  ;;  %v5505_v23 = vld [vmem:[%s5259_s20 + $0x58] sm:$0xff] }
 0x29b   : > { %7446 = vst [vmem:[#allocation53_spill] sm:$0xff] %v5482_v36 }
 0x29c   : > { %v1573_v14 = vmax.f32 %v1569_v32, 0.0  ;;  %7452 = vst [vmem:[#allocation59_spill] sm:$0xff] %v5502_v29  ;;  %v5509_v32 = vmul.f32 %v5482_v36, %v5419_v58 }
 0x29d   : > { %v1529_v9 = vpop.f32.mrf.mxu2  ;;  %7453 = vst [vmem:[#allocation60_spill] sm:$0xff] %v5505_v23 }
 0x29e   : > { %v1575_v10 = vpack.c.bf16 %v1573_v14, %v1573_v14  ;;  %v1530_v17 = vadd.f32 %v1529_v9, %v1356_v52  ;;  %v5475_v52 = vpop.permute.xlu2 %2144  ;;  %7454 = vst [vmem:[#allocation61_spill] sm:$0xff] %v5509_v32  ;;  %v5517_v14 = vmul.f32 %v5489_v45, %v5419_v58 }
 0x29f   : > { %v1544_v33 = vpop.f32.mrf.mxu3  ;;  %v1557_v50 = vpop.f32.mrf.mxu0  ;;  %7444 = vst [vmem:[#allocation52_spill] sm:$0xff] %v5475_v52 }
 0x2a0   : > { %v1543_v28 = vadd.f32 %v1542_v54, %v1530_v17  ;;  %1729 = vmatmul.bf16.vlgmr.msrb.gmra.mxu3 %v1575_v10  ;;  %v5478_v33 = vpop.permute.xlu1 %2223  ;;  %v7445_v10 = vmov 2   ;;  %v5496_v17 = vld [vmem:[%s5259_s20 + $0x40] sm:$0xff]  ;;  %v5499_v54 = vld [vmem:[%s5259_s20 + $0x48] sm:$0xff]  ;;  %7456 = vst [vmem:[#allocation63_spill] sm:$0xff] %v5517_v14 }
 0x2a1   : > { %4138 = vset.pattern.permute.xlu0 %v7445_v10  ;;  %7450 = vst [vmem:[#allocation57_spill] sm:$0xff] %v5496_v17  ;;  %v5630_v47 = vmul.f32 %v5478_v33, %v5280_v1 }
 0x2a2   : > { %v1572_v18 = vmax.f32 %v1543_v28, 0.0  ;;  %2595 = vperm.xlu0 %4138, %v5121_v16   ;;  %7451 = vst [vmem:[#allocation58_spill] sm:$0xff] %v5499_v54  ;;  %v5521_v16 = vmul.f32 %v5492_v37, %v5419_v58  ;;  %v1885_v28 = vpop.permute.xlu0 %1884 }
 0x2a3   : > { %v5541_v38 = vmul.f32 %v5496_v17, %v1885_v28  ;;  %v5544_v20 = vmul.f32 %v5499_v54, %v1885_v28  ;;  %v5547_v39 = vmul.f32 %v5502_v29, %v1885_v28  ;;  %v5550_v19 = vmul.f32 %v5505_v23, %v1885_v28 }
 0x2a4   : > { %v1574_v9 = vpack.c.bf16 %v1572_v18, %v1572_v18  ;;  %7457 = vst [vmem:[#allocation64_spill] sm:$0xff] %v5521_v16  ;;  %v1909_v46 = vmul.f32 %v5486_v21, %v1885_v28  ;;  %v1911_v6 = vmul.f32 %v5492_v37, %v1885_v28  ;;  %v7469_v16 = vmov 0  }
 0x2a5   : > { %v1531_v49 = vpop.f32.mrf.mxu2  ;;  %7458 = vst [vmem:[#allocation65_spill] sm:$0xff] %v5541_v38  ;;  %4139 = vset.pattern.permute.xlu1 %v7469_v16  ;;  %v2235_v16 = vmul.f32 %v5478_v33, %v5265_v61 }
 0x2a6   : > { %1716 = vmatmul.bf16.vlgmr.msrb.gmra.mxu2 %v1574_v9  ;;  %v2248_v50 = vpop.permute.xlu2 %2247  ;;  %7459 = vst [vmem:[#allocation66_spill] sm:$0xff] %v5544_v20 }
 0x2a7   : > { %v5524_v18 = vmul.f32 %v5334_v34, %v2248_v50  ;;  %v5527_v9 = vmul.f32 %v5346_v40, %v2248_v50  ;;  %v5530_v49 = vmul.f32 %v5349_v42, %v2248_v50  ;;  %v5533_v10 = vmul.f32 %v5363_v56, %v2248_v50  ;;  %7460 = vst [vmem:[#allocation67_spill] sm:$0xff] %v5547_v39 }
 0x2a8   : > { %v2270_v52 = vmul.f32 %v5366_v57, %v2248_v50  ;;  %v2271_v41 = vmul.f32 %v5369_v59, %v2248_v50  ;;  %v2272_v27 = vmul.f32 %v5372_v2, %v2248_v50  ;;  %v2273_v31 = vmul.f32 %v5375_v5, %v2248_v50  ;;  %v2256_v51 = vpop.permute.xlu1 %2255  ;;  %7461 = vst [vmem:[#allocation68_spill] sm:$0xff] %v5550_v19 }
 0x2a9   : > { %v5553_v26 = vmul.f32 %v5366_v57, %v2256_v51  ;;  %v5556_v8 = vmul.f32 %v5369_v59, %v2256_v51  ;;  %v5559_v50 = vmul.f32 %v5372_v2, %v2256_v51  ;;  %v5562_v11 = vmul.f32 %v5375_v5, %v2256_v51 }
 0x2aa   : > { %v2266_v13 = vmul.f32 %v5334_v34, %v2256_v51  ;;  %v2267_v25 = vmul.f32 %v5346_v40, %v2256_v51  ;;  %v2268_v7 = vmul.f32 %v5349_v42, %v2256_v51  ;;  %v2269_v55 = vmul.f32 %v5363_v56, %v2256_v51  ;;  %2683 = vperm.xlu0 %4138, %v5155_v30  }
 0x2ab   : > { %v5626_v19 = vmul.f32 %v5478_v33, %v5277_v0 }
 0x2ac   : > { %v5578_v48 = vadd.f32 %v2270_v52, %v2266_v13  ;;  %v5580_v15 = vadd.f32 %v2271_v41, %v2267_v25  ;;  %v5582_v22 = vadd.f32 %v2272_v27, %v2268_v7  ;;  %v5584_v51 = vadd.f32 %v2273_v31, %v2269_v55  ;;  %v5603_v31 = vpop.permute.xlu0 %2153 }
 0x2ad   : > { %v1904_v7 = vmul.f32 %v5496_v17, %v5419_v58  ;;  %v1905_v25 = vmul.f32 %v5499_v54, %v5419_v58  ;;  %v1906_v27 = vmul.f32 %v5502_v29, %v5419_v58  ;;  %v1907_v55 = vmul.f32 %v5505_v23, %v5419_v58  ;;  %7464 = vst [vmem:[#allocation71_spill] sm:$0xff] %v5603_v31 }
 0x2ae   : > { %7462 = vst [vmem:[#allocation69_spill] sm:$0xff] %v5582_v22  ;;  %v2288_v30 = vpop.permute.xlu2 %2287  ;;  %v1908_v52 = vmul.f32 %v5482_v36, %v1885_v28  ;;  %v1910_v13 = vmul.f32 %v5489_v45, %v1885_v28 }
 0x2af   : > { %7463 = vst [vmem:[#allocation70_spill] sm:$0xff] %v5584_v51  ;;  %v5615_v12 = vadd.f32 %v1909_v46, %v1905_v25  ;;  %v5619_v44 = vadd.f32 %v1911_v6, %v1907_v55  ;;  %v5638_v6 = vmul.f32 %v5478_v33, %v5289_v4  ;;  %v2234_v46 = vmul.f32 %v5478_v33, %v5262_v60 }
 0x2b0   : > { %v5605_v41 = vpop.permute.xlu1 %2327  ;;  %v5613_v24 = vadd.f32 %v1908_v52, %v1904_v7  ;;  %v5617_v58 = vadd.f32 %v1910_v13, %v1906_v27  ;;  %v7470_v52 = vmov 1   ;;  %v5676_v32 = vmul.f32 %v5496_v17, %v2288_v30 }
 0x2b1   : > { %7466 = vst [vmem:[#allocation73_spill] sm:$0xff] %v5615_v12  ;;  %4140 = vset.pattern.permute.xlu2 %v7470_v52  ;;  %v5679_v12 = vmul.f32 %v5499_v54, %v2288_v30  ;;  %v5685_v52 = vmul.f32 %v5505_v23, %v2288_v30  ;;  %v2310_v2 = vmul.f32 %v5482_v36, %v2288_v30 }
 0x2b2   : > { %2755 = vperm.xlu0 %4138, %v5172_v43   ;;  %7465 = vst [vmem:[#allocation72_spill] sm:$0xff] %v5613_v24  ;;  %v5634_v43 = vmul.f32 %v5478_v33, %v5286_v3  ;;  %v5682_v24 = vmul.f32 %v5502_v29, %v2288_v30  ;;  %v2311_v59 = vmul.f32 %v5486_v21, %v2288_v30 }
 0x2b3   : > { %7467 = vst [vmem:[#allocation74_spill] sm:$0xff] %v5617_v58  ;;  %v2237_v58 = vmul.f32 %v5478_v33, %v5271_v63  ;;  %v2312_v57 = vmul.f32 %v5489_v45, %v2288_v30  ;;  %v2313_v56 = vmul.f32 %v5492_v37, %v2288_v30 }
 0x2b4   : > { %7468 = vst [vmem:[#allocation75_spill] sm:$0xff] %v5619_v44  ;;  %v2216_v28 = vpop.permute.xlu0 %2215  ;;  %v2236_v44 = vmul.f32 %v5478_v33, %v5268_v62 }
 0x2b5   : > { %v5643_v7 = vmul.f32 %v2216_v28, %v5262_v60  ;;  %v5646_v25 = vmul.f32 %v2216_v28, %v5265_v61  ;;  %v5649_v27 = vmul.f32 %v2216_v28, %v5268_v62  ;;  %v5652_v55 = vmul.f32 %v2216_v28, %v5271_v63  ;;  %7471 = vst [vmem:[#allocation76_spill] sm:$0xff] %v5685_v52 }
 0x2b6   : > { %v5621_v31 = vpop.permute.xlu2 %2335  ;;  %v2238_v39 = vmul.f32 %v2216_v28, %v5277_v0  ;;  %v2239_v35 = vmul.f32 %v2216_v28, %v5280_v1  ;;  %v2240_v20 = vmul.f32 %v2216_v28, %v5286_v3  ;;  %v2241_v33 = vmul.f32 %v2216_v28, %v5289_v4 }
 0x2b8   : > { %v5640_v13 = vpop.permute.xlu1 %2375  ;;  %v5689_v38 = vadd.f32 %v2238_v39, %v2234_v46  ;;  %v5691_v53 = vadd.f32 %v2239_v35, %v2235_v16  ;;  %v5693_v5 = vadd.f32 %v2240_v20, %v2236_v44  ;;  %v5695_v28 = vadd.f32 %v2241_v33, %v2237_v58 }
 0x2ba   : > { %7473 = vst [vmem:[#allocation78_spill] sm:$0xff] %v5693_v5 }
 0x2bb   : > { %7474 = vst [vmem:[#allocation79_spill] sm:$0xff] %v5695_v28 }
 0x2bc   : > { %v2296_v42 = vpop.permute.xlu0 %2295 }
 0x2bd   : > { %v5704_v39 = vmul.f32 %v5482_v36, %v2296_v42  ;;  %v5707_v35 = vmul.f32 %v5486_v21, %v2296_v42  ;;  %v5710_v20 = vmul.f32 %v5489_v45, %v2296_v42  ;;  %v5713_v16 = vmul.f32 %v5492_v37, %v2296_v42 }
 0x2be   : > { %v5687_v14 = vpop.permute.xlu2 %2407  ;;  %v2306_v44 = vmul.f32 %v5496_v17, %v2296_v42  ;;  %v2307_v58 = vmul.f32 %v5499_v54, %v2296_v42  ;;  %v2308_v30 = vmul.f32 %v5502_v29, %v2296_v42  ;;  %v2309_v46 = vmul.f32 %v5505_v23, %v2296_v42 }
 0x2bf   : > { %7472 = vst [vmem:[#allocation77_spill] sm:$0xff] %v5687_v14 }
 0x2c0   : > { %v5701_v40 = vpop.permute.xlu1 %2447  ;;  %7476 = vst [vmem:[#allocation81_spill] sm:$0xff] %v5704_v39  ;;  %v5727_v51 = vadd.f32 %v2310_v2, %v2306_v44  ;;  %v5729_v28 = vadd.f32 %v2311_v59, %v2307_v58  ;;  %v5731_v22 = vadd.f32 %v2312_v57, %v2308_v30  ;;  %v5733_v5 = vadd.f32 %v2313_v56, %v2309_v46 }
 0x2c1   : > { %7475 = vst [vmem:[#allocation80_spill] sm:$0xff] %v5701_v40 }
 0x2c2   : > { %7477 = vst [vmem:[#allocation82_spill] sm:$0xff] %v5710_v20 }
 0x2c3   : > { %7478 = vst [vmem:[#allocation83_spill] sm:$0xff] %v5713_v16 }
 0x2c4   : > { %7479 = vst [vmem:[#allocation84_spill] sm:$0xff] %v5727_v51 }
 0x2c5   : > { %7480 = vst [vmem:[#allocation85_spill] sm:$0xff] %v5729_v28 }
 0x2c6   : > { %7481 = vst [vmem:[#allocation86_spill] sm:$0xff] %v5731_v22  ;;  %v5735_v42 = vpop.permute.xlu2 %2455 }
 0x2c7   : > { %7482 = vst [vmem:[#allocation87_spill] sm:$0xff] %v5733_v5 }
 0x2c8   : > { %7483 = vst [vmem:[#allocation88_spill] sm:$0xff] %v5735_v42  ;;  %v5737_v33 = vpop.permute.xlu1 %2495 }
 0x2c9   : > { %7484 = vst [vmem:[#allocation89_spill] sm:$0xff] %v5737_v33 }
 0x2ce   : > { %v2572_v39 = vpop.permute.xlu2 %2571 }
 0x2cf   : > { %v5740_v40 = vmul.f32 %v2572_v39, %v5277_v0  ;;  %v5743_v14 = vmul.f32 %v2572_v39, %v5280_v1  ;;  %v5746_v2 = vmul.f32 %v2572_v39, %v5286_v3  ;;  %v5749_v59 = vmul.f32 %v2572_v39, %v5289_v4 }
 0x2d0   : > { %v2582_v56 = vmul.f32 %v2572_v39, %v5262_v60  ;;  %v2583_v57 = vmul.f32 %v2572_v39, %v5265_v61  ;;  %v2584_v44 = vmul.f32 %v2572_v39, %v5268_v62  ;;  %v2585_v58 = vmul.f32 %v2572_v39, %v5271_v63  ;;  %v2564_v30 = vpop.permute.xlu1 %2563 }
 0x2d1   : > { %7485 = vst [vmem:[#allocation90_spill] sm:$0xff] %v5740_v40  ;;  %v5756_v46 = vmul.f32 %v2564_v30, %v5262_v60  ;;  %v5759_v34 = vmul.f32 %v2564_v30, %v5265_v61  ;;  %v5762_v33 = vmul.f32 %v2564_v30, %v5268_v62  ;;  %v5765_v42 = vmul.f32 %v2564_v30, %v5271_v63 }
 0x2d2   : > { %7486 = vst [vmem:[#allocation91_spill] sm:$0xff] %v5743_v14  ;;  %v2586_v5 = vmul.f32 %v2564_v30, %v5277_v0  ;;  %v2587_v22 = vmul.f32 %v2564_v30, %v5280_v1  ;;  %v2588_v28 = vmul.f32 %v2564_v30, %v5286_v3  ;;  %v2589_v39 = vmul.f32 %v2564_v30, %v5289_v4 }
 0x2d3   : > { %7487 = vst [vmem:[#allocation92_spill] sm:$0xff] %v5746_v2  ;;  %v5845_v2 = vld [vmem:[%s5259_s20 + $0x68] sm:$0xff] }
 0x2d4   : > { %7488 = vst [vmem:[#allocation93_spill] sm:$0xff] %v5749_v59  ;;  %v5779_v51 = vadd.f32 %v2586_v5, %v2582_v56  ;;  %v5781_v0 = vadd.f32 %v2587_v22, %v2583_v57  ;;  %v5783_v1 = vadd.f32 %v2588_v28, %v2584_v44  ;;  %v5785_v3 = vadd.f32 %v2589_v39, %v2585_v58 }
 0x2d5   : > { %7489 = vst [vmem:[#allocation94_spill] sm:$0xff] %v5756_v46 }
 0x2d6   : > { %7490 = vst [vmem:[#allocation95_spill] sm:$0xff] %v5759_v34  ;;  %v2636_v30 = vpop.permute.xlu2 %2635 }
 0x2d7   : > { %7491 = vst [vmem:[#allocation96_spill] sm:$0xff] %v5762_v33  ;;  %v5792_v61 = vmul.f32 %v5496_v17, %v2636_v30  ;;  %v5795_v62 = vmul.f32 %v5499_v54, %v2636_v30  ;;  %v5798_v5 = vmul.f32 %v5502_v29, %v2636_v30  ;;  %v5801_v22 = vmul.f32 %v5505_v23, %v2636_v30  ;;  %v5851_v33 = vld [vmem:[%s5259_s20 + $0x78] sm:$0xff] }
 0x2d8   : > { %7492 = vst [vmem:[#allocation97_spill] sm:$0xff] %v5765_v42  ;;  %v5787_v4 = vpop.permute.xlu1 %2603  ;;  %v2658_v28 = vmul.f32 %v5482_v36, %v2636_v30  ;;  %v2659_v56 = vmul.f32 %v5486_v21, %v2636_v30  ;;  %v2660_v57 = vmul.f32 %v5489_v45, %v2636_v30  ;;  %v2661_v44 = vmul.f32 %v5492_v37, %v2636_v30 }
 0x2d9   : > { %7493 = vst [vmem:[#allocation98_spill] sm:$0xff] %v5779_v51  ;;  %v5879_v14 = vmul.f32 %v5851_v33, %v5605_v41 }
 0x2da   : > { %7494 = vst [vmem:[#allocation99_spill] sm:$0xff] %v5781_v0 }
 0x2db   : > { %7495 = vst [vmem:[#allocation100_spill] sm:$0xff] %v5783_v1 }
 0x2dc   : > { %7496 = vst [vmem:[#allocation101_spill] sm:$0xff] %v5785_v3 }
 0x2dd   : > { %7497 = vst [vmem:[#allocation102_spill] sm:$0xff] %v5787_v4 }
 0x2de   : > { %v5789_v60 = vpop.permute.xlu2 %2675  ;;  %7499 = vst [vmem:[#allocation104_spill] sm:$0xff] %v5792_v61 }
 0x2df   : > { %7498 = vst [vmem:[#allocation103_spill] sm:$0xff] %v5789_v60  ;;  %v5912_v60 = vld [vmem:[%s5274_s24 + $0x98] sm:$0xff] }
 0x2e0   : > { %7500 = vst [vmem:[#allocation105_spill] sm:$0xff] %v5795_v62  ;;  %v2644_v58 = vpop.permute.xlu1 %2643 }
 0x2e1   : > { %7501 = vst [vmem:[#allocation106_spill] sm:$0xff] %v5798_v5  ;;  %v5808_v39 = vmul.f32 %v5482_v36, %v2644_v58  ;;  %v5811_v63 = vmul.f32 %v5486_v21, %v2644_v58  ;;  %v5814_v3 = vmul.f32 %v5489_v45, %v2644_v58  ;;  %v5817_v1 = vmul.f32 %v5492_v37, %v2644_v58  ;;  %v5923_v37 = vld [vmem:[%s5259_s20 + $0x88] sm:$0xff]  ;;  %v5929_v45 = vld [vmem:[%s5259_s20 + $0x98] sm:$0xff] }
 0x2e2   : > { %7502 = vst [vmem:[#allocation107_spill] sm:$0xff] %v5801_v22  ;;  %v2654_v0 = vmul.f32 %v5496_v17, %v2644_v58  ;;  %v2655_v30 = vmul.f32 %v5499_v54, %v2644_v58  ;;  %v2656_v51 = vmul.f32 %v5502_v29, %v2644_v58  ;;  %v2657_v59 = vmul.f32 %v5505_v23, %v2644_v58  ;;  %v5892_v22 = vld [vmem:[%s5259_s20 + $0x80] sm:$0xff] }
 0x2e3   : > { %7503 = vst [vmem:[#allocation108_spill] sm:$0xff] %v5808_v39  ;;  %v5842_v39 = vld [vmem:[%s5259_s20 + $0x60] sm:$0xff]  ;;  %v2389_v23 = vmul.f32 %v5929_v45, %v5640_v13 }
 0x2e4   : > { %7504 = vst [vmem:[#allocation109_spill] sm:$0xff] %v5811_v63  ;;  %v5831_v34 = vadd.f32 %v2658_v28, %v2654_v0  ;;  %v5833_v40 = vadd.f32 %v2659_v56, %v2655_v30  ;;  %v5835_v58 = vadd.f32 %v2660_v57, %v2656_v51  ;;  %v5837_v46 = vadd.f32 %v2661_v44, %v2657_v59  ;;  %v5848_v63 = vld [vmem:[%s5259_s20 + $0x70] sm:$0xff]  ;;  %v5854_v0 = vld [vmem:[%s5274_s24 + $0x60] sm:$0xff]  ;;  %v2368_v28 = vpop.permute.xlu0 %2367  ;;  %v5857_v56 = vld [vmem:[%s5274_s24 + $0x68] sm:$0xff] }
 0x2e5   : > { %7505 = vst [vmem:[#allocation110_spill] sm:$0xff] %v5814_v3  ;;  %v5860_v51 = vld [vmem:[%s5274_s24 + $0x70] sm:$0xff]  ;;  %v5863_v59 = vld [vmem:[%s5274_s24 + $0x78] sm:$0xff]  ;;  %v5867_v57 = vmul.f32 %v5842_v39, %v5605_v41  ;;  %v5871_v44 = vmul.f32 %v5845_v2, %v5605_v41  ;;  %v5875_v30 = vmul.f32 %v5848_v63, %v5605_v41  ;;  %v5895_v3 = vld [vmem:[%s5274_s24 + $0x80] sm:$0xff]  ;;  %v2338_v5 = vmul.f32 %v5854_v0, %v5621_v31 }
 0x2e6   : > { %7506 = vst [vmem:[#allocation111_spill] sm:$0xff] %v5817_v1  ;;  %v5839_v42 = vpop.permute.xlu2 %2723  ;;  %v2353_v1 = vmul.f32 %v5863_v59, %v5605_v41  ;;  %v2339_v62 = vmul.f32 %v5857_v56, %v5621_v31  ;;  %v2340_v61 = vmul.f32 %v5860_v51, %v5621_v31  ;;  %v2346_v4 = vmul.f32 %v5842_v39, %v5621_v31 }
 0x2e7   : > { %7507 = vst [vmem:[#allocation112_spill] sm:$0xff] %v5831_v34  ;;  %v2352_v34 = vmul.f32 %v5860_v51, %v5605_v41  ;;  %v2378_v21 = vmul.f32 %v5895_v3, %v5640_v13  ;;  %v2370_v54 = vmul.f32 %v5892_v22, %v2368_v28  ;;  %v2371_v17 = vmul.f32 %v5923_v37, %v2368_v28 }
 0x2e8   : > { %7508 = vst [vmem:[#allocation113_spill] sm:$0xff] %v5833_v40  ;;  %v2351_v40 = vmul.f32 %v5857_v56, %v5605_v41  ;;  %v2393_v52 = vmul.f32 %v5912_v60, %v2368_v28 }
 0x2e9   : > { %7509 = vst [vmem:[#allocation114_spill] sm:$0xff] %v5835_v58  ;;  %v2350_v58 = vmul.f32 %v5854_v0, %v5605_v41  ;;  %v5909_v41 = vld [vmem:[%s5274_s24 + $0x90] sm:$0xff] }
 0x2ea   : > { %7510 = vst [vmem:[#allocation115_spill] sm:$0xff] %v5837_v46  ;;  %v5881_v46 = vpop.permute.xlu1 %2715  ;;  %v2392_v16 = vmul.f32 %v5909_v41, %v2368_v28 }
 0x2eb   : > { %7511 = vst [vmem:[#allocation116_spill] sm:$0xff] %v5839_v42  ;;  %v5906_v42 = vld [vmem:[%s5274_s24 + $0x88] sm:$0xff] }
 0x2ec   : > { %7512 = vst [vmem:[#allocation117_spill] sm:$0xff] %v5842_v39  ;;  %v2379_v39 = vmul.f32 %v5906_v42, %v5640_v13 }
 0x2ed   : > { %7513 = vst [vmem:[#allocation118_spill] sm:$0xff] %v5845_v2 }
 0x2ee   : > { %7514 = vst [vmem:[#allocation119_spill] sm:$0xff] %v5848_v63  ;;  %v5947_v29 = vpop.permute.xlu2 %2795 }
 0x2ef   : > { %7515 = vst [vmem:[#allocation120_spill] sm:$0xff] %v5851_v33 }
 0x2f0   : > { %7516 = vst [vmem:[#allocation121_spill] sm:$0xff] %v5854_v0  ;;  %v2347_v0 = vmul.f32 %v5845_v2, %v5621_v31  ;;  %v2380_v2 = vmul.f32 %v5909_v41, %v5640_v13 }
 0x2f1   : > { %7517 = vst [vmem:[#allocation122_spill] sm:$0xff] %v5857_v56  ;;  %v2348_v56 = vmul.f32 %v5848_v63, %v5621_v31  ;;  %v2381_v63 = vmul.f32 %v5912_v60, %v5640_v13 }
 0x2f2   : > { %7518 = vst [vmem:[#allocation123_spill] sm:$0xff] %v5860_v51  ;;  %v2349_v51 = vmul.f32 %v5851_v33, %v5621_v31  ;;  %v2387_v33 = vmul.f32 %v5923_v37, %v5640_v13  ;;  %v5957_v20 = vpop.permute.xlu1 %2763 }
 0x2f3   : > { %7519 = vst [vmem:[#allocation124_spill] sm:$0xff] %v5863_v59 }
 0x2f4   : > { %7520 = vst [vmem:[#allocation125_spill] sm:$0xff] %v5867_v57  ;;  %v2391_v57 = vmul.f32 %v5906_v42, %v2368_v28 }
 0x2f5   : > { %7521 = vst [vmem:[#allocation126_spill] sm:$0xff] %v5871_v44  ;;  %v2390_v44 = vmul.f32 %v5895_v3, %v2368_v28 }
 0x2f6   : > { %7522 = vst [vmem:[#allocation127_spill] sm:$0xff] %v5875_v30  ;;  %v2373_v30 = vmul.f32 %v5929_v45, %v2368_v28 }
 0x2f7   : > { %7523 = vst [vmem:[#allocation128_spill] sm:$0xff] %v5879_v14 }
 0x2f8   : > { %7524 = vst [vmem:[#allocation129_spill] sm:$0xff] %v5881_v46  ;;  %v2341_v46 = vmul.f32 %v5863_v59, %v5621_v31  ;;  %v5926_v59 = vld [vmem:[%s5259_s20 + $0x90] sm:$0xff]  ;;  %v2386_v31 = vmul.f32 %v5892_v22, %v5640_v13 }
 0x2f9   : > { %7525 = vst [vmem:[#allocation130_spill] sm:$0xff] %v5895_v3  ;;  %v2388_v36 = vmul.f32 %v5926_v59, %v5640_v13  ;;  %v2372_v14 = vmul.f32 %v5926_v59, %v2368_v28  ;;  %v7532_v13 = vsub.f32 %v5643_v7, %v5626_v19  ;;  %v7535_v3 = vsub.f32 %v5527_v9, %v5556_v8  ;;  %v7541_v9 = vld [vmem:[#allocation69_spill] sm:$0xff] }
 0x2fa   : > { %7526 = vst [vmem:[#allocation131_spill] sm:$0xff] %v5906_v42  ;;  %v7537_v28 = vsub.f32 %v5530_v49, %v5559_v50  ;;  %v7538_v19 = vsub.f32 %v5652_v55, %v5638_v6  ;;  %v2282_v8 = vadd.f32 %v5578_v48, %v5689_v38  ;;  %v7542_v49 = vld [vmem:[#allocation79_spill] sm:$0xff]  ;;  %v7543_v50 = vld [vmem:[#allocation70_spill] sm:$0xff]  ;;  %v7544_v6 = vld [vmem:[#allocation81_spill] sm:$0xff] }
 0x2fb   : > { %7527 = vst [vmem:[#allocation132_spill] sm:$0xff] %v5909_v41  ;;  %v7536_v41 = vsub.f32 %v5649_v27, %v5634_v43  ;;  %v2285_v43 = vadd.f32 %v7543_v50, %v7542_v49  ;;  %v7545_v7 = vsub.f32 %v5676_v32, %v7544_v6  ;;  %v7547_v27 = vld [vmem:[#allocation82_spill] sm:$0xff]  ;;  %v7549_v55 = vld [vmem:[#allocation76_spill] sm:$0xff]  ;;  %v7555_v32 = vld [vmem:[#allocation87_spill] sm:$0xff] }
 0x2fc   : > { %7528 = vst [vmem:[#allocation133_spill] sm:$0xff] %v5923_v37  ;;  %v7548_v38 = vsub.f32 %v5682_v24, %v7547_v27  ;;  %v7556_v49 = vld [vmem:[#allocation125_spill] sm:$0xff]  ;;  %v2356_v27 = vadd.f32 %v2352_v34, %v2348_v56 }
 0x2fd   : > { %7529 = vst [vmem:[#allocation134_spill] sm:$0xff] %v5929_v45  ;;  %v7534_v45 = vsub.f32 %v5646_v25, %v5630_v47  ;;  %v2342_v50 = vsub.f32 %v7556_v49, %v2338_v5 }
 0x2fe   : > { %7530 = vst [vmem:[#allocation135_spill] sm:$0xff] %v5947_v29  ;;  %v7533_v29 = vsub.f32 %v5524_v18, %v5553_v26  ;;  %v7539_v26 = vsub.f32 %v5533_v10, %v5562_v11  ;;  %v5983_v18 = vpop.permute.xlu0 %2415  ;;  %v7546_v11 = vsub.f32 %v5679_v12, %v5707_v35  ;;  %v7557_v12 = vld [vmem:[#allocation126_spill] sm:$0xff]  ;;  %v7559_v24 = vld [vmem:[#allocation128_spill] sm:$0xff] }
 0x2ff   : > { %7531 = vst [vmem:[#allocation136_spill] sm:$0xff] %v5957_v20  ;;  %v2279_v42 = vadd.f32 %v7535_v3, %v7534_v45  ;;  %v2280_v20 = vadd.f32 %v7537_v28, %v7536_v41  ;;  %v2283_v3 = vadd.f32 %v5580_v15, %v5691_v53  ;;  %v7540_v45 = vld [vmem:[#allocation78_spill] sm:$0xff]  ;;  %v7550_v53 = vld [vmem:[#allocation83_spill] sm:$0xff]  ;;  %v2343_v35 = vsub.f32 %v7557_v12, %v2339_v62 }
 0x300   : > { %v2278_v37 = vadd.f32 %v7533_v29, %v7532_v13  ;;  %v2281_v29 = vadd.f32 %v7539_v26, %v7538_v19  ;;  %v2284_v47 = vadd.f32 %v7541_v9, %v7540_v45  ;;  %v7551_v15 = vsub.f32 %v7549_v55, %v7550_v53  ;;  %v7552_v13 = vld [vmem:[#allocation84_spill] sm:$0xff]  ;;  %v7553_v19 = vld [vmem:[#allocation85_spill] sm:$0xff]  ;;  %v7554_v45 = vld [vmem:[#allocation86_spill] sm:$0xff] }
 0x301   : > { %v2319_v10 = vadd.f32 %v7546_v11, %v2279_v42  ;;  %v2320_v48 = vadd.f32 %v7548_v38, %v2280_v20  ;;  %v2322_v28 = vadd.f32 %v7552_v13, %v2282_v8  ;;  %v2323_v26 = vadd.f32 %v7553_v19, %v2283_v3  ;;  %v7558_v42 = vld [vmem:[#allocation127_spill] sm:$0xff]  ;;  %v6015_v13 = vpop.permute.xlu1 %2835 }
 0x302   : > { %v2318_v25 = vadd.f32 %v7545_v7, %v2278_v37  ;;  %v2321_v41 = vadd.f32 %v7551_v15, %v2281_v29  ;;  %v2324_v9 = vadd.f32 %v7554_v45, %v2284_v47  ;;  %v2325_v37 = vadd.f32 %v7555_v32, %v2285_v43  ;;  %v6013_v7 = vpop.permute.xlu2 %2843  ;;  %7561 = vst [vmem:[#allocation69_spill] sm:$0xff] %v6015_v13 }
 0x303   : > { %v2344_v6 = vsub.f32 %v7558_v42, %v2340_v61  ;;  %v2345_v20 = vsub.f32 %v7559_v24, %v2341_v46  ;;  %7560 = vst [vmem:[#allocation78_spill] sm:$0xff] %v6013_v7  ;;  %v2354_v11 = vadd.f32 %v2350_v58, %v2346_v4  ;;  %v2355_v29 = vadd.f32 %v2351_v40, %v2347_v0 }
 0x304   : > { %v2357_v8 = vadd.f32 %v2353_v1, %v2349_v51  ;;  %v2358_v38 = vadd.f32 %v2342_v50, %v2318_v25  ;;  %v2359_v3 = vadd.f32 %v2343_v35, %v2319_v10  ;;  %v2364_v15 = vadd.f32 %v2356_v27, %v2324_v9  ;;  %v7572_v25 = vld [vmem:[#allocation10_spill] sm:$0xff]  ;;  %v7577_v35 = vld [vmem:[#allocation27_spill] sm:$0xff] }
 0x305   : > { %v2360_v55 = vadd.f32 %v2344_v6, %v2320_v48  ;;  %v2361_v47 = vadd.f32 %v2345_v20, %v2321_v41  ;;  %v2362_v53 = vadd.f32 %v2354_v11, %v2322_v28  ;;  %v2363_v43 = vadd.f32 %v2355_v29, %v2323_v26  ;;  %v7573_v48 = vld [vmem:[#allocation11_spill] sm:$0xff]  ;;  %v7574_v26 = vld [vmem:[#allocation20_spill] sm:$0xff]  ;;  %v7576_v50 = vld [vmem:[#allocation22_spill] sm:$0xff] }
 0x306   : > { %v2365_v5 = vadd.f32 %v2357_v8, %v2325_v37  ;;  %v2382_v62 = vsub.f32 %v2370_v54, %v2378_v21  ;;  %v2383_v61 = vsub.f32 %v2371_v17, %v2379_v39  ;;  %v2384_v19 = vsub.f32 %v2372_v14, %v2380_v2  ;;  %v6025_v56 = vpop.permute.xlu0 %2487  ;;  %v7566_v54 = vld [vmem:[#allocation4_spill] sm:$0xff]  ;;  %v7567_v14 = vld [vmem:[#allocation5_spill] sm:$0xff]  ;;  %v7569_v2 = vld [vmem:[#allocation7_spill] sm:$0xff] }
 0x307   : > { %v2385_v46 = vsub.f32 %v2373_v30, %v2381_v63  ;;  %v2394_v45 = vadd.f32 %v2390_v44, %v2386_v31  ;;  %v2395_v32 = vadd.f32 %v2391_v57, %v2387_v33  ;;  %v2396_v4 = vadd.f32 %v2392_v16, %v2388_v36  ;;  %7562 = vst [vmem:[#allocation79_spill] sm:$0xff] %v6025_v56  ;;  %v7568_v16 = vld [vmem:[#allocation6_spill] sm:$0xff]  ;;  %v7570_v57 = vld [vmem:[#allocation8_spill] sm:$0xff]  ;;  %v7571_v30 = vld [vmem:[#allocation9_spill] sm:$0xff] }
 0x308   : > { %v2397_v40 = vadd.f32 %v2393_v52, %v2389_v23  ;;  %v6017_v34 = vadd.f32 %v2382_v62, %v2358_v38  ;;  %v6019_v1 = vadd.f32 %v2383_v61, %v2359_v3  ;;  %v6021_v58 = vadd.f32 %v2384_v19, %v2360_v55  ;;  %v7575_v37 = vld [vmem:[#allocation21_spill] sm:$0xff]  ;;  %v7578_v6 = vld [vmem:[#allocation28_spill] sm:$0xff]  ;;  %v7580_v29 = vld [vmem:[#allocation30_spill] sm:$0xff] }
 0x309   : > { %v6023_v0 = vadd.f32 %v2385_v46, %v2361_v47  ;;  %v6027_v51 = vadd.f32 %v2394_v45, %v2362_v53  ;;  %v6029_v21 = vadd.f32 %v2395_v32, %v2363_v43  ;;  %v6031_v17 = vadd.f32 %v2396_v4, %v2364_v15  ;;  %v2944_v28 = vpop.permute.xlu1 %2943  ;;  %v7579_v20 = vld [vmem:[#allocation29_spill] sm:$0xff]  ;;  %v7581_v8 = vld [vmem:[#allocation31_spill] sm:$0xff] }
 0x30a   : > { %v6033_v63 = vadd.f32 %v2397_v40, %v2365_v5  ;;  %v2912_v36 = vpop.permute.xlu2 %2911  ;;  %v2946_v9 = vmul.f32 %v7574_v26, %v2944_v28  ;;  %v2947_v49 = vmul.f32 %v7575_v37, %v2944_v28  ;;  %v2948_v12 = vmul.f32 %v7576_v50, %v2944_v28 }
 0x30b   : > { %7563 = vst [vmem:[#allocation70_spill] sm:$0xff] %v6029_v21  ;;  %v2914_v23 = vmul.f32 %v2912_v36, %v7566_v54  ;;  %v2915_v52 = vmul.f32 %v2912_v36, %v7567_v14  ;;  %v2916_v33 = vmul.f32 %v2912_v36, %v7568_v16  ;;  %v2917_v39 = vmul.f32 %v2912_v36, %v7569_v2 }
 0x30c   : > { %7564 = vst [vmem:[#allocation81_spill] sm:$0xff] %v6031_v17  ;;  %v2934_v44 = vmul.f32 %v2912_v36, %v7570_v57  ;;  %v2935_v31 = vmul.f32 %v2912_v36, %v7571_v30  ;;  %v2936_v10 = vmul.f32 %v2912_v36, %v7572_v25  ;;  %v2937_v41 = vmul.f32 %v2912_v36, %v7573_v48 }
 0x30d   : > { %7565 = vst [vmem:[#allocation82_spill] sm:$0xff] %v6033_v63  ;;  %v2949_v42 = vmul.f32 %v7577_v35, %v2944_v28  ;;  %v2966_v24 = vmul.f32 %v7578_v6, %v2944_v28  ;;  %v2967_v11 = vmul.f32 %v7579_v20, %v2944_v28  ;;  %v2968_v27 = vmul.f32 %v7580_v29, %v2944_v28 }
 0x30e   : > { %v2969_v38 = vmul.f32 %v7581_v8, %v2944_v28  ;;  %v2920_v3 = vpop.permute.xlu0 %2919 }
 0x30f   : > { %v2922_v55 = vmul.f32 %v2920_v3, %v7570_v57  ;;  %v2923_v47 = vmul.f32 %v2920_v3, %v7571_v30  ;;  %v2924_v53 = vmul.f32 %v2920_v3, %v7572_v25  ;;  %v2925_v43 = vmul.f32 %v2920_v3, %v7573_v48 }
 0x310   : > { %v2930_v5 = vmul.f32 %v2920_v3, %v7566_v54  ;;  %v2931_v62 = vmul.f32 %v2920_v3, %v7567_v14  ;;  %v2932_v61 = vmul.f32 %v2920_v3, %v7568_v16  ;;  %v2933_v19 = vmul.f32 %v2920_v3, %v7569_v2 }
 0x311   : > { %v2928_v3 = vsub.f32 %v2916_v33, %v2924_v53 }
 0x312   : > { %v2952_v15 = vpop.permute.xlu2 %2951  ;;  %v2938_v7 = vadd.f32 %v2934_v44, %v2930_v5  ;;  %v2940_v13 = vadd.f32 %v2936_v10, %v2932_v61 }
 0x313   : > { %v2954_v46 = vmul.f32 %v7578_v6, %v2952_v15  ;;  %v2955_v45 = vmul.f32 %v7579_v20, %v2952_v15  ;;  %v2956_v32 = vmul.f32 %v7580_v29, %v2952_v15  ;;  %v2957_v4 = vmul.f32 %v7581_v8, %v2952_v15 }
 0x314   : > { %v2962_v40 = vmul.f32 %v7574_v26, %v2952_v15  ;;  %v2963_v36 = vmul.f32 %v7575_v37, %v2952_v15  ;;  %v2964_v54 = vmul.f32 %v7576_v50, %v2952_v15  ;;  %v2965_v14 = vmul.f32 %v7577_v35, %v2952_v15 }
 0x315   : > { %v2958_v57 = vsub.f32 %v2946_v9, %v2954_v46  ;;  %v2959_v16 = vsub.f32 %v2947_v49, %v2955_v45  ;;  %v2960_v30 = vsub.f32 %v2948_v12, %v2956_v32  ;;  %v2961_v2 = vsub.f32 %v2949_v42, %v2957_v4  ;;  %v2984_v42 = vpop.permute.xlu1 %2983 }
 0x316   : > { %v2970_v25 = vadd.f32 %v2966_v24, %v2962_v40  ;;  %v2971_v48 = vadd.f32 %v2967_v11, %v2963_v36  ;;  %v2972_v28 = vadd.f32 %v2968_v27, %v2964_v54  ;;  %v2973_v6 = vadd.f32 %v2969_v38, %v2965_v14  ;;  %v7582_v11 = vld [vmem:[#allocation57_spill] sm:$0xff]  ;;  %v7583_v38 = vld [vmem:[#allocation58_spill] sm:$0xff] }
 0x317   : > { %v2926_v20 = vsub.f32 %v2914_v23, %v2922_v55  ;;  %v2927_v29 = vsub.f32 %v2915_v52, %v2923_v47  ;;  %v2929_v8 = vsub.f32 %v2917_v39, %v2925_v43  ;;  %v2939_v26 = vadd.f32 %v2935_v31, %v2931_v62  ;;  %v7584_v52 = vld [vmem:[#allocation59_spill] sm:$0xff]  ;;  %v7585_v39 = vld [vmem:[#allocation60_spill] sm:$0xff]  ;;  %v7586_v31 = vld [vmem:[#allocation53_spill] sm:$0xff] }
 0x318   : > { %v2941_v37 = vadd.f32 %v2937_v41, %v2933_v19  ;;  %v2976_v63 = vadd.f32 %v2960_v30, %v2928_v3  ;;  %v2978_v9 = vadd.f32 %v2970_v25, %v2938_v7  ;;  %v2980_v12 = vadd.f32 %v2972_v28, %v2940_v13  ;;  %v7587_v41 = vld [vmem:[#allocation54_spill] sm:$0xff]  ;;  %v7588_v47 = vld [vmem:[#allocation55_spill] sm:$0xff]  ;;  %v7589_v7 = vld [vmem:[#allocation56_spill] sm:$0xff]  ;;  %v3024_v3 = vpop.permute.xlu0 %3023 }
 0x319   : > { %v2974_v56 = vadd.f32 %v2958_v57, %v2926_v20  ;;  %v2975_v50 = vadd.f32 %v2959_v16, %v2927_v29  ;;  %v2977_v35 = vadd.f32 %v2961_v2, %v2929_v8  ;;  %v2979_v49 = vadd.f32 %v2971_v48, %v2939_v26  ;;  %v7590_v26 = vld [vmem:[#allocation117_spill] sm:$0xff] }
 0x31a   : > { %v2981_v24 = vadd.f32 %v2973_v6, %v2941_v37  ;;  %v2986_v27 = vmul.f32 %v7582_v11, %v2984_v42  ;;  %v2987_v23 = vmul.f32 %v7583_v38, %v2984_v42  ;;  %v2988_v33 = vmul.f32 %v7584_v52, %v2984_v42  ;;  %v2992_v43 = vpop.permute.xlu2 %2991 }
 0x31b   : > { %v2989_v44 = vmul.f32 %v7585_v39, %v2984_v42  ;;  %v3006_v10 = vmul.f32 %v7586_v31, %v2984_v42  ;;  %v3007_v55 = vmul.f32 %v7587_v41, %v2984_v42  ;;  %v3008_v53 = vmul.f32 %v7588_v47, %v2984_v42 }
 0x31c   : > { %v3009_v15 = vmul.f32 %v7589_v7, %v2984_v42  ;;  %v2994_v13 = vmul.f32 %v7586_v31, %v2992_v43  ;;  %v2995_v5 = vmul.f32 %v7587_v41, %v2992_v43  ;;  %v2996_v62 = vmul.f32 %v7588_v47, %v2992_v43  ;;  %v7591_v42 = vld [vmem:[#allocation118_spill] sm:$0xff] }
 0x31d   : > { %v2997_v61 = vmul.f32 %v7589_v7, %v2992_v43  ;;  %v3002_v19 = vmul.f32 %v7582_v11, %v2992_v43  ;;  %v3003_v46 = vmul.f32 %v7583_v38, %v2992_v43  ;;  %v3004_v45 = vmul.f32 %v7584_v52, %v2992_v43 }
 0x31e   : > { %v2998_v32 = vsub.f32 %v2986_v27, %v2994_v13  ;;  %v2999_v4 = vsub.f32 %v2987_v23, %v2995_v5  ;;  %v3000_v40 = vsub.f32 %v2988_v33, %v2996_v62  ;;  %v3005_v36 = vmul.f32 %v7585_v39, %v2992_v43  ;;  %v7592_v27 = vld [vmem:[#allocation119_spill] sm:$0xff]  ;;  %v7593_v23 = vld [vmem:[#allocation120_spill] sm:$0xff]  ;;  %v7594_v33 = vld [vmem:[#allocation121_spill] sm:$0xff] }
 0x31f   : > { %v3001_v54 = vsub.f32 %v2989_v44, %v2997_v61  ;;  %v3010_v14 = vadd.f32 %v3006_v10, %v3002_v19  ;;  %v3011_v57 = vadd.f32 %v3007_v55, %v3003_v46  ;;  %v3012_v16 = vadd.f32 %v3008_v53, %v3004_v45  ;;  %v7595_v44 = vld [vmem:[#allocation122_spill] sm:$0xff] }
 0x320   : > { %v3013_v30 = vadd.f32 %v3009_v15, %v3005_v36  ;;  %v3014_v2 = vadd.f32 %v2998_v32, %v2974_v56  ;;  %v3015_v25 = vadd.f32 %v2999_v4, %v2975_v50  ;;  %v3016_v48 = vadd.f32 %v3000_v40, %v2976_v63  ;;  %v7596_v50 = vld [vmem:[#allocation123_spill] sm:$0xff] }
 0x321   : > { %v3017_v28 = vadd.f32 %v3001_v54, %v2977_v35  ;;  %v3018_v6 = vadd.f32 %v3010_v14, %v2978_v9  ;;  %v3019_v20 = vadd.f32 %v3011_v57, %v2979_v49  ;;  %v3020_v29 = vadd.f32 %v3012_v16, %v2980_v12  ;;  %v3032_v35 = vpop.permute.xlu1 %3031  ;;  %v7597_v9 = vld [vmem:[#allocation124_spill] sm:$0xff] }
 0x322   : > { %v3021_v8 = vadd.f32 %v3013_v30, %v2981_v24  ;;  %v3026_v37 = vmul.f32 %v7590_v26, %v3024_v3  ;;  %v3027_v11 = vmul.f32 %v7591_v42, %v3024_v3  ;;  %v3028_v38 = vmul.f32 %v7592_v27, %v3024_v3  ;;  %v3064_v57 = vpop.permute.xlu2 %3063  ;;  %v4147_v16 = vld [vmem:[%s7152_s10] ss:$0 sm:$0xff] }
 0x323   : > { %v3029_v52 = vmul.f32 %v7593_v23, %v3024_v3  ;;  %v3046_v39 = vmul.f32 %v7594_v33, %v3024_v3  ;;  %v3047_v56 = vmul.f32 %v7595_v44, %v3024_v3  ;;  %v3048_v63 = vmul.f32 %v7596_v50, %v3024_v3  ;;  %v1730_v13 = vpop.f32.mrf.mxu3 }
 0x324   : > { %v3049_v49 = vmul.f32 %v7597_v9, %v3024_v3  ;;  %v3034_v12 = vmul.f32 %v7594_v33, %v3032_v35  ;;  %v3035_v24 = vmul.f32 %v7595_v44, %v3032_v35  ;;  %v3036_v31 = vmul.f32 %v7596_v50, %v3032_v35 }
 0x325   : > { %v3037_v10 = vmul.f32 %v7597_v9, %v3032_v35  ;;  %v3042_v41 = vmul.f32 %v7590_v26, %v3032_v35  ;;  %v3043_v55 = vmul.f32 %v7591_v42, %v3032_v35  ;;  %v3044_v47 = vmul.f32 %v7592_v27, %v3032_v35 }
 0x326   : > { %v3038_v53 = vsub.f32 %v3026_v37, %v3034_v12  ;;  %v3039_v43 = vsub.f32 %v3027_v11, %v3035_v24  ;;  %v3040_v7 = vsub.f32 %v3028_v38, %v3036_v31  ;;  %v3045_v15 = vmul.f32 %v7593_v23, %v3032_v35  ;;  %v7598_v37 = vld [vmem:[#allocation133_spill] sm:$0xff] }
 0x327   : > { %v3041_v5 = vsub.f32 %v3029_v52, %v3037_v10  ;;  %v3050_v62 = vadd.f32 %v3046_v39, %v3042_v41  ;;  %v3051_v61 = vadd.f32 %v3047_v56, %v3043_v55  ;;  %v3052_v19 = vadd.f32 %v3048_v63, %v3044_v47  ;;  %v7599_v52 = vld [vmem:[#allocation134_spill] sm:$0xff]  ;;  %v3072_v39 = vpop.permute.xlu0 %3071 }
 0x328   : > { %v3053_v46 = vadd.f32 %v3049_v49, %v3045_v15  ;;  %v3054_v45 = vadd.f32 %v3038_v53, %v3014_v2  ;;  %v3055_v32 = vadd.f32 %v3039_v43, %v3015_v25  ;;  %v3056_v4 = vadd.f32 %v3040_v7, %v3016_v48  ;;  %v7600_v25 = vld [vmem:[#allocation130_spill] sm:$0xff] }
 0x329   : > { %v3057_v40 = vadd.f32 %v3041_v5, %v3017_v28  ;;  %v3058_v36 = vadd.f32 %v3050_v62, %v3018_v6  ;;  %v3059_v54 = vadd.f32 %v3051_v61, %v3019_v20  ;;  %v3060_v14 = vadd.f32 %v3052_v19, %v3020_v29  ;;  %v7601_v28 = vld [vmem:[#allocation131_spill] sm:$0xff]  ;;  %v7602_v20 = vld [vmem:[#allocation132_spill] sm:$0xff]  ;;  %v1717_v49 = vpop.f32.mrf.mxu2 }
 0x32a   : > { %v3061_v30 = vadd.f32 %v3053_v46, %v3021_v8  ;;  %v3066_v3 = vmul.f32 %v5892_v22, %v3064_v57  ;;  %v3067_v11 = vmul.f32 %v7598_v37, %v3064_v57  ;;  %v3068_v38 = vmul.f32 %v5926_v59, %v3064_v57 }
 0x32b   : > { %v3069_v2 = vmul.f32 %v7599_v52, %v3064_v57  ;;  %v3086_v48 = vmul.f32 %v7600_v25, %v3064_v57  ;;  %v3087_v6 = vmul.f32 %v7601_v28, %v3064_v57  ;;  %v3088_v29 = vmul.f32 %v7602_v20, %v3064_v57  ;;  %v1732_v43 = vpop.f32.mrf.mxu3 }
 0x32c   : > { %v3089_v56 = vmul.f32 %v5912_v60, %v3064_v57  ;;  %v3074_v63 = vmul.f32 %v7600_v25, %v3072_v39  ;;  %v3075_v8 = vmul.f32 %v7601_v28, %v3072_v39  ;;  %v3076_v35 = vmul.f32 %v7602_v20, %v3072_v39  ;;  %v6252_v43 = vld [vmem:[%s5274_s24 + $0xa8] sm:$0xff] }
 0x32d   : > { %v3077_v12 = vmul.f32 %v5912_v60, %v3072_v39  ;;  %v3082_v24 = vmul.f32 %v5892_v22, %v3072_v39  ;;  %v3083_v31 = vmul.f32 %v7598_v37, %v3072_v39  ;;  %v3084_v10 = vmul.f32 %v5926_v59, %v3072_v39  ;;  %7637 = vst [vmem:[#allocation54_spill] sm:$0xff] %v6252_v43 }
 0x32e   : > { %v1718_v41 = vadd.f32 %v4147_v16, %v1717_v49  ;;  %v3078_v55 = vsub.f32 %v3066_v3, %v3074_v63  ;;  %v3079_v47 = vsub.f32 %v3067_v11, %v3075_v8  ;;  %v3080_v53 = vsub.f32 %v3068_v38, %v3076_v35  ;;  %v7609_v11 = vld [vmem:[#allocation44_spill] sm:$0xff] }
 0x32f   : > { %v3081_v7 = vsub.f32 %v3069_v2, %v3077_v12  ;;  %v3085_v15 = vmul.f32 %v7599_v52, %v3072_v39  ;;  %v3090_v5 = vadd.f32 %v3086_v48, %v3082_v24  ;;  %v3091_v62 = vadd.f32 %v3087_v6, %v3083_v31  ;;  %v7617_v6 = vld [vmem:[#allocation45_spill] sm:$0xff]  ;;  %v6221_v49 = vld [vmem:[%s5259_s20 + $0xa0] sm:$0xff] }
 0x330   : > { %v6118_v61 = vadd.f32 %v1730_v13, %v1718_v41  ;;  %v3092_v19 = vadd.f32 %v3088_v29, %v3084_v10  ;;  %v6120_v46 = vadd.f32 %v3078_v55, %v3054_v45  ;;  %v6122_v57 = vadd.f32 %v3079_v47, %v3055_v32  ;;  %v6224_v12 = vld [vmem:[%s5259_s20 + $0xa8] sm:$0xff]  ;;  %v6243_v55 = vld [vmem:[%s5259_s20 + $0xb0] sm:$0xff]  ;;  %v6246_v47 = vld [vmem:[%s5259_s20 + $0xb8] sm:$0xff] }
 0x331   : > { %v3093_v17 = vadd.f32 %v3089_v56, %v3085_v15  ;;  %v6124_v21 = vadd.f32 %v3080_v53, %v3056_v4  ;;  %v6126_v16 = vadd.f32 %v3081_v7, %v3057_v40  ;;  %v6128_v3 = vadd.f32 %v3090_v5, %v3058_v36  ;;  %v1719_v63 = vpop.f32.mrf.mxu2  ;;  %7629 = vst [vmem:[#allocation29_spill] sm:$0xff] %v6224_v12  ;;  %v6249_v53 = vld [vmem:[%s5274_s24 + $0xa0] sm:$0xff]  ;;  %v6255_v7 = vld [vmem:[%s5274_s24 + $0xb0] sm:$0xff]  ;;  %v6258_v15 = vld [vmem:[%s5274_s24 + $0xb8] sm:$0xff] }
 0x332   : > { %7603 = vst [vmem:[#allocation76_spill] sm:$0xff] %v6118_v61  ;;  %v6132_v38 = vmul.f32 %v7590_v26, %v7609_v11  ;;  %v1735_v13 = vsel %vm1734_vm1, %v6118_v61, -inf  ;;  %v6136_v2 = vadd.f32 %v3091_v62, %v3059_v54  ;;  %v6138_v45 = vadd.f32 %v3092_v19, %v3060_v14  ;;  %v7640_v5 = vld [vmem:[#allocation77_spill] sm:$0xff] }
 0x333   : > { %7604 = vst [vmem:[#allocation83_spill] sm:$0xff] %v6120_v46  ;;  %v6142_v32 = vmul.f32 %v7591_v42, %v7609_v11  ;;  %v6146_v4 = vmul.f32 %v7592_v27, %v7609_v11  ;;  %v6150_v40 = vmul.f32 %v7593_v23, %v7609_v11  ;;  %1736 = vmax.xlane.f32.xlu0 %v1735_v13 }
 0x334   : > { %7605 = vst [vmem:[#allocation84_spill] sm:$0xff] %v6122_v57  ;;  %v6152_v36 = vadd.f32 %v3093_v17, %v3061_v30  ;;  %v6156_v54 = vmul.f32 %v7594_v33, %v7609_v11  ;;  %v6160_v14 = vmul.f32 %v7595_v44, %v7609_v11  ;;  %v6164_v48 = vmul.f32 %v7596_v50, %v7609_v11  ;;  %v7646_v57 = vld [vmem:[#allocation102_spill] sm:$0xff] }
 0x335   : > { %7606 = vst [vmem:[#allocation85_spill] sm:$0xff] %v6124_v21  ;;  %v6168_v29 = vmul.f32 %v7590_v26, %v7617_v6  ;;  %v6172_v17 = vmul.f32 %v7597_v9, %v7609_v11  ;;  %v6176_v30 = vmul.f32 %v7594_v33, %v7617_v6  ;;  %v6180_v39 = vmul.f32 %v7595_v44, %v7617_v6  ;;  %v4160_v21 = vld [vmem:[%s5274_s24 + $0x20] sm:$0xff] }
 0x336   : > { %7607 = vst [vmem:[#allocation86_spill] sm:$0xff] %v6126_v16  ;;  %v6184_v56 = vmul.f32 %v7596_v50, %v7617_v6  ;;  %v6188_v26 = vmul.f32 %v7597_v9, %v7617_v6  ;;  %v6192_v8 = vmul.f32 %v7591_v42, %v7617_v6  ;;  %v6196_v33 = vmul.f32 %v7592_v27, %v7617_v6  ;;  %v6202_v50 = vpop.permute.xlu0 %3143  ;;  %v7624_v9 = vld [vmem:[#allocation46_spill] sm:$0xff] }
 0x337   : > { %7608 = vst [vmem:[#allocation87_spill] sm:$0xff] %v6128_v3  ;;  %v6200_v44 = vmul.f32 %v7593_v23, %v7617_v6  ;;  %v6206_v35 = vmul.f32 %v5892_v22, %v7624_v9  ;;  %v6210_v42 = vmul.f32 %v7598_v37, %v7624_v9  ;;  %v6214_v27 = vmul.f32 %v5926_v59, %v7624_v9 }
 0x338   : > { %7610 = vst [vmem:[#allocation125_spill] sm:$0xff] %v6136_v2  ;;  %v6218_v23 = vmul.f32 %v7599_v52, %v7624_v9  ;;  %v6228_v24 = vmul.f32 %v7600_v25, %v7624_v9  ;;  %v6232_v31 = vmul.f32 %v7601_v28, %v7624_v9  ;;  %v6236_v10 = vmul.f32 %v7602_v20, %v7624_v9 }
 0x339   : > { %7611 = vst [vmem:[#allocation126_spill] sm:$0xff] %v6138_v45  ;;  %v6240_v41 = vmul.f32 %v5912_v60, %v7624_v9  ;;  %v6262_v62 = vmul.f32 %v6221_v49, %v7640_v5  ;;  %v6266_v19 = vmul.f32 %v6224_v12, %v7640_v5  ;;  %v6270_v11 = vmul.f32 %v6243_v55, %v7640_v5 }
 0x33a   : > { %7612 = vst [vmem:[#allocation127_spill] sm:$0xff] %v6150_v40  ;;  %v6274_v13 = vmul.f32 %v6246_v47, %v7640_v5  ;;  %v2418_v6 = vmul.f32 %v6249_v53, %v5983_v18  ;;  %v2419_v63 = vmul.f32 %v6252_v43, %v5983_v18  ;;  %v2420_v9 = vmul.f32 %v6255_v7, %v5983_v18 }
 0x33b   : > { %7613 = vst [vmem:[#allocation128_spill] sm:$0xff] %v6152_v36  ;;  %v2421_v61 = vmul.f32 %v6258_v15, %v5983_v18  ;;  %v7641_v36 = vld [vmem:[#allocation47_spill] sm:$0xff]  ;;  %v6302_v46 = vmul.f32 %v4160_v21, %v7646_v57 }
 0x33c   : > { %7614 = vst [vmem:[#allocation4_spill] sm:$0xff] %v6156_v54  ;;  %v6286_v45 = vmul.f32 %v7600_v25, %v7641_v36  ;;  %v6290_v2 = vmul.f32 %v7601_v28, %v7641_v36  ;;  %v6294_v3 = vmul.f32 %v7602_v20, %v7641_v36  ;;  %v6298_v16 = vmul.f32 %v5912_v60, %v7641_v36  ;;  %v4161_v25 = vld [vmem:[%s5274_s24 + $0x28] sm:$0xff] }
 0x33d   : > { %7615 = vst [vmem:[#allocation5_spill] sm:$0xff] %v6160_v14 }
 0x33e   : > { %7616 = vst [vmem:[#allocation6_spill] sm:$0xff] %v6164_v48 }
 0x33f   : > { %7618 = vst [vmem:[#allocation7_spill] sm:$0xff] %v6168_v29 }
 0x340   : > { %7619 = vst [vmem:[#allocation8_spill] sm:$0xff] %v6172_v17  ;;  %v2424_v17 = vsub.f32 %v6270_v11, %v2420_v9  ;;  %v6385_v11 = vld [vmem:[%s5259_s20 + $0xc0] sm:$0xff]  ;;  %v6401_v9 = vld [vmem:[%s5259_s20 + $0xd8] sm:$0xff] }
 0x341   : > { %7620 = vst [vmem:[#allocation9_spill] sm:$0xff] %v6192_v8 }
 0x342   : > { %7621 = vst [vmem:[#allocation10_spill] sm:$0xff] %v6196_v33 }
 0x343   : > { %7622 = vst [vmem:[#allocation11_spill] sm:$0xff] %v6200_v44  ;;  %v2425_v44 = vsub.f32 %v6274_v13, %v2421_v61 }
 0x344   : > { %7623 = vst [vmem:[#allocation20_spill] sm:$0xff] %v6202_v50  ;;  %v6306_v50 = vmul.f32 %v4161_v25, %v7646_v57 }
 0x345   : > { %7625 = vst [vmem:[#allocation21_spill] sm:$0xff] %v6206_v35  ;;  %v2422_v35 = vsub.f32 %v6262_v62, %v2418_v6  ;;  %v2441_v13 = vadd.f32 %v2425_v44, %v6023_v0  ;;  %v4168_v6 = vld [vmem:[%s7156_s14 + $0x30] sm:$0xff]  ;;  %v7664_v0 = vld [vmem:[#allocation80_spill] sm:$0xff] }
 0x346   : > { %7626 = vst [vmem:[#allocation22_spill] sm:$0xff] %v6210_v42  ;;  %v2450_v44 = vmul.f32 %v6385_v11, %v7664_v0 }
 0x347   : > { %7627 = vst [vmem:[#allocation27_spill] sm:$0xff] %v6214_v27  ;;  %2803 = vperm.xlu0 %4138, %v4168_v6  }
 0x348   : > { %7628 = vst [vmem:[#allocation28_spill] sm:$0xff] %v6218_v23 }
 0x349   : > { %7630 = vst [vmem:[#allocation30_spill] sm:$0xff] %v6228_v24  ;;  %v4165_v24 = vld [vmem:[%s5259_s20 + $0x28] sm:$0xff] }
 0x34a   : > { %7631 = vst [vmem:[#allocation31_spill] sm:$0xff] %v6232_v31  ;;  %v4164_v31 = vld [vmem:[%s5259_s20 + $0x20] sm:$0xff]  ;;  %v2615_v23 = vmul.f32 %v4165_v24, %v7646_v57 }
 0x34b   : > { %7632 = vst [vmem:[#allocation57_spill] sm:$0xff] %v6236_v10  ;;  %v4163_v10 = vld [vmem:[%s5274_s24 + $0x38] sm:$0xff]  ;;  %v2614_v60 = vmul.f32 %v4164_v31, %v7646_v57 }
 0x34c   : > { %7633 = vst [vmem:[#allocation58_spill] sm:$0xff] %v6240_v41  ;;  %v4162_v41 = vld [vmem:[%s5274_s24 + $0x30] sm:$0xff]  ;;  %v6314_v20 = vmul.f32 %v4163_v10, %v7646_v57 }
 0x34d   : > { %7634 = vst [vmem:[#allocation59_spill] sm:$0xff] %v6243_v55  ;;  %v6310_v28 = vmul.f32 %v4162_v41, %v7646_v57 }
 0x34e   : > { %7635 = vst [vmem:[#allocation60_spill] sm:$0xff] %v6246_v47 }
 0x34f   : > { %7636 = vst [vmem:[#allocation53_spill] sm:$0xff] %v6249_v53 }
 0x350   : > { %7638 = vst [vmem:[#allocation55_spill] sm:$0xff] %v6255_v7 }
 0x351   : > { %7639 = vst [vmem:[#allocation56_spill] sm:$0xff] %v6258_v15 }
 0x352   : > { %7642 = vst [vmem:[#allocation117_spill] sm:$0xff] %v6286_v45  ;;  %v2423_v45 = vsub.f32 %v6266_v19, %v2419_v63  ;;  %v6395_v63 = vld [vmem:[%s5259_s20 + $0xc8] sm:$0xff] }
 0x353   : > { %7643 = vst [vmem:[#allocation118_spill] sm:$0xff] %v6290_v2  ;;  %v2596_v2 = vpop.permute.xlu0 %2595 }
 0x354   : > { %7644 = vst [vmem:[#allocation119_spill] sm:$0xff] %v6294_v3  ;;  %v4167_v3 = vld [vmem:[%s5259_s20 + $0x38] sm:$0xff]  ;;  %v6328_v48 = vmul.f32 %v4164_v31, %v2596_v2  ;;  %v6330_v33 = vmul.f32 %v4165_v24, %v2596_v2  ;;  %v2618_v54 = vmul.f32 %v4160_v21, %v2596_v2  ;;  %v2619_v29 = vmul.f32 %v4161_v25, %v2596_v2  ;;  %v7671_v24 = vld [vmem:[#allocation88_spill] sm:$0xff] }
 0x355   : > { %7645 = vst [vmem:[#allocation120_spill] sm:$0xff] %v6298_v16  ;;  %v4166_v16 = vld [vmem:[%s5259_s20 + $0x30] sm:$0xff]  ;;  %v2617_v42 = vmul.f32 %v4167_v3, %v7646_v57  ;;  %v6334_v8 = vmul.f32 %v4167_v3, %v2596_v2  ;;  %v2621_v40 = vmul.f32 %v4163_v10, %v2596_v2  ;;  %v2426_v31 = vmul.f32 %v6221_v49, %v5983_v18 }
 0x356   : > { %7647 = vst [vmem:[#allocation121_spill] sm:$0xff] %v6302_v46  ;;  %v2616_v27 = vmul.f32 %v4166_v16, %v7646_v57  ;;  %v6332_v14 = vmul.f32 %v4166_v16, %v2596_v2  ;;  %v2620_v57 = vmul.f32 %v4162_v41, %v2596_v2  ;;  %v6344_v16 = vadd.f32 %v2618_v54, %v2614_v60 }
 0x357   : > { %7648 = vst [vmem:[#allocation122_spill] sm:$0xff] %v6306_v50  ;;  %v6346_v3 = vadd.f32 %v2619_v29, %v2615_v23  ;;  %v6350_v2 = vadd.f32 %v2621_v40, %v2617_v42  ;;  %v2427_v10 = vmul.f32 %v6224_v12, %v5983_v18  ;;  %v2428_v41 = vmul.f32 %v6243_v55, %v5983_v18  ;;  %v7677_v50 = vld [vmem:[#allocation79_spill] sm:$0xff] }
 0x358   : > { %7649 = vst [vmem:[#allocation123_spill] sm:$0xff] %v6310_v28  ;;  %v6348_v21 = vadd.f32 %v2620_v57, %v2616_v27  ;;  %v2429_v54 = vmul.f32 %v6246_v47, %v5983_v18  ;;  %v6362_v29 = vmul.f32 %v5892_v22, %v7641_v36  ;;  %v6366_v40 = vmul.f32 %v7598_v37, %v7641_v36  ;;  %v6415_v57 = vld [vmem:[%s5274_s24 + $0xc8] sm:$0xff] }
 0x359   : > { %7650 = vst [vmem:[#allocation124_spill] sm:$0xff] %v6314_v20  ;;  %v6370_v42 = vmul.f32 %v5926_v59, %v7641_v36  ;;  %v6374_v27 = vmul.f32 %v7599_v52, %v7641_v36  ;;  %v2430_v18 = vmul.f32 %v6249_v53, %v7640_v5  ;;  %v2431_v22 = vmul.f32 %v6252_v43, %v7640_v5 }
 0x35a   : > { %7651 = vst [vmem:[#allocation133_spill] sm:$0xff] %v6328_v48  ;;  %v2432_v23 = vmul.f32 %v6255_v7, %v7640_v5  ;;  %v2433_v37 = vmul.f32 %v6258_v15, %v7640_v5  ;;  %v2438_v59 = vadd.f32 %v2422_v35, %v6017_v34  ;;  %v2439_v52 = vadd.f32 %v2423_v45, %v6019_v1  ;;  %v6398_v5 = vld [vmem:[%s5259_s20 + $0xd0] sm:$0xff] }
 0x35b   : > { %7652 = vst [vmem:[#allocation134_spill] sm:$0xff] %v6330_v33  ;;  %v2440_v36 = vadd.f32 %v2424_v17, %v6021_v58  ;;  %v2434_v34 = vadd.f32 %v2430_v18, %v2426_v31  ;;  %v2435_v1 = vadd.f32 %v2431_v22, %v2427_v10  ;;  %v6404_v17 = vld [vmem:[%s5274_s24 + $0xc0] sm:$0xff]  ;;  %v2451_v35 = vmul.f32 %v6395_v63, %v7664_v0  ;;  %v6418_v31 = vld [vmem:[%s5274_s24 + $0xd0] sm:$0xff]  ;;  %v6421_v10 = vld [vmem:[%s5274_s24 + $0xd8] sm:$0xff] }
 0x35c   : > { %7653 = vst [vmem:[#allocation130_spill] sm:$0xff] %v6332_v14  ;;  %v2436_v45 = vadd.f32 %v2432_v23, %v2428_v41  ;;  %v2437_v58 = vadd.f32 %v2433_v37, %v2429_v54  ;;  %v2452_v25 = vmul.f32 %v6398_v5, %v7664_v0  ;;  %v2453_v60 = vmul.f32 %v6401_v9, %v7664_v0  ;;  %v7668_v54 = vld [vmem:[#allocation70_spill] sm:$0xff]  ;;  %v7669_v22 = vld [vmem:[#allocation81_spill] sm:$0xff] }
 0x35d   : > { %7654 = vst [vmem:[#allocation131_spill] sm:$0xff] %v6334_v8  ;;  %v2442_v41 = vadd.f32 %v2434_v34, %v6027_v51  ;;  %v2443_v18 = vadd.f32 %v2435_v1, %v7668_v54  ;;  %v7670_v37 = vld [vmem:[#allocation82_spill] sm:$0xff]  ;;  %v2458_v61 = vmul.f32 %v6404_v17, %v7671_v24  ;;  %v2459_v19 = vmul.f32 %v6415_v57, %v7671_v24  ;;  %v6452_v8 = vld [vmem:[%s5259_s20 + $0xe0] sm:$0xff] }
 0x35e   : > { %7655 = vst [vmem:[#allocation132_spill] sm:$0xff] %v6344_v16  ;;  %v2444_v23 = vadd.f32 %v2436_v45, %v7669_v22  ;;  %v2445_v6 = vadd.f32 %v2437_v58, %v7670_v37  ;;  %v2460_v62 = vmul.f32 %v6418_v31, %v7671_v24  ;;  %v2466_v51 = vmul.f32 %v6385_v11, %v7671_v24 }
 0x35f   : > { %7656 = vst [vmem:[#allocation44_spill] sm:$0xff] %v6346_v3  ;;  %v2467_v34 = vmul.f32 %v6395_v63, %v7671_v24  ;;  %v2468_v1 = vmul.f32 %v6398_v5, %v7671_v24  ;;  %v2469_v45 = vmul.f32 %v6401_v9, %v7671_v24  ;;  %v2462_v58 = vsub.f32 %v2450_v44, %v2458_v61  ;;  %v6458_v44 = vld [vmem:[%s5259_s20 + $0xf0] sm:$0xff] }
 0x360   : > { %7657 = vst [vmem:[#allocation45_spill] sm:$0xff] %v6348_v21  ;;  %v2463_v54 = vsub.f32 %v2451_v35, %v2459_v19  ;;  %v2464_v22 = vsub.f32 %v2452_v25, %v2460_v62  ;;  %v2470_v21 = vmul.f32 %v6404_v17, %v7664_v0  ;;  %v2471_v3 = vmul.f32 %v6415_v57, %v7664_v0  ;;  %v6461_v35 = vld [vmem:[%s5259_s20 + $0xf8] sm:$0xff] }
 0x361   : > { %7658 = vst [vmem:[#allocation46_spill] sm:$0xff] %v6350_v2  ;;  %v2461_v2 = vmul.f32 %v6421_v10, %v7671_v24  ;;  %v2472_v16 = vmul.f32 %v6418_v31, %v7664_v0  ;;  %v2473_v20 = vmul.f32 %v6421_v10, %v7664_v0  ;;  %v2478_v24 = vadd.f32 %v2462_v58, %v2438_v59  ;;  %v6464_v0 = vld [vmem:[%s5274_s24 + $0xe0] sm:$0xff]  ;;  %v6475_v58 = vld [vmem:[%s5274_s24 + $0xe8] sm:$0xff] }
 0x362   : > { %7659 = vst [vmem:[#allocation77_spill] sm:$0xff] %v6385_v11  ;;  %v2479_v19 = vadd.f32 %v2463_v54, %v2439_v52  ;;  %v2480_v62 = vadd.f32 %v2464_v22, %v2440_v36  ;;  %v2474_v25 = vadd.f32 %v2470_v21, %v2466_v51  ;;  %v2490_v59 = vmul.f32 %v6452_v8, %v7677_v50  ;;  %v6478_v21 = vld [vmem:[%s5274_s24 + $0xf0] sm:$0xff] }
 0x363   : > { %7660 = vst [vmem:[#allocation47_spill] sm:$0xff] %v6395_v63  ;;  %v2465_v37 = vsub.f32 %v2453_v60, %v2461_v2  ;;  %v6455_v2 = vld [vmem:[%s5259_s20 + $0xe8] sm:$0xff]  ;;  %v2475_v60 = vadd.f32 %v2471_v3, %v2467_v34  ;;  %v2476_v28 = vadd.f32 %v2472_v16, %v2468_v1  ;;  %v2477_v14 = vadd.f32 %v2473_v20, %v2469_v45  ;;  %v6481_v16 = vld [vmem:[%s5274_s24 + $0xf8] sm:$0xff] }
 0x364   : > { %7661 = vst [vmem:[#allocation102_spill] sm:$0xff] %v6398_v5  ;;  %v2491_v52 = vmul.f32 %v6455_v2, %v7677_v50  ;;  %v2492_v36 = vmul.f32 %v6458_v44, %v7677_v50  ;;  %v2482_v20 = vadd.f32 %v2474_v25, %v2442_v41  ;;  %v7681_v1 = vld [vmem:[#allocation89_spill] sm:$0xff]  ;;  %v2511_v46 = vmul.f32 %v6475_v58, %v7677_v50 }
 0x365   : > { %7662 = vst [vmem:[#allocation137_spill] sm:$0xff] %v6401_v9  ;;  %v2481_v61 = vadd.f32 %v2465_v37, %v2441_v13  ;;  %v2493_v13 = vmul.f32 %v6461_v35, %v7677_v50  ;;  %v2483_v3 = vadd.f32 %v2475_v60, %v2443_v18  ;;  %v2484_v51 = vadd.f32 %v2476_v28, %v2444_v23 }
 0x366   : > { %7663 = vst [vmem:[#allocation138_spill] sm:$0xff] %v6404_v17  ;;  %v2485_v34 = vadd.f32 %v2477_v14, %v2445_v6  ;;  %v2498_v45 = vmul.f32 %v6464_v0, %v7681_v1  ;;  %v2499_v54 = vmul.f32 %v6475_v58, %v7681_v1  ;;  %v2500_v22 = vmul.f32 %v6478_v21, %v7681_v1 }
 0x367   : > { %7665 = vst [vmem:[#allocation80_spill] sm:$0xff] %v6415_v57  ;;  %v2501_v37 = vmul.f32 %v6481_v16, %v7681_v1  ;;  %v2506_v33 = vmul.f32 %v6452_v8, %v7681_v1  ;;  %v2507_v41 = vmul.f32 %v6455_v2, %v7681_v1  ;;  %v2508_v14 = vmul.f32 %v6458_v44, %v7681_v1  ;;  %v7683_v57 = vld [vmem:[#allocation16_spill] sm:$0xff] }
 0x368   : > { %7666 = vst [vmem:[#allocation139_spill] sm:$0xff] %v6418_v31  ;;  %v2509_v28 = vmul.f32 %v6461_v35, %v7681_v1  ;;  %v2502_v18 = vsub.f32 %v2490_v59, %v2498_v45  ;;  %v2503_v23 = vsub.f32 %v2491_v52, %v2499_v54  ;;  %v2504_v6 = vsub.f32 %v2492_v36, %v2500_v22 }
 0x369   : > { %7667 = vst [vmem:[#allocation140_spill] sm:$0xff] %v6421_v10  ;;  %v2505_v25 = vsub.f32 %v2493_v13, %v2501_v37  ;;  %v2510_v60 = vmul.f32 %v6464_v0, %v7677_v50  ;;  %v2512_v48 = vmul.f32 %v6478_v21, %v7677_v50  ;;  %v2515_v52 = vadd.f32 %v2511_v46, %v2507_v41  ;;  %v7695_v41 = vld [vmem:[#allocation18_spill] sm:$0xff] }
 0x36a   : > { %7672 = vst [vmem:[#allocation70_spill] sm:$0xff] %v6452_v8  ;;  %v2519_v8 = vadd.f32 %v2503_v23, %v2479_v19  ;;  %v2520_v10 = vadd.f32 %v2504_v6, %v2480_v62  ;;  %v7704_v23 = vld [vmem:[#allocation39_spill] sm:$0xff] }
 0x36b   : > { %7673 = vst [vmem:[#allocation81_spill] sm:$0xff] %v6455_v2  ;;  %v2513_v2 = vmul.f32 %v6481_v16, %v7677_v50  ;;  %v2521_v1 = vadd.f32 %v2505_v25, %v2481_v61  ;;  %v2514_v59 = vadd.f32 %v2510_v60, %v2506_v33  ;;  %v2516_v36 = vadd.f32 %v2512_v48, %v2508_v14  ;;  %v7685_v50 = vld [vmem:[#allocation32_spill] sm:$0xff]  ;;  %v7688_v61 = vld [vmem:[#allocation13_spill] sm:$0xff] }
 0x36c   : > { %7674 = vst [vmem:[#allocation82_spill] sm:$0xff] %v6458_v44  ;;  %v2518_v44 = vadd.f32 %v2502_v18, %v2478_v24  ;;  %v2527_v54 = vmul.f32 %v2519_v8, %v2519_v8  ;;  %v2528_v22 = vmul.f32 %v2520_v10, %v2520_v10  ;;  %v7686_v24 = vld [vmem:[#allocation36_spill] sm:$0xff]  ;;  %v7689_v33 = vld [vmem:[#allocation17_spill] sm:$0xff]  ;;  %v7694_v10 = vld [vmem:[#allocation14_spill] sm:$0xff] }
 0x36d   : > { %7675 = vst [vmem:[#allocation88_spill] sm:$0xff] %v6461_v35  ;;  %v2517_v13 = vadd.f32 %v2513_v2, %v2509_v28  ;;  %v2529_v37 = vmul.f32 %v2521_v1, %v2521_v1  ;;  %v2524_v35 = vadd.f32 %v2516_v36, %v2484_v51  ;;  %v7687_v19 = vsub.f32 %v7685_v50, %v7686_v24  ;;  %v7691_v48 = vld [vmem:[#allocation33_spill] sm:$0xff]  ;;  %v7698_v51 = vld [vmem:[#allocation38_spill] sm:$0xff]  ;;  %v7700_v28 = vld [vmem:[#allocation15_spill] sm:$0xff] }
 0x36e   : > { %7676 = vst [vmem:[#allocation141_spill] sm:$0xff] %v6464_v0  ;;  %v2526_v45 = vmul.f32 %v2518_v44, %v2518_v44  ;;  %v2522_v0 = vadd.f32 %v2514_v59, %v2482_v20  ;;  %v7690_v46 = vsub.f32 %v7688_v61, %v7689_v33  ;;  %v7692_v2 = vld [vmem:[#allocation37_spill] sm:$0xff]  ;;  %v7696_v20 = vsub.f32 %v7694_v10, %v7695_v41  ;;  %v7703_v18 = vld [vmem:[#allocation35_spill] sm:$0xff]  ;;  %v7707_v36 = vld [vmem:[#allocation40_spill] sm:$0xff] }
 0x36f   : > { %7678 = vst [vmem:[#allocation79_spill] sm:$0xff] %v6475_v58  ;;  %v2523_v58 = vadd.f32 %v2515_v52, %v2483_v3  ;;  %v2525_v31 = vadd.f32 %v2517_v13, %v2485_v34  ;;  %v7693_v44 = vsub.f32 %v7691_v48, %v7692_v2  ;;  %v7697_v3 = vld [vmem:[#allocation34_spill] sm:$0xff]  ;;  %v2532_v1 = vmul.f32 %v2524_v35, %v2524_v35  ;;  %v7706_v52 = vld [vmem:[#allocation23_spill] sm:$0xff]  ;;  %v7708_v50 = vld [vmem:[#allocation24_spill] sm:$0xff] }
 0x370   : > { %7679 = vst [vmem:[#allocation142_spill] sm:$0xff] %v6478_v21  ;;  %v7682_v21 = vld [vmem:[#allocation12_spill] sm:$0xff]  ;;  %v7699_v34 = vsub.f32 %v7697_v3, %v7698_v51  ;;  %v2530_v25 = vmul.f32 %v2522_v0, %v2522_v0  ;;  %v1868_v13 = vadd.f32 %v7707_v36, %v7706_v52  ;;  %v7709_v24 = vld [vmem:[#allocation41_spill] sm:$0xff]  ;;  %v7711_v33 = vld [vmem:[#allocation42_spill] sm:$0xff] }
 0x371   : > { %7680 = vst [vmem:[#allocation143_spill] sm:$0xff] %v6481_v16  ;;  %v7684_v17 = vsub.f32 %v7682_v21, %v7683_v57  ;;  %v1865_v8 = vadd.f32 %v7693_v44, %v7690_v46  ;;  %v7701_v57 = vld [vmem:[#allocation19_spill] sm:$0xff]  ;;  %v2531_v60 = vmul.f32 %v2523_v58, %v2523_v58  ;;  %v2533_v59 = vmul.f32 %v2525_v31, %v2525_v31  ;;  %v7710_v61 = vld [vmem:[#allocation25_spill] sm:$0xff]  ;;  %v7712_v48 = vld [vmem:[#allocation26_spill] sm:$0xff] }
 0x372   : > { %v1866_v14 = vadd.f32 %v7699_v34, %v7696_v20  ;;  %v7702_v21 = vsub.f32 %v7700_v28, %v7701_v57  ;;  %v1870_v46 = vadd.f32 %v7711_v33, %v7710_v61  ;;  %v7713_v2 = vld [vmem:[#allocation43_spill] sm:$0xff]  ;;  %v6539_v10 = vadd.f32 %v2530_v25, %v2526_v45  ;;  %v7718_v31 = vld [vmem:[#allocation65_spill] sm:$0xff]  ;;  %v7721_v51 = vld [vmem:[#allocation66_spill] sm:$0xff] }
 0x373   : > { %v1864_v62 = vadd.f32 %v7687_v19, %v7684_v17  ;;  %v7705_v17 = vsub.f32 %v7703_v18, %v7704_v23  ;;  %v1869_v19 = vadd.f32 %v7709_v24, %v7708_v50  ;;  %v1871_v44 = vadd.f32 %v7713_v2, %v7712_v48  ;;  %v7719_v58 = vld [vmem:[#allocation61_spill] sm:$0xff]  ;;  %v7722_v34 = vld [vmem:[#allocation62_spill] sm:$0xff]  ;;  %v7725_v18 = vld [vmem:[#allocation63_spill] sm:$0xff] }
 0x374   : > { %7714 = vst [vmem:[#allocation89_spill] sm:$0xff] %v6539_v10  ;;  %v6541_v41 = vadd.f32 %v2531_v60, %v2527_v54  ;;  %v6543_v0 = vadd.f32 %v2532_v1, %v2528_v22  ;;  %v6545_v35 = vadd.f32 %v2533_v59, %v2529_v37  ;;  %v7720_v20 = vsub.f32 %v7718_v31, %v7719_v58  ;;  %v7727_v45 = vld [vmem:[#allocation68_spill] sm:$0xff]  ;;  %v7731_v37 = vld [vmem:[#allocation73_spill] sm:$0xff]  ;;  %v7732_v52 = vld [vmem:[#allocation74_spill] sm:$0xff] }
 0x375   : > { %v1867_v6 = vadd.f32 %v7705_v17, %v7702_v21  ;;  %v7723_v28 = vsub.f32 %v7721_v51, %v7722_v34  ;;  %v7724_v21 = vld [vmem:[#allocation67_spill] sm:$0xff]  ;;  %v7728_v25 = vld [vmem:[#allocation64_spill] sm:$0xff]  ;;  %v1921_v59 = vadd.f32 %v7731_v37, %v1869_v19  ;;  %v1922_v36 = vadd.f32 %v7732_v52, %v1870_v46  ;;  %v7737_v19 = vld [vmem:[#allocation9_spill] sm:$0xff] }
 0x376   : > { %7715 = vst [vmem:[#allocation12_spill] sm:$0xff] %v6541_v41  ;;  %v1916_v3 = vadd.f32 %v7720_v20, %v1864_v62  ;;  %v7726_v23 = vsub.f32 %v7724_v21, %v7725_v18  ;;  %v7729_v54 = vsub.f32 %v7727_v45, %v7728_v25  ;;  %v7730_v22 = vld [vmem:[#allocation72_spill] sm:$0xff]  ;;  %v7733_v50 = vld [vmem:[#allocation75_spill] sm:$0xff]  ;;  %v1952_v24 = vsub.f32 %v6132_v38, %v6176_v30  ;;  %v7738_v2 = vld [vmem:[#allocation5_spill] sm:$0xff] }
 0x377   : > { %7716 = vst [vmem:[#allocation16_spill] sm:$0xff] %v6543_v0  ;;  %v1917_v57 = vadd.f32 %v7723_v28, %v1865_v8  ;;  %v1920_v1 = vadd.f32 %v7730_v22, %v1868_v13  ;;  %v1923_v62 = vadd.f32 %v7733_v50, %v1871_v44  ;;  %v1953_v8 = vsub.f32 %v6142_v32, %v6180_v39  ;;  %v7734_v61 = vld [vmem:[#allocation127_spill] sm:$0xff]  ;;  %v7736_v13 = vld [vmem:[#allocation4_spill] sm:$0xff]  ;;  %v7739_v31 = vld [vmem:[#allocation10_spill] sm:$0xff] }
 0x378   : > { %7717 = vst [vmem:[#allocation32_spill] sm:$0xff] %v6545_v35  ;;  %v1918_v17 = vadd.f32 %v7726_v23, %v1866_v14  ;;  %v1919_v60 = vadd.f32 %v7729_v54, %v1867_v6  ;;  %v1954_v14 = vsub.f32 %v6146_v4, %v6184_v56  ;;  %v1955_v6 = vsub.f32 %v7734_v61, %v6188_v26  ;;  %v7735_v33 = vld [vmem:[#allocation7_spill] sm:$0xff]  ;;  %v7740_v44 = vld [vmem:[#allocation6_spill] sm:$0xff]  ;;  %v7742_v38 = vld [vmem:[#allocation8_spill] sm:$0xff] }
 0x379   : > { %v1964_v48 = vadd.f32 %v7736_v13, %v7735_v33  ;;  %v1965_v46 = vadd.f32 %v7738_v2, %v7737_v19  ;;  %v1966_v58 = vadd.f32 %v7740_v44, %v7739_v31  ;;  %v7741_v20 = vld [vmem:[#allocation11_spill] sm:$0xff]  ;;  %v1968_v51 = vadd.f32 %v1952_v24, %v1916_v3  ;;  %v7743_v21 = vld [vmem:[#allocation117_spill] sm:$0xff]  ;;  %v7745_v45 = vld [vmem:[#allocation118_spill] sm:$0xff] }
 0x37a   : > { %v1967_v30 = vadd.f32 %v7742_v38, %v7741_v20  ;;  %v1969_v32 = vadd.f32 %v1953_v8, %v1917_v57  ;;  %v1970_v39 = vadd.f32 %v1954_v14, %v1918_v17  ;;  %v1971_v34 = vadd.f32 %v1955_v6, %v1919_v60  ;;  %v7744_v18 = vld [vmem:[#allocation21_spill] sm:$0xff]  ;;  %v7746_v25 = vld [vmem:[#allocation22_spill] sm:$0xff]  ;;  %v7747_v22 = vld [vmem:[#allocation119_spill] sm:$0xff] }
 0x37b   : > { %v1972_v4 = vadd.f32 %v1964_v48, %v1920_v1  ;;  %v1973_v56 = vadd.f32 %v1965_v46, %v1921_v59  ;;  %v1974_v28 = vadd.f32 %v1966_v58, %v1922_v36  ;;  %v2004_v23 = vsub.f32 %v7744_v18, %v7743_v21  ;;  %v7748_v37 = vld [vmem:[#allocation27_spill] sm:$0xff]  ;;  %v7749_v50 = vld [vmem:[#allocation120_spill] sm:$0xff]  ;;  %v7751_v3 = vld [vmem:[#allocation30_spill] sm:$0xff] }
 0x37c   : > { %v1975_v26 = vadd.f32 %v1967_v30, %v1923_v62  ;;  %v2005_v54 = vsub.f32 %v7746_v25, %v7745_v45  ;;  %v2006_v52 = vsub.f32 %v7748_v37, %v7747_v22  ;;  %v7750_v61 = vld [vmem:[#allocation28_spill] sm:$0xff]  ;;  %v2016_v57 = vadd.f32 %v7751_v3, %v6362_v29  ;;  %v7752_v17 = vld [vmem:[#allocation31_spill] sm:$0xff]  ;;  %v7753_v1 = vld [vmem:[#allocation57_spill] sm:$0xff] }
 0x37d   : > { %v2007_v33 = vsub.f32 %v7750_v61, %v7749_v50  ;;  %v2017_v60 = vadd.f32 %v7752_v17, %v6366_v40  ;;  %v2018_v59 = vadd.f32 %v7753_v1, %v6370_v42  ;;  %v7754_v36 = vld [vmem:[#allocation58_spill] sm:$0xff]  ;;  %v2020_v24 = vadd.f32 %v2004_v23, %v1968_v51  ;;  %v7755_v46 = vld [vmem:[#allocation48_spill] sm:$0xff]  ;;  %v7756_v31 = vld [vmem:[#allocation49_spill] sm:$0xff] }
 0x37e   : > { %v2019_v62 = vadd.f32 %v7754_v36, %v6374_v27  ;;  %v2021_v8 = vadd.f32 %v2005_v54, %v1969_v32  ;;  %v2022_v14 = vadd.f32 %v2006_v52, %v1970_v39  ;;  %v2024_v13 = vadd.f32 %v2016_v57, %v1972_v4 }
 0x37f   : > { %v2023_v6 = vadd.f32 %v2007_v33, %v1971_v34  ;;  %v2025_v48 = vadd.f32 %v2017_v60, %v1973_v56  ;;  %v2026_v19 = vadd.f32 %v2018_v59, %v1974_v28  ;;  %v2043_v29 = vmul.f32 %v6221_v49, %v7755_v46  ;;  %v7757_v33 = vld [vmem:[#allocation50_spill] sm:$0xff] }
 0x380   : > { %v2027_v2 = vadd.f32 %v2019_v62, %v1975_v26  ;;  %v2044_v40 = vmul.f32 %v6224_v12, %v7755_v46  ;;  %v2045_v42 = vmul.f32 %v6243_v55, %v7755_v46  ;;  %v2046_v27 = vmul.f32 %v6246_v47, %v7755_v46 }
 0x381   : > { %v2052_v44 = vmul.f32 %v6249_v53, %v7756_v31  ;;  %v2053_v58 = vmul.f32 %v6252_v43, %v7756_v31  ;;  %v2054_v20 = vmul.f32 %v6255_v7, %v7756_v31  ;;  %v2055_v38 = vmul.f32 %v6258_v15, %v7756_v31 }
 0x382   : > { %v2060_v30 = vmul.f32 %v6221_v49, %v7756_v31  ;;  %v2061_v51 = vmul.f32 %v6224_v12, %v7756_v31  ;;  %v2062_v32 = vmul.f32 %v6243_v55, %v7756_v31  ;;  %v2063_v39 = vmul.f32 %v6246_v47, %v7756_v31 }
 0x383   : > { %v2056_v34 = vsub.f32 %v2043_v29, %v2052_v44  ;;  %v2057_v4 = vsub.f32 %v2044_v40, %v2053_v58  ;;  %v2058_v56 = vsub.f32 %v2045_v42, %v2054_v20  ;;  %v2059_v28 = vsub.f32 %v2046_v27, %v2055_v38  ;;  %v7761_v29 = vld [vmem:[#allocation139_spill] sm:$0xff]  ;;  %v7762_v42 = vld [vmem:[#allocation140_spill] sm:$0xff] }
 0x384   : > { %v2064_v26 = vmul.f32 %v6249_v53, %v7755_v46  ;;  %v2065_v21 = vmul.f32 %v6252_v43, %v7755_v46  ;;  %v2066_v18 = vmul.f32 %v6255_v7, %v7755_v46  ;;  %v2067_v23 = vmul.f32 %v6258_v15, %v7755_v46 }
 0x385   : > { %v2072_v45 = vadd.f32 %v2056_v34, %v2020_v24  ;;  %v2073_v25 = vadd.f32 %v2057_v4, %v2021_v8  ;;  %v2074_v54 = vadd.f32 %v2058_v56, %v2022_v14  ;;  %v2075_v22 = vadd.f32 %v2059_v28, %v2023_v6  ;;  %v7758_v24 = vld [vmem:[#allocation51_spill] sm:$0xff]  ;;  %v7759_v8 = vld [vmem:[#allocation138_spill] sm:$0xff]  ;;  %v7760_v6 = vld [vmem:[#allocation80_spill] sm:$0xff] }
 0x386   : > { %v2068_v37 = vadd.f32 %v2064_v26, %v2060_v30  ;;  %v2069_v52 = vadd.f32 %v2065_v21, %v2061_v51  ;;  %v2070_v50 = vadd.f32 %v2066_v18, %v2062_v32  ;;  %v2071_v61 = vadd.f32 %v2067_v23, %v2063_v39  ;;  %v7763_v23 = vld [vmem:[#allocation52_spill] sm:$0xff] }
 0x387   : > { %v2095_v3 = vmul.f32 %v6385_v11, %v7757_v33  ;;  %v2096_v57 = vmul.f32 %v6395_v63, %v7757_v33  ;;  %v2097_v17 = vmul.f32 %v6398_v5, %v7757_v33  ;;  %v2098_v60 = vmul.f32 %v6401_v9, %v7757_v33 }
 0x388   : > { %v2076_v1 = vadd.f32 %v2068_v37, %v2024_v13  ;;  %v2077_v59 = vadd.f32 %v2069_v52, %v2025_v48  ;;  %v2078_v36 = vadd.f32 %v2070_v50, %v2026_v19  ;;  %v2079_v62 = vadd.f32 %v2071_v61, %v2027_v2  ;;  %v7764_v37 = vld [vmem:[#allocation70_spill] sm:$0xff]  ;;  %v7765_v50 = vld [vmem:[#allocation81_spill] sm:$0xff] }
 0x389   : > { %v2104_v14 = vmul.f32 %v7759_v8, %v7758_v24  ;;  %v2105_v46 = vmul.f32 %v7760_v6, %v7758_v24  ;;  %v2106_v40 = vmul.f32 %v7761_v29, %v7758_v24  ;;  %v2107_v27 = vmul.f32 %v7762_v42, %v7758_v24 }
 0x38a   : > { %v2112_v31 = vmul.f32 %v6385_v11, %v7758_v24  ;;  %v2113_v13 = vmul.f32 %v6395_v63, %v7758_v24  ;;  %v2114_v48 = vmul.f32 %v6398_v5, %v7758_v24  ;;  %v2115_v19 = vmul.f32 %v6401_v9, %v7758_v24  ;;  %v7769_v24 = vld [vmem:[#allocation141_spill] sm:$0xff] }
 0x38b   : > { %v2108_v2 = vsub.f32 %v2095_v3, %v2104_v14  ;;  %v2109_v44 = vsub.f32 %v2096_v57, %v2105_v46  ;;  %v2110_v58 = vsub.f32 %v2097_v17, %v2106_v40  ;;  %v2111_v20 = vsub.f32 %v2098_v60, %v2107_v27  ;;  %v7766_v3 = vld [vmem:[#allocation82_spill] sm:$0xff]  ;;  %v7767_v17 = vld [vmem:[#allocation88_spill] sm:$0xff]  ;;  %v7768_v60 = vld [vmem:[#allocation71_spill] sm:$0xff] }
 0x38c   : > { %v2116_v38 = vmul.f32 %v7759_v8, %v7757_v33  ;;  %v2117_v30 = vmul.f32 %v7760_v6, %v7757_v33  ;;  %v2118_v51 = vmul.f32 %v7761_v29, %v7757_v33  ;;  %v2119_v32 = vmul.f32 %v7762_v42, %v7757_v33  ;;  %v7770_v46 = vld [vmem:[#allocation79_spill] sm:$0xff]  ;;  %v7771_v27 = vld [vmem:[#allocation142_spill] sm:$0xff] }
 0x38d   : > { %v2124_v39 = vadd.f32 %v2108_v2, %v2072_v45  ;;  %v2125_v34 = vadd.f32 %v2109_v44, %v2073_v25  ;;  %v2126_v4 = vadd.f32 %v2110_v58, %v2074_v54  ;;  %v2127_v56 = vadd.f32 %v2111_v20, %v2075_v22 }
 0x38e   : > { %v2120_v28 = vadd.f32 %v2116_v38, %v2112_v31  ;;  %v2121_v26 = vadd.f32 %v2117_v30, %v2113_v13  ;;  %v2122_v21 = vadd.f32 %v2118_v51, %v2114_v48  ;;  %v2123_v18 = vadd.f32 %v2119_v32, %v2115_v19 }
 0x38f   : > { %v2147_v52 = vmul.f32 %v7764_v37, %v7763_v23  ;;  %v2148_v61 = vmul.f32 %v7765_v50, %v7763_v23  ;;  %v2149_v57 = vmul.f32 %v7766_v3, %v7763_v23  ;;  %v2150_v33 = vmul.f32 %v7767_v17, %v7763_v23 }
 0x390   : > { %v2128_v45 = vadd.f32 %v2120_v28, %v2076_v1  ;;  %v2129_v25 = vadd.f32 %v2121_v26, %v2077_v59  ;;  %v2130_v54 = vadd.f32 %v2122_v21, %v2078_v36  ;;  %v2131_v22 = vadd.f32 %v2123_v18, %v2079_v62 }
 0x391   : > { %v2156_v14 = vmul.f32 %v7769_v24, %v7768_v60  ;;  %v2157_v40 = vmul.f32 %v7770_v46, %v7768_v60  ;;  %v2158_v31 = vmul.f32 %v7771_v27, %v7768_v60  ;;  %v2159_v13 = vmul.f32 %v6481_v16, %v7768_v60 }
 0x392   : > { %v2164_v48 = vmul.f32 %v7764_v37, %v7768_v60  ;;  %v2165_v1 = vmul.f32 %v7765_v50, %v7768_v60  ;;  %v2166_v59 = vmul.f32 %v7766_v3, %v7768_v60  ;;  %v2167_v36 = vmul.f32 %v7767_v17, %v7768_v60 }
 0x393   : > { %v2160_v62 = vsub.f32 %v2147_v52, %v2156_v14  ;;  %v2161_v19 = vsub.f32 %v2148_v61, %v2157_v40  ;;  %v2162_v2 = vsub.f32 %v2149_v57, %v2158_v31  ;;  %v2163_v44 = vsub.f32 %v2150_v33, %v2159_v13 }
 0x394   : > { %v2168_v58 = vmul.f32 %v7769_v24, %v7763_v23  ;;  %v2169_v20 = vmul.f32 %v7770_v46, %v7763_v23  ;;  %v2170_v38 = vmul.f32 %v7771_v27, %v7763_v23  ;;  %v2171_v30 = vmul.f32 %v6481_v16, %v7763_v23 }
 0x395   : > { %v2176_v51 = vadd.f32 %v2160_v62, %v2124_v39  ;;  %v2177_v32 = vadd.f32 %v2161_v19, %v2125_v34  ;;  %v2178_v28 = vadd.f32 %v2162_v2, %v2126_v4  ;;  %v2179_v26 = vadd.f32 %v2163_v44, %v2127_v56 }
 0x396   : > { %v2172_v21 = vadd.f32 %v2168_v58, %v2164_v48  ;;  %v2173_v18 = vadd.f32 %v2169_v20, %v2165_v1  ;;  %v2174_v52 = vadd.f32 %v2170_v38, %v2166_v59  ;;  %v2175_v61 = vadd.f32 %v2171_v30, %v2167_v36  ;;  %v3104_v48 = vpop.permute.xlu1 %3103  ;;  %v3112_v1 = vpop.permute.xlu2 %3111  ;;  %v7776_v30 = vld [vmem:[#allocation20_spill] sm:$0xff] }
 0x397   : > { %v2184_v57 = vmul.f32 %v2176_v51, %v2176_v51  ;;  %v2185_v33 = vmul.f32 %v2177_v32, %v2177_v32  ;;  %v2186_v60 = vmul.f32 %v2178_v28, %v2178_v28  ;;  %v2187_v14 = vmul.f32 %v2179_v26, %v2179_v26 }
 0x398   : > { %v2180_v40 = vadd.f32 %v2172_v21, %v2128_v45  ;;  %v2181_v31 = vadd.f32 %v2173_v18, %v2129_v25  ;;  %v2182_v13 = vadd.f32 %v2174_v52, %v2130_v54  ;;  %v2183_v35 = vadd.f32 %v2175_v61, %v2131_v22 }
 0x399   : > { %v3106_v59 = vmul.f32 %v6221_v49, %v3104_v48  ;;  %v3107_v45 = vmul.f32 %v6224_v12, %v3104_v48  ;;  %v3108_v25 = vmul.f32 %v6243_v55, %v3104_v48  ;;  %v3109_v54 = vmul.f32 %v6246_v47, %v3104_v48 }
 0x39a   : > { %v2188_v0 = vmul.f32 %v2180_v40, %v2180_v40  ;;  %v2189_v41 = vmul.f32 %v2181_v31, %v2181_v31  ;;  %v2190_v10 = vmul.f32 %v2182_v13, %v2182_v13  ;;  %v2191_v23 = vmul.f32 %v2183_v35, %v2183_v35 }
 0x39b   : > { %v3126_v35 = vmul.f32 %v6249_v53, %v3104_v48  ;;  %v3114_v22 = vmul.f32 %v6249_v53, %v3112_v1  ;;  %v3115_v36 = vmul.f32 %v6252_v43, %v3112_v1  ;;  %v3116_v62 = vmul.f32 %v6255_v7, %v3112_v1  ;;  %v7839_v53 = vld [vmem:[#allocation107_spill] sm:$0xff] }
 0x39c   : > { %v6691_v39 = vadd.f32 %v2188_v0, %v2184_v57  ;;  %v6693_v34 = vadd.f32 %v2189_v41, %v2185_v33  ;;  %v6695_v4 = vadd.f32 %v2190_v10, %v2186_v60  ;;  %v6697_v56 = vadd.f32 %v2191_v23, %v2187_v14 }
 0x39d   : > { %v3127_v0 = vmul.f32 %v6252_v43, %v3104_v48  ;;  %v3128_v41 = vmul.f32 %v6255_v7, %v3104_v48  ;;  %v3129_v10 = vmul.f32 %v6258_v15, %v3104_v48  ;;  %v3117_v19 = vmul.f32 %v6258_v15, %v3112_v1  ;;  %v7824_v15 = vld [vmem:[#allocation99_spill] sm:$0xff]  ;;  %v7829_v7 = vld [vmem:[#allocation46_spill] sm:$0xff]  ;;  %v7834_v43 = vld [vmem:[#allocation109_spill] sm:$0xff] }
 0x39e   : > { %7772 = vst [vmem:[#allocation36_spill] sm:$0xff] %v6691_v39  ;;  %v3122_v2 = vmul.f32 %v6221_v49, %v3112_v1  ;;  %v3123_v44 = vmul.f32 %v6224_v12, %v3112_v1  ;;  %v3124_v58 = vmul.f32 %v6243_v55, %v3112_v1  ;;  %v3125_v20 = vmul.f32 %v6246_v47, %v3112_v1  ;;  %v3152_v38 = vpop.permute.xlu1 %3151  ;;  %v7843_v55 = vld [vmem:[#allocation113_spill] sm:$0xff] }
 0x39f   : > { %7773 = vst [vmem:[#allocation13_spill] sm:$0xff] %v6693_v34  ;;  %v3146_v51 = vmul.f32 %v6385_v11, %v7776_v30  ;;  %v3147_v32 = vmul.f32 %v6395_v63, %v7776_v30  ;;  %v3148_v28 = vmul.f32 %v6398_v5, %v7776_v30  ;;  %v3149_v26 = vmul.f32 %v6401_v9, %v7776_v30 }
 0x3a0   : > { %7774 = vst [vmem:[#allocation17_spill] sm:$0xff] %v6695_v4  ;;  %v3166_v21 = vmul.f32 %v7759_v8, %v7776_v30  ;;  %v3167_v18 = vmul.f32 %v7760_v6, %v7776_v30  ;;  %v3168_v52 = vmul.f32 %v7761_v29, %v7776_v30  ;;  %v3169_v61 = vmul.f32 %v7762_v42, %v7776_v30  ;;  %v6739_v4 = vpop.permute.xlu0 %2683 }
 0x3a1   : > { %7775 = vst [vmem:[#allocation33_spill] sm:$0xff] %v6697_v56  ;;  %v3154_v57 = vmul.f32 %v7759_v8, %v3152_v38  ;;  %v3155_v33 = vmul.f32 %v7760_v6, %v3152_v38  ;;  %v3156_v60 = vmul.f32 %v7761_v29, %v3152_v38  ;;  %v3157_v14 = vmul.f32 %v7762_v42, %v3152_v38  ;;  %v7777_v6 = vld [vmem:[#allocation83_spill] sm:$0xff]  ;;  %v7810_v8 = vld [vmem:[#allocation96_spill] sm:$0xff] }
 0x3a2   : > { %v3162_v40 = vmul.f32 %v6385_v11, %v3152_v38  ;;  %v3163_v31 = vmul.f32 %v6395_v63, %v3152_v38  ;;  %v3164_v13 = vmul.f32 %v6398_v5, %v3152_v38  ;;  %v3165_v23 = vmul.f32 %v6401_v9, %v3152_v38  ;;  %v7813_v9 = vld [vmem:[#allocation130_spill] sm:$0xff]  ;;  %v7816_v63 = vld [vmem:[#allocation97_spill] sm:$0xff]  ;;  %v7819_v11 = vld [vmem:[#allocation131_spill] sm:$0xff] }
 0x3a3   : > { %v3118_v48 = vsub.f32 %v3106_v59, %v3114_v22  ;;  %v3119_v1 = vsub.f32 %v3107_v45, %v3115_v36  ;;  %v3120_v56 = vsub.f32 %v3108_v25, %v3116_v62  ;;  %v3121_v30 = vsub.f32 %v3109_v54, %v3117_v19  ;;  %v7778_v59 = vld [vmem:[#allocation84_spill] sm:$0xff]  ;;  %v7779_v25 = vld [vmem:[#allocation85_spill] sm:$0xff]  ;;  %v7780_v22 = vld [vmem:[#allocation86_spill] sm:$0xff] }
 0x3a4   : > { %v3130_v34 = vadd.f32 %v3126_v35, %v3122_v2  ;;  %v3131_v39 = vadd.f32 %v3127_v0, %v3123_v44  ;;  %v3132_v16 = vadd.f32 %v3128_v41, %v3124_v58  ;;  %v3133_v27 = vadd.f32 %v3129_v10, %v3125_v20  ;;  %v7781_v35 = vld [vmem:[#allocation87_spill] sm:$0xff]  ;;  %v7782_v41 = vld [vmem:[#allocation125_spill] sm:$0xff]  ;;  %v7783_v62 = vld [vmem:[#allocation126_spill] sm:$0xff] }
 0x3a5   : > { %v3158_v46 = vsub.f32 %v3146_v51, %v3154_v57  ;;  %v3159_v24 = vsub.f32 %v3147_v32, %v3155_v33  ;;  %v3160_v17 = vsub.f32 %v3148_v28, %v3156_v60  ;;  %v3161_v3 = vsub.f32 %v3149_v26, %v3157_v14  ;;  %v7784_v2 = vld [vmem:[#allocation128_spill] sm:$0xff]  ;;  %v7794_v28 = vld [vmem:[#allocation103_spill] sm:$0xff]  ;;  %v4174_v57 = vld [vmem:[%s5274_s24 + $0x68] sm:$0xff] }
 0x3a6   : > { %v3170_v50 = vadd.f32 %v3166_v21, %v3162_v40  ;;  %v3171_v37 = vadd.f32 %v3167_v18, %v3163_v31  ;;  %v3172_v42 = vadd.f32 %v3168_v52, %v3164_v13  ;;  %v3173_v29 = vadd.f32 %v3169_v61, %v3165_v23  ;;  %v4172_v21 = vld [vmem:[%s5259_s20 + $0x78] sm:$0xff]  ;;  %v4173_v52 = vld [vmem:[%s5274_s24 + $0x60] sm:$0xff]  ;;  %v4175_v60 = vld [vmem:[%s5274_s24 + $0x70] sm:$0xff] }
 0x3a7   : > { %v3134_v38 = vadd.f32 %v3118_v48, %v7777_v6  ;;  %v3135_v45 = vadd.f32 %v3119_v1, %v7778_v59  ;;  %v3136_v54 = vadd.f32 %v3120_v56, %v7779_v25  ;;  %v3137_v36 = vadd.f32 %v3121_v30, %v7780_v22  ;;  %v4176_v40 = vld [vmem:[%s5274_s24 + $0x78] sm:$0xff]  ;;  %v4177_v13 = vld [vmem:[%s5274_s24 + $0x80] sm:$0xff]  ;;  %v4178_v1 = vld [vmem:[%s5274_s24 + $0x88] sm:$0xff] }
 0x3a8   : > { %v3138_v0 = vadd.f32 %v3130_v34, %v7781_v35  ;;  %v3139_v10 = vadd.f32 %v3131_v39, %v7782_v41  ;;  %v3140_v19 = vadd.f32 %v3132_v16, %v7783_v62  ;;  %v3141_v44 = vadd.f32 %v3133_v27, %v7784_v2  ;;  %v7795_v23 = vld [vmem:[#allocation116_spill] sm:$0xff] }
 0x3a9   : > { %v6749_v58 = vadd.f32 %v3158_v46, %v3134_v38  ;;  %v6751_v6 = vadd.f32 %v3159_v24, %v3135_v45  ;;  %v6753_v20 = vadd.f32 %v3160_v17, %v3136_v54  ;;  %v6755_v56 = vadd.f32 %v3161_v3, %v3137_v36  ;;  %v6765_v46 = vpop.permute.xlu0 %2755  ;;  %v7793_v24 = vld [vmem:[#allocation76_spill] sm:$0xff]  ;;  %v4179_v38 = vld [vmem:[%s5274_s24 + $0x90] sm:$0xff]  ;;  %v4180_v45 = vld [vmem:[%s5274_s24 + $0x98] sm:$0xff] }
 0x3aa   : > { %v6757_v51 = vadd.f32 %v3170_v50, %v3138_v0  ;;  %v6759_v34 = vadd.f32 %v3171_v37, %v3139_v10  ;;  %v6761_v39 = vadd.f32 %v3172_v42, %v3140_v19  ;;  %v6763_v16 = vadd.f32 %v3173_v29, %v3141_v44  ;;  %v4169_v3 = vld [vmem:[%s5259_s20 + $0x60] sm:$0xff]  ;;  %v4170_v37 = vld [vmem:[%s5259_s20 + $0x68] sm:$0xff]  ;;  %v4171_v29 = vld [vmem:[%s5259_s20 + $0x70] sm:$0xff] }
 0x3ab   : > { %7785 = vst [vmem:[#allocation37_spill] sm:$0xff] %v6749_v58  ;;  %v6770_v50 = vmul.f32 %v4169_v3, %v7794_v28  ;;  %v6774_v42 = vmul.f32 %v4170_v37, %v7794_v28  ;;  %v6778_v26 = vmul.f32 %v4171_v29, %v7794_v28  ;;  %v6782_v18 = vmul.f32 %v4172_v21, %v7794_v28  ;;  %v4181_v54 = vld [vmem:[%s5259_s20 + $0x80] sm:$0xff]  ;;  %v4182_v36 = vld [vmem:[%s5259_s20 + $0x88] sm:$0xff]  ;;  %v4183_v0 = vld [vmem:[%s5259_s20 + $0x90] sm:$0xff] }
 0x3ac   : > { %7786 = vst [vmem:[#allocation14_spill] sm:$0xff] %v6751_v6  ;;  %v6786_v61 = vmul.f32 %v4173_v52, %v7794_v28  ;;  %v2699_v33 = vmul.f32 %v4174_v57, %v7794_v28  ;;  %v2700_v14 = vmul.f32 %v4175_v60, %v7794_v28  ;;  %v2701_v31 = vmul.f32 %v4176_v40, %v7794_v28  ;;  %v4184_v10 = vld [vmem:[%s5259_s20 + $0x98] sm:$0xff]  ;;  %v7796_v19 = vld [vmem:[#allocation129_spill] sm:$0xff]  ;;  %v7807_v6 = vld [vmem:[#allocation134_spill] sm:$0xff] }
 0x3ad   : > { %7787 = vst [vmem:[#allocation18_spill] sm:$0xff] %v6753_v20  ;;  %v6796_v48 = vmul.f32 %v4177_v13, %v7795_v23  ;;  %v6800_v30 = vmul.f32 %v4178_v1, %v7795_v23  ;;  %v6804_v59 = vmul.f32 %v4179_v38, %v7795_v23  ;;  %v6808_v25 = vmul.f32 %v4180_v45, %v7795_v23  ;;  %v7805_v20 = vld [vmem:[#allocation91_spill] sm:$0xff] }
 0x3ae   : > { %7788 = vst [vmem:[#allocation34_spill] sm:$0xff] %v6755_v56  ;;  %v2734_v22 = vmul.f32 %v4181_v54, %v7795_v23  ;;  %v2735_v35 = vmul.f32 %v4182_v36, %v7795_v23  ;;  %v2736_v41 = vmul.f32 %v4183_v0, %v7795_v23  ;;  %v2737_v62 = vmul.f32 %v4184_v10, %v7795_v23 }
 0x3af   : > { %7789 = vst [vmem:[#allocation38_spill] sm:$0xff] %v6757_v51  ;;  %v2718_v2 = vmul.f32 %v4181_v54, %v7796_v19  ;;  %v2719_v44 = vmul.f32 %v4182_v36, %v7796_v19  ;;  %v2740_v28 = vmul.f32 %v4179_v38, %v7796_v19  ;;  %v2687_v23 = vmul.f32 %v4174_v57, %v6739_v4  ;;  %v7801_v57 = vld [vmem:[#allocation133_spill] sm:$0xff] }
 0x3b0   : > { %7790 = vst [vmem:[#allocation15_spill] sm:$0xff] %v6759_v34  ;;  %v2688_v54 = vmul.f32 %v4175_v60, %v6739_v4  ;;  %v2689_v36 = vmul.f32 %v4176_v40, %v6739_v4  ;;  %v2697_v38 = vmul.f32 %v4172_v21, %v6739_v4  ;;  %v7802_v51 = vld [vmem:[#allocation121_spill] sm:$0xff]  ;;  %v7804_v40 = vld [vmem:[#allocation95_spill] sm:$0xff] }
 0x3b1   : > { %7791 = vst [vmem:[#allocation19_spill] sm:$0xff] %v6761_v39  ;;  %v1737_v27 = vpop.xlane.xlu0 %1736  ;;  %v2686_v39 = vmul.f32 %v4173_v52, %v6739_v4  ;;  %v7798_v52 = vld [vmem:[#allocation94_spill] sm:$0xff]  ;;  %v7803_v60 = vsub.f32 %v7801_v57, %v7802_v51  ;;  %v7820_v51 = vld [vmem:[#allocation124_spill] sm:$0xff] }
 0x3b2   : > { %7792 = vst [vmem:[#allocation35_spill] sm:$0xff] %v6763_v16  ;;  %v1738_v17 = vsub.f32 %v7793_v24, %v1737_v27  ;;  %v2720_v27 = vmul.f32 %v4183_v0, %v7796_v19  ;;  %v2721_v24 = vmul.f32 %v4184_v10, %v7796_v19  ;;  %v2741_v16 = vmul.f32 %v4180_v45, %v7796_v19  ;;  %v7799_v10 = vld [vmem:[#allocation90_spill] sm:$0xff] }
 0x3b3   : > { %v2694_v0 = vmul.f32 %v4169_v3, %v6739_v4  ;;  %v7806_v3 = vsub.f32 %v7804_v40, %v7805_v20  ;;  %v7823_v20 = vld [vmem:[#allocation132_spill] sm:$0xff] }
 0x3b4   : > { %v1739_v32 = vmul.f32 1.442695, %v1738_v17  ;;  %v2738_v17 = vmul.f32 %v4177_v13, %v7796_v19  ;;  %v2695_v13 = vmul.f32 %v4170_v37, %v6739_v4  ;;  %v7808_v37 = vld [vmem:[#allocation122_spill] sm:$0xff] }
 0x3b5   : > { %v7809_v58 = vsub.f32 %v7807_v6, %v7808_v37  ;;  %v7825_v6 = vld [vmem:[#allocation44_spill] sm:$0xff]  ;;  %v7827_v37 = vld [vmem:[#allocation45_spill] sm:$0xff] }
 0x3b6   : > { %4148 = vpow2.f32 %v1739_v32  ;;  %v2739_v32 = vmul.f32 %v4178_v1, %v7796_v19  ;;  %v2696_v1 = vmul.f32 %v4171_v29, %v6739_v4  ;;  %v7800_v19 = vsub.f32 %v7798_v52, %v7799_v10  ;;  %v7811_v4 = vld [vmem:[#allocation92_spill] sm:$0xff]  ;;  %v7817_v52 = vld [vmem:[#allocation93_spill] sm:$0xff] }
 0x3b7   : > { %v2627_v29 = vadd.f32 %v7809_v58, %v7806_v3  ;;  %v7812_v21 = vsub.f32 %v7810_v8, %v7811_v4  ;;  %v7818_v10 = vsub.f32 %v7816_v63, %v7817_v52  ;;  %v2631_v58 = vadd.f32 %v7825_v6, %v7824_v15  ;;  %v7826_v3 = vld [vmem:[#allocation100_spill] sm:$0xff]  ;;  %v7828_v4 = vld [vmem:[#allocation101_spill] sm:$0xff]  ;;  %v7840_v15 = vld [vmem:[#allocation111_spill] sm:$0xff] }
 0x3b8   : > { %v2626_v56 = vadd.f32 %v7803_v60, %v7800_v19  ;;  %v7821_v19 = vsub.f32 %v7819_v11, %v7820_v51  ;;  %v7822_v60 = vld [vmem:[#allocation98_spill] sm:$0xff]  ;;  %v2632_v8 = vadd.f32 %v7827_v37, %v7826_v3  ;;  %v7833_v52 = vld [vmem:[#allocation105_spill] sm:$0xff]  ;;  %v7841_v6 = vsub.f32 %v7839_v53, %v7840_v15  ;;  %v7842_v3 = vld [vmem:[#allocation112_spill] sm:$0xff] }
 0x3b9   : > { %v2630_v40 = vadd.f32 %v7823_v20, %v7822_v60  ;;  %v7835_v11 = vsub.f32 %v7833_v52, %v7834_v43  ;;  %v7836_v51 = vld [vmem:[#allocation106_spill] sm:$0xff]  ;;  %v2691_v43 = vsub.f32 %v6774_v42, %v2687_v23  ;;  %v2703_v53 = vadd.f32 %v2699_v33, %v2695_v13 }
 0x3ba   : > { %v2629_v57 = vadd.f32 %v7821_v19, %v7818_v10  ;;  %v7837_v19 = vld [vmem:[#allocation110_spill] sm:$0xff]  ;;  %v2705_v52 = vadd.f32 %v2701_v31, %v2697_v38  ;;  %v2732_v42 = vsub.f32 %v2720_v27, %v6804_v59  ;;  %v2744_v33 = vadd.f32 %v2740_v28, %v2736_v41  ;;  %v7849_v41 = vld [vmem:[#allocation136_spill] sm:$0xff] }
 0x3bb   : > { %v2667_v10 = vadd.f32 %v7835_v11, %v2627_v29  ;;  %v7838_v60 = vsub.f32 %v7836_v51, %v7837_v19  ;;  %v2670_v37 = vadd.f32 %v7842_v3, %v2630_v40  ;;  %v2692_v29 = vsub.f32 %v6778_v26, %v2688_v54 }
 0x3bc   : > { %v6827_v34 = vpop.eup %4148  ;;  %v2669_v47 = vadd.f32 %v7841_v6, %v2629_v57  ;;  %v2704_v57 = vadd.f32 %v2700_v14, %v2696_v1  ;;  %v2733_v26 = vsub.f32 %v2721_v24, %v6808_v25  ;;  %v2745_v14 = vadd.f32 %v2741_v16, %v2737_v62  ;;  %v7847_v25 = vld [vmem:[#allocation59_spill] sm:$0xff]  ;;  %v7850_v62 = vld [vmem:[#allocation53_spill] sm:$0xff] }
 0x3bd   : > { %7797 = vst [vmem:[#allocation39_spill] sm:$0xff] %v6827_v34  ;;  %v1741_v45 = vsel %vm1734_vm1, %v6827_v34, 0.0  ;;  %v7814_v34 = vld [vmem:[#allocation123_spill] sm:$0xff]  ;;  %v2707_v11 = vadd.f32 %v2691_v43, %v2667_v10  ;;  %v2774_v1 = vmul.f32 %v6221_v49, %v7849_v41  ;;  %v2778_v3 = vmul.f32 %v7850_v62, %v6765_v46 }
 0x3be   : > { %1742 = vadd.xlane.f32.xlu0 %v1741_v45  ;;  %v7815_v45 = vsub.f32 %v7813_v9, %v7814_v34  ;;  %v2633_v9 = vadd.f32 %v7829_v7, %v7828_v4  ;;  %v7830_v34 = vld [vmem:[#allocation104_spill] sm:$0xff]  ;;  %v2671_v7 = vadd.f32 %v7843_v55, %v2631_v58  ;;  %v7844_v4 = vld [vmem:[#allocation114_spill] sm:$0xff]  ;;  %v7852_v24 = vld [vmem:[#allocation55_spill] sm:$0xff] }
 0x3bf   : > { %v2672_v12 = vadd.f32 %v7844_v4, %v2632_v8  ;;  %v2782_v43 = vadd.f32 %v2778_v3, %v2774_v1 }
 0x3c0   : > { %v2628_v5 = vadd.f32 %v7815_v45, %v7812_v21  ;;  %v7831_v21 = vld [vmem:[#allocation108_spill] sm:$0xff]  ;;  %v2711_v51 = vadd.f32 %v2703_v53, %v2671_v7 }
 0x3c1   : > { %v7832_v45 = vsub.f32 %v7830_v34, %v7831_v21  ;;  %v7845_v34 = vld [vmem:[#allocation115_spill] sm:$0xff]  ;;  %v2690_v21 = vsub.f32 %v6770_v50, %v2686_v39  ;;  %v2730_v39 = vsub.f32 %v2718_v2, %v6796_v48  ;;  %v2731_v50 = vsub.f32 %v2719_v44, %v6800_v30  ;;  %v7846_v30 = vld [vmem:[#allocation29_spill] sm:$0xff]  ;;  %v7851_v44 = vld [vmem:[#allocation54_spill] sm:$0xff] }
 0x3c2   : > { %v2668_v20 = vadd.f32 %v7838_v60, %v2628_v5  ;;  %v2693_v5 = vsub.f32 %v6782_v18, %v2689_v36  ;;  %v2742_v18 = vadd.f32 %v2738_v17, %v2734_v22  ;;  %v2758_v48 = vmul.f32 %v6221_v49, %v6765_v46 }
 0x3c3   : > { %v2666_v63 = vadd.f32 %v7832_v45, %v2626_v56  ;;  %v2673_v56 = vadd.f32 %v7845_v34, %v2633_v9  ;;  %v2702_v45 = vadd.f32 %v6786_v61, %v2694_v0  ;;  %v2712_v9 = vadd.f32 %v2704_v57, %v2672_v12 }
 0x3c4   : > { %v2708_v55 = vadd.f32 %v2692_v29, %v2668_v20  ;;  %v2709_v58 = vadd.f32 %v2693_v5, %v2669_v47  ;;  %v2743_v61 = vadd.f32 %v2739_v32, %v2735_v35  ;;  %v2747_v23 = vadd.f32 %v2731_v50, %v2707_v11  ;;  %v7848_v35 = vld [vmem:[#allocation60_spill] sm:$0xff]  ;;  %v2804_v11 = vpop.permute.xlu0 %2803 }
 0x3c5   : > { %v2706_v40 = vadd.f32 %v2690_v21, %v2666_v63  ;;  %v2710_v8 = vadd.f32 %v2702_v45, %v2670_v37  ;;  %v2713_v19 = vadd.f32 %v2705_v52, %v2673_v56  ;;  %v2752_v12 = vadd.f32 %v2744_v33, %v2712_v9  ;;  %v7853_v32 = vld [vmem:[#allocation56_spill] sm:$0xff]  ;;  %v7861_v33 = vld [vmem:[#allocation139_spill] sm:$0xff] }
 0x3c6   : > { %v2748_v54 = vadd.f32 %v2732_v42, %v2708_v55  ;;  %v2749_v47 = vadd.f32 %v2733_v26, %v2709_v58  ;;  %v2751_v0 = vadd.f32 %v2743_v61, %v2711_v51  ;;  %v2759_v59 = vmul.f32 %v7846_v30, %v6765_v46  ;;  %v7854_v55 = vld [vmem:[#allocation135_spill] sm:$0xff]  ;;  %v7855_v58 = vld [vmem:[#allocation77_spill] sm:$0xff]  ;;  %v7859_v42 = vld [vmem:[#allocation138_spill] sm:$0xff] }
 0x3c7   : > { %v2746_v31 = vadd.f32 %v2730_v39, %v2706_v40  ;;  %v2750_v36 = vadd.f32 %v2742_v18, %v2710_v8  ;;  %v2753_v13 = vadd.f32 %v2745_v14, %v2713_v19  ;;  %v2760_v22 = vmul.f32 %v7847_v25, %v6765_v46  ;;  %v7856_v51 = vld [vmem:[#allocation47_spill] sm:$0xff]  ;;  %v7858_v39 = vld [vmem:[#allocation137_spill] sm:$0xff]  ;;  %v7860_v18 = vld [vmem:[#allocation80_spill] sm:$0xff] }
 0x3c8   : > { %v2761_v16 = vmul.f32 %v7848_v35, %v6765_v46  ;;  %v2766_v2 = vmul.f32 %v7850_v62, %v7849_v41  ;;  %v2767_v27 = vmul.f32 %v7851_v44, %v7849_v41  ;;  %v2768_v17 = vmul.f32 %v7852_v24, %v7849_v41 }
 0x3c9   : > { %v2769_v28 = vmul.f32 %v7853_v32, %v7849_v41  ;;  %v2775_v38 = vmul.f32 %v7846_v30, %v7849_v41  ;;  %v2776_v63 = vmul.f32 %v7847_v25, %v7849_v41  ;;  %v2777_v10 = vmul.f32 %v7848_v35, %v7849_v41 }
 0x3ca   : > { %v2770_v60 = vsub.f32 %v2758_v48, %v2766_v2  ;;  %v2771_v20 = vsub.f32 %v2759_v59, %v2767_v27  ;;  %v2772_v15 = vsub.f32 %v2760_v22, %v2768_v17  ;;  %v2779_v37 = vmul.f32 %v7851_v44, %v6765_v46 }
 0x3cb   : > { %v2773_v6 = vsub.f32 %v2761_v16, %v2769_v28  ;;  %v2780_v49 = vmul.f32 %v7852_v24, %v6765_v46  ;;  %v2781_v7 = vmul.f32 %v7853_v32, %v6765_v46  ;;  %v2790_v53 = vadd.f32 %v2782_v43, %v2750_v36  ;;  %v7857_v46 = vld [vmem:[#allocation102_spill] sm:$0xff]  ;;  %v7863_v32 = vld [vmem:[#allocation69_spill] sm:$0xff] }
 0x3cc   : > { %v2786_v4 = vadd.f32 %v2770_v60, %v2746_v31  ;;  %v2787_v34 = vadd.f32 %v2771_v20, %v2747_v23  ;;  %v2788_v56 = vadd.f32 %v2772_v15, %v2748_v54  ;;  %v2783_v29 = vadd.f32 %v2779_v37, %v2775_v38  ;;  %v7862_v31 = vld [vmem:[#allocation140_spill] sm:$0xff]  ;;  %v7864_v28 = vld [vmem:[#allocation70_spill] sm:$0xff]  ;;  %v7865_v38 = vld [vmem:[#allocation81_spill] sm:$0xff] }
 0x3cd   : > { %v2789_v21 = vadd.f32 %v2773_v6, %v2749_v47  ;;  %v2784_v5 = vadd.f32 %v2780_v49, %v2776_v63  ;;  %v2785_v45 = vadd.f32 %v2781_v7, %v2777_v10  ;;  %v2798_v8 = vmul.f32 %v7855_v58, %v7854_v55  ;;  %v7866_v10 = vld [vmem:[#allocation82_spill] sm:$0xff]  ;;  %v7867_v20 = vld [vmem:[#allocation88_spill] sm:$0xff] }
 0x3ce   : > { %v2791_v57 = vadd.f32 %v2783_v29, %v2751_v0  ;;  %v2799_v9 = vmul.f32 %v7856_v51, %v7854_v55  ;;  %v2800_v19 = vmul.f32 %v7857_v46, %v7854_v55  ;;  %v2801_v50 = vmul.f32 %v7858_v39, %v7854_v55  ;;  %v7868_v7 = vld [vmem:[#allocation78_spill] sm:$0xff] }
 0x3cf   : > { %v2792_v52 = vadd.f32 %v2784_v5, %v2752_v12  ;;  %v2793_v40 = vadd.f32 %v2785_v45, %v2753_v13  ;;  %v2806_v26 = vmul.f32 %v7859_v42, %v2804_v11  ;;  %v2807_v61 = vmul.f32 %v7860_v18, %v2804_v11  ;;  %v7871_v43 = vld [vmem:[#allocation142_spill] sm:$0xff]  ;;  %v7872_v5 = vld [vmem:[#allocation143_spill] sm:$0xff] }
 0x3d0   : > { %v2808_v14 = vmul.f32 %v7861_v33, %v2804_v11  ;;  %v2809_v23 = vmul.f32 %v7862_v31, %v2804_v11  ;;  %v2814_v54 = vmul.f32 %v7855_v58, %v2804_v11  ;;  %v2815_v47 = vmul.f32 %v7856_v51, %v2804_v11 }
 0x3d1   : > { %v2816_v36 = vmul.f32 %v7857_v46, %v2804_v11  ;;  %v2817_v0 = vmul.f32 %v7858_v39, %v2804_v11  ;;  %v2810_v12 = vsub.f32 %v2798_v8, %v2806_v26  ;;  %v2811_v13 = vsub.f32 %v2799_v9, %v2807_v61 }
 0x3d2   : > { %v2812_v48 = vsub.f32 %v2800_v19, %v2808_v14  ;;  %v2813_v30 = vsub.f32 %v2801_v50, %v2809_v23  ;;  %v2818_v59 = vmul.f32 %v7859_v42, %v7854_v55  ;;  %v2819_v25 = vmul.f32 %v7860_v18, %v7854_v55 }
 0x3d3   : > { %v2820_v22 = vmul.f32 %v7861_v33, %v7854_v55  ;;  %v2821_v35 = vmul.f32 %v7862_v31, %v7854_v55  ;;  %v2826_v16 = vadd.f32 %v2810_v12, %v2786_v4  ;;  %v2827_v41 = vadd.f32 %v2811_v13, %v2787_v34  ;;  %v7869_v4 = vld [vmem:[#allocation141_spill] sm:$0xff] }
 0x3d4   : > { %v2828_v62 = vadd.f32 %v2812_v48, %v2788_v56  ;;  %v2829_v2 = vadd.f32 %v2813_v30, %v2789_v21  ;;  %v2822_v44 = vadd.f32 %v2818_v59, %v2814_v54  ;;  %v2823_v27 = vadd.f32 %v2819_v25, %v2815_v47  ;;  %v7870_v56 = vld [vmem:[#allocation79_spill] sm:$0xff] }
 0x3d5   : > { %v2824_v24 = vadd.f32 %v2820_v22, %v2816_v36  ;;  %v2825_v17 = vadd.f32 %v2821_v35, %v2817_v0  ;;  %v2838_v1 = vmul.f32 %v7864_v28, %v7863_v32  ;;  %v2839_v63 = vmul.f32 %v7865_v38, %v7863_v32 }
 0x3d6   : > { %v2840_v60 = vmul.f32 %v7866_v10, %v7863_v32  ;;  %v2841_v15 = vmul.f32 %v7867_v20, %v7863_v32  ;;  %v2830_v6 = vadd.f32 %v2822_v44, %v2790_v53  ;;  %v2831_v3 = vadd.f32 %v2823_v27, %v2791_v57 }
 0x3d7   : > { %v2832_v37 = vadd.f32 %v2824_v24, %v2792_v52  ;;  %v2833_v49 = vadd.f32 %v2825_v17, %v2793_v40  ;;  %v2846_v34 = vmul.f32 %v7869_v4, %v7868_v7  ;;  %v2847_v21 = vmul.f32 %v7870_v56, %v7868_v7 }
 0x3d8   : > { %v2848_v29 = vmul.f32 %v7871_v43, %v7868_v7  ;;  %v2849_v45 = vmul.f32 %v7872_v5, %v7868_v7  ;;  %v2854_v11 = vmul.f32 %v7864_v28, %v7868_v7  ;;  %v2855_v53 = vmul.f32 %v7865_v38, %v7868_v7 }
 0x3d9   : > { %v2856_v57 = vmul.f32 %v7866_v10, %v7868_v7  ;;  %v2857_v52 = vmul.f32 %v7867_v20, %v7868_v7  ;;  %v2850_v40 = vsub.f32 %v2838_v1, %v2846_v34  ;;  %v2851_v55 = vsub.f32 %v2839_v63, %v2847_v21  ;;  %v7873_v10 = vld [vmem:[#allocation39_spill] sm:$0xff]  ;;  %v1760_v20 = vld [vmem:[%s7157_s15] sm:$0xff]  ;;  %v7878_v21 = vld [vmem:[#allocation89_spill] sm:$0xff] }
 0x3da   : > { %v2852_v58 = vsub.f32 %v2840_v60, %v2848_v29  ;;  %v2853_v8 = vsub.f32 %v2841_v15, %v2849_v45  ;;  %v2858_v51 = vmul.f32 %v7869_v4, %v7863_v32  ;;  %v2859_v9 = vmul.f32 %v7870_v56, %v7863_v32  ;;  %v4185_v7 = vld [vmem:[%s7156_s14 + $0x38] sm:$0xff]  ;;  %v7010_v4 = vpop.permute.xlu2 %3183  ;;  %v7879_v29 = vld [vmem:[#allocation12_spill] sm:$0xff] }
 0x3db   : > { %v2860_v46 = vmul.f32 %v7871_v43, %v7863_v32  ;;  %v2861_v19 = vmul.f32 %v7872_v5, %v7863_v32  ;;  %v2866_v39 = vadd.f32 %v2850_v40, %v2826_v16  ;;  %v2867_v50 = vadd.f32 %v2851_v55, %v2827_v41  ;;  %v7880_v45 = vld [vmem:[#allocation16_spill] sm:$0xff] }
 0x3dc   : > { %v2868_v42 = vadd.f32 %v2852_v58, %v2828_v62  ;;  %v2869_v26 = vadd.f32 %v2853_v8, %v2829_v2  ;;  %v2862_v18 = vadd.f32 %v2858_v51, %v2854_v11  ;;  %v2863_v61 = vadd.f32 %v2859_v9, %v2855_v53  ;;  %v7881_v53 = vld [vmem:[#allocation32_spill] sm:$0xff]  ;;  %v7883_v58 = vld [vmem:[#allocation13_spill] sm:$0xff] }
 0x3dd   : > { %v2864_v33 = vadd.f32 %v2860_v46, %v2856_v57  ;;  %v2865_v14 = vadd.f32 %v2861_v19, %v2857_v52  ;;  %v2874_v31 = vmul.f32 %v2866_v39, %v2866_v39  ;;  %v2875_v23 = vmul.f32 %v2867_v50, %v2867_v50  ;;  %v7882_v40 = vld [vmem:[#allocation36_spill] sm:$0xff]  ;;  %v7884_v51 = vld [vmem:[#allocation17_spill] sm:$0xff] }
 0x3de   : > { %v2876_v54 = vmul.f32 %v2868_v42, %v2868_v42  ;;  %v2877_v47 = vmul.f32 %v2869_v26, %v2869_v26  ;;  %v2870_v36 = vadd.f32 %v2862_v18, %v2830_v6  ;;  %v2871_v0 = vadd.f32 %v2863_v61, %v2831_v3  ;;  %v7885_v46 = vld [vmem:[#allocation33_spill] sm:$0xff] }
 0x3df   : > { %v2872_v12 = vadd.f32 %v2864_v33, %v2832_v37  ;;  %v2873_v13 = vadd.f32 %v2865_v14, %v2833_v49  ;;  %v7874_v6 = vmov 1   ;;  %v7875_v3 = vmov 0  }
 0x3e0   : > { %v2878_v48 = vmul.f32 %v2870_v36, %v2870_v36  ;;  %v2879_v30 = vmul.f32 %v2871_v0, %v2871_v0  ;;  %v7876_v37 = vmov 2   ;;  %v7877_v49 = vmov 3  }
 0x3e1   : > { %v2880_v59 = vmul.f32 %v2872_v12, %v2872_v12  ;;  %v2881_v25 = vmul.f32 %v2873_v13, %v2873_v13 }
 0x3e2   : > { %v6983_v22 = vadd.f32 %v2878_v48, %v2874_v31  ;;  %v6985_v35 = vadd.f32 %v2879_v30, %v2875_v23 }
 0x3e3   : > { %v6987_v16 = vadd.f32 %v2880_v59, %v2876_v54  ;;  %v6989_v41 = vadd.f32 %v2881_v25, %v2877_v47 }
 0x431   : > { %v1743_v62 = vpop.xlane.xlu0 %1742 }
 0x432   : > { %4150 = vrcp.f32 %v1743_v62  ;;  %v1755_v24 = vand.u32 2147483648, %v1743_v62  ;;  %v1753_v32 = vand.u32 2147483647, %v1743_v62  ;;  %vm1749_vm3 = vweird.f32 %v1743_v62 }
 0x434   : > { %v1756_v1 = vor.u32 1.1754944e-38, %v1755_v24  ;;  %vm1754_vm5 = vcmp.eq.f32.partialorder %v1753_v32, 8.507059e+37 }
 0x438   : > { %v4151_v2 = vpop.eup %4150 }
 0x439   : > { %v1745_v44 = vmul.f32 %v4151_v2, %v1743_v62  ;;  %vm1750_vm2 = vweird.f32 %v4151_v2 }
 0x43a   : > { %vm1751_vm4 = vmor %vm1749_vm3, %vm1750_vm2 }
 0x43b   : > { %v1746_v27 = vsub.f32 1.0, %v1745_v44 }
 0x43d   : > { %v1747_v17 = vmul.f32 %v4151_v2, %v1746_v27 }
 0x43f   : > { %v1748_v28 = vadd.f32 %v4151_v2, %v1747_v17 }
 0x441   : > { %v1752_v38 = vsel %vm1751_vm4, %v4151_v2, %v1748_v28 }
 0x442   : > { %v1757_v63 = vsel %vm1754_vm5, %v1756_v1, %v1752_v38 }
 0x443   : > { %v1758_v60 = vmul.f32 %v7873_v10, %v1757_v63 }
 0x445   : > { %1759 = vst.msk [vmem:[%s740_s23] sm:$0xff] %vm1734_vm1, %v1758_v60  ;;  %2887 = vperm.xlu0 %4138, %v1758_v60   ;;  %2539 = vperm.xlu2 %4140, %v1758_v60   ;;  %v1761_v15 = vmul.f32 %v1760_v20, %v1758_v60 }
 0x446   : > { %2198 = vperm.xlu1 %4139, %v1758_v60  }
 0x44d   : > { %4142 = vset.pattern.permute.xlu0 %v7874_v6  ;;  %4141 = vset.pattern.permute.xlu2 %v7875_v3  ;;  %v4188_v6 = vld [vmem:[%s5259_s20 + $0xf0] sm:$0xff] }
 0x44e   : > { %4143 = vset.pattern.permute.xlu1 %v7876_v37  ;;  %2547 = vperm.xlu0 %4142, %v1761_v15   ;;  %v3188_v3 = vmul.f32 %v4188_v6, %v7010_v4  ;;  %v4189_v37 = vld [vmem:[%s5259_s20 + $0xf8] sm:$0xff] }
 0x44f   : > { %2895 = vperm.xlu1 %4143, %v1761_v15   ;;  %2207 = vperm.xlu2 %4141, %v1761_v15  }
 0x456   : > { %4144 = vset.pattern.permute.xlu0 %v7877_v49 }
 0x457   : > { %4145 = vset.pattern.permute.xlu1 %v7877_v49  ;;  %4146 = vset.pattern.permute.xlu2 %v7877_v49  ;;  %v3189_v49 = vmul.f32 %v4189_v37, %v7010_v4 }
 0x458   : > { %3235 = vperm.xlu1 %4145, %v1758_v60   ;;  %3191 = vperm.xlu0 %4144, %v4185_v7  }
 0x459   : > { %3243 = vperm.xlu2 %4146, %v1761_v15  }
 0x49f   : > { %v2540_v34 = vpop.permute.xlu2 %2539 }
 0x4a0   : > { %v2542_v43 = vmul.f32 %v2540_v34, %v7878_v21  ;;  %v2543_v5 = vmul.f32 %v2540_v34, %v7879_v29  ;;  %v2544_v11 = vmul.f32 %v2540_v34, %v7880_v45  ;;  %v2545_v57 = vmul.f32 %v2540_v34, %v7881_v53  ;;  %v4190_v34 = vld [vmem:[%s5274_s24 + $0xe0] sm:$0xff] }
 0x4a9   : > { %v2208_v31 = vpop.permute.xlu2 %2207 }
 0x4aa   : > { %v2210_v0 = vmul.f32 %v2208_v31, %v7882_v40  ;;  %v2211_v12 = vmul.f32 %v2208_v31, %v7883_v58  ;;  %v2212_v13 = vmul.f32 %v2208_v31, %v7884_v51  ;;  %v2213_v48 = vmul.f32 %v2208_v31, %v7885_v46  ;;  %v7888_v31 = vld [vmem:[#allocation18_spill] sm:$0xff] }
 0x4b7   : > { %v2888_v56 = vpop.permute.xlu0 %2887 }
 0x4b8   : > { %v2199_v52 = vpop.permute.xlu1 %2198  ;;  %v2890_v39 = vmul.f32 %v2888_v56, %v6983_v22  ;;  %v2891_v50 = vmul.f32 %v2888_v56, %v6985_v35  ;;  %v2892_v42 = vmul.f32 %v2888_v56, %v6987_v16  ;;  %v2893_v26 = vmul.f32 %v2888_v56, %v6989_v41 }
 0x4b9   : > { %v2201_v55 = vmul.f32 %v2199_v52, %v7882_v40  ;;  %v2202_v8 = vmul.f32 %v2199_v52, %v7883_v58  ;;  %v2203_v9 = vmul.f32 %v2199_v52, %v7884_v51  ;;  %v2204_v19 = vmul.f32 %v2199_v52, %v7885_v46 }
 0x4ba   : > { %v3206_v56 = vmul.f32 %v4190_v34, %v7010_v4 }
 0x4bb   : > { %v2554_v18 = vadd.f32 %v2542_v43, %v2201_v55  ;;  %v2555_v61 = vadd.f32 %v2543_v5, %v2202_v8  ;;  %v2556_v33 = vadd.f32 %v2544_v11, %v2203_v9  ;;  %v2557_v14 = vadd.f32 %v2545_v57, %v2204_v19 }
 0x4bd   : > { %v7024_v23 = vadd.f32 %v2890_v39, %v2554_v18  ;;  %v7026_v54 = vadd.f32 %v2891_v50, %v2555_v61  ;;  %v7028_v47 = vadd.f32 %v2892_v42, %v2556_v33  ;;  %v7030_v36 = vadd.f32 %v2893_v26, %v2557_v14  ;;  %v7886_v61 = vld [vmem:[#allocation37_spill] sm:$0xff]  ;;  %v7887_v14 = vld [vmem:[#allocation14_spill] sm:$0xff] }
 0x4c0   : > { %v2548_v30 = vpop.permute.xlu0 %2547 }
 0x4c1   : > { %v2896_v59 = vpop.permute.xlu1 %2895  ;;  %v2550_v25 = vmul.f32 %v2548_v30, %v7878_v21  ;;  %v2551_v62 = vmul.f32 %v2548_v30, %v7879_v29  ;;  %v2552_v2 = vmul.f32 %v2548_v30, %v7880_v45  ;;  %v2553_v44 = vmul.f32 %v2548_v30, %v7881_v53  ;;  %v4191_v21 = vld [vmem:[%s5274_s24 + $0xe8] sm:$0xff]  ;;  %v4192_v29 = vld [vmem:[%s5274_s24 + $0xf0] sm:$0xff]  ;;  %v4193_v45 = vld [vmem:[%s5274_s24 + $0xf8] sm:$0xff] }
 0x4c2   : > { %v2898_v27 = vmul.f32 %v2896_v59, %v6983_v22  ;;  %v2899_v24 = vmul.f32 %v2896_v59, %v6985_v35  ;;  %v2900_v17 = vmul.f32 %v2896_v59, %v6987_v16  ;;  %v2901_v32 = vmul.f32 %v2896_v59, %v6989_v41  ;;  %v4186_v35 = vld [vmem:[%s5259_s20 + $0xe0] sm:$0xff]  ;;  %v4187_v41 = vld [vmem:[%s5259_s20 + $0xe8] sm:$0xff]  ;;  %v7891_v59 = vld [vmem:[#allocation15_spill] sm:$0xff]  ;;  %s3455_s20 = sshll.u32 %s4328_s27, 2 }
 0x4c3   : > { %v2558_v28 = vadd.f32 %v2550_v25, %v2210_v0  ;;  %v2559_v1 = vadd.f32 %v2551_v62, %v2211_v12  ;;  %v2560_v38 = vadd.f32 %v2552_v2, %v2212_v13  ;;  %v2561_v63 = vadd.f32 %v2553_v44, %v2213_v48  ;;  %v7889_v12 = vld [vmem:[#allocation34_spill] sm:$0xff]  ;;  %v7892_v62 = vld [vmem:[#allocation19_spill] sm:$0xff]  ;;  %p742_p9 = scmp.lt.s32.totalorder %s3455_s20, 7 }
 0x4c4   : > { %v3186_v16 = vmul.f32 %v4186_v35, %v7010_v4  ;;  %v3187_v15 = vmul.f32 %v4187_v41, %v7010_v4  ;;  %v3207_v43 = vmul.f32 %v4191_v21, %v7010_v4  ;;  %v3208_v5 = vmul.f32 %v4192_v29, %v7010_v4  ;;  %v7890_v48 = vld [vmem:[#allocation38_spill] sm:$0xff]  ;;  %v7893_v44 = vld [vmem:[#allocation35_spill] sm:$0xff] }
 0x4c5   : > { %v7044_v10 = vadd.f32 %v2898_v27, %v2558_v28  ;;  %v7046_v60 = vadd.f32 %v2899_v24, %v2559_v1  ;;  %v7048_v22 = vadd.f32 %v2900_v17, %v2560_v38  ;;  %v7050_v20 = vadd.f32 %v2901_v32, %v2561_v63  ;;  %s7902_s20 = smov (!%p742_p9, %s3455_s20), 7 }
 0x4c6   : > { %v3209_v11 = vmul.f32 %v4193_v45, %v7010_v4  ;;  %s3456_s27 = sshll.u32 %s7902_s20, 3 }
 0x4c7   : > { %s745_s22 = scalar_lea.vmem %s7159_s17, %s3456_s27 }
 0x4ca   : > { %v3192_v7 = vpop.permute.xlu0 %3191 }
 0x4cb   : > { %v3194_v53 = vmul.f32 %v4190_v34, %v3192_v7  ;;  %v3195_v57 = vmul.f32 %v4191_v21, %v3192_v7  ;;  %v3196_v52 = vmul.f32 %v4192_v29, %v3192_v7  ;;  %v3197_v40 = vmul.f32 %v4193_v45, %v3192_v7 }
 0x4cc   : > { %v3202_v55 = vmul.f32 %v4186_v35, %v3192_v7  ;;  %v3203_v58 = vmul.f32 %v4187_v41, %v3192_v7  ;;  %v3204_v8 = vmul.f32 %v4188_v6, %v3192_v7  ;;  %v3205_v51 = vmul.f32 %v4189_v37, %v3192_v7  ;;  %v3244_v37 = vpop.permute.xlu2 %3243 }
 0x4cd   : > { %v3198_v9 = vsub.f32 %v3186_v16, %v3194_v53  ;;  %v3199_v46 = vsub.f32 %v3187_v15, %v3195_v57  ;;  %v3200_v19 = vsub.f32 %v3188_v3, %v3196_v52  ;;  %v3201_v39 = vsub.f32 %v3189_v49, %v3197_v40  ;;  %v3236_v3 = vpop.permute.xlu1 %3235 }
 0x4ce   : > { %v3210_v50 = vadd.f32 %v3206_v56, %v3202_v55  ;;  %v3211_v42 = vadd.f32 %v3207_v43, %v3203_v58  ;;  %v3212_v26 = vadd.f32 %v3208_v5, %v3204_v8  ;;  %v3213_v18 = vadd.f32 %v3209_v11, %v3205_v51 }
 0x4cf   : > { %v3214_v33 = vadd.f32 %v3198_v9, %v7886_v61  ;;  %v3215_v4 = vadd.f32 %v3199_v46, %v7887_v14  ;;  %v3216_v0 = vadd.f32 %v3200_v19, %v7888_v31  ;;  %v3217_v13 = vadd.f32 %v3201_v39, %v7889_v12 }
 0x4d0   : > { %v3218_v30 = vadd.f32 %v3210_v50, %v7890_v48  ;;  %v3219_v25 = vadd.f32 %v3211_v42, %v7891_v59  ;;  %v3220_v2 = vadd.f32 %v3212_v26, %v7892_v62  ;;  %v3221_v27 = vadd.f32 %v3213_v18, %v7893_v44 }
 0x4d1   : > { %v3222_v24 = vmul.f32 %v3214_v33, %v3214_v33  ;;  %v3223_v17 = vmul.f32 %v3215_v4, %v3215_v4  ;;  %v3224_v32 = vmul.f32 %v3216_v0, %v3216_v0  ;;  %v3225_v28 = vmul.f32 %v3217_v13, %v3217_v13 }
 0x4d2   : > { %v3226_v1 = vmul.f32 %v3218_v30, %v3218_v30  ;;  %v3227_v38 = vmul.f32 %v3219_v25, %v3219_v25  ;;  %v3228_v63 = vmul.f32 %v3220_v2, %v3220_v2  ;;  %v3229_v35 = vmul.f32 %v3221_v27, %v3221_v27 }
 0x4d4   : > { %v3230_v16 = vadd.f32 %v3226_v1, %v3222_v24  ;;  %v3231_v41 = vadd.f32 %v3227_v38, %v3223_v17  ;;  %v3232_v15 = vadd.f32 %v3228_v63, %v3224_v32  ;;  %v3233_v6 = vadd.f32 %v3229_v35, %v3225_v28 }
 0x4d6   : > { %v3238_v49 = vmul.f32 %v3236_v3, %v3230_v16  ;;  %v3239_v7 = vmul.f32 %v3236_v3, %v3231_v41  ;;  %v3240_v34 = vmul.f32 %v3236_v3, %v3232_v15  ;;  %v3241_v56 = vmul.f32 %v3236_v3, %v3233_v6 }
 0x4d7   : > { %v3246_v21 = vmul.f32 %v3244_v37, %v3230_v16  ;;  %v3247_v43 = vmul.f32 %v3244_v37, %v3231_v41  ;;  %v3248_v29 = vmul.f32 %v3244_v37, %v3232_v15  ;;  %v3249_v5 = vmul.f32 %v3244_v37, %v3233_v6 }
 0x4d8   : > { %v3250_v45 = vadd.f32 %v3238_v49, %v7024_v23  ;;  %v3251_v11 = vadd.f32 %v3239_v7, %v7026_v54  ;;  %v3252_v53 = vadd.f32 %v3240_v34, %v7028_v47  ;;  %v3253_v57 = vadd.f32 %v3241_v56, %v7030_v36 }
 0x4d9   : > { %v7081_v52 = vadd.f32 %v3246_v21, %v7044_v10  ;;  %v7084_v40 = vadd.f32 %v3247_v43, %v7046_v60  ;;  %v7087_v55 = vadd.f32 %v3248_v29, %v7048_v22  ;;  %v7090_v58 = vadd.f32 %v3249_v5, %v7050_v20 }
 0x4db   : > { %v3258_v23 = vsub.f32 %v3250_v45, %v7081_v52  ;;  %v3259_v54 = vsub.f32 %v3251_v11, %v7084_v40  ;;  %v3260_v47 = vsub.f32 %v3252_v53, %v7087_v55  ;;  %v3261_v36 = vsub.f32 %v3253_v57, %v7090_v58 }
 0x4dd   : > { %v3262_v8 = vadd.f32 1.0, %v3258_v23  ;;  %v3263_v10 = vadd.f32 1.0, %v3259_v54  ;;  %v3264_v51 = vadd.f32 1.0, %v3260_v47  ;;  %v7096_v9 = vadd.f32 1.0, %v3261_v36 }
 0x4df   : > { %4152 = vrcp.f32 %v3262_v8  ;;  %v3275_v60 = vand.u32 2147483647, %v3262_v8  ;;  %v3277_v22 = vand.u32 2147483648, %v3262_v8  ;;  %v3290_v46 = vand.u32 2147483647, %v3263_v10 }
 0x4e0   : > { %4154 = vrcp.f32 %v3263_v10  ;;  %v3292_v19 = vand.u32 2147483648, %v3263_v10  ;;  %vm3271_vm6 = vweird.f32 %v3262_v8  ;;  %vm3286_vm7 = vweird.f32 %v3263_v10 }
 0x4e1   : > { %4156 = vrcp.f32 %v3264_v51  ;;  %vm7102_vm8 = vcmp.eq.f32.partialorder %v3275_v60, 8.507059e+37  ;;  %v3278_v33 = vor.u32 1.1754944e-38, %v3277_v22  ;;  %vm7106_vm9 = vcmp.eq.f32.partialorder %v3290_v46, 8.507059e+37 }
 0x4e2   : > { %4158 = vrcp.f32 %v7096_v9  ;;  %v3293_v12 = vor.u32 1.1754944e-38, %v3292_v19  ;;  %vm3301_vm10 = vweird.f32 %v3264_v51  ;;  %v3305_v25 = vand.u32 2147483647, %v3264_v51 }
 0x4e3   : > { %v3307_v62 = vand.u32 2147483648, %v3264_v51  ;;  %vm3316_vm15 = vweird.f32 %v7096_v9  ;;  %v3320_v17 = vand.u32 2147483647, %v7096_v9  ;;  %v3322_v32 = vand.u32 2147483648, %v7096_v9 }
 0x4e4   : > { %vm3306_vm3 = vcmp.eq.f32.partialorder %v3305_v25, 8.507059e+37 }
 0x4e5   : > { %v4153_v20 = vpop.eup %4152  ;;  %v3308_v16 = vor.u32 1.1754944e-38, %v3307_v62  ;;  %v3323_v7 = vor.u32 1.1754944e-38, %v3322_v32  ;;  %vm3321_vm5 = vcmp.eq.f32.partialorder %v3320_v17, 8.507059e+37 }
 0x4e6   : > { %v4155_v39 = vpop.eup %4154  ;;  %v3267_v50 = vmul.f32 %v4153_v20, %v3262_v8  ;;  %vm3272_vm11 = vweird.f32 %v4153_v20 }
 0x4e7   : > { %v4157_v42 = vpop.eup %4156  ;;  %v3282_v26 = vmul.f32 %v4155_v39, %v3263_v10  ;;  %vm3287_vm12 = vweird.f32 %v4155_v39  ;;  %vm3273_vm14 = vmor %vm3271_vm6, %vm3272_vm11 }
 0x4e8   : > { %v3268_v18 = vsub.f32 1.0, %v3267_v50  ;;  %v3297_v14 = vmul.f32 %v4157_v42, %v3264_v51  ;;  %v4159_v4 = vpop.eup %4158  ;;  %vm3302_vm13 = vweird.f32 %v4157_v42  ;;  %vm3288_vm0 = vmor %vm3286_vm7, %vm3287_vm12 }
 0x4e9   : > { %v3283_v31 = vsub.f32 1.0, %v3282_v26  ;;  %v3312_v30 = vmul.f32 %v4159_v4, %v7096_v9  ;;  %vm3317_vm1 = vweird.f32 %v4159_v4  ;;  %vm3303_vm2 = vmor %vm3301_vm10, %vm3302_vm13 }
 0x4ea   : > { %v3269_v13 = vmul.f32 %v4153_v20, %v3268_v18  ;;  %v3298_v48 = vsub.f32 1.0, %v3297_v14  ;;  %vm3318_vm4 = vmor %vm3316_vm15, %vm3317_vm1 }
 0x4eb   : > { %v3284_v59 = vmul.f32 %v4155_v39, %v3283_v31  ;;  %v3313_v27 = vsub.f32 1.0, %v3312_v30 }
 0x4ec   : > { %v3270_v2 = vadd.f32 %v4153_v20, %v3269_v13  ;;  %v3299_v44 = vmul.f32 %v4157_v42, %v3298_v48 }
 0x4ed   : > { %v3285_v24 = vadd.f32 %v4155_v39, %v3284_v59  ;;  %v3314_v38 = vmul.f32 %v4159_v4, %v3313_v27 }
 0x4ee   : > { %v3274_v28 = vsel %vm3273_vm14, %v4153_v20, %v3270_v2  ;;  %v3300_v1 = vadd.f32 %v4157_v42, %v3299_v44 }
 0x4ef   : > { %v3279_v63 = vsel %vm7102_vm8, %v3278_v33, %v3274_v28  ;;  %v3289_v35 = vsel %vm3288_vm0, %v4155_v39, %v3285_v24  ;;  %v3315_v3 = vadd.f32 %v4159_v4, %v3314_v38 }
 0x4f0   : > { %v3280_v41 = vmul.f32 %v3279_v63, %v7081_v52  ;;  %v3294_v15 = vsel %vm7106_vm9, %v3293_v12, %v3289_v35  ;;  %v3304_v6 = vsel %vm3303_vm2, %v4157_v42, %v3300_v1 }
 0x4f1   : > { %v3295_v37 = vmul.f32 %v3294_v15, %v7084_v40  ;;  %v3309_v49 = vsel %vm3306_vm3, %v3308_v16, %v3304_v6  ;;  %v3319_v56 = vsel %vm3318_vm4, %v4159_v4, %v3315_v3 }
 0x4f2   : > { %v3310_v34 = vmul.f32 %v3309_v49, %v7087_v55  ;;  %3326 = vst [vmem:[%s745_s22] sm:$0xff] %v3280_v41  ;;  %v3324_v21 = vsel %vm3321_vm5, %v3323_v7, %v3319_v56 }
 0x4f3   : > { %3327 = vst [vmem:[%s745_s22 + $0x8] sm:$0xff] %v3295_v37  ;;  %v3325_v43 = vmul.f32 %v3324_v21, %v7090_v58 }
 0x4f4   : > { %3328 = vst [vmem:[%s745_s22 + $0x10] sm:$0xff] %v3310_v34 }
 0x4f5   : > { %3329 = vst [vmem:[%s745_s22 + $0x18] sm:$0xff] %v3325_v43 }
 0x4f6 PF: > { %p25_p10 = scmp.ge.s32.totalorder %s4331_s28, 4   ;;  %s7898_s24 = smov %s4212_s25 }
 0x4f7   : > { %s7899_s25 = smov %s4340_s30  ;;  %s7900_s26 = smov %s4331_s28 }
 0x4f8   :  { %27 = sbr.rel (!%p25_p10) target bundleno = 7 (0x7), region = 199 }

</bundles_post_ra>
